<compile_context>
chip_gen: v5e
topology: v5e:2x2
jax: 0.10.0
libtpu: 0.0.40
codegen_flags: <defaults>
</compile_context>

<pallas_src>
import functools
import math

import jax
import jax.numpy as jnp
from jax.experimental import pallas as pl
from jax.experimental.pallas import tpu as pltpu


_VMEM_LIMIT = 32 * 1024 * 1024   # safe on v5e/v6e/v7x (well under 64 MiB physical)


# ------------------------------ tiling helpers ----------------------------- #

def _round_up(x, m):
    return ((x + m - 1) // m) * m


def _choose_tile(dim, target, align):
    """Largest divisor of `dim` <= target that is a multiple of `align`.
    Returns `dim` itself when dim <= target (full-extent block), None if no
    aligned divisor exists (caller pads instead of using a huge full block)."""
    if dim <= target:
        return dim
    t = (target // align) * align
    while t >= align:
        if dim % t == 0:
            return t
        t -= align
    return None


# ----------------------------- Pallas kernels ------------------------------ #

def _dense_kernel(x_ref, w_ref, b_ref, o_ref, acc_ref, *, activation):
    k = pl.program_id(2)

    @pl.when(k == 0)
    def _init():
        acc_ref[...] = jnp.zeros_like(acc_ref)

    acc_ref[...] += jnp.dot(x_ref[...], w_ref[...],
                            preferred_element_type=jnp.float32)

    @pl.when(k == pl.num_programs(2) - 1)
    def _finalize():
        y = acc_ref[...] + b_ref[...]
        if activation == "gelu":
            # TODO(synk): original BERT uses exact (erf) GELU; tanh approximation here.
            y = jax.nn.gelu(y, approximate=True)
        o_ref[...] = y.astype(o_ref.dtype)


def _dense_res_ln_kernel(x_ref, w_ref, b_ref, r_ref, g_ref, bb_ref, o_ref, acc_ref):
    """out = LayerNorm(x @ w + b + residual) * g + bb, with full-N tiles."""
    k = pl.program_id(1)

    @pl.when(k == 0)
    def _init():
        acc_ref[...] = jnp.zeros_like(acc_ref)

    acc_ref[...] += jnp.dot(x_ref[...], w_ref[...],
                            preferred_element_type=jnp.float32)

    @pl.when(k == pl.num_programs(1) - 1)
    def _finalize():
        y = acc_ref[...] + b_ref[...] + r_ref[...].astype(jnp.float32)
        mu = jnp.mean(y, axis=-1, keepdims=True)
        var = jnp.mean(jnp.square(y - mu), axis=-1, keepdims=True)
        o_ref[...] = ((y - mu) * jax.lax.rsqrt(var + 1e-12) * g_ref[...]
                      + bb_ref[...]).astype(o_ref.dtype)


def _layernorm_kernel(x_ref, g_ref, b_ref, o_ref):
    x = x_ref[...].astype(jnp.float32)
    mu = jnp.mean(x, axis=-1, keepdims=True)
    var = jnp.mean(jnp.square(x - mu), axis=-1, keepdims=True)
    o_ref[...] = ((x - mu) * jax.lax.rsqrt(var + 1e-12) * g_ref[...]
                  + b_ref[...]).astype(o_ref.dtype)


def _attention_kernel(q_ref, k_ref, v_ref, m_ref, o_ref, *, scale):
    # Blocks: q/k/v/o are (S, HD) bf16 tiles read straight out of the
    # (B*S, 3H) qkv buffer; mask is (1, 1, S) additive f32.
    q = q_ref[...]
    k = k_ref[...]
    v = v_ref[...]
    s = jax.lax.dot_general(q, k, (((1,), (1,)), ((), ())),
                            preferred_element_type=jnp.float32) * scale    # (S, S)
    s = s + m_ref[0]                                                       # (1, S) bcast
    m = jnp.max(s, axis=-1, keepdims=True)
    e = jnp.exp(s - m)
    denom = jnp.sum(e, axis=-1, keepdims=True)
    p = (e * pl.reciprocal(denom, approx=True)).astype(v.dtype)
    o_ref[...] = jnp.dot(p, v, preferred_element_type=jnp.float32).astype(o_ref.dtype)


def _gather_clf_kernel(idx_ref, emb_ref, w_ref, b_ref, o_ref, *, L):
    # idx_ref: SMEM (B, L) int32 (scalar prefetch); emb_ref: (1, S, H) bf16;
    # w_ref: (H, 1) f32; b_ref: (1, 1) f32; o_ref: (1, 1, L) f32
    b = pl.program_id(0)
    S = emb_ref.shape[1]
    emb = emb_ref[0]                                                 # (S, H)
    scores = jnp.dot(emb, w_ref[...].astype(emb.dtype),
                     preferred_element_type=jnp.float32)             # (S, 1)
    row = jax.lax.broadcasted_iota(jnp.int32, (S, 1), 0)
    lane = jax.lax.broadcasted_iota(jnp.int32, (1, L), 1)
    out = jnp.zeros((1, L), jnp.float32)
    for l in range(L):                                               # L static & tiny
        val = jnp.sum(jnp.where(row == idx_ref[b, l], scores, 0.0))
        out = out + jnp.where(lane == l, val, 0.0)
    o_ref[...] = (out + b_ref[...])[None]


# --------------------------- Pallas call wrappers --------------------------- #

def _pallas_dense(x, w, b, activation=None, out_dtype=jnp.bfloat16):
    M, K = x.shape
    N = w.shape[1]
    tm = _choose_tile(M, 512, 8)
    tk = _choose_tile(K, 512, 256) or _choose_tile(K, 512, 128)
    tn = _choose_tile(N, 512, 256) or _choose_tile(N, 512, 128)
    # Pad non-tileable dims (e.g. real vocab sizes) instead of using a full-N
    # block that would blow VMEM (v7x: 64 MiB physical).
    pad_m = 0 if tm else (_round_up(M, 512) - M)
    pad_k = 0 if tk else (_round_up(K, 512) - K)
    pad_n = 0 if tn else (_round_up(N, 512) - N)
    tm, tk, tn = tm or 512, tk or 512, tn or 512
    if pad_m or pad_k:
        x = jnp.pad(x, ((0, pad_m), (0, pad_k)))
    if pad_k or pad_n:
        w = jnp.pad(w, ((0, pad_k), (0, pad_n)))
    if pad_n:
        b = jnp.pad(b, ((0, pad_n),))
    Mp, Kp, Np = M + pad_m, K + pad_k, N + pad_n

    kernel = functools.partial(_dense_kernel, activation=activation)
    out = pl.pallas_call(
        kernel,
        out_shape=jax.ShapeDtypeStruct((Mp, Np), out_dtype),
        grid=(Mp // tm, Np // tn, Kp // tk),
        in_specs=[pl.BlockSpec((tm, tk), lambda i, j, k: (i, k)),
                  pl.BlockSpec((tk, tn), lambda i, j, k: (k, j)),
                  pl.BlockSpec((1, tn), lambda i, j, k: (0, j))],
        out_specs=pl.BlockSpec((tm, tn), lambda i, j, k: (i, j)),
        scratch_shapes=[pltpu.VMEM((tm, tn), jnp.float32)],
        compiler_params=pltpu.CompilerParams(
            dimension_semantics=("parallel", "parallel", "arbitrary"),
            vmem_limit_bytes=_VMEM_LIMIT),
    )(x, w, b.reshape(1, Np).astype(jnp.float32))
    if pad_m or pad_n:
        out = out[:M, :N]
    return out


def _pallas_dense_res_ln(x, w, b, residual, gamma, beta, out_dtype=jnp.bfloat16):
    """Dense + bias + residual + LayerNorm fused (N tile = full hidden)."""
    M, K = x.shape
    N = w.shape[1]
    tm = _choose_tile(M, 512, 8) or M
    tk = _choose_tile(K, 512, 256) or _choose_tile(K, 512, 128) or K
    return pl.pallas_call(
        _dense_res_ln_kernel,
        out_shape=jax.ShapeDtypeStruct((M, N), out_dtype),
        grid=(M // tm, K // tk),
        in_specs=[pl.BlockSpec((tm, tk), lambda i, k: (i, k)),
                  pl.BlockSpec((tk, N), lambda i, k: (k, 0)),
                  pl.BlockSpec((1, N), lambda i, k: (0, 0)),
                  pl.BlockSpec((tm, N), lambda i, k: (i, 0)),
                  pl.BlockSpec((1, N), lambda i, k: (0, 0)),
                  pl.BlockSpec((1, N), lambda i, k: (0, 0))],
        out_specs=pl.BlockSpec((tm, N), lambda i, k: (i, 0)),
        scratch_shapes=[pltpu.VMEM((tm, N), jnp.float32)],
        compiler_params=pltpu.CompilerParams(
            dimension_semantics=("parallel", "arbitrary"),
            vmem_limit_bytes=_VMEM_LIMIT),
    )(x, w, b.reshape(1, N).astype(jnp.float32), residual,
      gamma.reshape(1, N).astype(jnp.float32),
      beta.reshape(1, N).astype(jnp.float32))


def _pallas_layernorm(x, g, b, out_dtype=jnp.bfloat16):
    M, H = x.shape
    tm = _choose_tile(M, 1024, 8) or M
    return pl.pallas_call(
        _layernorm_kernel,
        out_shape=jax.ShapeDtypeStruct((M, H), out_dtype),
        grid=(M // tm,),
        in_specs=[pl.BlockSpec((tm, H), lambda i: (i, 0)),
                  pl.BlockSpec((1, H), lambda i: (0, 0)),
                  pl.BlockSpec((1, H), lambda i: (0, 0))],
        out_specs=pl.BlockSpec((tm, H), lambda i: (i, 0)),
        compiler_params=pltpu.CompilerParams(
            dimension_semantics=("parallel",)),
    )(x, g.reshape(1, H), b.reshape(1, H))


def _pallas_attention(qkv, add_mask, *, B, S, NH, HD):
    """qkv: (B*S, 3H) bf16 (Q|K|V column blocks); add_mask: (B, 1, S) f32.
    Output: context in merged-heads layout (B*S, H) bf16."""
    H = NH * HD
    assert HD % 128 == 0, "head_dim must be a multiple of 128 (see TODO above)"
    kernel = functools.partial(_attention_kernel, scale=1.0 / math.sqrt(HD))
    return pl.pallas_call(
        kernel,
        out_shape=jax.ShapeDtypeStruct((B * S, H), jnp.bfloat16),
        grid=(B, NH),
        in_specs=[pl.BlockSpec((S, HD), lambda b, h: (b, h)),            # Q tile
                  pl.BlockSpec((S, HD), lambda b, h: (b, NH + h)),       # K tile
                  pl.BlockSpec((S, HD), lambda b, h: (b, 2 * NH + h)),   # V tile
                  pl.BlockSpec((1, 1, S), lambda b, h: (b, 0, 0))],      # mask (per batch)
        out_specs=pl.BlockSpec((S, HD), lambda b, h: (b, h)),
        compiler_params=pltpu.CompilerParams(
            dimension_semantics=("parallel", "parallel"),
            vmem_limit_bytes=_VMEM_LIMIT),
    )(qkv, qkv, qkv, add_mask)


def _pallas_gather_clf(label_indexs, token_embeddings, clf_w, clf_b):
    B, S, H = token_embeddings.shape
    L = label_indexs.shape[1]
    kernel = functools.partial(_gather_clf_kernel, L=L)
    out = pl.pallas_call(
        kernel,
        out_shape=jax.ShapeDtypeStruct((B, 1, L), jnp.float32),
        grid_spec=pltpu.PrefetchScalarGridSpec(
            num_scalar_prefetch=1,
            grid=(B,),
            in_specs=[pl.BlockSpec((1, S, H), lambda b, idx: (b, 0, 0)),
                      pl.BlockSpec((H, 1), lambda b, idx: (0, 0)),
                      pl.BlockSpec((1, 1), lambda b, idx: (0, 0))],
            out_specs=pl.BlockSpec((1, 1, L), lambda b, idx: (b, 0, 0))),
        compiler_params=pltpu.CompilerParams(
            dimension_semantics=("arbitrary",)),
    )(label_indexs.astype(jnp.int32), token_embeddings,
      clf_w.astype(jnp.float32), clf_b.reshape(1, 1).astype(jnp.float32))
    return out.reshape(B, L)


# ------------------------------ Model params -------------------------------- #

def init_params(key, *, vocab, hidden, inter, layers, max_pos, type_vocab):
    std = 0.02
    keys = jax.random.split(key, 5 + layers)
    w_dt = jnp.bfloat16        # matmul weights stored bf16 (f32 MXU accumulation)

    def nrm(k, shape, dtype=jnp.float32):
        return (std * jax.random.normal(k, shape, jnp.float32)).astype(dtype)

    def zeros(shape):
        return jnp.zeros(shape, jnp.float32)

    def ones(shape):
        return jnp.ones(shape, jnp.float32)

    params = {
        "word_emb": nrm(keys[0], (vocab, hidden)),
        "pos_emb": nrm(keys[1], (max_pos, hidden)),
        "type_emb": nrm(keys[2], (type_vocab, hidden)),
        "emb_ln_g": ones((hidden,)),
        "emb_ln_b": zeros((hidden,)),
        "clf_w": nrm(keys[3], (hidden, 1)),     # loss_type in ['bce','mcc'] -> out=1
        "clf_b": zeros((1,)),
        # For production vocab sizes, pad the vocab dim to a multiple of 256 here
        # (the dense wrapper otherwise pads per call).
        "mlm_w": nrm(keys[4], (hidden, vocab), w_dt),   # mlm_clf: Linear(hidden, vocab)
        "mlm_b": zeros((vocab,)),
        "layers": [],
    }
    for li in range(layers):
        lk = jax.random.split(keys[5 + li], 6)
        qkv_w = jnp.concatenate(
            [nrm(lk[0], (hidden, hidden)),
             nrm(lk[1], (hidden, hidden)),
             nrm(lk[2], (hidden, hidden))], axis=1).astype(w_dt)   # fused (H, 3H)
        params["layers"].append({
            "qkv_w": qkv_w, "qkv_b": zeros((3 * hidden,)),
            "o_w": nrm(lk[3], (hidden, hidden), w_dt), "o_b": zeros((hidden,)),
            "ln1_g": ones((hidden,)), "ln1_b": zeros((hidden,)),
            "i_w": nrm(lk[4], (hidden, inter), w_dt), "i_b": zeros((inter,)),
            "f_w": nrm(lk[5], (inter, hidden), w_dt), "f_b": zeros((hidden,)),
            "ln2_g": ones((hidden,)), "ln2_b": zeros((hidden,)),
        })
    return params


# ------------------------------ Model forward -------------------------------- #

def label_mask_model_forward(params, input_ids, attention_mask, token_type_ids,
                             label_indexs, *, num_heads):
    B, S = input_ids.shape
    H = params["word_emb"].shape[1]
    NH = num_heads
    HD = H // NH

    # --- BERT embeddings (table lookups are XLA glue; LayerNorm is a Pallas kernel)
    we = jnp.take(params["word_emb"], input_ids, axis=0)          # (B, S, H) f32
    pe = params["pos_emb"][:S][None, :, :]                        # (1, S, H)
    te = jnp.take(params["type_emb"], token_type_ids, axis=0)     # (B, S, H)
    x = (we + pe + te).reshape(B * S, H)
    x = _pallas_layernorm(x, params["emb_ln_g"], params["emb_ln_b"])   # (B*S, H) bf16
    # TODO(synk): BERT/model dropout layers (p=0.1) are identity in eval mode; omitted.

    add_mask = ((1.0 - attention_mask.astype(jnp.float32)) * -10000.0)[:, None, :]  # (B,1,S)

    # --- BERT encoder layers
    for lp in params["layers"]:
        qkv = _pallas_dense(x, lp["qkv_w"], lp["qkv_b"])           # (B*S, 3H) bf16
        ctx = _pallas_attention(qkv, add_mask, B=B, S=S, NH=NH, HD=HD)  # (B*S, H) bf16
        x = _pallas_dense_res_ln(ctx, lp["o_w"], lp["o_b"], x,
                                 lp["ln1_g"], lp["ln1_b"])         # attn out + res + LN
        h = _pallas_dense(x, lp["i_w"], lp["i_b"], activation="gelu")
        x = _pallas_dense_res_ln(h, lp["f_w"], lp["f_b"], x,
                                 lp["ln2_g"], lp["ln2_b"])         # FFN out + res + LN

    token_embeddings = x.reshape(B, S, H)                          # bf16

    # --- gather label positions + clf head -> logits (B, num_masked_labels)
    logits = _pallas_gather_clf(label_indexs, token_embeddings,
                                params["clf_w"], params["clf_b"])

    # --- mlm head over all tokens, reshaped to (-1, vocab)
    # (conf.num_mlm_steps_or_epochs is not None and not eval_or_pred)
    mlm_logits = _pallas_dense(x, params["mlm_w"], params["mlm_b"])    # (B*S, V) bf16

    return logits, mlm_logits


# ----------------------------------- main ------------------------------------ #

if __name__ == "__main__":
    B, S, NH, HD = 2, 16, 2, 128
    H = NH * HD                      # 256
    N_LAYERS, INTER = 2, 512
    VOCAB, MAX_POS, TYPE_VOCAB = 256, 64, 2
    L = 3  # number of masked label positions per example

    key = jax.random.PRNGKey(0)
    k_ids, k_lbl, k_par = jax.random.split(key, 3)

    input_ids = jax.random.randint(k_ids, (B, S), 0, VOCAB, dtype=jnp.int32)
    attention_mask = jnp.ones((B, S), jnp.float32)
    token_type_ids = jnp.zeros((B, S), jnp.int32)
    label_indexs = jax.random.randint(k_lbl, (B, L), 0, S, dtype=jnp.int32)

    params = init_params(k_par, vocab=VOCAB, hidden=H, inter=INTER,
                         layers=N_LAYERS, max_pos=MAX_POS,
                         type_vocab=TYPE_VOCAB)

    fwd = jax.jit(functools.partial(label_mask_model_forward, num_heads=NH))
    logits, mlm_logits = fwd(params, input_ids, attention_mask,
                             token_type_ids, label_indexs)
    jax.block_until_ready((logits, mlm_logits))

    assert logits.shape == (B, L), logits.shape
    assert mlm_logits.shape == (B * S, VOCAB), mlm_logits.shape
    assert bool(jnp.all(jnp.isfinite(logits)))
    assert bool(jnp.all(jnp.isfinite(mlm_logits.astype(jnp.float32))))
    print("KERNEL_OK")
</pallas_src>

<mosaic_0001>
module attributes {stable_mosaic.version = 11 : i64} {
  func.func @_attention_kernel(%arg0: i32, %arg1: i32, %arg2: memref<16x128xbf16, #tpu.memory_space<vmem>>, %arg3: memref<16x128xbf16, #tpu.memory_space<vmem>>, %arg4: memref<16x128xbf16, #tpu.memory_space<vmem>>, %arg5: memref<1x1x16xf32, #tpu.memory_space<vmem>>, %arg6: memref<16x128xbf16, #tpu.memory_space<vmem>>) attributes {dimension_semantics = [#tpu.dimension_semantics<parallel>, #tpu.dimension_semantics<parallel>], iteration_bounds = array<i64: 2, 2>, scalar_prefetch = 0 : i64, scratch_operands = 0 : i64, tpu.core_type = #tpu.core_type<tc>, window_params = [{transform_indices = @transform_0, window_bounds = array<i64: 16, 128>}, {transform_indices = @transform_1, window_bounds = array<i64: 16, 128>}, {transform_indices = @transform_2, window_bounds = array<i64: 16, 128>}, {transform_indices = @transform_3, window_bounds = array<i64: 1, 1, 16>}, {transform_indices = @transform_4, window_bounds = array<i64: 16, 128>}]} {
    %c0 = arith.constant 0 : index
    %c0_0 = arith.constant 0 : index
    %0 = vector.load %arg2[%c0, %c0_0] : memref<16x128xbf16, #tpu.memory_space<vmem>>, vector<16x128xbf16>
    %c0_1 = arith.constant 0 : index
    %c0_2 = arith.constant 0 : index
    %1 = vector.load %arg3[%c0_1, %c0_2] : memref<16x128xbf16, #tpu.memory_space<vmem>>, vector<16x128xbf16>
    %c0_3 = arith.constant 0 : index
    %c0_4 = arith.constant 0 : index
    %2 = vector.load %arg4[%c0_3, %c0_4] : memref<16x128xbf16, #tpu.memory_space<vmem>>, vector<16x128xbf16>
    %cst = arith.constant dense<0.000000e+00> : vector<16x16xf32>
    %3 = tpu.matmul %0, %1, %cst {dimension_numbers = #tpu.dot_dimension_numbers<[1], [1], [0], [0], [0, 0, 1, 0], [], []>} : vector<16x128xbf16>, vector<16x128xbf16>, vector<16x16xf32> -> vector<16x16xf32>
    %cst_5 = arith.constant 0.0883883461 : f32
    %4 = vector.broadcast %cst_5 : f32 to vector<16x16xf32>
    %5 = arith.mulf %3, %4 : vector<16x16xf32>
    %c0_6 = arith.constant 0 : index
    %c0_7 = arith.constant 0 : index
    %c0_8 = arith.constant 0 : index
    %6 = vector.load %arg5[%c0_6, %c0_7, %c0_8] : memref<1x1x16xf32, #tpu.memory_space<vmem>>, vector<1x1x16xf32>
    %7 = vector.shape_cast %6 : vector<1x1x16xf32> to vector<1x16xf32>
    %8 = vector.broadcast %7 : vector<1x16xf32> to vector<16x16xf32>
    %9 = arith.addf %5, %8 : vector<16x16xf32>
    %cst_9 = arith.constant dense<0xFF800000> : vector<16xf32>
    %10 = vector.multi_reduction <maximumf>, %9, %cst_9 [1] : vector<16x16xf32> to vector<16xf32>
    %11 = vector.shape_cast %10 : vector<16xf32> to vector<16x1xf32>
    %12 = vector.broadcast %11 : vector<16x1xf32> to vector<16x16xf32>
    %13 = arith.subf %9, %12 : vector<16x16xf32>
    %14 = math.exp %13 : vector<16x16xf32>
    %cst_10 = arith.constant dense<0.000000e+00> : vector<16xf32>
    %15 = vector.multi_reduction <add>, %14, %cst_10 [1] : vector<16x16xf32> to vector<16xf32>
    %16 = vector.shape_cast %15 : vector<16xf32> to vector<16x1xf32>
    %17 = tpu.reciprocal %16 {approx = true} : vector<16x1xf32> -> vector<16x1xf32>
    %18 = vector.broadcast %17 : vector<16x1xf32> to vector<16x16xf32>
    %19 = arith.mulf %14, %18 : vector<16x16xf32>
    %20 = arith.truncf %19 : vector<16x16xf32> to vector<16x16xbf16>
    %cst_11 = arith.constant dense<0.000000e+00> : vector<16x128xf32>
    %21 = tpu.matmul %20, %2, %cst_11 {dimension_numbers = #tpu.dot_dimension_numbers<[1], [0], [0], [1], [0, 0, 1, 1], [], []>} : vector<16x16xbf16>, vector<16x128xbf16>, vector<16x128xf32> -> vector<16x128xf32>
    %22 = arith.truncf %21 : vector<16x128xf32> to vector<16x128xbf16>
    %c0_12 = arith.constant 0 : index
    %c0_13 = arith.constant 0 : index
    %23 = vector.load %arg6[%c0_12, %c0_13] : memref<16x128xbf16, #tpu.memory_space<vmem>>, vector<16x128xbf16>
    tpu.vector_store %arg6[%c0_12, %c0_13], %22 {strides = array<i32>} : memref<16x128xbf16, #tpu.memory_space<vmem>>, vector<16x128xbf16>,
    return
  }
  func.func @transform_0(%arg0: i32, %arg1: i32) -> (i32, i32) {
    %c0_i32 = arith.constant 0 : i32
    return %arg0, %arg1 : i32, i32
  }
  func.func @transform_1(%arg0: i32, %arg1: i32) -> (i32, i32) {
    %c2_i32 = arith.constant 2 : i32
    %0 = arith.addi %c2_i32, %arg1 : i32
    %c0_i32 = arith.constant 0 : i32
    return %arg0, %0 : i32, i32
  }
  func.func @transform_2(%arg0: i32, %arg1: i32) -> (i32, i32) {
    %c4_i32 = arith.constant 4 : i32
    %0 = arith.addi %c4_i32, %arg1 : i32
    %c0_i32 = arith.constant 0 : i32
    return %arg0, %0 : i32, i32
  }
  func.func @transform_3(%arg0: i32, %arg1: i32) -> (i32, i32, i32) {
    %c0_i32 = arith.constant 0 : i32
    %c0_i32_0 = arith.constant 0 : i32
    %c0_i32_1 = arith.constant 0 : i32
    return %arg0, %c0_i32, %c0_i32_0 : i32, i32, i32
  }
  func.func @transform_4(%arg0: i32, %arg1: i32) -> (i32, i32) {
    %c0_i32 = arith.constant 0 : i32
    return %arg0, %arg1 : i32, i32
  }
}

module attributes {stable_mosaic.version = 11 : i64} {
  func.func @_layernorm_kernel(%arg0: i32, %arg1: memref<32x256xf32, #tpu.memory_space<vmem>>, %arg2: memref<1x256xf32, #tpu.memory_space<vmem>>, %arg3: memref<1x256xf32, #tpu.memory_space<vmem>>, %arg4: memref<32x256xbf16, #tpu.memory_space<vmem>>) attributes {dimension_semantics = [#tpu.dimension_semantics<parallel>], iteration_bounds = array<i64: 1>, scalar_prefetch = 0 : i64, scratch_operands = 0 : i64, tpu.core_type = #tpu.core_type<tc>, window_params = [{transform_indices = @transform_0, window_bounds = array<i64: 32, 256>}, {pipeline_mode = #tpu.pipeline_mode<synchronous>, transform_indices = @transform_1, window_bounds = array<i64: 1, 256>}, {pipeline_mode = #tpu.pipeline_mode<synchronous>, transform_indices = @transform_2, window_bounds = array<i64: 1, 256>}, {transform_indices = @transform_3, window_bounds = array<i64: 32, 256>}]} {
    %c0 = arith.constant 0 : index
    %c0_0 = arith.constant 0 : index
    %0 = vector.load %arg1[%c0, %c0_0] : memref<32x256xf32, #tpu.memory_space<vmem>>, vector<32x256xf32>
    %cst = arith.constant dense<0.000000e+00> : vector<32xf32>
    %1 = vector.multi_reduction <add>, %0, %cst [1] : vector<32x256xf32> to vector<32xf32>
    %2 = vector.shape_cast %1 : vector<32xf32> to vector<32x1xf32>
    %cst_1 = arith.constant 2.560000e+02 : f32
    %3 = vector.broadcast %cst_1 : f32 to vector<32x1xf32>
    %4 = arith.divf %2, %3 : vector<32x1xf32>
    %5 = vector.broadcast %4 : vector<32x1xf32> to vector<32x256xf32>
    %6 = arith.subf %0, %5 : vector<32x256xf32>
    %7 = arith.mulf %6, %6 : vector<32x256xf32>
    %cst_2 = arith.constant dense<0.000000e+00> : vector<32xf32>
    %8 = vector.multi_reduction <add>, %7, %cst_2 [1] : vector<32x256xf32> to vector<32xf32>
    %9 = vector.shape_cast %8 : vector<32xf32> to vector<32x1xf32>
    %cst_3 = arith.constant 2.560000e+02 : f32
    %10 = vector.broadcast %cst_3 : f32 to vector<32x1xf32>
    %11 = arith.divf %9, %10 : vector<32x1xf32>
    %12 = vector.broadcast %4 : vector<32x1xf32> to vector<32x256xf32>
    %13 = arith.subf %0, %12 : vector<32x256xf32>
    %cst_4 = arith.constant 9.99999996E-13 : f32
    %14 = vector.broadcast %cst_4 : f32 to vector<32x1xf32>
    %15 = arith.addf %11, %14 : vector<32x1xf32>
    %16 = math.rsqrt %15 : vector<32x1xf32>
    %17 = vector.broadcast %16 : vector<32x1xf32> to vector<32x256xf32>
    %18 = arith.mulf %13, %17 : vector<32x256xf32>
    %c0_5 = arith.constant 0 : index
    %c0_6 = arith.constant 0 : index
    %19 = vector.load %arg2[%c0_5, %c0_6] : memref<1x256xf32, #tpu.memory_space<vmem>>, vector<1x256xf32>
    %20 = vector.broadcast %19 : vector<1x256xf32> to vector<32x256xf32>
    %21 = arith.mulf %18, %20 : vector<32x256xf32>
    %c0_7 = arith.constant 0 : index
    %c0_8 = arith.constant 0 : index
    %22 = vector.load %arg3[%c0_7, %c0_8] : memref<1x256xf32, #tpu.memory_space<vmem>>, vector<1x256xf32>
    %23 = vector.broadcast %22 : vector<1x256xf32> to vector<32x256xf32>
    %24 = arith.addf %21, %23 : vector<32x256xf32>
    %25 = arith.truncf %24 : vector<32x256xf32> to vector<32x256xbf16>
    %c0_9 = arith.constant 0 : index
    %c0_10 = arith.constant 0 : index
    %26 = vector.load %arg4[%c0_9, %c0_10] : memref<32x256xbf16, #tpu.memory_space<vmem>>, vector<32x256xbf16>
    tpu.vector_store %arg4[%c0_9, %c0_10], %25 {strides = array<i32>} : memref<32x256xbf16, #tpu.memory_space<vmem>>, vector<32x256xbf16>,
    return
  }
  func.func @transform_0(%arg0: i32) -> (i32, i32) {
    %c0_i32 = arith.constant 0 : i32
    %c0_i32_0 = arith.constant 0 : i32
    return %arg0, %c0_i32 : i32, i32
  }
  func.func @transform_1(%arg0: i32) -> (i32, i32) {
    %c0_i32 = arith.constant 0 : i32
    %c0_i32_0 = arith.constant 0 : i32
    %c0_i32_1 = arith.constant 0 : i32
    return %c0_i32, %c0_i32_0 : i32, i32
  }
  func.func @transform_2(%arg0: i32) -> (i32, i32) {
    %c0_i32 = arith.constant 0 : i32
    %c0_i32_0 = arith.constant 0 : i32
    %c0_i32_1 = arith.constant 0 : i32
    return %c0_i32, %c0_i32_0 : i32, i32
  }
  func.func @transform_3(%arg0: i32) -> (i32, i32) {
    %c0_i32 = arith.constant 0 : i32
    %c0_i32_0 = arith.constant 0 : i32
    return %arg0, %c0_i32 : i32, i32
  }
}

module attributes {stable_mosaic.version = 11 : i64} {
  func.func @_dense_kernel(%arg0: i32, %arg1: i32, %arg2: i32, %arg3: memref<32x256xbf16, #tpu.memory_space<vmem>>, %arg4: memref<256x256xbf16, #tpu.memory_space<vmem>>, %arg5: memref<1x256xf32, #tpu.memory_space<vmem>>, %arg6: memref<32x256xbf16, #tpu.memory_space<vmem>>, %arg7: memref<32x256xf32, #tpu.memory_space<vmem>>) attributes {dimension_semantics = [#tpu.dimension_semantics<parallel>, #tpu.dimension_semantics<parallel>, #tpu.dimension_semantics<arbitrary>], iteration_bounds = array<i64: 1, 3, 1>, scalar_prefetch = 0 : i64, scratch_operands = 1 : i64, tpu.core_type = #tpu.core_type<tc>, window_params = [{transform_indices = @transform_0, window_bounds = array<i64: 32, 256>}, {transform_indices = @transform_1, window_bounds = array<i64: 256, 256>}, {transform_indices = @transform_2, window_bounds = array<i64: 1, 256>}, {transform_indices = @transform_3, window_bounds = array<i64: 32, 256>}]} {
    %c0_i32 = arith.constant 0 : i32
    %0 = arith.cmpi eq, %arg2, %c0_i32 : i32
    %1 = arith.extui %0 : i1 to i32
    %c0_i32_0 = arith.constant 0 : i32
    %2 = arith.cmpi ne, %1, %c0_i32_0 : i32
    scf.if %2 {
      %cst_10 = arith.constant 0.000000e+00 : f32
      %12 = vector.broadcast %cst_10 : f32 to vector<32x256xf32>
      %c0_11 = arith.constant 0 : index
      %c0_12 = arith.constant 0 : index
      %13 = vector.load %arg7[%c0_11, %c0_12] : memref<32x256xf32, #tpu.memory_space<vmem>>, vector<32x256xf32>
      tpu.vector_store %arg7[%c0_11, %c0_12], %12 {strides = array<i32>} : memref<32x256xf32, #tpu.memory_space<vmem>>, vector<32x256xf32>,
    } else {
    }
    %c0 = arith.constant 0 : index
    %c0_1 = arith.constant 0 : index
    %3 = vector.load %arg7[%c0, %c0_1] : memref<32x256xf32, #tpu.memory_space<vmem>>, vector<32x256xf32>
    %c0_2 = arith.constant 0 : index
    %c0_3 = arith.constant 0 : index
    %4 = vector.load %arg3[%c0_2, %c0_3] : memref<32x256xbf16, #tpu.memory_space<vmem>>, vector<32x256xbf16>
    %c0_4 = arith.constant 0 : index
    %c0_5 = arith.constant 0 : index
    %5 = vector.load %arg4[%c0_4, %c0_5] : memref<256x256xbf16, #tpu.memory_space<vmem>>, vector<256x256xbf16>
    %cst = arith.constant dense<0.000000e+00> : vector<32x256xf32>
    %6 = tpu.matmul %4, %5, %cst {dimension_numbers = #tpu.dot_dimension_numbers<[1], [0], [0], [1], [0, 0, 1, 1], [], []>} : vector<32x256xbf16>, vector<256x256xbf16>, vector<32x256xf32> -> vector<32x256xf32>
    %7 = arith.addf %3, %6 : vector<32x256xf32>
    %c0_6 = arith.constant 0 : index
    %c0_7 = arith.constant 0 : index
    %8 = vector.load %arg7[%c0_6, %c0_7] : memref<32x256xf32, #tpu.memory_space<vmem>>, vector<32x256xf32>
    tpu.vector_store %arg7[%c0_6, %c0_7], %7 {strides = array<i32>} : memref<32x256xf32, #tpu.memory_space<vmem>>, vector<32x256xf32>,
    %c0_i32_8 = arith.constant 0 : i32
    %9 = arith.cmpi eq, %arg2, %c0_i32_8 : i32
    %10 = arith.extui %9 : i1 to i32
    %c0_i32_9 = arith.constant 0 : i32
    %11 = arith.cmpi ne, %10, %c0_i32_9 : i32
    scf.if %11 {
      %c0_10 = arith.constant 0 : index
      %c0_11 = arith.constant 0 : index
      %12 = vector.load %arg7[%c0_10, %c0_11] : memref<32x256xf32, #tpu.memory_space<vmem>>, vector<32x256xf32>
      %c0_12 = arith.constant 0 : index
      %c0_13 = arith.constant 0 : index
      %13 = vector.load %arg5[%c0_12, %c0_13] : memref<1x256xf32, #tpu.memory_space<vmem>>, vector<1x256xf32>
      %14 = vector.broadcast %13 : vector<1x256xf32> to vector<32x256xf32>
      %15 = arith.addf %12, %14 : vector<32x256xf32>
      %16 = arith.truncf %15 : vector<32x256xf32> to vector<32x256xbf16>
      %c0_14 = arith.constant 0 : index
      %c0_15 = arith.constant 0 : index
      %17 = vector.load %arg6[%c0_14, %c0_15] : memref<32x256xbf16, #tpu.memory_space<vmem>>, vector<32x256xbf16>
      tpu.vector_store %arg6[%c0_14, %c0_15], %16 {strides = array<i32>} : memref<32x256xbf16, #tpu.memory_space<vmem>>, vector<32x256xbf16>,
    } else {
    }
    return
  }
  func.func @transform_0(%arg0: i32, %arg1: i32, %arg2: i32) -> (i32, i32) {
    %c0_i32 = arith.constant 0 : i32
    return %arg0, %arg2 : i32, i32
  }
  func.func @transform_1(%arg0: i32, %arg1: i32, %arg2: i32) -> (i32, i32) {
    %c0_i32 = arith.constant 0 : i32
    return %arg2, %arg1 : i32, i32
  }
  func.func @transform_2(%arg0: i32, %arg1: i32, %arg2: i32) -> (i32, i32) {
    %c0_i32 = arith.constant 0 : i32
    %c0_i32_0 = arith.constant 0 : i32
    return %c0_i32, %arg1 : i32, i32
  }
  func.func @transform_3(%arg0: i32, %arg1: i32, %arg2: i32) -> (i32, i32) {
    %c0_i32 = arith.constant 0 : i32
    return %arg0, %arg1 : i32, i32
  }
}

module attributes {stable_mosaic.version = 11 : i64} {
  func.func @_dense_res_ln_kernel(%arg0: i32, %arg1: i32, %arg2: memref<32x256xbf16, #tpu.memory_space<vmem>>, %arg3: memref<256x256xbf16, #tpu.memory_space<vmem>>, %arg4: memref<1x256xf32, #tpu.memory_space<vmem>>, %arg5: memref<32x256xbf16, #tpu.memory_space<vmem>>, %arg6: memref<1x256xf32, #tpu.memory_space<vmem>>, %arg7: memref<1x256xf32, #tpu.memory_space<vmem>>, %arg8: memref<32x256xbf16, #tpu.memory_space<vmem>>, %arg9: memref<32x256xf32, #tpu.memory_space<vmem>>) attributes {dimension_semantics = [#tpu.dimension_semantics<parallel>, #tpu.dimension_semantics<arbitrary>], iteration_bounds = array<i64: 1, 1>, scalar_prefetch = 0 : i64, scratch_operands = 1 : i64, tpu.core_type = #tpu.core_type<tc>, window_params = [{transform_indices = @transform_0, window_bounds = array<i64: 32, 256>}, {transform_indices = @transform_1, window_bounds = array<i64: 256, 256>}, {pipeline_mode = #tpu.pipeline_mode<synchronous>, transform_indices = @transform_2, window_bounds = array<i64: 1, 256>}, {transform_indices = @transform_3, window_bounds = array<i64: 32, 256>}, {pipeline_mode = #tpu.pipeline_mode<synchronous>, transform_indices = @transform_4, window_bounds = array<i64: 1, 256>}, {pipeline_mode = #tpu.pipeline_mode<synchronous>, transform_indices = @transform_5, window_bounds = array<i64: 1, 256>}, {transform_indices = @transform_6, window_bounds = array<i64: 32, 256>}]} {
    %c0_i32 = arith.constant 0 : i32
    %0 = arith.cmpi eq, %arg1, %c0_i32 : i32
    %1 = arith.extui %0 : i1 to i32
    %c0_i32_0 = arith.constant 0 : i32
    %2 = arith.cmpi ne, %1, %c0_i32_0 : i32
    scf.if %2 {
      %cst_10 = arith.constant 0.000000e+00 : f32
      %12 = vector.broadcast %cst_10 : f32 to vector<32x256xf32>
      %c0_11 = arith.constant 0 : index
      %c0_12 = arith.constant 0 : index
      %13 = vector.load %arg9[%c0_11, %c0_12] : memref<32x256xf32, #tpu.memory_space<vmem>>, vector<32x256xf32>
      tpu.vector_store %arg9[%c0_11, %c0_12], %12 {strides = array<i32>} : memref<32x256xf32, #tpu.memory_space<vmem>>, vector<32x256xf32>,
    } else {
    }
    %c0 = arith.constant 0 : index
    %c0_1 = arith.constant 0 : index
    %3 = vector.load %arg9[%c0, %c0_1] : memref<32x256xf32, #tpu.memory_space<vmem>>, vector<32x256xf32>
    %c0_2 = arith.constant 0 : index
    %c0_3 = arith.constant 0 : index
    %4 = vector.load %arg2[%c0_2, %c0_3] : memref<32x256xbf16, #tpu.memory_space<vmem>>, vector<32x256xbf16>
    %c0_4 = arith.constant 0 : index
    %c0_5 = arith.constant 0 : index
    %5 = vector.load %arg3[%c0_4, %c0_5] : memref<256x256xbf16, #tpu.memory_space<vmem>>, vector<256x256xbf16>
    %cst = arith.constant dense<0.000000e+00> : vector<32x256xf32>
    %6 = tpu.matmul %4, %5, %cst {dimension_numbers = #tpu.dot_dimension_numbers<[1], [0], [0], [1], [0, 0, 1, 1], [], []>} : vector<32x256xbf16>, vector<256x256xbf16>, vector<32x256xf32> -> vector<32x256xf32>
    %7 = arith.addf %3, %6 : vector<32x256xf32>
    %c0_6 = arith.constant 0 : index
    %c0_7 = arith.constant 0 : index
    %8 = vector.load %arg9[%c0_6, %c0_7] : memref<32x256xf32, #tpu.memory_space<vmem>>, vector<32x256xf32>
    tpu.vector_store %arg9[%c0_6, %c0_7], %7 {strides = array<i32>} : memref<32x256xf32, #tpu.memory_space<vmem>>, vector<32x256xf32>,
    %c0_i32_8 = arith.constant 0 : i32
    %9 = arith.cmpi eq, %arg1, %c0_i32_8 : i32
    %10 = arith.extui %9 : i1 to i32
    %c0_i32_9 = arith.constant 0 : i32
    %11 = arith.cmpi ne, %10, %c0_i32_9 : i32
    scf.if %11 {
      %c0_10 = arith.constant 0 : index
      %c0_11 = arith.constant 0 : index
      %12 = vector.load %arg9[%c0_10, %c0_11] : memref<32x256xf32, #tpu.memory_space<vmem>>, vector<32x256xf32>
      %c0_12 = arith.constant 0 : index
      %c0_13 = arith.constant 0 : index
      %13 = vector.load %arg4[%c0_12, %c0_13] : memref<1x256xf32, #tpu.memory_space<vmem>>, vector<1x256xf32>
      %14 = vector.broadcast %13 : vector<1x256xf32> to vector<32x256xf32>
      %15 = arith.addf %12, %14 : vector<32x256xf32>
      %c0_14 = arith.constant 0 : index
      %c0_15 = arith.constant 0 : index
      %16 = vector.load %arg5[%c0_14, %c0_15] : memref<32x256xbf16, #tpu.memory_space<vmem>>, vector<32x256xbf16>
      %17 = arith.extf %16 : vector<32x256xbf16> to vector<32x256xf32>
      %18 = arith.addf %15, %17 : vector<32x256xf32>
      %cst_16 = arith.constant dense<0.000000e+00> : vector<32xf32>
      %19 = vector.multi_reduction <add>, %18, %cst_16 [1] : vector<32x256xf32> to vector<32xf32>
      %20 = vector.shape_cast %19 : vector<32xf32> to vector<32x1xf32>
      %cst_17 = arith.constant 2.560000e+02 : f32
      %21 = vector.broadcast %cst_17 : f32 to vector<32x1xf32>
      %22 = arith.divf %20, %21 : vector<32x1xf32>
      %23 = vector.broadcast %22 : vector<32x1xf32> to vector<32x256xf32>
      %24 = arith.subf %18, %23 : vector<32x256xf32>
      %25 = arith.mulf %24, %24 : vector<32x256xf32>
      %cst_18 = arith.constant dense<0.000000e+00> : vector<32xf32>
      %26 = vector.multi_reduction <add>, %25, %cst_18 [1] : vector<32x256xf32> to vector<32xf32>
      %27 = vector.shape_cast %26 : vector<32xf32> to vector<32x1xf32>
      %cst_19 = arith.constant 2.560000e+02 : f32
      %28 = vector.broadcast %cst_19 : f32 to vector<32x1xf32>
      %29 = arith.divf %27, %28 : vector<32x1xf32>
      %30 = vector.broadcast %22 : vector<32x1xf32> to vector<32x256xf32>
      %31 = arith.subf %18, %30 : vector<32x256xf32>
      %cst_20 = arith.constant 9.99999996E-13 : f32
      %32 = vector.broadcast %cst_20 : f32 to vector<32x1xf32>
      %33 = arith.addf %29, %32 : vector<32x1xf32>
      %34 = math.rsqrt %33 : vector<32x1xf32>
      %35 = vector.broadcast %34 : vector<32x1xf32> to vector<32x256xf32>
      %36 = arith.mulf %31, %35 : vector<32x256xf32>
      %c0_21 = arith.constant 0 : index
      %c0_22 = arith.constant 0 : index
      %37 = vector.load %arg6[%c0_21, %c0_22] : memref<1x256xf32, #tpu.memory_space<vmem>>, vector<1x256xf32>
      %38 = vector.broadcast %37 : vector<1x256xf32> to vector<32x256xf32>
      %39 = arith.mulf %36, %38 : vector<32x256xf32>
      %c0_23 = arith.constant 0 : index
      %c0_24 = arith.constant 0 : index
      %40 = vector.load %arg7[%c0_23, %c0_24] : memref<1x256xf32, #tpu.memory_space<vmem>>, vector<1x256xf32>
      %41 = vector.broadcast %40 : vector<1x256xf32> to vector<32x256xf32>
      %42 = arith.addf %39, %41 : vector<32x256xf32>
      %43 = arith.truncf %42 : vector<32x256xf32> to vector<32x256xbf16>
      %c0_25 = arith.constant 0 : index
      %c0_26 = arith.constant 0 : index
      %44 = vector.load %arg8[%c0_25, %c0_26] : memref<32x256xbf16, #tpu.memory_space<vmem>>, vector<32x256xbf16>
      tpu.vector_store %arg8[%c0_25, %c0_26], %43 {strides = array<i32>} : memref<32x256xbf16, #tpu.memory_space<vmem>>, vector<32x256xbf16>,
    } else {
    }
    return
  }
  func.func @transform_0(%arg0: i32, %arg1: i32) -> (i32, i32) {
    %c0_i32 = arith.constant 0 : i32
    return %arg0, %arg1 : i32, i32
  }
  func.func @transform_1(%arg0: i32, %arg1: i32) -> (i32, i32) {
    %c0_i32 = arith.constant 0 : i32
    %c0_i32_0 = arith.constant 0 : i32
    return %arg1, %c0_i32 : i32, i32
  }
  func.func @transform_2(%arg0: i32, %arg1: i32) -> (i32, i32) {
    %c0_i32 = arith.constant 0 : i32
    %c0_i32_0 = arith.constant 0 : i32
    %c0_i32_1 = arith.constant 0 : i32
    return %c0_i32, %c0_i32_0 : i32, i32
  }
  func.func @transform_3(%arg0: i32, %arg1: i32) -> (i32, i32) {
    %c0_i32 = arith.constant 0 : i32
    %c0_i32_0 = arith.constant 0 : i32
    return %arg0, %c0_i32 : i32, i32
  }
  func.func @transform_4(%arg0: i32, %arg1: i32) -> (i32, i32) {
    %c0_i32 = arith.constant 0 : i32
    %c0_i32_0 = arith.constant 0 : i32
    %c0_i32_1 = arith.constant 0 : i32
    return %c0_i32, %c0_i32_0 : i32, i32
  }
  func.func @transform_5(%arg0: i32, %arg1: i32) -> (i32, i32) {
    %c0_i32 = arith.constant 0 : i32
    %c0_i32_0 = arith.constant 0 : i32
    %c0_i32_1 = arith.constant 0 : i32
    return %c0_i32, %c0_i32_0 : i32, i32
  }
  func.func @transform_6(%arg0: i32, %arg1: i32) -> (i32, i32) {
    %c0_i32 = arith.constant 0 : i32
    %c0_i32_0 = arith.constant 0 : i32
    return %arg0, %c0_i32 : i32, i32
  }
}

module attributes {stable_mosaic.version = 11 : i64} {
  func.func @_dense_res_ln_kernel(%arg0: i32, %arg1: i32, %arg2: memref<32x512xbf16, #tpu.memory_space<vmem>>, %arg3: memref<512x256xbf16, #tpu.memory_space<vmem>>, %arg4: memref<1x256xf32, #tpu.memory_space<vmem>>, %arg5: memref<32x256xbf16, #tpu.memory_space<vmem>>, %arg6: memref<1x256xf32, #tpu.memory_space<vmem>>, %arg7: memref<1x256xf32, #tpu.memory_space<vmem>>, %arg8: memref<32x256xbf16, #tpu.memory_space<vmem>>, %arg9: memref<32x256xf32, #tpu.memory_space<vmem>>) attributes {dimension_semantics = [#tpu.dimension_semantics<parallel>, #tpu.dimension_semantics<arbitrary>], iteration_bounds = array<i64: 1, 1>, scalar_prefetch = 0 : i64, scratch_operands = 1 : i64, tpu.core_type = #tpu.core_type<tc>, window_params = [{transform_indices = @transform_0, window_bounds = array<i64: 32, 512>}, {transform_indices = @transform_1, window_bounds = array<i64: 512, 256>}, {pipeline_mode = #tpu.pipeline_mode<synchronous>, transform_indices = @transform_2, window_bounds = array<i64: 1, 256>}, {transform_indices = @transform_3, window_bounds = array<i64: 32, 256>}, {pipeline_mode = #tpu.pipeline_mode<synchronous>, transform_indices = @transform_4, window_bounds = array<i64: 1, 256>}, {pipeline_mode = #tpu.pipeline_mode<synchronous>, transform_indices = @transform_5, window_bounds = array<i64: 1, 256>}, {transform_indices = @transform_6, window_bounds = array<i64: 32, 256>}]} {
    %c0_i32 = arith.constant 0 : i32
    %0 = arith.cmpi eq, %arg1, %c0_i32 : i32
    %1 = arith.extui %0 : i1 to i32
    %c0_i32_0 = arith.constant 0 : i32
    %2 = arith.cmpi ne, %1, %c0_i32_0 : i32
    scf.if %2 {
      %cst_10 = arith.constant 0.000000e+00 : f32
      %12 = vector.broadcast %cst_10 : f32 to vector<32x256xf32>
      %c0_11 = arith.constant 0 : index
      %c0_12 = arith.constant 0 : index
      %13 = vector.load %arg9[%c0_11, %c0_12] : memref<32x256xf32, #tpu.memory_space<vmem>>, vector<32x256xf32>
      tpu.vector_store %arg9[%c0_11, %c0_12], %12 {strides = array<i32>} : memref<32x256xf32, #tpu.memory_space<vmem>>, vector<32x256xf32>,
    } else {
    }
    %c0 = arith.constant 0 : index
    %c0_1 = arith.constant 0 : index
    %3 = vector.load %arg9[%c0, %c0_1] : memref<32x256xf32, #tpu.memory_space<vmem>>, vector<32x256xf32>
    %c0_2 = arith.constant 0 : index
    %c0_3 = arith.constant 0 : index
    %4 = vector.load %arg2[%c0_2, %c0_3] : memref<32x512xbf16, #tpu.memory_space<vmem>>, vector<32x512xbf16>
    %c0_4 = arith.constant 0 : index
    %c0_5 = arith.constant 0 : index
    %5 = vector.load %arg3[%c0_4, %c0_5] : memref<512x256xbf16, #tpu.memory_space<vmem>>, vector<512x256xbf16>
    %cst = arith.constant dense<0.000000e+00> : vector<32x256xf32>
    %6 = tpu.matmul %4, %5, %cst {dimension_numbers = #tpu.dot_dimension_numbers<[1], [0], [0], [1], [0, 0, 1, 1], [], []>} : vector<32x512xbf16>, vector<512x256xbf16>, vector<32x256xf32> -> vector<32x256xf32>
    %7 = arith.addf %3, %6 : vector<32x256xf32>
    %c0_6 = arith.constant 0 : index
    %c0_7 = arith.constant 0 : index
    %8 = vector.load %arg9[%c0_6, %c0_7] : memref<32x256xf32, #tpu.memory_space<vmem>>, vector<32x256xf32>
    tpu.vector_store %arg9[%c0_6, %c0_7], %7 {strides = array<i32>} : memref<32x256xf32, #tpu.memory_space<vmem>>, vector<32x256xf32>,
    %c0_i32_8 = arith.constant 0 : i32
    %9 = arith.cmpi eq, %arg1, %c0_i32_8 : i32
    %10 = arith.extui %9 : i1 to i32
    %c0_i32_9 = arith.constant 0 : i32
    %11 = arith.cmpi ne, %10, %c0_i32_9 : i32
    scf.if %11 {
      %c0_10 = arith.constant 0 : index
      %c0_11 = arith.constant 0 : index
      %12 = vector.load %arg9[%c0_10, %c0_11] : memref<32x256xf32, #tpu.memory_space<vmem>>, vector<32x256xf32>
      %c0_12 = arith.constant 0 : index
      %c0_13 = arith.constant 0 : index
      %13 = vector.load %arg4[%c0_12, %c0_13] : memref<1x256xf32, #tpu.memory_space<vmem>>, vector<1x256xf32>
      %14 = vector.broadcast %13 : vector<1x256xf32> to vector<32x256xf32>
      %15 = arith.addf %12, %14 : vector<32x256xf32>
      %c0_14 = arith.constant 0 : index
      %c0_15 = arith.constant 0 : index
      %16 = vector.load %arg5[%c0_14, %c0_15] : memref<32x256xbf16, #tpu.memory_space<vmem>>, vector<32x256xbf16>
      %17 = arith.extf %16 : vector<32x256xbf16> to vector<32x256xf32>
      %18 = arith.addf %15, %17 : vector<32x256xf32>
      %cst_16 = arith.constant dense<0.000000e+00> : vector<32xf32>
      %19 = vector.multi_reduction <add>, %18, %cst_16 [1] : vector<32x256xf32> to vector<32xf32>
      %20 = vector.shape_cast %19 : vector<32xf32> to vector<32x1xf32>
      %cst_17 = arith.constant 2.560000e+02 : f32
      %21 = vector.broadcast %cst_17 : f32 to vector<32x1xf32>
      %22 = arith.divf %20, %21 : vector<32x1xf32>
      %23 = vector.broadcast %22 : vector<32x1xf32> to vector<32x256xf32>
      %24 = arith.subf %18, %23 : vector<32x256xf32>
      %25 = arith.mulf %24, %24 : vector<32x256xf32>
      %cst_18 = arith.constant dense<0.000000e+00> : vector<32xf32>
      %26 = vector.multi_reduction <add>, %25, %cst_18 [1] : vector<32x256xf32> to vector<32xf32>
      %27 = vector.shape_cast %26 : vector<32xf32> to vector<32x1xf32>
      %cst_19 = arith.constant 2.560000e+02 : f32
      %28 = vector.broadcast %cst_19 : f32 to vector<32x1xf32>
      %29 = arith.divf %27, %28 : vector<32x1xf32>
      %30 = vector.broadcast %22 : vector<32x1xf32> to vector<32x256xf32>
      %31 = arith.subf %18, %30 : vector<32x256xf32>
      %cst_20 = arith.constant 9.99999996E-13 : f32
      %32 = vector.broadcast %cst_20 : f32 to vector<32x1xf32>
      %33 = arith.addf %29, %32 : vector<32x1xf32>
      %34 = math.rsqrt %33 : vector<32x1xf32>
      %35 = vector.broadcast %34 : vector<32x1xf32> to vector<32x256xf32>
      %36 = arith.mulf %31, %35 : vector<32x256xf32>
      %c0_21 = arith.constant 0 : index
      %c0_22 = arith.constant 0 : index
      %37 = vector.load %arg6[%c0_21, %c0_22] : memref<1x256xf32, #tpu.memory_space<vmem>>, vector<1x256xf32>
      %38 = vector.broadcast %37 : vector<1x256xf32> to vector<32x256xf32>
      %39 = arith.mulf %36, %38 : vector<32x256xf32>
      %c0_23 = arith.constant 0 : index
      %c0_24 = arith.constant 0 : index
      %40 = vector.load %arg7[%c0_23, %c0_24] : memref<1x256xf32, #tpu.memory_space<vmem>>, vector<1x256xf32>
      %41 = vector.broadcast %40 : vector<1x256xf32> to vector<32x256xf32>
      %42 = arith.addf %39, %41 : vector<32x256xf32>
      %43 = arith.truncf %42 : vector<32x256xf32> to vector<32x256xbf16>
      %c0_25 = arith.constant 0 : index
      %c0_26 = arith.constant 0 : index
      %44 = vector.load %arg8[%c0_25, %c0_26] : memref<32x256xbf16, #tpu.memory_space<vmem>>, vector<32x256xbf16>
      tpu.vector_store %arg8[%c0_25, %c0_26], %43 {strides = array<i32>} : memref<32x256xbf16, #tpu.memory_space<vmem>>, vector<32x256xbf16>,
    } else {
    }
    return
  }
  func.func @transform_0(%arg0: i32, %arg1: i32) -> (i32, i32) {
    %c0_i32 = arith.constant 0 : i32
    return %arg0, %arg1 : i32, i32
  }
  func.func @transform_1(%arg0: i32, %arg1: i32) -> (i32, i32) {
    %c0_i32 = arith.constant 0 : i32
    %c0_i32_0 = arith.constant 0 : i32
    return %arg1, %c0_i32 : i32, i32
  }
  func.func @transform_2(%arg0: i32, %arg1: i32) -> (i32, i32) {
    %c0_i32 = arith.constant 0 : i32
    %c0_i32_0 = arith.constant 0 : i32
    %c0_i32_1 = arith.constant 0 : i32
    return %c0_i32, %c0_i32_0 : i32, i32
  }
  func.func @transform_3(%arg0: i32, %arg1: i32) -> (i32, i32) {
    %c0_i32 = arith.constant 0 : i32
    %c0_i32_0 = arith.constant 0 : i32
    return %arg0, %c0_i32 : i32, i32
  }
  func.func @transform_4(%arg0: i32, %arg1: i32) -> (i32, i32) {
    %c0_i32 = arith.constant 0 : i32
    %c0_i32_0 = arith.constant 0 : i32
    %c0_i32_1 = arith.constant 0 : i32
    return %c0_i32, %c0_i32_0 : i32, i32
  }
  func.func @transform_5(%arg0: i32, %arg1: i32) -> (i32, i32) {
    %c0_i32 = arith.constant 0 : i32
    %c0_i32_0 = arith.constant 0 : i32
    %c0_i32_1 = arith.constant 0 : i32
    return %c0_i32, %c0_i32_0 : i32, i32
  }
  func.func @transform_6(%arg0: i32, %arg1: i32) -> (i32, i32) {
    %c0_i32 = arith.constant 0 : i32
    %c0_i32_0 = arith.constant 0 : i32
    return %arg0, %c0_i32 : i32, i32
  }
}

module attributes {stable_mosaic.version = 11 : i64} {
  func.func @_dense_kernel(%arg0: i32, %arg1: i32, %arg2: i32, %arg3: memref<32x256xbf16, #tpu.memory_space<vmem>>, %arg4: memref<256x512xbf16, #tpu.memory_space<vmem>>, %arg5: memref<1x512xf32, #tpu.memory_space<vmem>>, %arg6: memref<32x512xbf16, #tpu.memory_space<vmem>>, %arg7: memref<32x512xf32, #tpu.memory_space<vmem>>) attributes {dimension_semantics = [#tpu.dimension_semantics<parallel>, #tpu.dimension_semantics<parallel>, #tpu.dimension_semantics<arbitrary>], iteration_bounds = array<i64: 1, 1, 1>, scalar_prefetch = 0 : i64, scratch_operands = 1 : i64, tpu.core_type = #tpu.core_type<tc>, window_params = [{transform_indices = @transform_0, window_bounds = array<i64: 32, 256>}, {transform_indices = @transform_1, window_bounds = array<i64: 256, 512>}, {transform_indices = @transform_2, window_bounds = array<i64: 1, 512>}, {transform_indices = @transform_3, window_bounds = array<i64: 32, 512>}]} {
    %c0_i32 = arith.constant 0 : i32
    %0 = arith.cmpi eq, %arg2, %c0_i32 : i32
    %1 = arith.extui %0 : i1 to i32
    %c0_i32_0 = arith.constant 0 : i32
    %2 = arith.cmpi ne, %1, %c0_i32_0 : i32
    scf.if %2 {
      %cst_10 = arith.constant 0.000000e+00 : f32
      %12 = vector.broadcast %cst_10 : f32 to vector<32x512xf32>
      %c0_11 = arith.constant 0 : index
      %c0_12 = arith.constant 0 : index
      %13 = vector.load %arg7[%c0_11, %c0_12] : memref<32x512xf32, #tpu.memory_space<vmem>>, vector<32x512xf32>
      tpu.vector_store %arg7[%c0_11, %c0_12], %12 {strides = array<i32>} : memref<32x512xf32, #tpu.memory_space<vmem>>, vector<32x512xf32>,
    } else {
    }
    %c0 = arith.constant 0 : index
    %c0_1 = arith.constant 0 : index
    %3 = vector.load %arg7[%c0, %c0_1] : memref<32x512xf32, #tpu.memory_space<vmem>>, vector<32x512xf32>
    %c0_2 = arith.constant 0 : index
    %c0_3 = arith.constant 0 : index
    %4 = vector.load %arg3[%c0_2, %c0_3] : memref<32x256xbf16, #tpu.memory_space<vmem>>, vector<32x256xbf16>
    %c0_4 = arith.constant 0 : index
    %c0_5 = arith.constant 0 : index
    %5 = vector.load %arg4[%c0_4, %c0_5] : memref<256x512xbf16, #tpu.memory_space<vmem>>, vector<256x512xbf16>
    %cst = arith.constant dense<0.000000e+00> : vector<32x512xf32>
    %6 = tpu.matmul %4, %5, %cst {dimension_numbers = #tpu.dot_dimension_numbers<[1], [0], [0], [1], [0, 0, 1, 1], [], []>} : vector<32x256xbf16>, vector<256x512xbf16>, vector<32x512xf32> -> vector<32x512xf32>
    %7 = arith.addf %3, %6 : vector<32x512xf32>
    %c0_6 = arith.constant 0 : index
    %c0_7 = arith.constant 0 : index
    %8 = vector.load %arg7[%c0_6, %c0_7] : memref<32x512xf32, #tpu.memory_space<vmem>>, vector<32x512xf32>
    tpu.vector_store %arg7[%c0_6, %c0_7], %7 {strides = array<i32>} : memref<32x512xf32, #tpu.memory_space<vmem>>, vector<32x512xf32>,
    %c0_i32_8 = arith.constant 0 : i32
    %9 = arith.cmpi eq, %arg2, %c0_i32_8 : i32
    %10 = arith.extui %9 : i1 to i32
    %c0_i32_9 = arith.constant 0 : i32
    %11 = arith.cmpi ne, %10, %c0_i32_9 : i32
    scf.if %11 {
      %c0_10 = arith.constant 0 : index
      %c0_11 = arith.constant 0 : index
      %12 = vector.load %arg7[%c0_10, %c0_11] : memref<32x512xf32, #tpu.memory_space<vmem>>, vector<32x512xf32>
      %c0_12 = arith.constant 0 : index
      %c0_13 = arith.constant 0 : index
      %13 = vector.load %arg5[%c0_12, %c0_13] : memref<1x512xf32, #tpu.memory_space<vmem>>, vector<1x512xf32>
      %14 = vector.broadcast %13 : vector<1x512xf32> to vector<32x512xf32>
      %15 = arith.addf %12, %14 : vector<32x512xf32>
      %16 = arith.mulf %15, %15 : vector<32x512xf32>
      %17 = arith.mulf %15, %16 : vector<32x512xf32>
      %cst_14 = arith.constant 4.471500e-02 : f32
      %18 = vector.broadcast %cst_14 : f32 to vector<32x512xf32>
      %19 = arith.mulf %18, %17 : vector<32x512xf32>
      %20 = arith.addf %15, %19 : vector<32x512xf32>
      %cst_15 = arith.constant 0.797884583 : f32
      %21 = vector.broadcast %cst_15 : f32 to vector<32x512xf32>
      %22 = arith.mulf %21, %20 : vector<32x512xf32>
      %23 = math.tanh %22 : vector<32x512xf32>
      %cst_16 = arith.constant 1.000000e+00 : f32
      %24 = vector.broadcast %cst_16 : f32 to vector<32x512xf32>
      %25 = arith.addf %24, %23 : vector<32x512xf32>
      %cst_17 = arith.constant 5.000000e-01 : f32
      %26 = vector.broadcast %cst_17 : f32 to vector<32x512xf32>
      %27 = arith.mulf %26, %25 : vector<32x512xf32>
      %28 = arith.mulf %15, %27 : vector<32x512xf32>
      %29 = arith.truncf %28 : vector<32x512xf32> to vector<32x512xbf16>
      %c0_18 = arith.constant 0 : index
      %c0_19 = arith.constant 0 : index
      %30 = vector.load %arg6[%c0_18, %c0_19] : memref<32x512xbf16, #tpu.memory_space<vmem>>, vector<32x512xbf16>
      tpu.vector_store %arg6[%c0_18, %c0_19], %29 {strides = array<i32>} : memref<32x512xbf16, #tpu.memory_space<vmem>>, vector<32x512xbf16>,
    } else {
    }
    return
  }
  func.func @transform_0(%arg0: i32, %arg1: i32, %arg2: i32) -> (i32, i32) {
    %c0_i32 = arith.constant 0 : i32
    return %arg0, %arg2 : i32, i32
  }
  func.func @transform_1(%arg0: i32, %arg1: i32, %arg2: i32) -> (i32, i32) {
    %c0_i32 = arith.constant 0 : i32
    return %arg2, %arg1 : i32, i32
  }
  func.func @transform_2(%arg0: i32, %arg1: i32, %arg2: i32) -> (i32, i32) {
    %c0_i32 = arith.constant 0 : i32
    %c0_i32_0 = arith.constant 0 : i32
    return %c0_i32, %arg1 : i32, i32
  }
  func.func @transform_3(%arg0: i32, %arg1: i32, %arg2: i32) -> (i32, i32) {
    %c0_i32 = arith.constant 0 : i32
    return %arg0, %arg1 : i32, i32
  }
}

module attributes {stable_mosaic.version = 11 : i64} {
  func.func @_dense_kernel(%arg0: i32, %arg1: i32, %arg2: i32, %arg3: memref<32x256xbf16, #tpu.memory_space<vmem>>, %arg4: memref<256x256xbf16, #tpu.memory_space<vmem>>, %arg5: memref<1x256xf32, #tpu.memory_space<vmem>>, %arg6: memref<32x256xbf16, #tpu.memory_space<vmem>>, %arg7: memref<32x256xf32, #tpu.memory_space<vmem>>) attributes {dimension_semantics = [#tpu.dimension_semantics<parallel>, #tpu.dimension_semantics<parallel>, #tpu.dimension_semantics<arbitrary>], iteration_bounds = array<i64: 1, 3, 1>, scalar_prefetch = 0 : i64, scratch_operands = 1 : i64, tpu.core_type = #tpu.core_type<tc>, window_params = [{transform_indices = @transform_0, window_bounds = array<i64: 32, 256>}, {transform_indices = @transform_1, window_bounds = array<i64: 256, 256>}, {transform_indices = @transform_2, window_bounds = array<i64: 1, 256>}, {transform_indices = @transform_3, window_bounds = array<i64: 32, 256>}]} {
    %c0_i32 = arith.constant 0 : i32
    %0 = arith.cmpi eq, %arg2, %c0_i32 : i32
    %1 = arith.extui %0 : i1 to i32
    %c0_i32_0 = arith.constant 0 : i32
    %2 = arith.cmpi ne, %1, %c0_i32_0 : i32
    scf.if %2 {
      %cst_10 = arith.constant 0.000000e+00 : f32
      %12 = vector.broadcast %cst_10 : f32 to vector<32x256xf32>
      %c0_11 = arith.constant 0 : index
      %c0_12 = arith.constant 0 : index
      %13 = vector.load %arg7[%c0_11, %c0_12] : memref<32x256xf32, #tpu.memory_space<vmem>>, vector<32x256xf32>
      tpu.vector_store %arg7[%c0_11, %c0_12], %12 {strides = array<i32>} : memref<32x256xf32, #tpu.memory_space<vmem>>, vector<32x256xf32>,
    } else {
    }
    %c0 = arith.constant 0 : index
    %c0_1 = arith.constant 0 : index
    %3 = vector.load %arg7[%c0, %c0_1] : memref<32x256xf32, #tpu.memory_space<vmem>>, vector<32x256xf32>
    %c0_2 = arith.constant 0 : index
    %c0_3 = arith.constant 0 : index
    %4 = vector.load %arg3[%c0_2, %c0_3] : memref<32x256xbf16, #tpu.memory_space<vmem>>, vector<32x256xbf16>
    %c0_4 = arith.constant 0 : index
    %c0_5 = arith.constant 0 : index
    %5 = vector.load %arg4[%c0_4, %c0_5] : memref<256x256xbf16, #tpu.memory_space<vmem>>, vector<256x256xbf16>
    %cst = arith.constant dense<0.000000e+00> : vector<32x256xf32>
    %6 = tpu.matmul %4, %5, %cst {dimension_numbers = #tpu.dot_dimension_numbers<[1], [0], [0], [1], [0, 0, 1, 1], [], []>} : vector<32x256xbf16>, vector<256x256xbf16>, vector<32x256xf32> -> vector<32x256xf32>
    %7 = arith.addf %3, %6 : vector<32x256xf32>
    %c0_6 = arith.constant 0 : index
    %c0_7 = arith.constant 0 : index
    %8 = vector.load %arg7[%c0_6, %c0_7] : memref<32x256xf32, #tpu.memory_space<vmem>>, vector<32x256xf32>
    tpu.vector_store %arg7[%c0_6, %c0_7], %7 {strides = array<i32>} : memref<32x256xf32, #tpu.memory_space<vmem>>, vector<32x256xf32>,
    %c0_i32_8 = arith.constant 0 : i32
    %9 = arith.cmpi eq, %arg2, %c0_i32_8 : i32
    %10 = arith.extui %9 : i1 to i32
    %c0_i32_9 = arith.constant 0 : i32
    %11 = arith.cmpi ne, %10, %c0_i32_9 : i32
    scf.if %11 {
      %c0_10 = arith.constant 0 : index
      %c0_11 = arith.constant 0 : index
      %12 = vector.load %arg7[%c0_10, %c0_11] : memref<32x256xf32, #tpu.memory_space<vmem>>, vector<32x256xf32>
      %c0_12 = arith.constant 0 : index
      %c0_13 = arith.constant 0 : index
      %13 = vector.load %arg5[%c0_12, %c0_13] : memref<1x256xf32, #tpu.memory_space<vmem>>, vector<1x256xf32>
      %14 = vector.broadcast %13 : vector<1x256xf32> to vector<32x256xf32>
      %15 = arith.addf %12, %14 : vector<32x256xf32>
      %16 = arith.truncf %15 : vector<32x256xf32> to vector<32x256xbf16>
      %c0_14 = arith.constant 0 : index
      %c0_15 = arith.constant 0 : index
      %17 = vector.load %arg6[%c0_14, %c0_15] : memref<32x256xbf16, #tpu.memory_space<vmem>>, vector<32x256xbf16>
      tpu.vector_store %arg6[%c0_14, %c0_15], %16 {strides = array<i32>} : memref<32x256xbf16, #tpu.memory_space<vmem>>, vector<32x256xbf16>,
    } else {
    }
    return
  }
  func.func @transform_0(%arg0: i32, %arg1: i32, %arg2: i32) -> (i32, i32) {
    %c0_i32 = arith.constant 0 : i32
    return %arg0, %arg2 : i32, i32
  }
  func.func @transform_1(%arg0: i32, %arg1: i32, %arg2: i32) -> (i32, i32) {
    %c0_i32 = arith.constant 0 : i32
    return %arg2, %arg1 : i32, i32
  }
  func.func @transform_2(%arg0: i32, %arg1: i32, %arg2: i32) -> (i32, i32) {
    %c0_i32 = arith.constant 0 : i32
    %c0_i32_0 = arith.constant 0 : i32
    return %c0_i32, %arg1 : i32, i32
  }
  func.func @transform_3(%arg0: i32, %arg1: i32, %arg2: i32) -> (i32, i32) {
    %c0_i32 = arith.constant 0 : i32
    return %arg0, %arg1 : i32, i32
  }
}

module attributes {stable_mosaic.version = 11 : i64} {
  func.func @_dense_kernel(%arg0: i32, %arg1: i32, %arg2: i32, %arg3: memref<32x256xbf16, #tpu.memory_space<vmem>>, %arg4: memref<256x512xbf16, #tpu.memory_space<vmem>>, %arg5: memref<1x512xf32, #tpu.memory_space<vmem>>, %arg6: memref<32x512xbf16, #tpu.memory_space<vmem>>, %arg7: memref<32x512xf32, #tpu.memory_space<vmem>>) attributes {dimension_semantics = [#tpu.dimension_semantics<parallel>, #tpu.dimension_semantics<parallel>, #tpu.dimension_semantics<arbitrary>], iteration_bounds = array<i64: 1, 1, 1>, scalar_prefetch = 0 : i64, scratch_operands = 1 : i64, tpu.core_type = #tpu.core_type<tc>, window_params = [{transform_indices = @transform_0, window_bounds = array<i64: 32, 256>}, {transform_indices = @transform_1, window_bounds = array<i64: 256, 512>}, {transform_indices = @transform_2, window_bounds = array<i64: 1, 512>}, {transform_indices = @transform_3, window_bounds = array<i64: 32, 512>}]} {
    %c0_i32 = arith.constant 0 : i32
    %0 = arith.cmpi eq, %arg2, %c0_i32 : i32
    %1 = arith.extui %0 : i1 to i32
    %c0_i32_0 = arith.constant 0 : i32
    %2 = arith.cmpi ne, %1, %c0_i32_0 : i32
    scf.if %2 {
      %cst_10 = arith.constant 0.000000e+00 : f32
      %12 = vector.broadcast %cst_10 : f32 to vector<32x512xf32>
      %c0_11 = arith.constant 0 : index
      %c0_12 = arith.constant 0 : index
      %13 = vector.load %arg7[%c0_11, %c0_12] : memref<32x512xf32, #tpu.memory_space<vmem>>, vector<32x512xf32>
      tpu.vector_store %arg7[%c0_11, %c0_12], %12 {strides = array<i32>} : memref<32x512xf32, #tpu.memory_space<vmem>>, vector<32x512xf32>,
    } else {
    }
    %c0 = arith.constant 0 : index
    %c0_1 = arith.constant 0 : index
    %3 = vector.load %arg7[%c0, %c0_1] : memref<32x512xf32, #tpu.memory_space<vmem>>, vector<32x512xf32>
    %c0_2 = arith.constant 0 : index
    %c0_3 = arith.constant 0 : index
    %4 = vector.load %arg3[%c0_2, %c0_3] : memref<32x256xbf16, #tpu.memory_space<vmem>>, vector<32x256xbf16>
    %c0_4 = arith.constant 0 : index
    %c0_5 = arith.constant 0 : index
    %5 = vector.load %arg4[%c0_4, %c0_5] : memref<256x512xbf16, #tpu.memory_space<vmem>>, vector<256x512xbf16>
    %cst = arith.constant dense<0.000000e+00> : vector<32x512xf32>
    %6 = tpu.matmul %4, %5, %cst {dimension_numbers = #tpu.dot_dimension_numbers<[1], [0], [0], [1], [0, 0, 1, 1], [], []>} : vector<32x256xbf16>, vector<256x512xbf16>, vector<32x512xf32> -> vector<32x512xf32>
    %7 = arith.addf %3, %6 : vector<32x512xf32>
    %c0_6 = arith.constant 0 : index
    %c0_7 = arith.constant 0 : index
    %8 = vector.load %arg7[%c0_6, %c0_7] : memref<32x512xf32, #tpu.memory_space<vmem>>, vector<32x512xf32>
    tpu.vector_store %arg7[%c0_6, %c0_7], %7 {strides = array<i32>} : memref<32x512xf32, #tpu.memory_space<vmem>>, vector<32x512xf32>,
    %c0_i32_8 = arith.constant 0 : i32
    %9 = arith.cmpi eq, %arg2, %c0_i32_8 : i32
    %10 = arith.extui %9 : i1 to i32
    %c0_i32_9 = arith.constant 0 : i32
    %11 = arith.cmpi ne, %10, %c0_i32_9 : i32
    scf.if %11 {
      %c0_10 = arith.constant 0 : index
      %c0_11 = arith.constant 0 : index
      %12 = vector.load %arg7[%c0_10, %c0_11] : memref<32x512xf32, #tpu.memory_space<vmem>>, vector<32x512xf32>
      %c0_12 = arith.constant 0 : index
      %c0_13 = arith.constant 0 : index
      %13 = vector.load %arg5[%c0_12, %c0_13] : memref<1x512xf32, #tpu.memory_space<vmem>>, vector<1x512xf32>
      %14 = vector.broadcast %13 : vector<1x512xf32> to vector<32x512xf32>
      %15 = arith.addf %12, %14 : vector<32x512xf32>
      %16 = arith.mulf %15, %15 : vector<32x512xf32>
      %17 = arith.mulf %15, %16 : vector<32x512xf32>
      %cst_14 = arith.constant 4.471500e-02 : f32
      %18 = vector.broadcast %cst_14 : f32 to vector<32x512xf32>
      %19 = arith.mulf %18, %17 : vector<32x512xf32>
      %20 = arith.addf %15, %19 : vector<32x512xf32>
      %cst_15 = arith.constant 0.797884583 : f32
      %21 = vector.broadcast %cst_15 : f32 to vector<32x512xf32>
      %22 = arith.mulf %21, %20 : vector<32x512xf32>
      %23 = math.tanh %22 : vector<32x512xf32>
      %cst_16 = arith.constant 1.000000e+00 : f32
      %24 = vector.broadcast %cst_16 : f32 to vector<32x512xf32>
      %25 = arith.addf %24, %23 : vector<32x512xf32>
      %cst_17 = arith.constant 5.000000e-01 : f32
      %26 = vector.broadcast %cst_17 : f32 to vector<32x512xf32>
      %27 = arith.mulf %26, %25 : vector<32x512xf32>
      %28 = arith.mulf %15, %27 : vector<32x512xf32>
      %29 = arith.truncf %28 : vector<32x512xf32> to vector<32x512xbf16>
      %c0_18 = arith.constant 0 : index
      %c0_19 = arith.constant 0 : index
      %30 = vector.load %arg6[%c0_18, %c0_19] : memref<32x512xbf16, #tpu.memory_space<vmem>>, vector<32x512xbf16>
      tpu.vector_store %arg6[%c0_18, %c0_19], %29 {strides = array<i32>} : memref<32x512xbf16, #tpu.memory_space<vmem>>, vector<32x512xbf16>,
    } else {
    }
    return
  }
  func.func @transform_0(%arg0: i32, %arg1: i32, %arg2: i32) -> (i32, i32) {
    %c0_i32 = arith.constant 0 : i32
    return %arg0, %arg2 : i32, i32
  }
  func.func @transform_1(%arg0: i32, %arg1: i32, %arg2: i32) -> (i32, i32) {
    %c0_i32 = arith.constant 0 : i32
    return %arg2, %arg1 : i32, i32
  }
  func.func @transform_2(%arg0: i32, %arg1: i32, %arg2: i32) -> (i32, i32) {
    %c0_i32 = arith.constant 0 : i32
    %c0_i32_0 = arith.constant 0 : i32
    return %c0_i32, %arg1 : i32, i32
  }
  func.func @transform_3(%arg0: i32, %arg1: i32, %arg2: i32) -> (i32, i32) {
    %c0_i32 = arith.constant 0 : i32
    return %arg0, %arg1 : i32, i32
  }
}

module attributes {stable_mosaic.version = 11 : i64} {
  func.func @_gather_clf_kernel(%arg0: i32, %arg1: memref<2x3xi32, #tpu.memory_space<smem>>, %arg2: memref<1x16x256xbf16, #tpu.memory_space<vmem>>, %arg3: memref<256x1xf32, #tpu.memory_space<vmem>>, %arg4: memref<1x1xf32, #tpu.memory_space<vmem>>, %arg5: memref<1x1x3xf32, #tpu.memory_space<vmem>>) attributes {dimension_semantics = [#tpu.dimension_semantics<arbitrary>], iteration_bounds = array<i64: 2>, scalar_prefetch = 1 : i64, scratch_operands = 0 : i64, tpu.core_type = #tpu.core_type<tc>, window_params = [{transform_indices = @transform_0, window_bounds = array<i64: 1, 16, 256>}, {pipeline_mode = #tpu.pipeline_mode<synchronous>, transform_indices = @transform_1, window_bounds = array<i64: 256, 1>}, {pipeline_mode = #tpu.pipeline_mode<synchronous>, transform_indices = @transform_2, window_bounds = array<i64: 1, 1>}, {transform_indices = @transform_3, window_bounds = array<i64: 1, 1, 3>}]} {
    %c0 = arith.constant 0 : index
    %c0_0 = arith.constant 0 : index
    %c0_1 = arith.constant 0 : index
    %0 = vector.load %arg2[%c0, %c0_0, %c0_1] : memref<1x16x256xbf16, #tpu.memory_space<vmem>>, vector<1x16x256xbf16>
    %1 = vector.shape_cast %0 : vector<1x16x256xbf16> to vector<16x256xbf16>
    %c0_2 = arith.constant 0 : index
    %c0_3 = arith.constant 0 : index
    %2 = vector.load %arg3[%c0_2, %c0_3] : memref<256x1xf32, #tpu.memory_space<vmem>>, vector<256x1xf32>
    %3 = arith.truncf %2 : vector<256x1xf32> to vector<256x1xbf16>
    %cst = arith.constant dense<0.000000e+00> : vector<16x1xf32>
    %4 = tpu.matmul %1, %3, %cst {dimension_numbers = #tpu.dot_dimension_numbers<[1], [0], [0], [1], [0, 0, 1, 1], [], []>} : vector<16x256xbf16>, vector<256x1xbf16>, vector<16x1xf32> -> vector<16x1xf32>
    %5 = tpu.iota {dimensions = array<i32: 0>} : vector<16x1xi32>
    %6 = tpu.iota {dimensions = array<i32: 1>} : vector<1x3xi32>
    %cst_4 = arith.constant 0.000000e+00 : f32
    %7 = vector.broadcast %cst_4 : f32 to vector<1x3xf32>
    %8 = arith.index_cast %arg0 : i32 to index
    %c0_5 = arith.constant 0 : index
    %9 = memref.load %arg1[%8, %c0_5] : memref<2x3xi32, #tpu.memory_space<smem>>
    %10 = vector.broadcast %9 : i32 to vector<16x1xi32>
    %11 = arith.cmpi eq, %5, %10 : vector<16x1xi32>
    %cst_6 = arith.constant 0.000000e+00 : f32
    %12 = vector.broadcast %cst_6 : f32 to vector<16x1xf32>
    %13 = arith.select %11, %4, %12 : vector<16x1xi1>, vector<16x1xf32>
    %14 = vector.shape_cast %13 : vector<16x1xf32> to vector<1x16x1xf32>
    %cst_7 = arith.constant dense<0.000000e+00> : vector<1xf32>
    %15 = vector.multi_reduction <add>, %14, %cst_7 [1, 2] : vector<1x16x1xf32> to vector<1xf32>
    %16 = vector.shape_cast %15 : vector<1xf32> to vector<1x1x1xf32>
    %17 = vector.extract %16[0, 0, 0] : f32 from vector<1x1x1xf32>
    %c0_i32 = arith.constant 0 : i32
    %18 = vector.broadcast %c0_i32 : i32 to vector<1x3xi32>
    %19 = arith.cmpi eq, %6, %18 : vector<1x3xi32>
    %cst_8 = arith.constant 0.000000e+00 : f32
    %20 = vector.broadcast %17 : f32 to vector<1x3xf32>
    %21 = vector.broadcast %cst_8 : f32 to vector<1x3xf32>
    %22 = arith.select %19, %20, %21 : vector<1x3xi1>, vector<1x3xf32>
    %23 = arith.addf %7, %22 : vector<1x3xf32>
    %24 = arith.index_cast %arg0 : i32 to index
    %c1 = arith.constant 1 : index
    %25 = memref.load %arg1[%24, %c1] : memref<2x3xi32, #tpu.memory_space<smem>>
    %26 = vector.broadcast %25 : i32 to vector<16x1xi32>
    %27 = arith.cmpi eq, %5, %26 : vector<16x1xi32>
    %cst_9 = arith.constant 0.000000e+00 : f32
    %28 = vector.broadcast %cst_9 : f32 to vector<16x1xf32>
    %29 = arith.select %27, %4, %28 : vector<16x1xi1>, vector<16x1xf32>
    %30 = vector.shape_cast %29 : vector<16x1xf32> to vector<1x16x1xf32>
    %cst_10 = arith.constant dense<0.000000e+00> : vector<1xf32>
    %31 = vector.multi_reduction <add>, %30, %cst_10 [1, 2] : vector<1x16x1xf32> to vector<1xf32>
    %32 = vector.shape_cast %31 : vector<1xf32> to vector<1x1x1xf32>
    %33 = vector.extract %32[0, 0, 0] : f32 from vector<1x1x1xf32>
    %c1_i32 = arith.constant 1 : i32
    %34 = vector.broadcast %c1_i32 : i32 to vector<1x3xi32>
    %35 = arith.cmpi eq, %6, %34 : vector<1x3xi32>
    %cst_11 = arith.constant 0.000000e+00 : f32
    %36 = vector.broadcast %33 : f32 to vector<1x3xf32>
    %37 = vector.broadcast %cst_11 : f32 to vector<1x3xf32>
    %38 = arith.select %35, %36, %37 : vector<1x3xi1>, vector<1x3xf32>
    %39 = arith.addf %23, %38 : vector<1x3xf32>
    %40 = arith.index_cast %arg0 : i32 to index
    %c2 = arith.constant 2 : index
    %41 = memref.load %arg1[%40, %c2] : memref<2x3xi32, #tpu.memory_space<smem>>
    %42 = vector.broadcast %41 : i32 to vector<16x1xi32>
    %43 = arith.cmpi eq, %5, %42 : vector<16x1xi32>
    %cst_12 = arith.constant 0.000000e+00 : f32
    %44 = vector.broadcast %cst_12 : f32 to vector<16x1xf32>
    %45 = arith.select %43, %4, %44 : vector<16x1xi1>, vector<16x1xf32>
    %46 = vector.shape_cast %45 : vector<16x1xf32> to vector<1x16x1xf32>
    %cst_13 = arith.constant dense<0.000000e+00> : vector<1xf32>
    %47 = vector.multi_reduction <add>, %46, %cst_13 [1, 2] : vector<1x16x1xf32> to vector<1xf32>
    %48 = vector.shape_cast %47 : vector<1xf32> to vector<1x1x1xf32>
    %49 = vector.extract %48[0, 0, 0] : f32 from vector<1x1x1xf32>
    %c2_i32 = arith.constant 2 : i32
    %50 = vector.broadcast %c2_i32 : i32 to vector<1x3xi32>
    %51 = arith.cmpi eq, %6, %50 : vector<1x3xi32>
    %cst_14 = arith.constant 0.000000e+00 : f32
    %52 = vector.broadcast %49 : f32 to vector<1x3xf32>
    %53 = vector.broadcast %cst_14 : f32 to vector<1x3xf32>
    %54 = arith.select %51, %52, %53 : vector<1x3xi1>, vector<1x3xf32>
    %55 = arith.addf %39, %54 : vector<1x3xf32>
    %c0_15 = arith.constant 0 : index
    %c0_16 = arith.constant 0 : index
    %56 = vector.load %arg4[%c0_15, %c0_16] : memref<1x1xf32, #tpu.memory_space<vmem>>, vector<1x1xf32>
    %57 = vector.broadcast %56 : vector<1x1xf32> to vector<1x3xf32>
    %58 = arith.addf %55, %57 : vector<1x3xf32>
    %59 = vector.shape_cast %58 : vector<1x3xf32> to vector<1x1x3xf32>
    %c0_17 = arith.constant 0 : index
    %c0_18 = arith.constant 0 : index
    %c0_19 = arith.constant 0 : index
    %60 = vector.load %arg5[%c0_17, %c0_18, %c0_19] : memref<1x1x3xf32, #tpu.memory_space<vmem>>, vector<1x1x3xf32>
    tpu.vector_store %arg5[%c0_17, %c0_18, %c0_19], %59 {strides = array<i32>} : memref<1x1x3xf32, #tpu.memory_space<vmem>>, vector<1x1x3xf32>,
    return
  }
  func.func @transform_0(%arg0: i32, %arg1: memref<2x3xi32, #tpu.memory_space<smem>>) -> (i32, i32, i32) {
    %c0_i32 = arith.constant 0 : i32
    %c0_i32_0 = arith.constant 0 : i32
    %c0_i32_1 = arith.constant 0 : i32
    return %arg0, %c0_i32, %c0_i32_0 : i32, i32, i32
  }
  func.func @transform_1(%arg0: i32, %arg1: memref<2x3xi32, #tpu.memory_space<smem>>) -> (i32, i32) {
    %c0_i32 = arith.constant 0 : i32
    %c0_i32_0 = arith.constant 0 : i32
    %c0_i32_1 = arith.constant 0 : i32
    return %c0_i32, %c0_i32_0 : i32, i32
  }
  func.func @transform_2(%arg0: i32, %arg1: memref<2x3xi32, #tpu.memory_space<smem>>) -> (i32, i32) {
    %c0_i32 = arith.constant 0 : i32
    %c0_i32_0 = arith.constant 0 : i32
    %c0_i32_1 = arith.constant 0 : i32
    return %c0_i32, %c0_i32_0 : i32, i32
  }
  func.func @transform_3(%arg0: i32, %arg1: memref<2x3xi32, #tpu.memory_space<smem>>) -> (i32, i32, i32) {
    %c0_i32 = arith.constant 0 : i32
    %c0_i32_0 = arith.constant 0 : i32
    %c0_i32_1 = arith.constant 0 : i32
    return %arg0, %c0_i32, %c0_i32_0 : i32, i32, i32
  }
}

module attributes {stable_mosaic.version = 11 : i64} {
  func.func @_dense_kernel(%arg0: i32, %arg1: i32, %arg2: i32, %arg3: memref<32x256xbf16, #tpu.memory_space<vmem>>, %arg4: memref<256x256xbf16, #tpu.memory_space<vmem>>, %arg5: memref<1x256xf32, #tpu.memory_space<vmem>>, %arg6: memref<32x256xbf16, #tpu.memory_space<vmem>>, %arg7: memref<32x256xf32, #tpu.memory_space<vmem>>) attributes {dimension_semantics = [#tpu.dimension_semantics<parallel>, #tpu.dimension_semantics<parallel>, #tpu.dimension_semantics<arbitrary>], iteration_bounds = array<i64: 1, 1, 1>, scalar_prefetch = 0 : i64, scratch_operands = 1 : i64, tpu.core_type = #tpu.core_type<tc>, window_params = [{transform_indices = @transform_0, window_bounds = array<i64: 32, 256>}, {transform_indices = @transform_1, window_bounds = array<i64: 256, 256>}, {transform_indices = @transform_2, window_bounds = array<i64: 1, 256>}, {transform_indices = @transform_3, window_bounds = array<i64: 32, 256>}]} {
    %c0_i32 = arith.constant 0 : i32
    %0 = arith.cmpi eq, %arg2, %c0_i32 : i32
    %1 = arith.extui %0 : i1 to i32
    %c0_i32_0 = arith.constant 0 : i32
    %2 = arith.cmpi ne, %1, %c0_i32_0 : i32
    scf.if %2 {
      %cst_10 = arith.constant 0.000000e+00 : f32
      %12 = vector.broadcast %cst_10 : f32 to vector<32x256xf32>
      %c0_11 = arith.constant 0 : index
      %c0_12 = arith.constant 0 : index
      %13 = vector.load %arg7[%c0_11, %c0_12] : memref<32x256xf32, #tpu.memory_space<vmem>>, vector<32x256xf32>
      tpu.vector_store %arg7[%c0_11, %c0_12], %12 {strides = array<i32>} : memref<32x256xf32, #tpu.memory_space<vmem>>, vector<32x256xf32>,
    } else {
    }
    %c0 = arith.constant 0 : index
    %c0_1 = arith.constant 0 : index
    %3 = vector.load %arg7[%c0, %c0_1] : memref<32x256xf32, #tpu.memory_space<vmem>>, vector<32x256xf32>
    %c0_2 = arith.constant 0 : index
    %c0_3 = arith.constant 0 : index
    %4 = vector.load %arg3[%c0_2, %c0_3] : memref<32x256xbf16, #tpu.memory_space<vmem>>, vector<32x256xbf16>
    %c0_4 = arith.constant 0 : index
    %c0_5 = arith.constant 0 : index
    %5 = vector.load %arg4[%c0_4, %c0_5] : memref<256x256xbf16, #tpu.memory_space<vmem>>, vector<256x256xbf16>
    %cst = arith.constant dense<0.000000e+00> : vector<32x256xf32>
    %6 = tpu.matmul %4, %5, %cst {dimension_numbers = #tpu.dot_dimension_numbers<[1], [0], [0], [1], [0, 0, 1, 1], [], []>} : vector<32x256xbf16>, vector<256x256xbf16>, vector<32x256xf32> -> vector<32x256xf32>
    %7 = arith.addf %3, %6 : vector<32x256xf32>
    %c0_6 = arith.constant 0 : index
    %c0_7 = arith.constant 0 : index
    %8 = vector.load %arg7[%c0_6, %c0_7] : memref<32x256xf32, #tpu.memory_space<vmem>>, vector<32x256xf32>
    tpu.vector_store %arg7[%c0_6, %c0_7], %7 {strides = array<i32>} : memref<32x256xf32, #tpu.memory_space<vmem>>, vector<32x256xf32>,
    %c0_i32_8 = arith.constant 0 : i32
    %9 = arith.cmpi eq, %arg2, %c0_i32_8 : i32
    %10 = arith.extui %9 : i1 to i32
    %c0_i32_9 = arith.constant 0 : i32
    %11 = arith.cmpi ne, %10, %c0_i32_9 : i32
    scf.if %11 {
      %c0_10 = arith.constant 0 : index
      %c0_11 = arith.constant 0 : index
      %12 = vector.load %arg7[%c0_10, %c0_11] : memref<32x256xf32, #tpu.memory_space<vmem>>, vector<32x256xf32>
      %c0_12 = arith.constant 0 : index
      %c0_13 = arith.constant 0 : index
      %13 = vector.load %arg5[%c0_12, %c0_13] : memref<1x256xf32, #tpu.memory_space<vmem>>, vector<1x256xf32>
      %14 = vector.broadcast %13 : vector<1x256xf32> to vector<32x256xf32>
      %15 = arith.addf %12, %14 : vector<32x256xf32>
      %16 = arith.truncf %15 : vector<32x256xf32> to vector<32x256xbf16>
      %c0_14 = arith.constant 0 : index
      %c0_15 = arith.constant 0 : index
      %17 = vector.load %arg6[%c0_14, %c0_15] : memref<32x256xbf16, #tpu.memory_space<vmem>>, vector<32x256xbf16>
      tpu.vector_store %arg6[%c0_14, %c0_15], %16 {strides = array<i32>} : memref<32x256xbf16, #tpu.memory_space<vmem>>, vector<32x256xbf16>,
    } else {
    }
    return
  }
  func.func @transform_0(%arg0: i32, %arg1: i32, %arg2: i32) -> (i32, i32) {
    %c0_i32 = arith.constant 0 : i32
    return %arg0, %arg2 : i32, i32
  }
  func.func @transform_1(%arg0: i32, %arg1: i32, %arg2: i32) -> (i32, i32) {
    %c0_i32 = arith.constant 0 : i32
    return %arg2, %arg1 : i32, i32
  }
  func.func @transform_2(%arg0: i32, %arg1: i32, %arg2: i32) -> (i32, i32) {
    %c0_i32 = arith.constant 0 : i32
    %c0_i32_0 = arith.constant 0 : i32
    return %c0_i32, %arg1 : i32, i32
  }
  func.func @transform_3(%arg0: i32, %arg1: i32, %arg2: i32) -> (i32, i32) {
    %c0_i32 = arith.constant 0 : i32
    return %arg0, %arg1 : i32, i32
  }
}

</mosaic_0001>

<bundles_post_ra>
// kernel: label_mask_model_forward.13
= control target key start
LH: loop header
LB: loop body
LE: loop exit
PB: predicated region body
PF: predicated region fallthrough
CT: control target
= control target key end

     0   :  { %v180_v12 = vmov 256.0   ;;  %s283_s0 = inlined_call_operand.vmem [shape: f32[32,256], index: 0, kind: input, shape index: {}]   ;;  %s284_s1 = inlined_call_operand.vmem [shape: f32[1,256], index: 1, kind: input, shape index: {}]   ;;  %s285_s2 = inlined_call_operand.vmem [shape: f32[1,256], index: 2, kind: input, shape index: {}]   ;;  %s286_s3 = inlined_call_operand.vmem [shape: bf16[32,256], index: 3, kind: output, shape index: {}]  }
   0x1   :  { %v18_v0 = vld [vmem:[%s283_s0 + $0x20] sm:$0xff]  ;;  %v19_v1 = vld [vmem:[%s283_s0 + $0x28] sm:$0xff]  ;;  %v20_v6 = vld [vmem:[%s283_s0 + $0x30] sm:$0xff]  ;;  %170 = vrcp.f32 %v180_v12 }
   0x2   :  { %v14_v2 = vld [vmem:[%s283_s0] sm:$0xff]  ;;  %v28_v3 = vadd.f32 %v19_v1, %v18_v0  ;;  %v15_v4 = vld [vmem:[%s283_s0 + $0x8] sm:$0xff]  ;;  %v21_v7 = vld [vmem:[%s283_s0 + $0x38] sm:$0xff] }
   0x3   :  { %v22_v5 = vadd.f32 %v15_v4, %v14_v2  ;;  %v16_v8 = vld [vmem:[%s283_s0 + $0x10] sm:$0xff]  ;;  %v17_v9 = vld [vmem:[%s283_s0 + $0x18] sm:$0xff]  ;;  %v31_v10 = vadd.f32 %v21_v7, %v20_v6 }
   0x4   :  { %29 = vadd.xlane.f32.xlu1 %v28_v3  ;;  %v25_v11 = vadd.f32 %v17_v9, %v16_v8 }
   0x5   :  { %23 = vadd.xlane.f32.xlu0 %v22_v5 }
   0x7   :  { %v171_v13 = vpop.eup %170 }
   0x8   :  { %v35_v14 = vmul.f32 256.0, %v171_v13  ;;  %vm39_vm0 = vweird.f32 %v171_v13 }
   0xa   :  { %v36_v15 = vsub.f32 1.0, %v35_v14 }
   0xc   :  { %32 = vadd.xlane.f32.xlu1 %v31_v10  ;;  %v37_v16 = vmul.f32 %v171_v13, %v36_v15 }
   0xd   :  { %26 = vadd.xlane.f32.xlu0 %v25_v11 }
   0xe   :  { %v38_v17 = vadd.f32 %v171_v13, %v37_v16 }
  0x10   :  { %v40_v18 = vsel %vm39_vm0, %v171_v13, %v38_v17 }
  0x77   :  { %v30_v19 = vpop.xlane.xlu1 %29 }
  0x78   :  { %v43_v20 = vmul.f32 %v40_v18, %v30_v19  ;;  %v24_v21 = vpop.xlane.xlu0 %23 }
  0x79   :  { %v41_v22 = vmul.f32 %v40_v18, %v24_v21 }
  0x7a   :  { %v225_v23 = vsub.f32 %v18_v0, %v43_v20  ;;  %v227_v24 = vsub.f32 %v19_v1, %v43_v20 }
  0x7b   :  { %v229_v25 = vsub.f32 %v14_v2, %v41_v22  ;;  %v231_v26 = vsub.f32 %v15_v4, %v41_v22  ;;  %v129_v2 = vld [vmem:[%s284_s1] sm:$0x3] }
  0x7c   :  { %v57_v27 = vmul.f32 %v225_v23, %v225_v23  ;;  %v58_v28 = vmul.f32 %v227_v24, %v227_v24  ;;  %v132_v12 = vperm.slane %v129_v2, 1 }
  0x7d   :  { %v53_v29 = vmul.f32 %v229_v25, %v229_v25  ;;  %v54_v30 = vmul.f32 %v231_v26, %v231_v26 }
  0x7e   :  { %v67_v31 = vadd.f32 %v58_v28, %v57_v27 }
  0x7f   :  { %v33_v32 = vpop.xlane.xlu1 %32  ;;  %v61_v33 = vadd.f32 %v54_v30, %v53_v29 }
  0x80   :  { %v44_v34 = vmul.f32 %v40_v18, %v33_v32  ;;  %v27_v35 = vpop.xlane.xlu0 %26  ;;  %68 = vadd.xlane.f32.xlu0 %v67_v31 }
  0x81   :  { %v42_v36 = vmul.f32 %v40_v18, %v27_v35  ;;  %62 = vadd.xlane.f32.xlu2 %v61_v33 }
  0x82   :  { %v241_v37 = vsub.f32 %v20_v6, %v44_v34  ;;  %v243_v38 = vsub.f32 %v21_v7, %v44_v34  ;;  %v143_v6 = vld [vmem:[%s285_s2] sm:$0x3] }
  0x83   :  { %v245_v39 = vsub.f32 %v16_v8, %v42_v36  ;;  %v247_v40 = vsub.f32 %v17_v9, %v42_v36  ;;  %v131_v9 = vperm.slane %v129_v2, 0  ;;  %v145_v15 = vperm.slane %v143_v6, 0 }
  0x84   :  { %v59_v41 = vmul.f32 %v241_v37, %v241_v37  ;;  %v60_v42 = vmul.f32 %v243_v38, %v243_v38  ;;  %v146_v16 = vperm.slane %v143_v6, 1 }
  0x85   :  { %v55_v43 = vmul.f32 %v245_v39, %v245_v39  ;;  %v56_v44 = vmul.f32 %v247_v40, %v247_v40 }
  0x86   :  { %v70_v45 = vadd.f32 %v60_v42, %v59_v41 }
  0x87   :  { %v64_v46 = vadd.f32 %v56_v44, %v55_v43 }
  0x88   :  { %71 = vadd.xlane.f32.xlu1 %v70_v45 }
  0x89   :  { %65 = vadd.xlane.f32.xlu2 %v64_v46 }
  0xf3   :  { %v69_v47 = vpop.xlane.xlu0 %68 }
  0xf4   :  { %v63_v48 = vpop.xlane.xlu2 %62  ;;  %v75_v49 = vmul.f32 %v69_v47, %v40_v18 }
  0xf5   :  { %v73_v50 = vmul.f32 %v63_v48, %v40_v18 }
  0xf6   :  { %v79_v51 = vadd.f32 1e-12, %v75_v49 }
  0xf7   :  { %v77_v52 = vadd.f32 1e-12, %v73_v50 }
  0xf8   :  { %172 = vrsqrt.f32 %v79_v51  ;;  %vm107_vm3 = vweird.f32 %v79_v51 }
  0xf9   :  { %174 = vrsqrt.f32 %v77_v52  ;;  %vm87_vm4 = vweird.f32 %v77_v52 }
  0xfb   :  { %v72_v53 = vpop.xlane.xlu1 %71 }
  0xfc   :  { %v76_v54 = vmul.f32 %v72_v53, %v40_v18  ;;  %v66_v55 = vpop.xlane.xlu2 %65 }
  0xfd   :  { %v74_v56 = vmul.f32 %v66_v55, %v40_v18 }
  0xfe   :  { %v173_v57 = vpop.eup %172  ;;  %v80_v58 = vadd.f32 1e-12, %v76_v54 }
  0xff   :  { %v175_v59 = vpop.eup %174  ;;  %v102_v60 = vmul.f32 %v173_v57, %v79_v51  ;;  %v78_v61 = vadd.f32 1e-12, %v74_v56  ;;  %vm108_vm1 = vweird.f32 %v173_v57 }
 0x100   :  { %v82_v62 = vmul.f32 %v175_v59, %v77_v52  ;;  %176 = vrsqrt.f32 %v80_v58  ;;  %vm88_vm2 = vweird.f32 %v175_v59  ;;  %vm109_vm5 = vmor %vm107_vm3, %vm108_vm1  ;;  %vm117_vm9 = vweird.f32 %v80_v58 }
 0x101   :  { %v103_v63 = vmul.f32 %v173_v57, %v102_v60  ;;  %178 = vrsqrt.f32 %v78_v61  ;;  %vm89_vm6 = vmor %vm87_vm4, %vm88_vm2  ;;  %vm97_vm11 = vweird.f32 %v78_v61 }
 0x102   :  { %v83_v0 = vmul.f32 %v175_v59, %v82_v62 }
 0x103   :  { %v104_v1 = vmul.f32 0.5, %v103_v63 }
 0x104   :  { %v84_v3 = vmul.f32 0.5, %v83_v0 }
 0x105   :  { %v105_v4 = vsub.f32 1.5, %v104_v1 }
 0x106   :  { %v177_v5 = vpop.eup %176  ;;  %v85_v7 = vsub.f32 1.5, %v84_v3 }
 0x107   :  { %v179_v8 = vpop.eup %178  ;;  %v106_v10 = vmul.f32 %v173_v57, %v105_v4  ;;  %v112_v11 = vmul.f32 %v177_v5, %v80_v58  ;;  %vm118_vm7 = vweird.f32 %v177_v5 }
 0x108   :  { %v86_v13 = vmul.f32 %v175_v59, %v85_v7  ;;  %v92_v14 = vmul.f32 %v179_v8, %v78_v61  ;;  %vm98_vm8 = vweird.f32 %v179_v8  ;;  %vm119_vm10 = vmor %vm117_vm9, %vm118_vm7 }
 0x109   :  { %v110_v17 = vsel %vm109_vm5, %v173_v57, %v106_v10  ;;  %v113_v18 = vmul.f32 %v177_v5, %v112_v11  ;;  %vm99_vm12 = vmor %vm97_vm11, %vm98_vm8 }
 0x10a   :  { %v90_v19 = vsel %vm89_vm6, %v175_v59, %v86_v13  ;;  %v125_v20 = vmul.f32 %v110_v17, %v225_v23  ;;  %v126_v21 = vmul.f32 %v110_v17, %v227_v24  ;;  %v93_v22 = vmul.f32 %v179_v8, %v92_v14 }
 0x10b   :  { %v121_v27 = vmul.f32 %v90_v19, %v229_v25  ;;  %v122_v28 = vmul.f32 %v90_v19, %v231_v26  ;;  %v114_v29 = vmul.f32 0.5, %v113_v18 }
 0x10c   :  { %v139_v30 = vmul.f32 %v131_v9, %v125_v20  ;;  %v140_v31 = vmul.f32 %v132_v12, %v126_v21  ;;  %v94_v32 = vmul.f32 0.5, %v93_v22 }
 0x10d   :  { %v135_v33 = vmul.f32 %v131_v9, %v121_v27  ;;  %v136_v34 = vmul.f32 %v132_v12, %v122_v28  ;;  %v115_v35 = vsub.f32 1.5, %v114_v29 }
 0x10e   :  { %v153_v36 = vadd.f32 %v145_v15, %v139_v30  ;;  %v154_v41 = vadd.f32 %v146_v16, %v140_v31  ;;  %v95_v42 = vsub.f32 1.5, %v94_v32 }
 0x10f   :  { %v149_v23 = vadd.f32 %v145_v15, %v135_v33  ;;  %v150_v43 = vadd.f32 %v146_v16, %v136_v34  ;;  %v116_v24 = vmul.f32 %v177_v5, %v115_v35 }
 0x110   :  { %v159_v44 = vpack.c.bf16 %v154_v41, %v153_v36  ;;  %v96_v25 = vmul.f32 %v179_v8, %v95_v42 }
 0x111   :  { %v157_v26 = vpack.c.bf16 %v150_v43, %v149_v23  ;;  %v120_v45 = vsel %vm119_vm10, %v177_v5, %v116_v24 }
 0x112   :  { %163 = vst [vmem:[%s286_s3 + $0x10] sm:$0xff] %v159_v44  ;;  %v127_v46 = vmul.f32 %v120_v45, %v241_v37  ;;  %v128_v47 = vmul.f32 %v120_v45, %v243_v38  ;;  %v100_v48 = vsel %vm99_vm12, %v179_v8, %v96_v25 }
 0x113   :  { %161 = vst [vmem:[%s286_s3] sm:$0xff] %v157_v26  ;;  %v123_v49 = vmul.f32 %v100_v48, %v245_v39  ;;  %v124_v50 = vmul.f32 %v100_v48, %v247_v40 }
 0x114   :  { %v141_v51 = vmul.f32 %v131_v9, %v127_v46  ;;  %v142_v52 = vmul.f32 %v132_v12, %v128_v47 }
 0x115   :  { %v137_v53 = vmul.f32 %v131_v9, %v123_v49  ;;  %v138_v54 = vmul.f32 %v132_v12, %v124_v50 }
 0x116   :  { %v155_v55 = vadd.f32 %v145_v15, %v141_v51  ;;  %v156_v56 = vadd.f32 %v146_v16, %v142_v52 }
 0x117   :  { %v151_v57 = vadd.f32 %v145_v15, %v137_v53  ;;  %v152_v58 = vadd.f32 %v146_v16, %v138_v54 }
 0x118   :  { %v160_v37 = vpack.c.bf16 %v156_v56, %v155_v55 }
 0x119   :  { %v158_v59 = vpack.c.bf16 %v152_v58, %v151_v57 }
 0x11a   :  { %164 = vst [vmem:[%s286_s3 + $0x18] sm:$0xff] %v160_v37 }
 0x11b   :  { %162 = vst [vmem:[%s286_s3 + $0x8] sm:$0xff] %v158_v59 }

// kernel: label_mask_model_forward.15
= control target key start
LH: loop header
LB: loop body
LE: loop exit
PB: predicated region body
PF: predicated region fallthrough
CT: control target
= control target key end

     0   :  { %s1164_s0 = inlined_call_operand.vmem [shape: bf16[32,768], index: 0, kind: input, shape index: {}, may-alias: {0,1,2}]   ;;  %s1165_s1 = inlined_call_operand.vmem [shape: bf16[32,768], index: 1, kind: input, shape index: {}, may-alias: {0,1,2}]   ;;  %s1166_s2 = inlined_call_operand.vmem [shape: bf16[32,768], index: 2, kind: input, shape index: {}, may-alias: {0,1,2}]   ;;  %s1167_s3 = inlined_call_operand.vmem [shape: f32[2,1,16], index: 3, kind: input, shape index: {}]   ;;  %s1168_s4 = inlined_call_operand.vmem [shape: bf16[32,256], index: 4, kind: output, shape index: {}]  }
   0x1   :  { %1171 = sst [smem:[#allocation10_spill]] %s1168_s4 }
   0x2   :  { %s960_s15 = smov 0   ;;  %s962_s16 = smov 0  }
   0x3   :  { %s964_s17 = smov 0   ;;  %s966_s18 = smov 0  }
   0x4   :  { %s968_s19 = smov 0   ;;  %s970_s20 = smov 0  }
   0x5   :  { %s972_s21 = smov 0   ;;  %s974_s22 = smov 0  }
   0x6   :  { %s976_s23 = smov 0   ;;  %s978_s24 = smov 0  }
   0x7   :  { %s980_s25 = smov 0  }
   0x8 LB: > { %1172 = sst [smem:[#allocation6_spill]] %s917_s21  ;;  %s23_s27 = sadd.s32 1, %s925_s23  ;;  %s933_s25 = sphi %s980_s25, %s14_s25   ;;  %s929_s24 = sphi %s978_s24, %s1195_s24   ;;  %s925_s23 = sphi %s976_s23, %s1194_s23   ;;  %s921_s22 = sphi %s974_s22, %s1193_s22   ;;  %s917_s21 = sphi %s972_s21, %s1192_s21   ;;  %s913_s20 = sphi %s970_s20, %s1191_s20   ;;  %s909_s19 = sphi %s968_s19, %s1190_s19   ;;  %s905_s18 = sphi %s966_s18, %s1189_s18   ;;  %s901_s17 = sphi %s964_s17, %s1188_s17   ;;  %s897_s16 = sphi %s962_s16, %s1187_s16   ;;  %s893_s15 = sphi %s960_s15, %s1186_s15  }
   0x9   : > { %p24_p0 = scmp.ge.s32.totalorder %s23_s27, 2  ;;  %s26_s28 = sadd.s32 1, %s929_s24 }
   0xa   : > { %s35_s29 = sadd.s32 1, %s913_s20  ;;  %p42_p1 = scmp.ne.s32.totalorder %s913_s20, %s909_s19 }
   0xb   : > { %s1197_s27 = smov (%p24_p0, %s23_s27), 0  ;;  %s1199_s28 = smov (!%p24_p0, %s26_s28), %s929_s24 }
   0xc   : > { %1173 = sst [smem:[#allocation7_spill]] %s1197_s27  ;;  %s31_s30 = ssub.s32 %s925_s23, %s1197_s27 }
   0xd   : > { %p43_p2 = scmp.eq.s32.totalorder %s933_s25, 0  ;;  %p28_p3 = scmp.ge.s32.totalorder %s1199_s28, 2 }
   0xe   : > { %s58_s5 = sadd.s32 2, %s925_s23  ;;  %s59_s7 = sadd.s32 2, %s1197_s27 }
   0xf   : > { %p1033_p4 = por %p43_p2, %p42_p1  ;;  %s1201_s28 = smov (%p28_p3, %s1199_s28), 0 }
  0x10   : > { %1175 = sst [smem:[#allocation8_spill]] %s1201_s28  ;;  %s61_s8 = ssub.s32 %s58_s5, %s59_s7 }
  0x11   : > { %s65_s9 = sadd.s32 1, %s905_s18  ;;  %s30_s10 = ssub.s32 %s929_s24, %s1201_s28 }
  0x12   : > { %p72_p5 = scmp.ne.s32.totalorder %s905_s18, %s901_s17  ;;  %s32_s11 = sor.u32 %s31_s30, %s30_s10 }
  0x13   : > { %s62_s12 = sor.u32 %s61_s8, %s30_s10  ;;  %p33_p6 = scmp.eq.s32.totalorder %s32_s11, 0 }
  0x14   : > { %p63_p7 = scmp.eq.s32.totalorder %s62_s12, 0  ;;  %p1047_p8 = por %p72_p5, %p43_p2 }
  0x15   : > { %s88_s14 = sadd.s32 4, %s925_s23  ;;  %s89_s7 = sadd.s32 4, %s1197_s27 }
  0x16   : > { %s1053_s26 = scalar_select %p33_p6, %s913_s20, %s35_s29  }
  0x17   : > { %s1056_s5 = scalar_select %p63_p7, %s905_s18, %s65_s9  }
  0x18   : > { %1177 = sst [smem:[#allocation9_spill]] %s1053_s26  ;;  %s95_s28 = sadd.s32 1, %s897_s16 }
  0x19   : > { %s91_s4 = ssub.s32 %s88_s14, %s89_s7  ;;  %p102_p9 = scmp.ne.s32.totalorder %s897_s16, %s893_s15 }
  0x1a   : > { %s92_s30 = sor.u32 %s91_s4, %s30_s10  ;;  %s1178_s21 = sadd.s32 4294967295, %s933_s25  }
  0x1b   : > { %p160_p10 = scmp.eq.s32.totalorder %s1178_s21, 3  ;;  %p93_p11 = scmp.eq.s32.totalorder %s92_s30, 0 }
  0x1c   : > { %p1066_p12 = por %p102_p9, %p43_p2  ;;  %p703_p0 = scmp.ge.s32.totalorder %s933_s25, 4 }
  0x1d   : > { %p1073_p13 = por %p160_p10, %p42_p1 }
  0x1e   : > { %s1078_s29 = scalar_select %p93_p11, %s897_s16, %s95_s28  }
  0x1f   : > { %182 = sbr.rel (%p703_p0) target bundleno = 63 (0x3f), region = 16 }
  0x24   : > { %185 = sbr.rel (!%p1033_p4) target bundleno = 45 (0x2d), region = 20  ;;  %s187_s4 = sand.u32 (%p1033_p4), 1, %s913_s20  }
  0x25   : > { %s749_s21 = smul.u32 (%p1033_p4), 12, %s929_s24  ;;  %s704_s9 = sshll.u32 (%p1033_p4), %s187_s4, 3 }
  0x26   : > { %s189_s28 = scalar_lea.vmem (%p1033_p4), [#allocation2], %s704_s9 }
  0x27   : > { %s192_s10 = sadd.s32 (%p1033_p4), %s925_s23, %s749_s21 }
  0x28   : > { %s707_s12 = sshll.u32 (%p1033_p4), %s192_s10, 2 }
  0x29   : > { %s194_s30 = scalar_lea.vmem %s1164_s0, %s707_s12 }
  0x2a   : > { %v211_v0 = vld [vmem:[%s194_s30] sm:$0xf]  ;;  %v213_v1 = vld [vmem:[%s194_s30 + $0x18] sm:$0xf] }
  0x2b   : > { %212 = vst [vmem:[%s189_s28] sm:$0xf] %v211_v0 }
  0x2c   : > { %214 = vst [vmem:[%s189_s28 + $0x4] sm:$0xf] %v213_v1 }
  0x2d PF: > { %242 = sbr.rel (!%p1047_p8) target bundleno = 54 (0x36), region = 61  ;;  %s244_s6 = sand.u32 (%p1047_p8), 1, %s905_s18  }
  0x2e   : > { %s597_s4 = smul.u32 (%p1047_p8), 12, %s929_s24  ;;  %s708_s21 = sshll.u32 (%p1047_p8), %s244_s6, 3 }
  0x2f   : > { %s246_s9 = scalar_lea.vmem (%p1047_p8), [#allocation3], %s708_s21 }
  0x30   : > { %s598_s10 = sadd.s32 (%p1047_p8), %s925_s23, %s597_s4 }
  0x31   : > { %s709_s27 = sshll.u32 (%p1047_p8), %s598_s10, 2 }
  0x32   : > { %s600_s12 = scalar_lea.vmem %s1165_s1, %s709_s27 }
  0x33   : > { %v710_v2 = vld [vmem:[%s600_s12 + $0x8] sm:$0xf]  ;;  %v711_v3 = vld [vmem:[%s600_s12 + $0x20] sm:$0xf] }
  0x34   : > { %270 = vst [vmem:[%s246_s9] sm:$0xf] %v710_v2 }
  0x35   : > { %272 = vst [vmem:[%s246_s9 + $0x4] sm:$0xf] %v711_v3 }
  0x36 PF: > { %300 = sbr.rel (!%p1066_p12) target bundleno = 63 (0x3f), region = 102  ;;  %s302_s13 = sand.u32 (%p1066_p12), 1, %s897_s16  }
  0x37   : > { %s604_s7 = smul.u32 (%p1066_p12), 12, %s929_s24  ;;  %s712_s30 = sshll.u32 (%p1066_p12), %s302_s13, 3 }
  0x38   : > { %s304_s21 = scalar_lea.vmem (%p1066_p12), [#allocation4], %s712_s30 }
  0x39   : > { %s605_s28 = sadd.s32 (%p1066_p12), %s925_s23, %s604_s7 }
  0x3a   : > { %s713_s6 = sshll.u32 (%p1066_p12), %s605_s28, 2 }
  0x3b   : > { %s607_s27 = scalar_lea.vmem %s1166_s2, %s713_s6 }
  0x3c   : > { %v714_v4 = vld [vmem:[%s607_s27 + $0x10] sm:$0xf]  ;;  %v715_v5 = vld [vmem:[%s607_s27 + $0x28] sm:$0xf] }
  0x3d   : > { %328 = vst [vmem:[%s304_s21] sm:$0xf] %v714_v4 }
  0x3e   : > { %330 = vst [vmem:[%s304_s21 + $0x4] sm:$0xf] %v715_v5 }
  0x3f PF: > { %p716_p1 = scmp.ge.s32.totalorder %s933_s25, 1  ;;  %p363_p2 = scmp.lt.s32.totalorder %s933_s25, 5 }
  0x41   : > { %p364_p3 = pnand %p716_p1, %p363_p2 }
  0x42   : > { %s377_s8 = sand.u32 (!%p364_p3), 1, %s901_s17   ;;  %s370_s10 = sand.u32 (!%p364_p3), 1, %s909_s19  }
  0x43   : > { %367 = sbr.rel (%p364_p3) target bundleno = 620 (0x26c), region = 147  ;;  %s718_s14 = sshll.u32 (!%p364_p3), %s377_s8, 3 }
  0x44   : > { %s1109_s12 = sshll.u32 (!%p364_p3), %s370_s10, 3  ;;  %s379_s9 = scalar_lea.vmem (!%p364_p3), [#allocation3], %s718_s14 }
  0x45   : > { %p424_p4 = scmp.lt.s32.totalorder (!%p364_p3), %s921_s22, 1  ;;  %s372_s7 = scalar_lea.vmem (!%p364_p3), [#allocation2], %s1109_s12 }
  0x46   : > { %s384_s17 = sand.u32 (!%p364_p3), 1, %s893_s15   ;;  %s418_s15 = scalar_lea.vmem (!%p364_p3), [#allocation5], %s1109_s12 }
  0x47   : > { %s719_s19 = sshll.u32 (!%p364_p3), %s384_s17, 3 }
  0x48   : > { %v741_v6 = vld [vmem:[%s379_s9] sm:$0xff]  ;;  %s425_s13 = scalar_select %p424_p4, %s921_s22, 1  ;;  %v740_v7 = vld [vmem:[%s372_s7] sm:$0xff]  ;;  %vm469_vm0 = vcmask 130048  }
  0x49   : > { %454 = vmatpush.bf16.xpose.msra.mxu0 %v741_v6  ;;  %s386_s4 = scalar_lea.vmem [#allocation4], %s719_s19  ;;  %s1181_s26 = sld [smem:[#allocation6_spill]] (%p1073_p13) }
  0x4a   : > { %s426_s6 = scalar_lea.vmem %s1167_s3, %s425_s13  ;;  %v742_v27 = vld [vmem:[%s386_s4] sm:$0xff]  ;;  %s743_s27 = sshll.u32 (%p1073_p13), %s921_s22, 2 }
  0x4b   : > { %v838_v8 = vld [vmem:[%s426_s6] ss:$0 sm:$0xff]  ;;  %509 = vmatpush.bf16.msra.mxu1 %v742_v27  ;;  %s1182_s9 = sld [smem:[#allocation10_spill]] (%p1073_p13) }
  0x4f   : > { %s529_s21 = sadd.s32 (%p1073_p13), %s1181_s26, %s743_s27 }
  0x50   : > { %455 = vmatmul.bf16.vlgmr.msra.gmra.mxu0 %v740_v7  ;;  %s737_s8 = sshll.u32 (%p1073_p13), %s529_s21, 2 }
  0x51   : > { %s531_s13 = scalar_lea.vmem (%p1073_p13), %s1182_s9, %s737_s8 }
  0xcd   : > { %v456_v9 = vpop.f32.mrf.mxu0 }
  0xce   : > { %v461_v10 = vmul.f32 0.088388346, %v456_v9 }
  0xd0   : > { %v467_v11 = vadd.f32 %v838_v8, %v461_v10 }
  0xd2   : > { %v470_v12 = vsel %vm469_vm0, %v467_v11, -inf }
  0xd3   : > { %471 = vmax.xlane.f32.xlu0 %v470_v12 }
  0xd5   : > { %v458_v13 = vpop.f32.mrf.mxu0 }
  0xd6   : > { %v462_v14 = vmul.f32 0.088388346, %v458_v13 }
  0xd8   : > { %v468_v15 = vadd.f32 %v838_v8, %v462_v14 }
  0xda   : > { %v473_v16 = vsel %vm469_vm0, %v468_v15, -inf }
  0xdb   : > { %474 = vmax.xlane.f32.xlu0 %v473_v16 }
 0x146   : > { %v472_v17 = vpop.xlane.xlu0 %471 }
 0x147   : > { %v476_v18 = vsub.f32 %v467_v11, %v472_v17 }
 0x149   : > { %v478_v19 = vmul.f32 1.442695, %v476_v18 }
 0x14b   : > { %839 = vpow2.f32 %v478_v19 }
 0x14e   : > { %v475_v20 = vpop.xlane.xlu0 %474 }
 0x14f   : > { %v477_v21 = vsub.f32 %v468_v15, %v475_v20 }
 0x151   : > { %v840_v22 = vpop.eup %839  ;;  %v480_v23 = vmul.f32 1.442695, %v477_v21 }
 0x152   : > { %v482_v24 = vsel %vm469_vm0, %v840_v22, 0.0 }
 0x153   : > { %841 = vpow2.f32 %v480_v23  ;;  %483 = vadd.xlane.f32.xlu1 %v482_v24 }
 0x159   : > { %v842_v25 = vpop.eup %841 }
 0x15a   : > { %v485_v26 = vsel %vm469_vm0, %v842_v25, 0.0 }
 0x15b   : > { %486 = vadd.xlane.f32.xlu1 %v485_v26 }
 0x1c6   : > { %v484_v28 = vpop.xlane.xlu1 %483 }
 0x1c7   : > { %843 = vrcp.f32 %v484_v28 }
 0x1cd   : > { %v844_v30 = vpop.eup %843 }
 0x1ce   : > { %v487_v29 = vpop.xlane.xlu1 %486  ;;  %v490_v32 = vmul.f32 %v844_v30, %v840_v22 }
 0x1cf   : > { %845 = vrcp.f32 %v487_v29 }
 0x1d5   : > { %v846_v31 = vpop.eup %845 }
 0x1d6   : > { %v491_v33 = vmul.f32 %v846_v31, %v842_v25 }
 0x1d8   : > { %v492_v34 = vpack.c.bf16 %v491_v33, %v490_v32 }
 0x1da   : > { %733 = vmatmul.msk.bf16.vlgmr.msra.gmra.mxu1 %vm469_vm0, %v492_v34 }
 0x257   : > { %v511_v35 = vpop.f32.mrf.mxu1 }
 0x25e   : > { %526 = sbr.rel (!%p1073_p13) target bundleno = 620 (0x26c), region = 163 }
 0x25f   : > { %v513_v36 = vpop.f32.mrf.mxu1 }
 0x260   : > { %v747_v37 = vpack.c.bf16 %v513_v36, %v511_v35 }
 0x262   : > { %748 = vst [vmem:[%s418_s15] sm:$0xff] %v747_v37  }
 0x269   : > { %v548_v38 = vld [vmem:[%s418_s15] sm:$0xf]  ;;  %v550_v39 = vld [vmem:[%s418_s15 + $0x4] sm:$0xf] }
 0x26a   : > { %549 = vst [vmem:[%s531_s13] sm:$0xf] %v548_v38 }
 0x26b   : > { %551 = vst [vmem:[%s531_s13 + $0x8] sm:$0xf] %v550_v39 }
 0x26c PF: > { %s14_s25 = sadd.s32 1, %s933_s25   ;;  %s1183_s22 = sld [smem:[#allocation9_spill]] }
 0x26d   : > { %p11_p5 = scmp.ge.s32.totalorder %s14_s25, 6   ;;  %s1184_s11 = sld [smem:[#allocation7_spill]] }
 0x26e   : > { %s1185_s12 = sld [smem:[#allocation8_spill]]  ;;  %s1186_s15 = smov %s897_s16 }
 0x26f   : > { %s1187_s16 = smov %s1078_s29  ;;  %s1188_s17 = smov %s905_s18 }
 0x270   : > { %s1189_s18 = smov %s1056_s5  ;;  %s1190_s19 = smov %s913_s20 }
 0x271   : > { %s1192_s21 = smov %s925_s23  ;;  %13 = sbr.rel (!%p11_p5) target bundleno = 8 (0x8), region = 254 }
 0x272   : > { %s1191_s20 = smov %s1183_s22  ;;  %s1193_s22 = smov %s929_s24 }
 0x273   : > { %s1194_s23 = smov %s1184_s11 }
 0x274   : > { %s1195_s24 = smov %s1185_s12 }

// kernel: label_mask_model_forward.14
= control target key start
LH: loop header
LB: loop body
LE: loop exit
PB: predicated region body
PF: predicated region fallthrough
CT: control target
= control target key end

     0   :  { %s1237_s12 = smov 0   ;;  %s1239_s13 = smov 0   ;;  %s1485_s0 = inlined_call_operand.vmem [shape: bf16[32,256], index: 0, kind: input, shape index: {}]   ;;  %s1486_s1 = inlined_call_operand.vmem [shape: bf16[256,768], index: 1, kind: input, shape index: {}]   ;;  %s1487_s2 = inlined_call_operand.vmem [shape: f32[1,768], index: 2, kind: input, shape index: {}]   ;;  %s1488_s3 = inlined_call_operand.vmem [shape: bf16[32,768], index: 3, kind: output, shape index: {}]  }
   0x1   :  { %s1241_s14 = smov 0   ;;  %s1243_s15 = smov 0  }
   0x2   :  { %s1245_s16 = smov 0  }
   0x3 LB: > { %s28_s17 = sadd.s32 1, %s1211_s15  ;;  %s938_s18 = sadd.s32 4294967295, %s1215_s16   ;;  %s1215_s16 = sphi %s1245_s16, %s13_s16   ;;  %s1211_s15 = sphi %s1243_s15, %s1493_s15   ;;  %s1207_s14 = sphi %s1241_s14, %s1492_s14   ;;  %s1203_s13 = sphi %s1239_s13, %s1491_s13   ;;  %s1199_s12 = sphi %s1237_s12, %s1490_s12  }
   0x4   : > { %p30_p0 = scmp.ge.s32.totalorder %s28_s17, 3  ;;  %p76_p1 = scmp.ne.s32.totalorder %s1203_s13, %s1199_s12 }
   0x5   : > { %p77_p2 = scmp.eq.s32.totalorder %s1215_s16, 0  ;;  %p134_p4 = scmp.eq.s32.totalorder %s938_s18, 2 }
   0x6   : > { %s1495_s17 = smov (%p30_p0, %s28_s17), 0  ;;  %s69_s20 = sadd.s32 1, %s1203_s13 }
   0x7   : > { %p78_p3 = por %p77_p2, %p76_p1  ;;  %s65_s19 = ssub.s32 %s1211_s15, %s1495_s17 }
   0x8   : > { %p67_p5 = scmp.eq.s32.totalorder %s65_s19, 0  ;;  %p1272_p6 = por %p134_p4, %p76_p1 }
   0x9   : > { %p942_p7 = scmp.ge.s32.totalorder %s1215_s16, 3 }
   0xa   : > { %s1277_s22 = scalar_select %p67_p5, %s1203_s13, %s69_s20  }
   0xb   : > { %171 = sbr.rel (%p942_p7) target bundleno = 52 (0x34), region = 20 }
  0x10   : > { %174 = sbr.rel (!%p78_p3) target bundleno = 52 (0x34), region = 24  ;;  %s176_s23 = sand.u32 (%p78_p3), 1, %s1203_s13  }
  0x11   : > { %s1099_s24 = sshll.u32 (%p78_p3), %s1211_s15, 3  ;;  %s943_s25 = sshll.u32 (%p78_p3), %s176_s23, 8 }
  0x12   : > { %s1285_s28 = scalar_lea.vmem (%p78_p3), %s1486_s1, %s1099_s24  ;;  %s1290_s29 = scalar_lea.vmem (%p78_p3), [#allocation3], %s943_s25 }
  0x13   : > { %v275_v0 = vld [vmem:[%s1285_s28] sm:$0xff] (%p78_p3)  ;;  %v277_v1 = vld [vmem:[%s1285_s28 + $0x18] sm:$0xff] (%p78_p3)  ;;  %v279_v2 = vld [vmem:[%s1285_s28 + $0x30] sm:$0xff] (%p78_p3) }
  0x14   : > { %276 = vst [vmem:[%s1290_s29] sm:$0xff] (%p78_p3), %v275_v0  ;;  %v281_v3 = vld [vmem:[%s1285_s28 + $0x48] sm:$0xff] (%p78_p3)  ;;  %v283_v4 = vld [vmem:[%s1285_s28 + $0x60] sm:$0xff] (%p78_p3)  ;;  %v285_v5 = vld [vmem:[%s1285_s28 + $0x78] sm:$0xff] (%p78_p3) }
  0x15   : > { %278 = vst [vmem:[%s1290_s29 + $0x8] sm:$0xff] %v277_v1  ;;  %v287_v6 = vld [vmem:[%s1285_s28 + $0x90] sm:$0xff]  ;;  %v289_v7 = vld [vmem:[%s1285_s28 + $0xa8] sm:$0xff]  ;;  %v291_v8 = vld [vmem:[%s1285_s28 + $0xc0] sm:$0xff] }
  0x16   : > { %280 = vst [vmem:[%s1290_s29 + $0x10] sm:$0xff] %v279_v2  ;;  %v293_v9 = vld [vmem:[%s1285_s28 + $0xd8] sm:$0xff]  ;;  %v295_v10 = vld [vmem:[%s1285_s28 + $0xf0] sm:$0xff]  ;;  %v297_v11 = vld [vmem:[%s1285_s28 + $0x108] sm:$0xff] }
  0x17   : > { %282 = vst [vmem:[%s1290_s29 + $0x18] sm:$0xff] %v281_v3  ;;  %v299_v12 = vld [vmem:[%s1285_s28 + $0x120] sm:$0xff]  ;;  %v301_v13 = vld [vmem:[%s1285_s28 + $0x138] sm:$0xff]  ;;  %v303_v14 = vld [vmem:[%s1285_s28 + $0x150] sm:$0xff] }
  0x18   : > { %284 = vst [vmem:[%s1290_s29 + $0x20] sm:$0xff] %v283_v4  ;;  %v305_v15 = vld [vmem:[%s1285_s28 + $0x168] sm:$0xff]  ;;  %v307_v16 = vld [vmem:[%s1285_s28 + $0x180] sm:$0xff]  ;;  %v309_v17 = vld [vmem:[%s1285_s28 + $0x198] sm:$0xff] }
  0x19   : > { %286 = vst [vmem:[%s1290_s29 + $0x28] sm:$0xff] %v285_v5  ;;  %v311_v18 = vld [vmem:[%s1285_s28 + $0x1b0] sm:$0xff]  ;;  %v313_v19 = vld [vmem:[%s1285_s28 + $0x1c8] sm:$0xff]  ;;  %v315_v20 = vld [vmem:[%s1285_s28 + $0x1e0] sm:$0xff] }
  0x1a   : > { %288 = vst [vmem:[%s1290_s29 + $0x30] sm:$0xff] %v287_v6  ;;  %v317_v21 = vld [vmem:[%s1285_s28 + $0x1f8] sm:$0xff]  ;;  %v319_v22 = vld [vmem:[%s1285_s28 + $0x210] sm:$0xff]  ;;  %v321_v23 = vld [vmem:[%s1285_s28 + $0x228] sm:$0xff] }
  0x1b   : > { %290 = vst [vmem:[%s1290_s29 + $0x38] sm:$0xff] %v289_v7  ;;  %v323_v24 = vld [vmem:[%s1285_s28 + $0x240] sm:$0xff]  ;;  %v325_v25 = vld [vmem:[%s1285_s28 + $0x258] sm:$0xff]  ;;  %v327_v26 = vld [vmem:[%s1285_s28 + $0x270] sm:$0xff] }
  0x1c   : > { %292 = vst [vmem:[%s1290_s29 + $0x40] sm:$0xff] %v291_v8  ;;  %v329_v27 = vld [vmem:[%s1285_s28 + $0x288] sm:$0xff]  ;;  %v331_v28 = vld [vmem:[%s1285_s28 + $0x2a0] sm:$0xff]  ;;  %v333_v29 = vld [vmem:[%s1285_s28 + $0x2b8] sm:$0xff] }
  0x1d   : > { %294 = vst [vmem:[%s1290_s29 + $0x48] sm:$0xff] %v293_v9  ;;  %v335_v30 = vld [vmem:[%s1285_s28 + $0x2d0] sm:$0xff]  ;;  %v337_v31 = vld [vmem:[%s1285_s28 + $0x2e8] sm:$0xff] }
  0x1e   : > { %296 = vst [vmem:[%s1290_s29 + $0x50] sm:$0xff] %v295_v10 }
  0x1f   : > { %298 = vst [vmem:[%s1290_s29 + $0x58] sm:$0xff] %v297_v11 }
  0x20   : > { %300 = vst [vmem:[%s1290_s29 + $0x60] sm:$0xff] %v299_v12 }
  0x21   : > { %302 = vst [vmem:[%s1290_s29 + $0x68] sm:$0xff] %v301_v13 }
  0x22   : > { %304 = vst [vmem:[%s1290_s29 + $0x70] sm:$0xff] %v303_v14 }
  0x23   : > { %306 = vst [vmem:[%s1290_s29 + $0x78] sm:$0xff] %v305_v15 }
  0x24   : > { %308 = vst [vmem:[%s1290_s29 + $0x80] sm:$0xff] %v307_v16 }
  0x25   : > { %310 = vst [vmem:[%s1290_s29 + $0x88] sm:$0xff] %v309_v17 }
  0x26   : > { %312 = vst [vmem:[%s1290_s29 + $0x90] sm:$0xff] %v311_v18 }
  0x27   : > { %314 = vst [vmem:[%s1290_s29 + $0x98] sm:$0xff] %v313_v19 }
  0x28   : > { %316 = vst [vmem:[%s1290_s29 + $0xa0] sm:$0xff] %v315_v20 }
  0x29   : > { %318 = vst [vmem:[%s1290_s29 + $0xa8] sm:$0xff] %v317_v21 }
  0x2a   : > { %320 = vst [vmem:[%s1290_s29 + $0xb0] sm:$0xff] %v319_v22 }
  0x2b   : > { %322 = vst [vmem:[%s1290_s29 + $0xb8] sm:$0xff] %v321_v23 }
  0x2c   : > { %324 = vst [vmem:[%s1290_s29 + $0xc0] sm:$0xff] %v323_v24 }
  0x2d   : > { %326 = vst [vmem:[%s1290_s29 + $0xc8] sm:$0xff] %v325_v25 }
  0x2e   : > { %328 = vst [vmem:[%s1290_s29 + $0xd0] sm:$0xff] %v327_v26 }
  0x2f   : > { %330 = vst [vmem:[%s1290_s29 + $0xd8] sm:$0xff] %v329_v27 }
  0x30   : > { %332 = vst [vmem:[%s1290_s29 + $0xe0] sm:$0xff] %v331_v28 }
  0x31   : > { %334 = vst [vmem:[%s1290_s29 + $0xe8] sm:$0xff] %v333_v29 }
  0x32   : > { %336 = vst [vmem:[%s1290_s29 + $0xf0] sm:$0xff] %v335_v30 }
  0x33   : > { %338 = vst [vmem:[%s1290_s29 + $0xf8] sm:$0xff] %v337_v31 }
  0x34 PF: > { %p946_p8 = scmp.ge.s32.totalorder %s1215_s16, 1  ;;  %p351_p9 = scmp.lt.s32.totalorder %s1215_s16, 4 }
  0x36   : > { %p352_p10 = pnand %p946_p8, %p351_p9 }
  0x37   : > { %s358_s30 = sand.u32 (!%p352_p10), 1, %s1199_s12  }
  0x38   : > { %355 = sbr.rel (%p352_p10) target bundleno = 268 (0x10c), region = 66  ;;  %s947_s4 = sshll.u32 (!%p352_p10), %s358_s30, 8 }
  0x39   : > { %s1358_s5 = scalar_lea.vmem (!%p352_p10), [#allocation3], %s947_s4  ;;  %s949_s4 = sshll.u32 (!%p352_p10), %s1207_s14, 1 }
  0x3a   : > { %p409_p11 = scmp.lt.s32.totalorder (!%p352_p10), %s949_s4, 5  ;;  %s948_s8 = sshll.u32 (!%p352_p10), %s358_s30, 5 }
  0x3b   : > { %s1454_s9 = scalar_lea.vmem (!%p352_p10), [#allocation4], %s948_s8 }
  0x3d   : > { %v1024_v32 = vld [vmem:[%s1358_s5 + $0x70] sm:$0xf]  ;;  %v1119_v33 = vld [vmem:[%s1358_s5 + $0x74] sm:$0xf0]  ;;  %v1118_v37 = vld [vmem:[%s1358_s5 + $0x74] sm:$0xf] }
  0x3e   : > { %v1088_v34 = vld [vmem:[%s1358_s5 + $0xf0] sm:$0xf]  ;;  %v1025_v35 = vor.u32 %v1119_v33, %v1024_v32  ;;  %v1135_v36 = vld [vmem:[%s1358_s5 + $0xf4] sm:$0xf0]  ;;  %v1026_v38 = vld [vmem:[%s1358_s5 + $0x78] sm:$0xf0] }
  0x3f   : > { %v1089_v39 = vor.u32 %v1135_v36, %v1088_v34  ;;  %v1029_v40 = vor.u32 %v1118_v37, %v1026_v38  ;;  %v1134_v41 = vld [vmem:[%s1358_s5 + $0xf4] sm:$0xf]  ;;  %v1090_v42 = vld [vmem:[%s1358_s5 + $0xf8] sm:$0xf0]  ;;  %v1016_v43 = vld [vmem:[%s1358_s5 + $0x60] sm:$0xf] }
  0x40   : > { %651 = vmatpush.bf16.msra.mxu0 %v1025_v35  ;;  %v1093_v44 = vor.u32 %v1134_v41, %v1090_v42  ;;  %v1117_v45 = vld [vmem:[%s1358_s5 + $0x64] sm:$0xf0]  ;;  %v1080_v46 = vld [vmem:[%s1358_s5 + $0xe0] sm:$0xf]  ;;  %v1116_v50 = vld [vmem:[%s1358_s5 + $0x64] sm:$0xf] }
  0x41   : > { %v1133_v47 = vld [vmem:[%s1358_s5 + $0xe4] sm:$0xf0]  ;;  %670 = vmatpush.bf16.msra.mxu1 %v1089_v39  ;;  %689 = vmatpush.bf16.msra.mxu2 %v1029_v40  ;;  %v1017_v48 = vor.u32 %v1117_v45, %v1016_v43  ;;  %v1018_v51 = vld [vmem:[%s1358_s5 + $0x68] sm:$0xf0]  ;;  %v1132_v52 = vld [vmem:[%s1358_s5 + $0xe4] sm:$0xf] }
  0x42   : > { %v1081_v49 = vor.u32 %v1133_v47, %v1080_v46  ;;  %708 = vmatpush.bf16.msra.mxu3 %v1093_v44  ;;  %v1021_v53 = vor.u32 %v1116_v50, %v1018_v51  ;;  %v1082_v54 = vld [vmem:[%s1358_s5 + $0xe8] sm:$0xf0]  ;;  %v1008_v55 = vld [vmem:[%s1358_s5 + $0x50] sm:$0xf]  ;;  %v1115_v56 = vld [vmem:[%s1358_s5 + $0x54] sm:$0xf0] }
  0x43   : > { %v1085_v57 = vor.u32 %v1132_v52, %v1082_v54  ;;  %v1072_v58 = vld [vmem:[%s1358_s5 + $0xd0] sm:$0xf]  ;;  %v1131_v59 = vld [vmem:[%s1358_s5 + $0xd4] sm:$0xf0]  ;;  %v1114_v60 = vld [vmem:[%s1358_s5 + $0x54] sm:$0xf]  ;;  %v1009_v61 = vor.u32 %v1115_v56, %v1008_v55 }
  0x44   : > { %652 = vmatpush.bf16.msra.mxu0 %v1017_v48  ;;  %v1010_v62 = vld [vmem:[%s1358_s5 + $0x58] sm:$0xf0]  ;;  %v1130_v63 = vld [vmem:[%s1358_s5 + $0xd4] sm:$0xf]  ;;  %v1073_v1 = vor.u32 %v1131_v59, %v1072_v58  ;;  %v1000_v3 = vld [vmem:[%s1358_s5 + $0x40] sm:$0xf] }
  0x45   : > { %v1074_v0 = vld [vmem:[%s1358_s5 + $0xd8] sm:$0xf0]  ;;  %671 = vmatpush.bf16.msra.mxu1 %v1081_v49  ;;  %690 = vmatpush.bf16.msra.mxu2 %v1021_v53  ;;  %v1013_v2 = vor.u32 %v1114_v60, %v1010_v62  ;;  %v1113_v4 = vld [vmem:[%s1358_s5 + $0x44] sm:$0xf0]  ;;  %v1064_v5 = vld [vmem:[%s1358_s5 + $0xc0] sm:$0xf] }
  0x46   : > { %709 = vmatpush.bf16.msra.mxu3 %v1085_v57  ;;  %v1077_v6 = vor.u32 %v1130_v63, %v1074_v0  ;;  %v1129_v7 = vld [vmem:[%s1358_s5 + $0xc4] sm:$0xf0]  ;;  %v1112_v8 = vld [vmem:[%s1358_s5 + $0x44] sm:$0xf]  ;;  %v1002_v9 = vld [vmem:[%s1358_s5 + $0x48] sm:$0xf0]  ;;  %v1001_v12 = vor.u32 %v1113_v4, %v1000_v3 }
  0x47   : > { %v1128_v10 = vld [vmem:[%s1358_s5 + $0xc4] sm:$0xf]  ;;  %v1066_v11 = vld [vmem:[%s1358_s5 + $0xc8] sm:$0xf0]  ;;  %v1065_v13 = vor.u32 %v1129_v7, %v1064_v5  ;;  %v1005_v14 = vor.u32 %v1112_v8, %v1002_v9  ;;  %v992_v15 = vld [vmem:[%s1358_s5 + $0x30] sm:$0xf] }
  0x48   : > { %653 = vmatpush.bf16.msra.mxu0 %v1009_v61  ;;  %v1111_v16 = vld [vmem:[%s1358_s5 + $0x34] sm:$0xf0]  ;;  %v1056_v17 = vld [vmem:[%s1358_s5 + $0xb0] sm:$0xf]  ;;  %v1069_v18 = vor.u32 %v1128_v10, %v1066_v11  ;;  %v1110_v20 = vld [vmem:[%s1358_s5 + $0x34] sm:$0xf] }
  0x49   : > { %672 = vmatpush.bf16.msra.mxu1 %v1073_v1  ;;  %691 = vmatpush.bf16.msra.mxu2 %v1013_v2  ;;  %v1127_v19 = vld [vmem:[%s1358_s5 + $0xb4] sm:$0xf0]  ;;  %v994_v21 = vld [vmem:[%s1358_s5 + $0x38] sm:$0xf0]  ;;  %v1126_v22 = vld [vmem:[%s1358_s5 + $0xb4] sm:$0xf]  ;;  %v993_v24 = vor.u32 %v1111_v16, %v992_v15 }
  0x4a   : > { %710 = vmatpush.bf16.msra.mxu3 %v1077_v6  ;;  %v1058_v23 = vld [vmem:[%s1358_s5 + $0xb8] sm:$0xf0]  ;;  %v1057_v25 = vor.u32 %v1127_v19, %v1056_v17  ;;  %v997_v26 = vor.u32 %v1110_v20, %v994_v21  ;;  %v984_v27 = vld [vmem:[%s1358_s5 + $0x20] sm:$0xf]  ;;  %v1109_v28 = vld [vmem:[%s1358_s5 + $0x24] sm:$0xf0] }
  0x4b   : > { %v1048_v29 = vld [vmem:[%s1358_s5 + $0xa0] sm:$0xf]  ;;  %v1061_v30 = vor.u32 %v1126_v22, %v1058_v23  ;;  %v1125_v31 = vld [vmem:[%s1358_s5 + $0xa4] sm:$0xf0]  ;;  %v1108_v32 = vld [vmem:[%s1358_s5 + $0x24] sm:$0xf]  ;;  %v985_v36 = vor.u32 %v1109_v28, %v984_v27 }
  0x4c   : > { %654 = vmatpush.bf16.msra.mxu0 %v1001_v12  ;;  %v986_v33 = vld [vmem:[%s1358_s5 + $0x28] sm:$0xf0]  ;;  %v1124_v34 = vld [vmem:[%s1358_s5 + $0xa4] sm:$0xf]  ;;  %v1049_v37 = vor.u32 %v1125_v31, %v1048_v29  ;;  %v976_v39 = vld [vmem:[%s1358_s5 + $0x10] sm:$0xf] }
  0x4d   : > { %673 = vmatpush.bf16.msra.mxu1 %v1065_v13  ;;  %692 = vmatpush.bf16.msra.mxu2 %v1005_v14  ;;  %v1050_v35 = vld [vmem:[%s1358_s5 + $0xa8] sm:$0xf0]  ;;  %v989_v38 = vor.u32 %v1108_v32, %v986_v33  ;;  %v1107_v40 = vld [vmem:[%s1358_s5 + $0x14] sm:$0xf0]  ;;  %v1040_v41 = vld [vmem:[%s1358_s5 + $0x90] sm:$0xf] }
  0x4e   : > { %711 = vmatpush.bf16.msra.mxu3 %v1069_v18  ;;  %v1053_v42 = vor.u32 %v1124_v34, %v1050_v35  ;;  %v1123_v43 = vld [vmem:[%s1358_s5 + $0x94] sm:$0xf0]  ;;  %v1106_v44 = vld [vmem:[%s1358_s5 + $0x14] sm:$0xf]  ;;  %v978_v45 = vld [vmem:[%s1358_s5 + $0x18] sm:$0xf0]  ;;  %v977_v48 = vor.u32 %v1107_v40, %v976_v39 }
  0x4f   : > { %v1122_v46 = vld [vmem:[%s1358_s5 + $0x94] sm:$0xf]  ;;  %v1042_v47 = vld [vmem:[%s1358_s5 + $0x98] sm:$0xf0]  ;;  %v1041_v49 = vor.u32 %v1123_v43, %v1040_v41  ;;  %v981_v50 = vor.u32 %v1106_v44, %v978_v45  ;;  %v968_v51 = vld [vmem:[%s1358_s5] sm:$0xf] }
  0x50   : > { %655 = vmatpush.bf16.msra.mxu0 %v993_v24  ;;  %v1105_v52 = vld [vmem:[%s1358_s5 + $0x4] sm:$0xf0]  ;;  %v1032_v53 = vld [vmem:[%s1358_s5 + $0x80] sm:$0xf]  ;;  %v1045_v54 = vor.u32 %v1122_v46, %v1042_v47  ;;  %v1104_v56 = vld [vmem:[%s1358_s5 + $0x4] sm:$0xf] }
  0x51   : > { %674 = vmatpush.bf16.msra.mxu1 %v1057_v25  ;;  %693 = vmatpush.bf16.msra.mxu2 %v997_v26  ;;  %v1121_v55 = vld [vmem:[%s1358_s5 + $0x84] sm:$0xf0]  ;;  %v970_v57 = vld [vmem:[%s1358_s5 + $0x8] sm:$0xf0]  ;;  %v1120_v58 = vld [vmem:[%s1358_s5 + $0x84] sm:$0xf]  ;;  %v969_v60 = vor.u32 %v1105_v52, %v968_v51 }
  0x52   : > { %712 = vmatpush.bf16.msra.mxu3 %v1061_v30  ;;  %v1034_v59 = vld [vmem:[%s1358_s5 + $0x88] sm:$0xf0]  ;;  %v952_v61 = vld [vmem:[%s1485_s0] sm:$0xf]  ;;  %v1101_v62 = vld [vmem:[%s1485_s0 + $0x4] sm:$0xf0]  ;;  %v1033_v63 = vor.u32 %v1121_v55, %v1032_v53  ;;  %v973_v0 = vor.u32 %v1104_v56, %v970_v57 }
  0x53   : > { %v1100_v1 = vld [vmem:[%s1485_s0 + $0x4] sm:$0xf]  ;;  %v954_v2 = vld [vmem:[%s1485_s0 + $0x8] sm:$0xf0]  ;;  %v1037_v3 = vor.u32 %v1120_v58, %v1034_v59  ;;  %v953_v4 = vor.u32 %v1101_v62, %v952_v61  ;;  %v960_v6 = vld [vmem:[%s1485_s0 + $0x10] sm:$0xf] }
  0x54   : > { %656 = vmatpush.bf16.msra.mxu0 %v985_v36  ;;  %v957_v5 = vor.u32 %v1100_v1, %v954_v2  ;;  %v1103_v7 = vld [vmem:[%s1485_s0 + $0x14] sm:$0xf0]  ;;  %v1102_v8 = vld [vmem:[%s1485_s0 + $0x14] sm:$0xf]  ;;  %v962_v9 = vld [vmem:[%s1485_s0 + $0x18] sm:$0xf0] }
  0x55   : > { %675 = vmatpush.bf16.msra.mxu1 %v1049_v37  ;;  %694 = vmatpush.bf16.msra.mxu2 %v989_v38  ;;  %v961_v10 = vor.u32 %v1103_v7, %v960_v6  ;;  %v965_v11 = vor.u32 %v1102_v8, %v962_v9  ;;  %s1497_s4 = smov (!%p409_p11, %s949_s4), 5  ;;  %s1136_s12 = sshll.u32 (%p1272_p6), %s1207_s14, 3 }
  0x56   : > { %713 = vmatpush.bf16.msra.mxu3 %v1053_v42  ;;  %s411_s7 = scalar_lea.vmem %s1487_s2, %s1497_s4  ;;  %s788_s11 = scalar_lea.vmem (%p1272_p6), %s1488_s3, %s1136_s12 }
  0x57   : > { %v754_v14 = vld [vmem:[%s411_s7] sm:$0x3] }
  0x58   : > { %657 = vmatpush.bf16.msra.mxu0 %v977_v48  ;;  %v756_v16 = vperm.slane %v754_v14, 0  ;;  %v757_v18 = vperm.slane %v754_v14, 1 }
  0x59   : > { %676 = vmatpush.bf16.msra.mxu1 %v1041_v49  ;;  %695 = vmatpush.bf16.msra.mxu2 %v981_v50 }
  0x5a   : > { %714 = vmatpush.bf16.msra.mxu3 %v1045_v54 }
  0x5c   : > { %658 = vmatpush.bf16.msra.mxu0 %v969_v60 }
  0x5d   : > { %677 = vmatpush.bf16.msra.mxu1 %v1033_v63  ;;  %696 = vmatpush.bf16.msra.mxu2 %v973_v0 }
  0x5e   : > { %715 = vmatpush.bf16.msra.mxu3 %v1037_v3 }
  0x5f   : > { %659 = vmatmul.bf16.vlgmr.msra.gmra.mxu0 %v953_v4 }
  0x60   : > { %678 = vmatmul.bf16.vlgmr.msra.gmra.mxu1 %v957_v5  ;;  %697 = vmatmul.bf16.vlgmr.msra.gmra.mxu2 %v953_v4 }
  0x61   : > { %716 = vmatmul.bf16.vlgmr.msra.gmra.mxu3 %v957_v5 }
  0x6f   : > { %664 = vmatmul.bf16.gmra.mxu0 %v961_v10 }
  0x70   : > { %683 = vmatmul.bf16.gmra.mxu1 %v965_v11  ;;  %702 = vmatmul.bf16.gmra.mxu2 %v961_v10 }
  0x71   : > { %721 = vmatmul.bf16.gmra.mxu3 %v965_v11 }
  0xdc   : > { %v660_v12 = vpop.f32.mrf.mxu0 }
  0xdd   : > { %v679_v13 = vpop.f32.mrf.mxu1 }
  0xde   : > { %v680_v15 = vadd.f32 %v679_v13, %v660_v12 }
  0xe0   : > { %v760_v21 = vadd.f32 %v756_v16, %v680_v15 }
  0xe3   : > { %v698_v17 = vpop.f32.mrf.mxu2 }
  0xe4   : > { %v717_v19 = vpop.f32.mrf.mxu3  ;;  %v662_v20 = vpop.f32.mrf.mxu0 }
  0xe5   : > { %v718_v22 = vadd.f32 %v717_v19, %v698_v17  ;;  %v681_v23 = vpop.f32.mrf.mxu1 }
  0xe6   : > { %v682_v26 = vadd.f32 %v681_v23, %v662_v20 }
  0xe7   : > { %v761_v24 = vadd.f32 %v757_v18, %v718_v22 }
  0xe8   : > { %v762_v32 = vadd.f32 %v756_v16, %v682_v26 }
  0xe9   : > { %v768_v25 = vpack.c.bf16 %v761_v24, %v760_v21 }
  0xeb   : > { %772 = vst [vmem:[%s1454_s9] sm:$0xff] %v768_v25  ;;  %v700_v27 = vpop.f32.mrf.mxu2 }
  0xec   : > { %v719_v28 = vpop.f32.mrf.mxu3  ;;  %v665_v30 = vpop.f32.mrf.mxu0 }
  0xed   : > { %v720_v29 = vadd.f32 %v719_v28, %v700_v27  ;;  %v684_v31 = vpop.f32.mrf.mxu1 }
  0xee   : > { %v685_v35 = vadd.f32 %v684_v31, %v665_v30 }
  0xef   : > { %v763_v33 = vadd.f32 %v757_v18, %v720_v29 }
  0xf0   : > { %v764_v38 = vadd.f32 %v756_v16, %v685_v35 }
  0xf1   : > { %v769_v34 = vpack.c.bf16 %v763_v33, %v762_v32 }
  0xf2   : > { %v823_v51 = vld [vmem:[%s1454_s9] sm:$0xff] (%p1272_p6) }
  0xf3   : > { %773 = vst [vmem:[%s1454_s9 + $0x8] sm:$0xff] %v769_v34  ;;  %v703_v36 = vpop.f32.mrf.mxu2 }
  0xf4   : > { %v722_v37 = vpop.f32.mrf.mxu3  ;;  %v667_v41 = vpop.f32.mrf.mxu0  ;;  %824 = vst [vmem:[%s788_s11] sm:$0xff] (%p1272_p6), %v823_v51 }
  0xf5   : > { %v723_v39 = vadd.f32 %v722_v37, %v703_v36  ;;  %v686_v42 = vpop.f32.mrf.mxu1 }
  0xf6   : > { %v687_v44 = vadd.f32 %v686_v42, %v667_v41 }
  0xf7   : > { %v765_v40 = vadd.f32 %v757_v18, %v723_v39 }
  0xf8   : > { %v766_v48 = vadd.f32 %v756_v16, %v687_v44 }
  0xf9   : > { %v770_v43 = vpack.c.bf16 %v765_v40, %v764_v38 }
  0xfa   : > { %v825_v52 = vld [vmem:[%s1454_s9 + $0x8] sm:$0xff] (%p1272_p6) }
  0xfb   : > { %774 = vst [vmem:[%s1454_s9 + $0x10] sm:$0xff] %v770_v43  ;;  %v705_v45 = vpop.f32.mrf.mxu2 }
  0xfc   : > { %v724_v46 = vpop.f32.mrf.mxu3  ;;  %826 = vst [vmem:[%s788_s11 + $0x18] sm:$0xff] (%p1272_p6), %v825_v52 }
  0xfd   : > { %v725_v47 = vadd.f32 %v724_v46, %v705_v45 }
  0xff   : > { %v767_v49 = vadd.f32 %v757_v18, %v725_v47  ;;  %782 = sbr.rel (!%p1272_p6) target bundleno = 268 (0x10c), region = 82 }
 0x101   : > { %v771_v50 = vpack.c.bf16 %v767_v49, %v766_v48 }
 0x102   : > { %v827_v53 = vld [vmem:[%s1454_s9 + $0x10] sm:$0xff] (%p1272_p6) }
 0x103   : > { %775 = vst [vmem:[%s1454_s9 + $0x18] sm:$0xff] %v771_v50 }
 0x104   : > { %828 = vst [vmem:[%s788_s11 + $0x30] sm:$0xff] %v827_v53 }
 0x10a   : > { %v829_v54 = vld [vmem:[%s1454_s9 + $0x18] sm:$0xff] }
 0x10b   : > { %830 = vst [vmem:[%s788_s11 + $0x48] sm:$0xff] %v829_v54 }
 0x10c PF: > { %s13_s16 = sadd.s32 1, %s1215_s16   ;;  %s1490_s12 = smov %s1203_s13 }
 0x10d   : > { %p10_p12 = scmp.ge.s32.totalorder %s13_s16, 5   ;;  %s1491_s13 = smov %s1277_s22 }
 0x10e   : > { %s1492_s14 = smov %s1211_s15  ;;  %s1493_s15 = smov %s1495_s17 }
 0x10f   :  { %12 = sbr.rel (!%p10_p12) target bundleno = 3 (0x3), region = 157 }

// kernel: label_mask_model_forward.16
= control target key start
LH: loop header
LB: loop body
LE: loop exit
PB: predicated region body
PF: predicated region fallthrough
CT: control target
= control target key end

     0   :  { %11 = vsyncpa [#allocation4], 0  ;;  %s780_s24 = smov [#allocation3]   ;;  %s781_s26 = smov 128   ;;  %s931_s0 = inlined_call_operand.vmem [shape: bf16[32,256], index: 0, kind: input, shape index: {}]   ;;  %s932_s1 = inlined_call_operand.hbm [shape: bf16[256,256], index: 1, kind: input, shape index: {}]   ;;  %s933_s2 = inlined_call_operand.vmem [shape: f32[1,256], index: 2, kind: input, shape index: {}]   ;;  %s934_s3 = inlined_call_operand.vmem [shape: bf16[32,256], index: 3, kind: input, shape index: {}]   ;;  %s935_s4 = inlined_call_operand.vmem [shape: f32[1,256], index: 4, kind: input, shape index: {}]   ;;  %s936_s5 = inlined_call_operand.vmem [shape: f32[1,256], index: 5, kind: input, shape index: {}]   ;;  %s937_s6 = inlined_call_operand.vmem [shape: bf16[32,256], index: 6, kind: output, shape index: {}]  }
   0x1   :  { %s18_s23 = sshll.u32 %s932_s1, 4  ;;  %s20_s25 = sshll.u32 %s780_s24, 4  ;;  %s19_s23 = int_to_ptr.hbm [resolvable:$true] %s18_s23  ;;  %s21_s25 = int_to_ptr.vmem [resolvable:$true] %s20_s25 }
   0x2   :  { %s782_s27 = smov 8  }
   0x3   :  { %26 = dma.hbm_to_vmem [thread:$0]  %s19_s23, 4096, %s21_s25, [#allocation4], %s781_s26, %s781_s26, %s782_s27  }
   0x4   :  { %778 = dma.done.wait [#allocation4], 4096  }
   0x5   :  { %779 = vsyncadd [#allocation4], 4294963200  ;;  %v634_v0 = vld [vmem:[#allocation3 + $0x70] sm:$0xf]  ;;  %v723_v1 = vld [vmem:[#allocation3 + $0x74] sm:$0xf0] }
   0x6   :  { %v698_v2 = vld [vmem:[#allocation3 + $0xf0] sm:$0xf]  ;;  %v635_v3 = vor.u32 %v723_v1, %v634_v0  ;;  %v739_v4 = vld [vmem:[#allocation3 + $0xf4] sm:$0xf0]  ;;  %v722_v5 = vld [vmem:[#allocation3 + $0x74] sm:$0xf] }
   0x7   :  { %v636_v6 = vld [vmem:[#allocation3 + $0x78] sm:$0xf0]  ;;  %v699_v7 = vor.u32 %v739_v4, %v698_v2  ;;  %v738_v9 = vld [vmem:[#allocation3 + $0xf4] sm:$0xf]  ;;  %v626_v11 = vld [vmem:[#allocation3 + $0x60] sm:$0xf] }
   0x8   :  { %v639_v8 = vor.u32 %v722_v5, %v636_v6  ;;  %v700_v10 = vld [vmem:[#allocation3 + $0xf8] sm:$0xf0]  ;;  %275 = vmatpush.bf16.msra.mxu0 %v635_v3  ;;  %v721_v13 = vld [vmem:[#allocation3 + $0x64] sm:$0xf0]  ;;  %v690_v14 = vld [vmem:[#allocation3 + $0xe0] sm:$0xf] }
   0x9   :  { %v703_v12 = vor.u32 %v738_v9, %v700_v10  ;;  %v737_v15 = vld [vmem:[#allocation3 + $0xe4] sm:$0xf0]  ;;  %294 = vmatpush.bf16.msra.mxu1 %v699_v7  ;;  %v627_v16 = vor.u32 %v721_v13, %v626_v11  ;;  %v720_v18 = vld [vmem:[#allocation3 + $0x64] sm:$0xf]  ;;  %v628_v19 = vld [vmem:[#allocation3 + $0x68] sm:$0xf0] }
   0xa   :  { %313 = vmatpush.bf16.msra.mxu2 %v639_v8  ;;  %v691_v17 = vor.u32 %v737_v15, %v690_v14  ;;  %v736_v20 = vld [vmem:[#allocation3 + $0xe4] sm:$0xf]  ;;  %v631_v21 = vor.u32 %v720_v18, %v628_v19  ;;  %v692_v22 = vld [vmem:[#allocation3 + $0xe8] sm:$0xf0]  ;;  %v618_v23 = vld [vmem:[#allocation3 + $0x50] sm:$0xf] }
   0xb   :  { %332 = vmatpush.bf16.msra.mxu3 %v703_v12  ;;  %v719_v24 = vld [vmem:[#allocation3 + $0x54] sm:$0xf0]  ;;  %v695_v25 = vor.u32 %v736_v20, %v692_v22  ;;  %v682_v26 = vld [vmem:[#allocation3 + $0xd0] sm:$0xf]  ;;  %v718_v28 = vld [vmem:[#allocation3 + $0x54] sm:$0xf] }
   0xc   :  { %v735_v27 = vld [vmem:[#allocation3 + $0xd4] sm:$0xf0]  ;;  %276 = vmatpush.bf16.msra.mxu0 %v627_v16  ;;  %v619_v29 = vor.u32 %v719_v24, %v618_v23  ;;  %v620_v30 = vld [vmem:[#allocation3 + $0x58] sm:$0xf0]  ;;  %v734_v31 = vld [vmem:[#allocation3 + $0xd4] sm:$0xf] }
   0xd   :  { %v684_v32 = vld [vmem:[#allocation3 + $0xd8] sm:$0xf0]  ;;  %295 = vmatpush.bf16.msra.mxu1 %v691_v17  ;;  %v683_v33 = vor.u32 %v735_v27, %v682_v26  ;;  %v623_v34 = vor.u32 %v718_v28, %v620_v30  ;;  %v610_v35 = vld [vmem:[#allocation3 + $0x40] sm:$0xf]  ;;  %v717_v36 = vld [vmem:[#allocation3 + $0x44] sm:$0xf0] }
   0xe   :  { %314 = vmatpush.bf16.msra.mxu2 %v631_v21  ;;  %v674_v37 = vld [vmem:[#allocation3 + $0xc0] sm:$0xf]  ;;  %v687_v38 = vor.u32 %v734_v31, %v684_v32  ;;  %v733_v39 = vld [vmem:[#allocation3 + $0xc4] sm:$0xf0]  ;;  %v716_v40 = vld [vmem:[#allocation3 + $0x44] sm:$0xf]  ;;  %v611_v44 = vor.u32 %v717_v36, %v610_v35 }
   0xf   :  { %333 = vmatpush.bf16.msra.mxu3 %v695_v25  ;;  %v612_v41 = vld [vmem:[#allocation3 + $0x48] sm:$0xf0]  ;;  %v732_v42 = vld [vmem:[#allocation3 + $0xc4] sm:$0xf]  ;;  %v675_v45 = vor.u32 %v733_v39, %v674_v37  ;;  %v602_v47 = vld [vmem:[#allocation3 + $0x30] sm:$0xf] }
  0x10   :  { %v676_v43 = vld [vmem:[#allocation3 + $0xc8] sm:$0xf0]  ;;  %277 = vmatpush.bf16.msra.mxu0 %v619_v29  ;;  %v615_v46 = vor.u32 %v716_v40, %v612_v41  ;;  %v715_v48 = vld [vmem:[#allocation3 + $0x34] sm:$0xf0]  ;;  %v666_v49 = vld [vmem:[#allocation3 + $0xb0] sm:$0xf] }
  0x11   :  { %296 = vmatpush.bf16.msra.mxu1 %v683_v33  ;;  %v679_v50 = vor.u32 %v732_v42, %v676_v43  ;;  %v731_v51 = vld [vmem:[#allocation3 + $0xb4] sm:$0xf0]  ;;  %v714_v52 = vld [vmem:[#allocation3 + $0x34] sm:$0xf]  ;;  %v604_v53 = vld [vmem:[#allocation3 + $0x38] sm:$0xf0]  ;;  %v603_v56 = vor.u32 %v715_v48, %v602_v47 }
  0x12   :  { %315 = vmatpush.bf16.msra.mxu2 %v623_v34  ;;  %v730_v54 = vld [vmem:[#allocation3 + $0xb4] sm:$0xf]  ;;  %v668_v55 = vld [vmem:[#allocation3 + $0xb8] sm:$0xf0]  ;;  %v667_v57 = vor.u32 %v731_v51, %v666_v49  ;;  %v607_v58 = vor.u32 %v714_v52, %v604_v53  ;;  %v594_v59 = vld [vmem:[#allocation3 + $0x20] sm:$0xf] }
  0x13   :  { %334 = vmatpush.bf16.msra.mxu3 %v687_v38  ;;  %v713_v60 = vld [vmem:[#allocation3 + $0x24] sm:$0xf0]  ;;  %v658_v61 = vld [vmem:[#allocation3 + $0xa0] sm:$0xf]  ;;  %v671_v62 = vor.u32 %v730_v54, %v668_v55  ;;  %v712_v0 = vld [vmem:[#allocation3 + $0x24] sm:$0xf] }
  0x14   :  { %278 = vmatpush.bf16.msra.mxu0 %v611_v44  ;;  %v729_v63 = vld [vmem:[#allocation3 + $0xa4] sm:$0xf0]  ;;  %v596_v1 = vld [vmem:[#allocation3 + $0x28] sm:$0xf0]  ;;  %v728_v2 = vld [vmem:[#allocation3 + $0xa4] sm:$0xf]  ;;  %v595_v4 = vor.u32 %v713_v60, %v594_v59 }
  0x15   :  { %297 = vmatpush.bf16.msra.mxu1 %v675_v45  ;;  %v660_v3 = vld [vmem:[#allocation3 + $0xa8] sm:$0xf0]  ;;  %v659_v5 = vor.u32 %v729_v63, %v658_v61  ;;  %v599_v6 = vor.u32 %v712_v0, %v596_v1  ;;  %v586_v7 = vld [vmem:[#allocation3 + $0x10] sm:$0xf]  ;;  %v711_v8 = vld [vmem:[#allocation3 + $0x14] sm:$0xf0] }
  0x16   :  { %316 = vmatpush.bf16.msra.mxu2 %v615_v46  ;;  %v650_v9 = vld [vmem:[#allocation3 + $0x90] sm:$0xf]  ;;  %v663_v10 = vor.u32 %v728_v2, %v660_v3  ;;  %v727_v11 = vld [vmem:[#allocation3 + $0x94] sm:$0xf0]  ;;  %v710_v12 = vld [vmem:[#allocation3 + $0x14] sm:$0xf]  ;;  %v587_v16 = vor.u32 %v711_v8, %v586_v7 }
  0x17   :  { %335 = vmatpush.bf16.msra.mxu3 %v679_v50  ;;  %v588_v13 = vld [vmem:[#allocation3 + $0x18] sm:$0xf0]  ;;  %v726_v14 = vld [vmem:[#allocation3 + $0x94] sm:$0xf]  ;;  %v651_v17 = vor.u32 %v727_v11, %v650_v9  ;;  %v578_v19 = vld [vmem:[#allocation3] sm:$0xf] }
  0x18   :  { %279 = vmatpush.bf16.msra.mxu0 %v603_v56  ;;  %v652_v15 = vld [vmem:[#allocation3 + $0x98] sm:$0xf0]  ;;  %v591_v18 = vor.u32 %v710_v12, %v588_v13  ;;  %v709_v20 = vld [vmem:[#allocation3 + $0x4] sm:$0xf0]  ;;  %v642_v21 = vld [vmem:[#allocation3 + $0x80] sm:$0xf] }
  0x19   :  { %298 = vmatpush.bf16.msra.mxu1 %v667_v57  ;;  %v655_v22 = vor.u32 %v726_v14, %v652_v15  ;;  %v725_v23 = vld [vmem:[#allocation3 + $0x84] sm:$0xf0]  ;;  %v708_v24 = vld [vmem:[#allocation3 + $0x4] sm:$0xf]  ;;  %v580_v25 = vld [vmem:[#allocation3 + $0x8] sm:$0xf0]  ;;  %v579_v28 = vor.u32 %v709_v20, %v578_v19 }
  0x1a   :  { %317 = vmatpush.bf16.msra.mxu2 %v607_v58  ;;  %v724_v26 = vld [vmem:[#allocation3 + $0x84] sm:$0xf]  ;;  %v644_v27 = vld [vmem:[#allocation3 + $0x88] sm:$0xf0]  ;;  %v562_v29 = vld [vmem:[%s931_s0] sm:$0xf]  ;;  %v643_v31 = vor.u32 %v725_v23, %v642_v21  ;;  %v583_v32 = vor.u32 %v708_v24, %v580_v25 }
  0x1b   :  { %336 = vmatpush.bf16.msra.mxu3 %v671_v62  ;;  %v705_v30 = vld [vmem:[%s931_s0 + $0x4] sm:$0xf0]  ;;  %v704_v33 = vld [vmem:[%s931_s0 + $0x4] sm:$0xf]  ;;  %v564_v34 = vld [vmem:[%s931_s0 + $0x8] sm:$0xf0]  ;;  %v647_v35 = vor.u32 %v724_v26, %v644_v27 }
  0x1c   :  { %280 = vmatpush.bf16.msra.mxu0 %v595_v4  ;;  %v563_v36 = vor.u32 %v705_v30, %v562_v29  ;;  %v567_v37 = vor.u32 %v704_v33, %v564_v34  ;;  %v570_v38 = vld [vmem:[%s931_s0 + $0x10] sm:$0xf]  ;;  %v707_v39 = vld [vmem:[%s931_s0 + $0x14] sm:$0xf0]  ;;  %v706_v40 = vld [vmem:[%s931_s0 + $0x14] sm:$0xf] }
  0x1d   :  { %299 = vmatpush.bf16.msra.mxu1 %v659_v5  ;;  %v572_v41 = vld [vmem:[%s931_s0 + $0x18] sm:$0xf0]  ;;  %v571_v42 = vor.u32 %v707_v39, %v570_v38  ;;  %v378_v45 = vld [vmem:[%s933_s2] sm:$0x3]  ;;  %v393_v63 = vld [vmem:[%s934_s3 + $0x8] sm:$0xff]  ;;  %v783_v39 = vmov 256.0  }
  0x1e   :  { %318 = vmatpush.bf16.msra.mxu2 %v599_v6  ;;  %v575_v43 = vor.u32 %v706_v40, %v572_v41  ;;  %v380_v48 = vperm.slane %v378_v45, 0  ;;  %v392_v49 = vld [vmem:[%s934_s3] sm:$0xff]  ;;  %v381_v52 = vperm.slane %v378_v45, 1  ;;  %v398_v7 = vunpack.c.l.bf16 %v393_v63  ;;  %v394_v11 = vld [vmem:[%s934_s3 + $0x10] sm:$0xff]  ;;  %v395_v27 = vld [vmem:[%s934_s3 + $0x18] sm:$0xff] }
  0x1f   :  { %337 = vmatpush.bf16.msra.mxu3 %v663_v10  ;;  %v396_v53 = vunpack.c.l.bf16 %v392_v49  ;;  %v397_v58 = vunpack.c.h.bf16 %v392_v49  ;;  %v399_v8 = vunpack.c.h.bf16 %v393_v63  ;;  %v401_v20 = vunpack.c.h.bf16 %v394_v11 }
  0x20   :  { %281 = vmatpush.bf16.msra.mxu0 %v587_v16  ;;  %v402_v33 = vunpack.c.l.bf16 %v395_v27  ;;  %v403_v34 = vunpack.c.h.bf16 %v395_v27  ;;  %744 = vrcp.f32 %v783_v39 }
  0x21   :  { %300 = vmatpush.bf16.msra.mxu1 %v651_v17  ;;  %v400_v17 = vunpack.c.l.bf16 %v394_v11 }
  0x22   :  { %319 = vmatpush.bf16.msra.mxu2 %v591_v18 }
  0x23   :  { %338 = vmatpush.bf16.msra.mxu3 %v655_v22 }
  0x24   :  { %282 = vmatpush.bf16.msra.mxu0 %v579_v28 }
  0x25   :  { %301 = vmatpush.bf16.msra.mxu1 %v643_v31 }
  0x26   :  { %320 = vmatpush.bf16.msra.mxu2 %v583_v32  ;;  %v745_v40 = vpop.eup %744 }
  0x27   :  { %339 = vmatpush.bf16.msra.mxu3 %v647_v35  ;;  %283 = vmatmul.bf16.vlgmr.msra.gmra.mxu0 %v563_v36  ;;  %v425_v41 = vmul.f32 256.0, %v745_v40  ;;  %vm429_vm0 = vweird.f32 %v745_v40 }
  0x28   :  { %302 = vmatmul.bf16.vlgmr.msra.gmra.mxu1 %v567_v37 }
  0x29   :  { %321 = vmatmul.bf16.vlgmr.msra.gmra.mxu2 %v563_v36 }
  0x2a   :  { %340 = vmatmul.bf16.vlgmr.msra.gmra.mxu3 %v567_v37 }
  0x37   :  { %288 = vmatmul.bf16.gmra.mxu0 %v571_v42 }
  0x38   :  { %307 = vmatmul.bf16.gmra.mxu1 %v575_v43 }
  0x39   :  { %326 = vmatmul.bf16.gmra.mxu2 %v571_v42  ;;  %v426_v42 = vsub.f32 1.0, %v425_v41 }
  0x3a   :  { %345 = vmatmul.bf16.gmra.mxu3 %v575_v43 }
  0x3b   :  { %v427_v43 = vmul.f32 %v745_v40, %v426_v42 }
  0xa4   :  { %v284_v44 = vpop.f32.mrf.mxu0 }
  0xa5   :  { %v303_v46 = vpop.f32.mrf.mxu1 }
  0xa6   :  { %v304_v47 = vadd.f32 %v303_v46, %v284_v44  ;;  %v428_v44 = vadd.f32 %v745_v40, %v427_v43 }
  0xa8   :  { %v384_v50 = vadd.f32 %v380_v48, %v304_v47  ;;  %v861_v45 = vsel %vm429_vm0, %v745_v40, %v428_v44 }
  0xaa   :  { %v404_v60 = vadd.f32 %v396_v53, %v384_v50 }
  0xac   :  { %v322_v51 = vpop.f32.mrf.mxu2  ;;  %v286_v55 = vpop.f32.mrf.mxu0 }
  0xad   :  { %v341_v54 = vpop.f32.mrf.mxu3  ;;  %v305_v57 = vpop.f32.mrf.mxu1 }
  0xae   :  { %v342_v56 = vadd.f32 %v341_v54, %v322_v51  ;;  %v306_v61 = vadd.f32 %v305_v57, %v286_v55 }
  0xb0   :  { %v385_v59 = vadd.f32 %v381_v52, %v342_v56  ;;  %v386_v4 = vadd.f32 %v380_v48, %v306_v61 }
  0xb2   :  { %v405_v62 = vadd.f32 %v397_v58, %v385_v59  ;;  %v406_v12 = vadd.f32 %v398_v7, %v386_v4 }
  0xb4   :  { %v324_v0 = vpop.f32.mrf.mxu2  ;;  %v412_v1 = vadd.f32 %v405_v62, %v404_v60  ;;  %v289_v3 = vpop.f32.mrf.mxu0 }
  0xb5   :  { %v343_v2 = vpop.f32.mrf.mxu3  ;;  %v308_v6 = vpop.f32.mrf.mxu1 }
  0xb6   :  { %v344_v5 = vadd.f32 %v343_v2, %v324_v0  ;;  %413 = vadd.xlane.f32.xlu0 %v412_v1  ;;  %v309_v10 = vadd.f32 %v308_v6, %v289_v3 }
  0xb8   :  { %v387_v9 = vadd.f32 %v381_v52, %v344_v5  ;;  %v388_v14 = vadd.f32 %v380_v48, %v309_v10 }
  0xba   :  { %v407_v13 = vadd.f32 %v399_v8, %v387_v9  ;;  %v408_v24 = vadd.f32 %v400_v17, %v388_v14 }
  0xbc   :  { %v327_v15 = vpop.f32.mrf.mxu2  ;;  %v415_v16 = vadd.f32 %v407_v13, %v406_v12  ;;  %v291_v21 = vpop.f32.mrf.mxu0 }
  0xbd   :  { %v346_v18 = vpop.f32.mrf.mxu3  ;;  %v310_v22 = vpop.f32.mrf.mxu1 }
  0xbe   :  { %v347_v19 = vadd.f32 %v346_v18, %v327_v15  ;;  %416 = vadd.xlane.f32.xlu0 %v415_v16  ;;  %v311_v25 = vadd.f32 %v310_v22, %v291_v21  ;;  %v519_v22 = vld [vmem:[%s935_s4] sm:$0x3] }
  0xc0   :  { %v389_v23 = vadd.f32 %v381_v52, %v347_v19  ;;  %v390_v31 = vadd.f32 %v380_v48, %v311_v25 }
  0xc2   :  { %v409_v26 = vadd.f32 %v401_v20, %v389_v23  ;;  %v410_v36 = vadd.f32 %v402_v33, %v390_v31 }
  0xc4   :  { %v329_v28 = vpop.f32.mrf.mxu2  ;;  %v418_v29 = vadd.f32 %v409_v26, %v408_v24 }
  0xc5   :  { %v348_v30 = vpop.f32.mrf.mxu3 }
  0xc6   :  { %v349_v32 = vadd.f32 %v348_v30, %v329_v28  ;;  %419 = vadd.xlane.f32.xlu1 %v418_v29  ;;  %v900_v29 = vperm.slane %v519_v22, 0  ;;  %v902_v30 = vperm.slane %v519_v22, 1 }
  0xc8   :  { %v391_v35 = vadd.f32 %v381_v52, %v349_v32 }
  0xca   :  { %v411_v37 = vadd.f32 %v403_v34, %v391_v35 }
  0xcc   :  { %v421_v38 = vadd.f32 %v411_v37, %v410_v36 }
  0xce   :  { %422 = vadd.xlane.f32.xlu1 %v421_v38 }
 0x129   :  { %v414_v46 = vpop.xlane.xlu0 %413 }
 0x12a   :  { %v431_v47 = vmul.f32 %v861_v45, %v414_v46 }
 0x12c   :  { %v435_v48 = vsub.f32 %v404_v60, %v431_v47  ;;  %v436_v49 = vsub.f32 %v405_v62, %v431_v47 }
 0x12e   :  { %v443_v50 = vmul.f32 %v435_v48, %v435_v48  ;;  %v444_v51 = vmul.f32 %v436_v49, %v436_v49 }
 0x130   :  { %v451_v52 = vadd.f32 %v444_v51, %v443_v50 }
 0x131   :  { %v417_v53 = vpop.xlane.xlu0 %416 }
 0x132   :  { %v432_v54 = vmul.f32 %v861_v45, %v417_v53  ;;  %452 = vadd.xlane.f32.xlu2 %v451_v52 }
 0x134   :  { %v865_v55 = vsub.f32 %v406_v12, %v432_v54  ;;  %v867_v56 = vsub.f32 %v407_v13, %v432_v54 }
 0x136   :  { %v445_v57 = vmul.f32 %v865_v55, %v865_v55  ;;  %v446_v58 = vmul.f32 %v867_v56, %v867_v56 }
 0x138   :  { %v454_v59 = vadd.f32 %v446_v58, %v445_v57 }
 0x139   :  { %v420_v60 = vpop.xlane.xlu1 %419 }
 0x13a   :  { %v433_v61 = vmul.f32 %v861_v45, %v420_v60  ;;  %455 = vadd.xlane.f32.xlu2 %v454_v59 }
 0x13c   :  { %v874_v62 = vsub.f32 %v408_v24, %v433_v61  ;;  %v876_v63 = vsub.f32 %v409_v26, %v433_v61  ;;  %v533_v26 = vld [vmem:[%s936_s5] sm:$0x3] }
 0x13d   :  { %v535_v33 = vperm.slane %v533_v26, 0  ;;  %v536_v34 = vperm.slane %v533_v26, 1 }
 0x13e   :  { %v447_v0 = vmul.f32 %v874_v62, %v874_v62  ;;  %v448_v1 = vmul.f32 %v876_v63, %v876_v63 }
 0x140   :  { %v457_v2 = vadd.f32 %v448_v1, %v447_v0 }
 0x141   :  { %v423_v3 = vpop.xlane.xlu1 %422 }
 0x142   :  { %v434_v4 = vmul.f32 %v861_v45, %v423_v3  ;;  %458 = vadd.xlane.f32.xlu0 %v457_v2 }
 0x144   :  { %v883_v5 = vsub.f32 %v410_v36, %v434_v4  ;;  %v885_v6 = vsub.f32 %v411_v37, %v434_v4 }
 0x146   :  { %v449_v7 = vmul.f32 %v883_v5, %v883_v5  ;;  %v450_v8 = vmul.f32 %v885_v6, %v885_v6 }
 0x148   :  { %v460_v9 = vadd.f32 %v450_v8, %v449_v7 }
 0x14a   :  { %461 = vadd.xlane.f32.xlu1 %v460_v9 }
 0x1a5   :  { %v453_v10 = vpop.xlane.xlu2 %452 }
 0x1a6   :  { %v463_v11 = vmul.f32 %v453_v10, %v861_v45 }
 0x1a8   :  { %v467_v12 = vadd.f32 1e-12, %v463_v11 }
 0x1aa   :  { %746 = vrsqrt.f32 %v467_v12  ;;  %vm477_vm2 = vweird.f32 %v467_v12 }
 0x1ad   :  { %v456_v13 = vpop.xlane.xlu2 %455 }
 0x1ae   :  { %v464_v14 = vmul.f32 %v456_v13, %v861_v45 }
 0x1b0   :  { %v747_v15 = vpop.eup %746  ;;  %v468_v16 = vadd.f32 1e-12, %v464_v14 }
 0x1b1   :  { %v472_v17 = vmul.f32 %v747_v15, %v467_v12  ;;  %vm478_vm1 = vweird.f32 %v747_v15 }
 0x1b2   :  { %748 = vrsqrt.f32 %v468_v16  ;;  %vm479_vm3 = vmor %vm477_vm2, %vm478_vm1  ;;  %vm487_vm5 = vweird.f32 %v468_v16 }
 0x1b3   :  { %v473_v18 = vmul.f32 %v747_v15, %v472_v17 }
 0x1b5   :  { %v474_v19 = vmul.f32 0.5, %v473_v18  ;;  %v459_v20 = vpop.xlane.xlu0 %458 }
 0x1b6   :  { %v465_v21 = vmul.f32 %v459_v20, %v861_v45 }
 0x1b7   :  { %v475_v23 = vsub.f32 1.5, %v474_v19 }
 0x1b8   :  { %v749_v24 = vpop.eup %748  ;;  %v469_v25 = vadd.f32 1e-12, %v465_v21 }
 0x1b9   :  { %v476_v27 = vmul.f32 %v747_v15, %v475_v23  ;;  %v482_v28 = vmul.f32 %v749_v24, %v468_v16  ;;  %vm488_vm4 = vweird.f32 %v749_v24 }
 0x1ba   :  { %750 = vrsqrt.f32 %v469_v25  ;;  %vm489_vm6 = vmor %vm487_vm5, %vm488_vm4  ;;  %vm497_vm8 = vweird.f32 %v469_v25 }
 0x1bb   :  { %v480_v31 = vsel %vm479_vm3, %v747_v15, %v476_v27  ;;  %v483_v32 = vmul.f32 %v749_v24, %v482_v28 }
 0x1bc   :  { %v511_v35 = vmul.f32 %v480_v31, %v435_v48  ;;  %v512_v36 = vmul.f32 %v480_v31, %v436_v49 }
 0x1bd   :  { %v484_v37 = vmul.f32 0.5, %v483_v32  ;;  %v462_v38 = vpop.xlane.xlu1 %461 }
 0x1be   :  { %v525_v39 = vmul.f32 %v900_v29, %v511_v35  ;;  %v526_v40 = vmul.f32 %v902_v30, %v512_v36  ;;  %v466_v41 = vmul.f32 %v462_v38, %v861_v45 }
 0x1bf   :  { %v485_v42 = vsub.f32 1.5, %v484_v37 }
 0x1c0   :  { %v751_v43 = vpop.eup %750  ;;  %v539_v44 = vadd.f32 %v535_v33, %v525_v39  ;;  %v540_v46 = vadd.f32 %v536_v34, %v526_v40  ;;  %v470_v47 = vadd.f32 1e-12, %v466_v41 }
 0x1c1   :  { %v486_v50 = vmul.f32 %v749_v24, %v485_v42  ;;  %v492_v51 = vmul.f32 %v751_v43, %v469_v25  ;;  %vm498_vm7 = vweird.f32 %v751_v43 }
 0x1c2   :  { %v547_v52 = vpack.c.bf16 %v540_v46, %v539_v44  ;;  %752 = vrsqrt.f32 %v470_v47  ;;  %vm499_vm9 = vmor %vm497_vm8, %vm498_vm7  ;;  %vm507_vm11 = vweird.f32 %v470_v47 }
 0x1c3   :  { %v490_v48 = vsel %vm489_vm6, %v749_v24, %v486_v50  ;;  %v493_v49 = vmul.f32 %v751_v43, %v492_v51 }
 0x1c4   :  { %551 = vst [vmem:[%s937_s6] sm:$0xff] %v547_v52  ;;  %v513_v45 = vmul.f32 %v490_v48, %v865_v55  ;;  %v514_v53 = vmul.f32 %v490_v48, %v867_v56 }
 0x1c5   :  { %v494_v54 = vmul.f32 0.5, %v493_v49 }
 0x1c6   :  { %v527_v57 = vmul.f32 %v900_v29, %v513_v45  ;;  %v528_v58 = vmul.f32 %v902_v30, %v514_v53 }
 0x1c7   :  { %v495_v59 = vsub.f32 1.5, %v494_v54 }
 0x1c8   :  { %v753_v60 = vpop.eup %752  ;;  %v541_v61 = vadd.f32 %v535_v33, %v527_v57  ;;  %v542_v0 = vadd.f32 %v536_v34, %v528_v58 }
 0x1c9   :  { %v496_v1 = vmul.f32 %v751_v43, %v495_v59  ;;  %v502_v2 = vmul.f32 %v753_v60, %v470_v47  ;;  %vm508_vm10 = vweird.f32 %v753_v60 }
 0x1ca   :  { %v548_v3 = vpack.c.bf16 %v542_v0, %v541_v61  ;;  %vm509_vm12 = vmor %vm507_vm11, %vm508_vm10 }
 0x1cb   :  { %v500_v4 = vsel %vm499_vm9, %v751_v43, %v496_v1  ;;  %v503_v7 = vmul.f32 %v753_v60, %v502_v2 }
 0x1cc   :  { %552 = vst [vmem:[%s937_s6 + $0x8] sm:$0xff] %v548_v3  ;;  %v515_v55 = vmul.f32 %v500_v4, %v874_v62  ;;  %v516_v56 = vmul.f32 %v500_v4, %v876_v63 }
 0x1cd   :  { %v504_v8 = vmul.f32 0.5, %v503_v7 }
 0x1ce   :  { %v529_v9 = vmul.f32 %v900_v29, %v515_v55  ;;  %v530_v10 = vmul.f32 %v902_v30, %v516_v56 }
 0x1cf   :  { %v505_v11 = vsub.f32 1.5, %v504_v8 }
 0x1d0   :  { %v543_v12 = vadd.f32 %v535_v33, %v529_v9  ;;  %v544_v13 = vadd.f32 %v536_v34, %v530_v10 }
 0x1d1   :  { %v506_v14 = vmul.f32 %v753_v60, %v505_v11 }
 0x1d2   :  { %v549_v15 = vpack.c.bf16 %v544_v13, %v543_v12 }
 0x1d3   :  { %v510_v16 = vsel %vm509_vm12, %v753_v60, %v506_v14 }
 0x1d4   :  { %553 = vst [vmem:[%s937_s6 + $0x10] sm:$0xff] %v549_v15  ;;  %v517_v62 = vmul.f32 %v510_v16, %v883_v5  ;;  %v518_v63 = vmul.f32 %v510_v16, %v885_v6 }
 0x1d6   :  { %v531_v17 = vmul.f32 %v900_v29, %v517_v62  ;;  %v532_v18 = vmul.f32 %v902_v30, %v518_v63 }
 0x1d8   :  { %v545_v19 = vadd.f32 %v535_v33, %v531_v17  ;;  %v546_v20 = vadd.f32 %v536_v34, %v532_v18 }
 0x1da   :  { %v550_v21 = vpack.c.bf16 %v546_v20, %v545_v19 }
 0x1dc   :  { %554 = vst [vmem:[%s937_s6 + $0x18] sm:$0xff] %v550_v21 }
 0x1dd   :  { %559 = vsyncpa [#allocation4], 1 }

// kernel: label_mask_model_forward.18
= control target key start
LH: loop header
LB: loop body
LE: loop exit
PB: predicated region body
PF: predicated region fallthrough
CT: control target
= control target key end

     0   :  { %11 = vsyncpa [#allocation4], 0  ;;  %s1252_s24 = smov [#allocation3]   ;;  %s1253_s26 = smov 128   ;;  %s1463_s0 = inlined_call_operand.vmem [shape: bf16[32,512], index: 0, kind: input, shape index: {}]   ;;  %s1464_s1 = inlined_call_operand.hbm [shape: bf16[512,256], index: 1, kind: input, shape index: {}]   ;;  %s1465_s2 = inlined_call_operand.vmem [shape: f32[1,256], index: 2, kind: input, shape index: {}]   ;;  %s1466_s3 = inlined_call_operand.vmem [shape: bf16[32,256], index: 3, kind: input, shape index: {}]   ;;  %s1467_s4 = inlined_call_operand.vmem [shape: f32[1,256], index: 4, kind: input, shape index: {}]   ;;  %s1468_s5 = inlined_call_operand.vmem [shape: f32[1,256], index: 5, kind: input, shape index: {}]   ;;  %s1469_s6 = inlined_call_operand.vmem [shape: bf16[32,256], index: 6, kind: output, shape index: {}]  }
   0x1   :  { %s18_s23 = sshll.u32 %s1464_s1, 4  ;;  %s20_s25 = sshll.u32 %s1252_s24, 4  ;;  %s19_s23 = int_to_ptr.hbm [resolvable:$true] %s18_s23  ;;  %s21_s25 = int_to_ptr.vmem [resolvable:$true] %s20_s25 }
   0x2   :  { %s1254_s27 = smov 8  }
   0x3   :  { %26 = dma.hbm_to_vmem [thread:$0]  %s19_s23, 8192, %s21_s25, [#allocation4], %s1253_s26, %s1253_s26, %s1254_s27  }
   0x4   :  { %1250 = dma.done.wait [#allocation4], 8192  }
   0x5   :  { %1251 = vsyncadd [#allocation4], 4294959104  ;;  %v942_v0 = vld [vmem:[#allocation3 + $0x70] sm:$0xf]  ;;  %v1163_v1 = vld [vmem:[#allocation3 + $0x74] sm:$0xf0] }
   0x6   :  { %v1006_v2 = vld [vmem:[#allocation3 + $0xf0] sm:$0xf]  ;;  %v943_v3 = vor.u32 %v1163_v1, %v942_v0  ;;  %v1179_v4 = vld [vmem:[#allocation3 + $0xf4] sm:$0xf0]  ;;  %v934_v11 = vld [vmem:[#allocation3 + $0x60] sm:$0xf] }
   0x7   :  { %v1070_v5 = vld [vmem:[#allocation3 + $0x170] sm:$0xf]  ;;  %v1195_v6 = vld [vmem:[#allocation3 + $0x174] sm:$0xf0]  ;;  %v1007_v7 = vor.u32 %v1179_v4, %v1006_v2  ;;  %v1161_v13 = vld [vmem:[#allocation3 + $0x64] sm:$0xf0] }
   0x8   :  { %v1071_v8 = vor.u32 %v1195_v6, %v1070_v5  ;;  %v1134_v9 = vld [vmem:[#allocation3 + $0x1f0] sm:$0xf]  ;;  %v1211_v10 = vld [vmem:[#allocation3 + $0x1f4] sm:$0xf0]  ;;  %491 = vmatpush.bf16.msra.mxu0 %v943_v3  ;;  %v998_v14 = vld [vmem:[#allocation3 + $0xe0] sm:$0xf]  ;;  %v935_v16 = vor.u32 %v1161_v13, %v934_v11 }
   0x9   :  { %v1135_v12 = vor.u32 %v1211_v10, %v1134_v9  ;;  %v1177_v15 = vld [vmem:[#allocation3 + $0xe4] sm:$0xf0]  ;;  %510 = vmatpush.bf16.msra.mxu1 %v1007_v7  ;;  %v1062_v18 = vld [vmem:[#allocation3 + $0x160] sm:$0xf]  ;;  %v926_v23 = vld [vmem:[#allocation3 + $0x50] sm:$0xf] }
   0xa   :  { %529 = vmatpush.bf16.msra.mxu2 %v1071_v8  ;;  %v999_v17 = vor.u32 %v1177_v15, %v998_v14  ;;  %v1193_v19 = vld [vmem:[#allocation3 + $0x164] sm:$0xf0]  ;;  %v1126_v20 = vld [vmem:[#allocation3 + $0x1e0] sm:$0xf]  ;;  %v1159_v24 = vld [vmem:[#allocation3 + $0x54] sm:$0xf0] }
   0xb   :  { %548 = vmatpush.bf16.msra.mxu3 %v1135_v12  ;;  %v1063_v21 = vor.u32 %v1193_v19, %v1062_v18  ;;  %v1209_v22 = vld [vmem:[#allocation3 + $0x1e4] sm:$0xf0]  ;;  %v990_v26 = vld [vmem:[#allocation3 + $0xd0] sm:$0xf]  ;;  %v1175_v27 = vld [vmem:[#allocation3 + $0xd4] sm:$0xf0]  ;;  %v927_v29 = vor.u32 %v1159_v24, %v926_v23 }
   0xc   :  { %v1127_v25 = vor.u32 %v1209_v22, %v1126_v20  ;;  %v1054_v28 = vld [vmem:[#allocation3 + $0x150] sm:$0xf]  ;;  %492 = vmatpush.bf16.msra.mxu0 %v935_v16  ;;  %v1191_v30 = vld [vmem:[#allocation3 + $0x154] sm:$0xf0]  ;;  %v991_v33 = vor.u32 %v1175_v27, %v990_v26  ;;  %v918_v35 = vld [vmem:[#allocation3 + $0x40] sm:$0xf] }
   0xd   :  { %v1118_v31 = vld [vmem:[#allocation3 + $0x1d0] sm:$0xf]  ;;  %v1207_v32 = vld [vmem:[#allocation3 + $0x1d4] sm:$0xf0]  ;;  %511 = vmatpush.bf16.msra.mxu1 %v999_v17  ;;  %v1055_v34 = vor.u32 %v1191_v30, %v1054_v28  ;;  %v1157_v36 = vld [vmem:[#allocation3 + $0x44] sm:$0xf0] }
   0xe   :  { %530 = vmatpush.bf16.msra.mxu2 %v1063_v21  ;;  %v982_v37 = vld [vmem:[#allocation3 + $0xc0] sm:$0xf]  ;;  %v1119_v38 = vor.u32 %v1207_v32, %v1118_v31  ;;  %v1173_v39 = vld [vmem:[#allocation3 + $0xc4] sm:$0xf0]  ;;  %v919_v44 = vor.u32 %v1157_v36, %v918_v35  ;;  %v910_v47 = vld [vmem:[#allocation3 + $0x30] sm:$0xf] }
   0xf   :  { %549 = vmatpush.bf16.msra.mxu3 %v1127_v25  ;;  %v1046_v40 = vld [vmem:[#allocation3 + $0x140] sm:$0xf]  ;;  %v1189_v41 = vld [vmem:[#allocation3 + $0x144] sm:$0xf0]  ;;  %v983_v45 = vor.u32 %v1173_v39, %v982_v37  ;;  %v1155_v48 = vld [vmem:[#allocation3 + $0x34] sm:$0xf0] }
  0x10   :  { %v1110_v42 = vld [vmem:[#allocation3 + $0x1c0] sm:$0xf]  ;;  %v1205_v43 = vld [vmem:[#allocation3 + $0x1c4] sm:$0xf0]  ;;  %493 = vmatpush.bf16.msra.mxu0 %v927_v29  ;;  %v1047_v46 = vor.u32 %v1189_v41, %v1046_v40  ;;  %v974_v49 = vld [vmem:[#allocation3 + $0xb0] sm:$0xf]  ;;  %v911_v56 = vor.u32 %v1155_v48, %v910_v47 }
  0x11   :  { %512 = vmatpush.bf16.msra.mxu1 %v991_v33  ;;  %v1111_v50 = vor.u32 %v1205_v43, %v1110_v42  ;;  %v1171_v51 = vld [vmem:[#allocation3 + $0xb4] sm:$0xf0]  ;;  %v1038_v52 = vld [vmem:[#allocation3 + $0x130] sm:$0xf]  ;;  %v902_v59 = vld [vmem:[#allocation3 + $0x20] sm:$0xf] }
  0x12   :  { %531 = vmatpush.bf16.msra.mxu2 %v1055_v34  ;;  %v1187_v53 = vld [vmem:[#allocation3 + $0x134] sm:$0xf0]  ;;  %v1102_v54 = vld [vmem:[#allocation3 + $0x1b0] sm:$0xf]  ;;  %v975_v57 = vor.u32 %v1171_v51, %v974_v49  ;;  %v1153_v60 = vld [vmem:[#allocation3 + $0x24] sm:$0xf0] }
  0x13   :  { %550 = vmatpush.bf16.msra.mxu3 %v1119_v38  ;;  %v1203_v55 = vld [vmem:[#allocation3 + $0x1b4] sm:$0xf0]  ;;  %v1039_v58 = vor.u32 %v1187_v53, %v1038_v52  ;;  %v966_v61 = vld [vmem:[#allocation3 + $0xa0] sm:$0xf]  ;;  %v1169_v63 = vld [vmem:[#allocation3 + $0xa4] sm:$0xf0]  ;;  %v903_v4 = vor.u32 %v1153_v60, %v902_v59 }
  0x14   :  { %494 = vmatpush.bf16.msra.mxu0 %v919_v44  ;;  %v1103_v62 = vor.u32 %v1203_v55, %v1102_v54  ;;  %v1030_v0 = vld [vmem:[#allocation3 + $0x120] sm:$0xf]  ;;  %v1185_v1 = vld [vmem:[#allocation3 + $0x124] sm:$0xf0]  ;;  %v967_v5 = vor.u32 %v1169_v63, %v966_v61  ;;  %v894_v7 = vld [vmem:[#allocation3 + $0x10] sm:$0xf] }
  0x15   :  { %513 = vmatpush.bf16.msra.mxu1 %v983_v45  ;;  %v1094_v2 = vld [vmem:[#allocation3 + $0x1a0] sm:$0xf]  ;;  %v1201_v3 = vld [vmem:[#allocation3 + $0x1a4] sm:$0xf0]  ;;  %v1031_v6 = vor.u32 %v1185_v1, %v1030_v0  ;;  %v1151_v8 = vld [vmem:[#allocation3 + $0x14] sm:$0xf0] }
  0x16   :  { %532 = vmatpush.bf16.msra.mxu2 %v1047_v46  ;;  %v958_v9 = vld [vmem:[#allocation3 + $0x90] sm:$0xf]  ;;  %v1095_v10 = vor.u32 %v1201_v3, %v1094_v2  ;;  %v1167_v11 = vld [vmem:[#allocation3 + $0x94] sm:$0xf0]  ;;  %v886_v16 = vld [vmem:[#allocation3] sm:$0xf]  ;;  %v895_v17 = vor.u32 %v1151_v8, %v894_v7 }
  0x17   :  { %551 = vmatpush.bf16.msra.mxu3 %v1111_v50  ;;  %v1022_v12 = vld [vmem:[#allocation3 + $0x110] sm:$0xf]  ;;  %v1183_v13 = vld [vmem:[#allocation3 + $0x114] sm:$0xf0]  ;;  %v1149_v18 = vld [vmem:[#allocation3 + $0x4] sm:$0xf0]  ;;  %v959_v21 = vor.u32 %v1167_v11, %v958_v9 }
  0x18   :  { %495 = vmatpush.bf16.msra.mxu0 %v911_v56  ;;  %v1086_v14 = vld [vmem:[#allocation3 + $0x190] sm:$0xf]  ;;  %v1199_v15 = vld [vmem:[#allocation3 + $0x194] sm:$0xf0]  ;;  %v950_v19 = vld [vmem:[#allocation3 + $0x80] sm:$0xf]  ;;  %v1023_v22 = vor.u32 %v1183_v13, %v1022_v12  ;;  %v887_v34 = vor.u32 %v1149_v18, %v886_v16 }
  0x19   :  { %514 = vmatpush.bf16.msra.mxu1 %v975_v57  ;;  %v1165_v20 = vld [vmem:[#allocation3 + $0x84] sm:$0xf0]  ;;  %v1014_v23 = vld [vmem:[#allocation3 + $0x100] sm:$0xf]  ;;  %v1087_v26 = vor.u32 %v1199_v15, %v1086_v14  ;;  %v1142_v29 = vld [vmem:[%s1463_s0 + $0xc] sm:$0xf0] }
  0x1a   :  { %533 = vmatpush.bf16.msra.mxu2 %v1039_v58  ;;  %v1181_v24 = vld [vmem:[#allocation3 + $0x104] sm:$0xf0]  ;;  %v1078_v25 = vld [vmem:[#allocation3 + $0x180] sm:$0xf]  ;;  %v1140_v30 = vld [vmem:[%s1463_s0 + $0x4] sm:$0xf]  ;;  %v951_v38 = vor.u32 %v1165_v20, %v950_v19 }
  0x1b   :  { %552 = vmatpush.bf16.msra.mxu3 %v1103_v62  ;;  %v1197_v27 = vld [vmem:[#allocation3 + $0x184] sm:$0xf0]  ;;  %v854_v28 = vld [vmem:[%s1463_s0] sm:$0xf]  ;;  %v856_v31 = vld [vmem:[%s1463_s0 + $0x10] sm:$0xf0]  ;;  %v1015_v39 = vor.u32 %v1181_v24, %v1014_v23 }
  0x1c   :  { %496 = vmatpush.bf16.msra.mxu0 %v903_v4  ;;  %v1194_v32 = vld [vmem:[#allocation3 + $0x174] sm:$0xf]  ;;  %v1072_v33 = vld [vmem:[#allocation3 + $0x178] sm:$0xf0]  ;;  %v862_v35 = vld [vmem:[%s1463_s0 + $0x8] sm:$0xf]  ;;  %v1079_v43 = vor.u32 %v1197_v27, %v1078_v25  ;;  %v1318_v48 = vor.u32 %v1142_v29, %v854_v28  ;;  %v1320_v53 = vor.u32 %v1140_v30, %v856_v31 }
  0x1d   :  { %515 = vmatpush.bf16.msra.mxu1 %v967_v5  ;;  %v1178_v36 = vld [vmem:[#allocation3 + $0xf4] sm:$0xf]  ;;  %v1008_v37 = vld [vmem:[#allocation3 + $0xf8] sm:$0xf0]  ;;  %v1143_v40 = vld [vmem:[%s1463_s0 + $0x14] sm:$0xf0]  ;;  %v1075_v44 = vor.u32 %v1194_v32, %v1072_v33 }
  0x1e   :  { %534 = vmatpush.bf16.msra.mxu2 %v1031_v6  ;;  %v1141_v41 = vld [vmem:[%s1463_s0 + $0xc] sm:$0xf]  ;;  %v864_v42 = vld [vmem:[%s1463_s0 + $0x18] sm:$0xf0]  ;;  %v1162_v45 = vld [vmem:[#allocation3 + $0x74] sm:$0xf]  ;;  %v1011_v49 = vor.u32 %v1178_v36, %v1008_v37  ;;  %v1322_v54 = vor.u32 %v1143_v40, %v862_v35 }
  0x1f   :  { %553 = vmatpush.bf16.msra.mxu3 %v1095_v10  ;;  %v944_v46 = vld [vmem:[#allocation3 + $0x78] sm:$0xf0]  ;;  %v1210_v47 = vld [vmem:[#allocation3 + $0x1f4] sm:$0xf]  ;;  %v1192_v51 = vld [vmem:[#allocation3 + $0x164] sm:$0xf]  ;;  %v1324_v57 = vor.u32 %v1141_v41, %v864_v42 }
  0x20   :  { %497 = vmatpush.bf16.msra.mxu0 %v895_v17  ;;  %v1136_v50 = vld [vmem:[#allocation3 + $0x1f8] sm:$0xf0]  ;;  %v1064_v52 = vld [vmem:[#allocation3 + $0x168] sm:$0xf0]  ;;  %v1176_v55 = vld [vmem:[#allocation3 + $0xe4] sm:$0xf]  ;;  %v947_v58 = vor.u32 %v1162_v45, %v944_v46 }
  0x21   :  { %516 = vmatpush.bf16.msra.mxu1 %v959_v21  ;;  %v1000_v56 = vld [vmem:[#allocation3 + $0xe8] sm:$0xf0]  ;;  %v1139_v59 = vor.u32 %v1210_v47, %v1136_v50  ;;  %v1067_v60 = vor.u32 %v1192_v51, %v1064_v52  ;;  %v1160_v61 = vld [vmem:[#allocation3 + $0x64] sm:$0xf]  ;;  %v1190_v2 = vld [vmem:[#allocation3 + $0x154] sm:$0xf] }
  0x22   :  { %535 = vmatpush.bf16.msra.mxu2 %v1023_v22  ;;  %v936_v62 = vld [vmem:[#allocation3 + $0x68] sm:$0xf0]  ;;  %v1208_v63 = vld [vmem:[#allocation3 + $0x1e4] sm:$0xf]  ;;  %v1003_v0 = vor.u32 %v1176_v55, %v1000_v56  ;;  %v1056_v3 = vld [vmem:[#allocation3 + $0x158] sm:$0xf0] }
  0x23   :  { %554 = vmatpush.bf16.msra.mxu3 %v1087_v26  ;;  %v1128_v1 = vld [vmem:[#allocation3 + $0x1e8] sm:$0xf0]  ;;  %v1174_v4 = vld [vmem:[#allocation3 + $0xd4] sm:$0xf]  ;;  %v992_v5 = vld [vmem:[#allocation3 + $0xd8] sm:$0xf0]  ;;  %v939_v6 = vor.u32 %v1160_v61, %v936_v62  ;;  %v1059_v8 = vor.u32 %v1190_v2, %v1056_v3 }
  0x24   :  { %498 = vmatpush.bf16.msra.mxu0 %v887_v34  ;;  %v1131_v7 = vor.u32 %v1208_v63, %v1128_v1  ;;  %v1158_v9 = vld [vmem:[#allocation3 + $0x54] sm:$0xf]  ;;  %v928_v10 = vld [vmem:[#allocation3 + $0x58] sm:$0xf0]  ;;  %v995_v12 = vor.u32 %v1174_v4, %v992_v5  ;;  %v1188_v14 = vld [vmem:[#allocation3 + $0x144] sm:$0xf] }
  0x25   :  { %517 = vmatpush.bf16.msra.mxu1 %v951_v38  ;;  %v1206_v11 = vld [vmem:[#allocation3 + $0x1d4] sm:$0xf]  ;;  %v1120_v13 = vld [vmem:[#allocation3 + $0x1d8] sm:$0xf0]  ;;  %v1048_v15 = vld [vmem:[#allocation3 + $0x148] sm:$0xf0]  ;;  %v931_v18 = vor.u32 %v1158_v9, %v928_v10 }
  0x26   :  { %536 = vmatpush.bf16.msra.mxu2 %v1015_v39  ;;  %v1172_v16 = vld [vmem:[#allocation3 + $0xc4] sm:$0xf]  ;;  %v984_v17 = vld [vmem:[#allocation3 + $0xc8] sm:$0xf0]  ;;  %v1123_v22 = vor.u32 %v1206_v11, %v1120_v13  ;;  %v1051_v23 = vor.u32 %v1188_v14, %v1048_v15  ;;  %v870_v25 = vld [vmem:[%s1463_s0 + $0x20] sm:$0xf] }
  0x27   :  { %555 = vmatpush.bf16.msra.mxu3 %v1079_v43  ;;  %499 = vmatmul.bf16.vlgmr.msra.gmra.mxu0 %v1318_v48  ;;  %v1156_v19 = vld [vmem:[#allocation3 + $0x44] sm:$0xf]  ;;  %v920_v20 = vld [vmem:[#allocation3 + $0x48] sm:$0xf0]  ;;  %v1146_v26 = vld [vmem:[%s1463_s0 + $0x2c] sm:$0xf0]  ;;  %v987_v27 = vor.u32 %v1172_v16, %v984_v17 }
  0x28   :  { %518 = vmatmul.bf16.vlgmr.msra.gmra.mxu1 %v1320_v53  ;;  %567 = vmatpush.bf16.msrb.mxu0 %v947_v58  ;;  %v1204_v21 = vld [vmem:[#allocation3 + $0x1c4] sm:$0xf]  ;;  %v1112_v24 = vld [vmem:[#allocation3 + $0x1c8] sm:$0xf0]  ;;  %v872_v29 = vld [vmem:[%s1463_s0 + $0x30] sm:$0xf0]  ;;  %v923_v35 = vor.u32 %v1156_v19, %v920_v20 }
  0x29   :  { %586 = vmatpush.bf16.msrb.mxu1 %v1011_v49  ;;  %537 = vmatmul.bf16.vlgmr.msra.gmra.mxu2 %v1322_v54  ;;  %v1144_v28 = vld [vmem:[%s1463_s0 + $0x24] sm:$0xf]  ;;  %v1186_v30 = vld [vmem:[#allocation3 + $0x134] sm:$0xf]  ;;  %v1040_v31 = vld [vmem:[#allocation3 + $0x138] sm:$0xf0]  ;;  %v1115_v39 = vor.u32 %v1204_v21, %v1112_v24 }
  0x2a   :  { %605 = vmatpush.bf16.msrb.mxu2 %v1075_v44  ;;  %556 = vmatmul.bf16.vlgmr.msra.gmra.mxu3 %v1324_v57  ;;  %v878_v32 = vld [vmem:[%s1463_s0 + $0x28] sm:$0xf]  ;;  %v1170_v33 = vld [vmem:[#allocation3 + $0xb4] sm:$0xf]  ;;  %v976_v34 = vld [vmem:[#allocation3 + $0xb8] sm:$0xf0]  ;;  %v1043_v40 = vor.u32 %v1186_v30, %v1040_v31  ;;  %v1354_v44 = vor.u32 %v1146_v26, %v870_v25  ;;  %v1356_v50 = vor.u32 %v1144_v28, %v872_v29 }
  0x2b   :  { %624 = vmatpush.bf16.msrb.mxu3 %v1139_v59  ;;  %v1147_v36 = vld [vmem:[%s1463_s0 + $0x34] sm:$0xf0]  ;;  %v1145_v37 = vld [vmem:[%s1463_s0 + $0x2c] sm:$0xf]  ;;  %v880_v38 = vld [vmem:[%s1463_s0 + $0x38] sm:$0xf0]  ;;  %v979_v45 = vor.u32 %v1170_v33, %v976_v34 }
  0x2c   :  { %568 = vmatpush.bf16.msrb.mxu0 %v939_v6  ;;  %v1154_v41 = vld [vmem:[#allocation3 + $0x34] sm:$0xf]  ;;  %v912_v42 = vld [vmem:[#allocation3 + $0x38] sm:$0xf0]  ;;  %v1184_v47 = vld [vmem:[#allocation3 + $0x124] sm:$0xf]  ;;  %v1358_v51 = vor.u32 %v1147_v36, %v878_v32  ;;  %v883_v56 = vor.u32 %v1145_v37, %v880_v38 }
  0x2d   :  { %587 = vmatpush.bf16.msrb.mxu1 %v1003_v0  ;;  %v1202_v43 = vld [vmem:[#allocation3 + $0x1b4] sm:$0xf]  ;;  %v1104_v46 = vld [vmem:[#allocation3 + $0x1b8] sm:$0xf0]  ;;  %v1032_v49 = vld [vmem:[#allocation3 + $0x128] sm:$0xf0]  ;;  %v915_v58 = vor.u32 %v1154_v41, %v912_v42 }
  0x2e   :  { %606 = vmatpush.bf16.msrb.mxu2 %v1067_v60  ;;  %v1168_v52 = vld [vmem:[#allocation3 + $0xa4] sm:$0xf]  ;;  %v968_v55 = vld [vmem:[#allocation3 + $0xa8] sm:$0xf0]  ;;  %v1107_v59 = vor.u32 %v1202_v43, %v1104_v46  ;;  %v1035_v60 = vor.u32 %v1184_v47, %v1032_v49  ;;  %v1182_v2 = vld [vmem:[#allocation3 + $0x114] sm:$0xf] }
  0x2f   :  { %625 = vmatpush.bf16.msrb.mxu3 %v1131_v7  ;;  %v1152_v61 = vld [vmem:[#allocation3 + $0x24] sm:$0xf]  ;;  %v904_v62 = vld [vmem:[#allocation3 + $0x28] sm:$0xf0]  ;;  %v971_v0 = vor.u32 %v1168_v52, %v968_v55  ;;  %v1024_v3 = vld [vmem:[#allocation3 + $0x118] sm:$0xf0] }
  0x30   :  { %569 = vmatpush.bf16.msrb.mxu0 %v931_v18  ;;  %v1200_v63 = vld [vmem:[#allocation3 + $0x1a4] sm:$0xf]  ;;  %v1096_v1 = vld [vmem:[#allocation3 + $0x1a8] sm:$0xf0]  ;;  %v1166_v4 = vld [vmem:[#allocation3 + $0x94] sm:$0xf]  ;;  %v907_v6 = vor.u32 %v1152_v61, %v904_v62 }
  0x31   :  { %588 = vmatpush.bf16.msrb.mxu1 %v995_v12  ;;  %v960_v5 = vld [vmem:[#allocation3 + $0x98] sm:$0xf0]  ;;  %v1099_v7 = vor.u32 %v1200_v63, %v1096_v1  ;;  %v1150_v9 = vld [vmem:[#allocation3 + $0x14] sm:$0xf]  ;;  %v1180_v14 = vld [vmem:[#allocation3 + $0x104] sm:$0xf] }
  0x32   :  { %607 = vmatpush.bf16.msrb.mxu2 %v1059_v8  ;;  %v1027_v8 = vor.u32 %v1182_v2, %v1024_v3  ;;  %v896_v10 = vld [vmem:[#allocation3 + $0x18] sm:$0xf0]  ;;  %v1198_v11 = vld [vmem:[#allocation3 + $0x194] sm:$0xf]  ;;  %v963_v12 = vor.u32 %v1166_v4, %v960_v5  ;;  %v1016_v15 = vld [vmem:[#allocation3 + $0x108] sm:$0xf0] }
  0x33   :  { %626 = vmatpush.bf16.msrb.mxu3 %v1123_v22  ;;  %v1088_v13 = vld [vmem:[#allocation3 + $0x198] sm:$0xf0]  ;;  %v1164_v16 = vld [vmem:[#allocation3 + $0x84] sm:$0xf]  ;;  %v952_v17 = vld [vmem:[#allocation3 + $0x88] sm:$0xf0]  ;;  %v899_v18 = vor.u32 %v1150_v9, %v896_v10  ;;  %v1019_v20 = vor.u32 %v1180_v14, %v1016_v15 }
  0x34   :  { %570 = vmatpush.bf16.msrb.mxu0 %v923_v35  ;;  %v1091_v19 = vor.u32 %v1198_v11, %v1088_v13  ;;  %v1148_v21 = vld [vmem:[#allocation3 + $0x4] sm:$0xf]  ;;  %v888_v22 = vld [vmem:[#allocation3 + $0x8] sm:$0xf0] }
  0x35   :  { %589 = vmatpush.bf16.msrb.mxu1 %v987_v27  ;;  %v1196_v24 = vld [vmem:[#allocation3 + $0x184] sm:$0xf]  ;;  %v1080_v25 = vld [vmem:[#allocation3 + $0x188] sm:$0xf0]  ;;  %v891_v26 = vor.u32 %v1148_v21, %v888_v22 }
  0x36   :  { %608 = vmatpush.bf16.msrb.mxu2 %v1051_v23  ;;  %v955_v23 = vor.u32 %v1164_v16, %v952_v17  ;;  %v1083_v27 = vor.u32 %v1196_v24, %v1080_v25  ;;  %v684_v49 = vld [vmem:[%s1466_s3] sm:$0xff]  ;;  %v686_v24 = vld [vmem:[%s1466_s3 + $0x10] sm:$0xff] }
  0x37   :  { %627 = vmatpush.bf16.msrb.mxu3 %v1115_v39  ;;  %504 = vmatmul.bf16.gmra.mxu0 %v1354_v44  ;;  %v688_v61 = vunpack.c.l.bf16 %v684_v49 }
  0x38   :  { %523 = vmatmul.bf16.gmra.mxu1 %v1356_v50  ;;  %571 = vmatpush.bf16.msrb.mxu0 %v915_v58 }
  0x39   :  { %590 = vmatpush.bf16.msrb.mxu1 %v979_v45  ;;  %542 = vmatmul.bf16.gmra.mxu2 %v1358_v51 }
  0x3a   :  { %609 = vmatpush.bf16.msrb.mxu2 %v1043_v40  ;;  %561 = vmatmul.bf16.gmra.mxu3 %v883_v56 }
  0x3b   :  { %628 = vmatpush.bf16.msrb.mxu3 %v1107_v59 }
  0x3c   :  { %572 = vmatpush.bf16.msrb.mxu0 %v907_v6 }
  0x3d   :  { %591 = vmatpush.bf16.msrb.mxu1 %v971_v0  ;;  %v689_v0 = vunpack.c.h.bf16 %v684_v49 }
  0x3e   :  { %610 = vmatpush.bf16.msrb.mxu2 %v1035_v60 }
  0x3f   :  { %629 = vmatpush.bf16.msrb.mxu3 %v1099_v7  ;;  %v685_v7 = vld [vmem:[%s1466_s3 + $0x8] sm:$0xff] }
  0x40   :  { %573 = vmatpush.bf16.msrb.mxu0 %v899_v18  ;;  %v690_v14 = vunpack.c.l.bf16 %v685_v7  ;;  %v691_v18 = vunpack.c.h.bf16 %v685_v7 }
  0x41   :  { %592 = vmatpush.bf16.msrb.mxu1 %v963_v12 }
  0x42   :  { %611 = vmatpush.bf16.msrb.mxu2 %v1027_v8 }
  0x43   :  { %630 = vmatpush.bf16.msrb.mxu3 %v1091_v19 }
  0x44   :  { %574 = vmatpush.bf16.msrb.mxu0 %v891_v26 }
  0x45   :  { %593 = vmatpush.bf16.msrb.mxu1 %v955_v23 }
  0x46   :  { %612 = vmatpush.bf16.msrb.mxu2 %v1019_v20 }
  0x47   :  { %631 = vmatpush.bf16.msrb.mxu3 %v1083_v27  ;;  %575 = vmatmul.bf16.vlgmr.msrb.gmra.mxu0 %v1318_v48 }
  0x48   :  { %594 = vmatmul.bf16.vlgmr.msrb.gmra.mxu1 %v1320_v53 }
  0x49   :  { %613 = vmatmul.bf16.vlgmr.msrb.gmra.mxu2 %v1322_v54 }
  0x4a   :  { %632 = vmatmul.bf16.vlgmr.msrb.gmra.mxu3 %v1324_v57 }
  0x57   :  { %580 = vmatmul.bf16.gmra.mxu0 %v1354_v44  ;;  %v670_v44 = vld [vmem:[%s1465_s2] sm:$0x3] }
  0x58   :  { %599 = vmatmul.bf16.gmra.mxu1 %v1356_v50  ;;  %v672_v47 = vperm.slane %v670_v44, 0 }
  0x59   :  { %618 = vmatmul.bf16.gmra.mxu2 %v1358_v51 }
  0x5a   :  { %637 = vmatmul.bf16.gmra.mxu3 %v883_v56  ;;  %v673_v56 = vperm.slane %v670_v44, 1 }
  0xa4   :  { %v500_v28 = vpop.f32.mrf.mxu0 }
  0xa5   :  { %v519_v29 = vpop.f32.mrf.mxu1 }
  0xa6   :  { %v520_v38 = vadd.f32 %v519_v29, %v500_v28 }
  0xac   :  { %v538_v30 = vpop.f32.mrf.mxu2  ;;  %v502_v32 = vpop.f32.mrf.mxu0 }
  0xad   :  { %v557_v31 = vpop.f32.mrf.mxu3  ;;  %v521_v33 = vpop.f32.mrf.mxu1  ;;  %v539_v43 = vadd.f32 %v538_v30, %v520_v38  ;;  %v692_v30 = vunpack.c.l.bf16 %v686_v24 }
  0xae   :  { %v522_v52 = vadd.f32 %v521_v33, %v502_v32 }
  0xaf   :  { %v558_v46 = vadd.f32 %v557_v31, %v539_v43 }
  0xb1   :  { %v676_v60 = vadd.f32 %v672_v47, %v558_v46 }
  0xb3   :  { %v1376_v2 = vadd.f32 %v688_v61, %v676_v60 }
  0xb4   :  { %v540_v48 = vpop.f32.mrf.mxu2  ;;  %v505_v53 = vpop.f32.mrf.mxu0 }
  0xb5   :  { %v559_v34 = vpop.f32.mrf.mxu3  ;;  %v524_v35 = vpop.f32.mrf.mxu1  ;;  %v541_v62 = vadd.f32 %v540_v48, %v522_v52  ;;  %v693_v48 = vunpack.c.h.bf16 %v686_v24 }
  0xb6   :  { %v525_v4 = vadd.f32 %v524_v35, %v505_v53 }
  0xb7   :  { %v560_v3 = vadd.f32 %v559_v34, %v541_v62 }
  0xb9   :  { %v678_v15 = vadd.f32 %v672_v47, %v560_v3 }
  0xbb   :  { %v698_v22 = vadd.f32 %v690_v14, %v678_v15 }
  0xbc   :  { %v543_v54 = vpop.f32.mrf.mxu2  ;;  %v507_v57 = vpop.f32.mrf.mxu0 }
  0xbd   :  { %v562_v36 = vpop.f32.mrf.mxu3  ;;  %v526_v37 = vpop.f32.mrf.mxu1  ;;  %v544_v16 = vadd.f32 %v543_v54, %v525_v4 }
  0xbe   :  { %v527_v27 = vadd.f32 %v526_v37, %v507_v57  ;;  %v687_v57 = vld [vmem:[%s1466_s3 + $0x18] sm:$0xff] }
  0xbf   :  { %v563_v21 = vadd.f32 %v562_v36, %v544_v16  ;;  %v694_v46 = vunpack.c.l.bf16 %v687_v57  ;;  %v695_v49 = vunpack.c.h.bf16 %v687_v57 }
  0xc1   :  { %v680_v31 = vadd.f32 %v672_v47, %v563_v21 }
  0xc3   :  { %v700_v38 = vadd.f32 %v692_v30, %v680_v31 }
  0xc4   :  { %v545_v39 = vpop.f32.mrf.mxu2  ;;  %v576_v41 = vpop.f32.mrf.mxu0 }
  0xc5   :  { %v564_v40 = vpop.f32.mrf.mxu3  ;;  %v595_v42 = vpop.f32.mrf.mxu1  ;;  %v546_v32 = vadd.f32 %v545_v39, %v527_v27 }
  0xc6   :  { %v596_v45 = vadd.f32 %v595_v42, %v576_v41 }
  0xc7   :  { %v565_v54 = vadd.f32 %v564_v40, %v546_v32 }
  0xcc   :  { %v614_v50 = vpop.f32.mrf.mxu2  ;;  %v578_v58 = vpop.f32.mrf.mxu0 }
  0xcd   :  { %v633_v51 = vpop.f32.mrf.mxu3  ;;  %v615_v55 = vadd.f32 %v614_v50, %v596_v45  ;;  %v597_v59 = vpop.f32.mrf.mxu1  ;;  %v682_v45 = vadd.f32 %v672_v47, %v565_v54  ;;  %v811_v54 = vld [vmem:[%s1467_s4] sm:$0x3] }
  0xce   :  { %v598_v5 = vadd.f32 %v597_v59, %v578_v58 }
  0xcf   :  { %v634_v63 = vadd.f32 %v633_v51, %v615_v55  ;;  %v702_v51 = vadd.f32 %v694_v46, %v682_v45  ;;  %v1255_v55 = vmov 256.0  }
  0xd0   :  { %1216 = vrcp.f32 %v1255_v55 }
  0xd1   :  { %v677_v1 = vadd.f32 %v673_v56, %v634_v63 }
  0xd3   :  { %v1378_v6 = vadd.f32 %v689_v0, %v677_v1 }
  0xd4   :  { %v616_v8 = vpop.f32.mrf.mxu2  ;;  %v581_v12 = vpop.f32.mrf.mxu0 }
  0xd5   :  { %v635_v9 = vpop.f32.mrf.mxu3  ;;  %v617_v10 = vadd.f32 %v616_v8, %v598_v5  ;;  %v704_v11 = vadd.f32 %v1378_v6, %v1376_v2  ;;  %v600_v13 = vpop.f32.mrf.mxu1 }
  0xd6   :  { %v601_v20 = vadd.f32 %v600_v13, %v581_v12  ;;  %v1217_v58 = vpop.eup %1216 }
  0xd7   :  { %v636_v17 = vadd.f32 %v635_v9, %v617_v10  ;;  %705 = vadd.xlane.f32.xlu0 %v704_v11  ;;  %v717_v59 = vmul.f32 256.0, %v1217_v58  ;;  %vm721_vm0 = vweird.f32 %v1217_v58 }
  0xd9   :  { %v679_v19 = vadd.f32 %v673_v56, %v636_v17  ;;  %v718_v60 = vsub.f32 1.0, %v717_v59 }
  0xdb   :  { %v699_v23 = vadd.f32 %v691_v18, %v679_v19  ;;  %v719_v61 = vmul.f32 %v1217_v58, %v718_v60 }
  0xdc   :  { %v619_v25 = vpop.f32.mrf.mxu2  ;;  %v583_v34 = vpop.f32.mrf.mxu0 }
  0xdd   :  { %v638_v26 = vpop.f32.mrf.mxu3  ;;  %v620_v28 = vadd.f32 %v619_v25, %v601_v20  ;;  %v707_v29 = vadd.f32 %v699_v23, %v698_v22  ;;  %v602_v53 = vpop.f32.mrf.mxu1  ;;  %v720_v62 = vadd.f32 %v1217_v58, %v719_v61 }
  0xde   :  { %v603_v36 = vadd.f32 %v602_v53, %v583_v34 }
  0xdf   :  { %v639_v33 = vadd.f32 %v638_v26, %v620_v28  ;;  %708 = vadd.xlane.f32.xlu0 %v707_v29  ;;  %v1391_v63 = vsel %vm721_vm0, %v1217_v58, %v720_v62 }
  0xe1   :  { %v681_v35 = vadd.f32 %v673_v56, %v639_v33 }
  0xe3   :  { %v701_v41 = vadd.f32 %v693_v48, %v681_v35 }
  0xe4   :  { %v621_v42 = vpop.f32.mrf.mxu2 }
  0xe5   :  { %v622_v37 = vadd.f32 %v621_v42, %v603_v36  ;;  %v710_v43 = vadd.f32 %v701_v41, %v700_v38  ;;  %v640_v44 = vpop.f32.mrf.mxu3  ;;  %v825_v42 = vld [vmem:[%s1468_s5] sm:$0x3] }
  0xe6   :  { %v827_v46 = vperm.slane %v825_v42, 0 }
  0xe7   :  { %v641_v39 = vadd.f32 %v640_v44, %v622_v37  ;;  %711 = vadd.xlane.f32.xlu1 %v710_v43  ;;  %v1432_v43 = vperm.slane %v811_v54, 0  ;;  %v1434_v44 = vperm.slane %v811_v54, 1 }
  0xe9   :  { %v683_v50 = vadd.f32 %v673_v56, %v641_v39 }
  0xeb   :  { %v703_v52 = vadd.f32 %v695_v49, %v683_v50  ;;  %v828_v49 = vperm.slane %v825_v42, 1 }
  0xed   :  { %v713_v40 = vadd.f32 %v703_v52, %v702_v51 }
  0xef   :  { %714 = vadd.xlane.f32.xlu1 %v713_v40 }
 0x14a   :  { %v706_v47 = vpop.xlane.xlu0 %705 }
 0x14b   :  { %v723_v0 = vmul.f32 %v1391_v63, %v706_v47 }
 0x14d   :  { %v727_v1 = vsub.f32 %v1376_v2, %v723_v0  ;;  %v728_v56 = vsub.f32 %v1378_v6, %v723_v0 }
 0x14f   :  { %v735_v3 = vmul.f32 %v727_v1, %v727_v1  ;;  %v736_v4 = vmul.f32 %v728_v56, %v728_v56 }
 0x151   :  { %v743_v5 = vadd.f32 %v736_v4, %v735_v3 }
 0x152   :  { %v709_v7 = vpop.xlane.xlu0 %708 }
 0x153   :  { %v724_v8 = vmul.f32 %v1391_v63, %v709_v7  ;;  %744 = vadd.xlane.f32.xlu2 %v743_v5 }
 0x155   :  { %v1397_v9 = vsub.f32 %v698_v22, %v724_v8  ;;  %v1399_v10 = vsub.f32 %v699_v23, %v724_v8 }
 0x157   :  { %v737_v11 = vmul.f32 %v1397_v9, %v1397_v9  ;;  %v738_v12 = vmul.f32 %v1399_v10, %v1399_v10 }
 0x159   :  { %v746_v2 = vadd.f32 %v738_v12, %v737_v11 }
 0x15a   :  { %v712_v13 = vpop.xlane.xlu1 %711 }
 0x15b   :  { %v725_v6 = vmul.f32 %v1391_v63, %v712_v13  ;;  %747 = vadd.xlane.f32.xlu2 %v746_v2 }
 0x15d   :  { %v1406_v14 = vsub.f32 %v700_v38, %v725_v6  ;;  %v1408_v15 = vsub.f32 %v701_v41, %v725_v6 }
 0x15f   :  { %v739_v16 = vmul.f32 %v1406_v14, %v1406_v14  ;;  %v740_v17 = vmul.f32 %v1408_v15, %v1408_v15 }
 0x161   :  { %v749_v18 = vadd.f32 %v740_v17, %v739_v16 }
 0x162   :  { %v715_v19 = vpop.xlane.xlu1 %714 }
 0x163   :  { %v726_v20 = vmul.f32 %v1391_v63, %v715_v19  ;;  %750 = vadd.xlane.f32.xlu0 %v749_v18 }
 0x165   :  { %v1415_v21 = vsub.f32 %v702_v51, %v726_v20  ;;  %v1417_v22 = vsub.f32 %v703_v52, %v726_v20 }
 0x167   :  { %v741_v23 = vmul.f32 %v1415_v21, %v1415_v21  ;;  %v742_v24 = vmul.f32 %v1417_v22, %v1417_v22 }
 0x169   :  { %v752_v25 = vadd.f32 %v742_v24, %v741_v23 }
 0x16b   :  { %753 = vadd.xlane.f32.xlu1 %v752_v25 }
 0x1c6   :  { %v745_v26 = vpop.xlane.xlu2 %744 }
 0x1c7   :  { %v755_v27 = vmul.f32 %v745_v26, %v1391_v63 }
 0x1c9   :  { %v759_v28 = vadd.f32 1e-12, %v755_v27 }
 0x1cb   :  { %1218 = vrsqrt.f32 %v759_v28  ;;  %vm769_vm2 = vweird.f32 %v759_v28 }
 0x1ce   :  { %v748_v29 = vpop.xlane.xlu2 %747 }
 0x1cf   :  { %v756_v30 = vmul.f32 %v748_v29, %v1391_v63 }
 0x1d1   :  { %v1219_v31 = vpop.eup %1218  ;;  %v760_v32 = vadd.f32 1e-12, %v756_v30 }
 0x1d2   :  { %v764_v33 = vmul.f32 %v1219_v31, %v759_v28  ;;  %vm770_vm1 = vweird.f32 %v1219_v31 }
 0x1d3   :  { %1220 = vrsqrt.f32 %v760_v32  ;;  %vm771_vm3 = vmor %vm769_vm2, %vm770_vm1  ;;  %vm779_vm5 = vweird.f32 %v760_v32 }
 0x1d4   :  { %v765_v48 = vmul.f32 %v1219_v31, %v764_v33 }
 0x1d6   :  { %v766_v34 = vmul.f32 0.5, %v765_v48  ;;  %v751_v53 = vpop.xlane.xlu0 %750 }
 0x1d7   :  { %v757_v35 = vmul.f32 %v751_v53, %v1391_v63 }
 0x1d8   :  { %v767_v36 = vsub.f32 1.5, %v766_v34 }
 0x1d9   :  { %v1221_v38 = vpop.eup %1220  ;;  %v761_v41 = vadd.f32 1e-12, %v757_v35 }
 0x1da   :  { %v768_v57 = vmul.f32 %v1219_v31, %v767_v36  ;;  %v774_v37 = vmul.f32 %v1221_v38, %v760_v32  ;;  %vm780_vm4 = vweird.f32 %v1221_v38 }
 0x1db   :  { %1222 = vrsqrt.f32 %v761_v41  ;;  %vm781_vm6 = vmor %vm779_vm5, %vm780_vm4  ;;  %vm789_vm8 = vweird.f32 %v761_v41 }
 0x1dc   :  { %v772_v45 = vsel %vm771_vm3, %v1219_v31, %v768_v57  ;;  %v775_v39 = vmul.f32 %v1221_v38, %v774_v37 }
 0x1dd   :  { %v803_v50 = vmul.f32 %v772_v45, %v727_v1  ;;  %v804_v51 = vmul.f32 %v772_v45, %v728_v56 }
 0x1de   :  { %v776_v52 = vmul.f32 0.5, %v775_v39  ;;  %v754_v40 = vpop.xlane.xlu1 %753 }
 0x1df   :  { %v817_v55 = vmul.f32 %v1432_v43, %v803_v50  ;;  %v818_v58 = vmul.f32 %v1434_v44, %v804_v51  ;;  %v758_v59 = vmul.f32 %v754_v40, %v1391_v63 }
 0x1e0   :  { %v777_v60 = vsub.f32 1.5, %v776_v52 }
 0x1e1   :  { %v1223_v61 = vpop.eup %1222  ;;  %v831_v62 = vadd.f32 %v827_v46, %v817_v55  ;;  %v832_v47 = vadd.f32 %v828_v49, %v818_v58  ;;  %v762_v0 = vadd.f32 1e-12, %v758_v59 }
 0x1e2   :  { %v778_v3 = vmul.f32 %v1221_v38, %v777_v60  ;;  %v784_v4 = vmul.f32 %v1223_v61, %v761_v41  ;;  %vm790_vm7 = vweird.f32 %v1223_v61 }
 0x1e3   :  { %v839_v5 = vpack.c.bf16 %v832_v47, %v831_v62  ;;  %1224 = vrsqrt.f32 %v762_v0  ;;  %vm791_vm9 = vmor %vm789_vm8, %vm790_vm7  ;;  %vm799_vm11 = vweird.f32 %v762_v0 }
 0x1e4   :  { %v782_v1 = vsel %vm781_vm6, %v1221_v38, %v778_v3  ;;  %v785_v56 = vmul.f32 %v1223_v61, %v784_v4 }
 0x1e5   :  { %843 = vst [vmem:[%s1469_s6] sm:$0xff] %v839_v5  ;;  %v805_v63 = vmul.f32 %v782_v1, %v1397_v9  ;;  %v806_v7 = vmul.f32 %v782_v1, %v1399_v10 }
 0x1e6   :  { %v786_v8 = vmul.f32 0.5, %v785_v56 }
 0x1e7   :  { %v819_v11 = vmul.f32 %v1432_v43, %v805_v63  ;;  %v820_v12 = vmul.f32 %v1434_v44, %v806_v7 }
 0x1e8   :  { %v787_v2 = vsub.f32 1.5, %v786_v8 }
 0x1e9   :  { %v1225_v13 = vpop.eup %1224  ;;  %v833_v6 = vadd.f32 %v827_v46, %v819_v11  ;;  %v834_v16 = vadd.f32 %v828_v49, %v820_v12 }
 0x1ea   :  { %v788_v17 = vmul.f32 %v1223_v61, %v787_v2  ;;  %v794_v18 = vmul.f32 %v1225_v13, %v762_v0  ;;  %vm800_vm10 = vweird.f32 %v1225_v13 }
 0x1eb   :  { %v840_v19 = vpack.c.bf16 %v834_v16, %v833_v6  ;;  %vm801_vm12 = vmor %vm799_vm11, %vm800_vm10 }
 0x1ec   :  { %v792_v20 = vsel %vm791_vm9, %v1223_v61, %v788_v17  ;;  %v795_v23 = vmul.f32 %v1225_v13, %v794_v18 }
 0x1ed   :  { %844 = vst [vmem:[%s1469_s6 + $0x8] sm:$0xff] %v840_v19  ;;  %v807_v9 = vmul.f32 %v792_v20, %v1406_v14  ;;  %v808_v10 = vmul.f32 %v792_v20, %v1408_v15 }
 0x1ee   :  { %v796_v24 = vmul.f32 0.5, %v795_v23 }
 0x1ef   :  { %v821_v25 = vmul.f32 %v1432_v43, %v807_v9  ;;  %v822_v26 = vmul.f32 %v1434_v44, %v808_v10 }
 0x1f0   :  { %v797_v27 = vsub.f32 1.5, %v796_v24 }
 0x1f1   :  { %v835_v28 = vadd.f32 %v827_v46, %v821_v25  ;;  %v836_v29 = vadd.f32 %v828_v49, %v822_v26 }
 0x1f2   :  { %v798_v30 = vmul.f32 %v1225_v13, %v797_v27 }
 0x1f3   :  { %v841_v31 = vpack.c.bf16 %v836_v29, %v835_v28 }
 0x1f4   :  { %v802_v32 = vsel %vm801_vm12, %v1225_v13, %v798_v30 }
 0x1f5   :  { %845 = vst [vmem:[%s1469_s6 + $0x10] sm:$0xff] %v841_v31  ;;  %v809_v14 = vmul.f32 %v802_v32, %v1415_v21  ;;  %v810_v15 = vmul.f32 %v802_v32, %v1417_v22 }
 0x1f7   :  { %v823_v33 = vmul.f32 %v1432_v43, %v809_v14  ;;  %v824_v48 = vmul.f32 %v1434_v44, %v810_v15 }
 0x1f9   :  { %v837_v34 = vadd.f32 %v827_v46, %v823_v33  ;;  %v838_v53 = vadd.f32 %v828_v49, %v824_v48 }
 0x1fb   :  { %v842_v35 = vpack.c.bf16 %v838_v53, %v837_v34 }
 0x1fd   :  { %846 = vst [vmem:[%s1469_s6 + $0x18] sm:$0xff] %v842_v35 }
 0x1fe   :  { %851 = vsyncpa [#allocation4], 1 }

// kernel: label_mask_model_forward.17
= control target key start
LH: loop header
LB: loop body
LE: loop exit
PB: predicated region body
PF: predicated region fallthrough
CT: control target
= control target key end

     0   :  { %s1817_s1 = inlined_call_operand.vmem [shape: bf16[256,512], index: 1, kind: input, shape index: {}]   ;;  %s1818_s0 = inlined_call_operand.vmem [shape: bf16[32,256], index: 0, kind: input, shape index: {}]   ;;  %s1819_s2 = inlined_call_operand.vmem [shape: f32[1,512], index: 2, kind: input, shape index: {}]   ;;  %s1820_s3 = inlined_call_operand.vmem [shape: bf16[32,512], index: 3, kind: output, shape index: {}]  }
   0x1   :  { %v981_v0 = vld [vmem:[%s1817_s1 + $0xe0] sm:$0xf]  ;;  %v1157_v1 = vld [vmem:[%s1817_s1 + $0xec] sm:$0xf0]  ;;  %v1155_v5 = vld [vmem:[%s1817_s1 + $0xe4] sm:$0xf] }
   0x2   :  { %v1109_v2 = vld [vmem:[%s1817_s1 + $0x1e0] sm:$0xf]  ;;  %v982_v3 = vor.u32 %v1157_v1, %v981_v0  ;;  %v1189_v4 = vld [vmem:[%s1817_s1 + $0x1ec] sm:$0xf0]  ;;  %v983_v6 = vld [vmem:[%s1817_s1 + $0xf0] sm:$0xf0] }
   0x3   :  { %v1110_v7 = vor.u32 %v1189_v4, %v1109_v2  ;;  %v986_v8 = vor.u32 %v1155_v5, %v983_v6  ;;  %v1187_v9 = vld [vmem:[%s1817_s1 + $0x1e4] sm:$0xf]  ;;  %v1111_v10 = vld [vmem:[%s1817_s1 + $0x1f0] sm:$0xf0]  ;;  %v965_v11 = vld [vmem:[%s1817_s1 + $0xc0] sm:$0xf] }
   0x4   :  { %458 = vmatpush.bf16.msra.mxu0 %v982_v3  ;;  %v1114_v12 = vor.u32 %v1187_v9, %v1111_v10  ;;  %v1153_v13 = vld [vmem:[%s1817_s1 + $0xcc] sm:$0xf0]  ;;  %v1093_v14 = vld [vmem:[%s1817_s1 + $0x1c0] sm:$0xf]  ;;  %v1151_v18 = vld [vmem:[%s1817_s1 + $0xc4] sm:$0xf] }
   0x5   :  { %v1185_v15 = vld [vmem:[%s1817_s1 + $0x1cc] sm:$0xf0]  ;;  %477 = vmatpush.bf16.msra.mxu1 %v1110_v7  ;;  %496 = vmatpush.bf16.msra.mxu2 %v986_v8  ;;  %v966_v16 = vor.u32 %v1153_v13, %v965_v11  ;;  %v967_v19 = vld [vmem:[%s1817_s1 + $0xd0] sm:$0xf0]  ;;  %v1183_v20 = vld [vmem:[%s1817_s1 + $0x1c4] sm:$0xf] }
   0x6   :  { %v1094_v17 = vor.u32 %v1185_v15, %v1093_v14  ;;  %515 = vmatpush.bf16.msra.mxu3 %v1114_v12  ;;  %v970_v21 = vor.u32 %v1151_v18, %v967_v19  ;;  %v1095_v22 = vld [vmem:[%s1817_s1 + $0x1d0] sm:$0xf0]  ;;  %v949_v23 = vld [vmem:[%s1817_s1 + $0xa0] sm:$0xf]  ;;  %v1149_v24 = vld [vmem:[%s1817_s1 + $0xac] sm:$0xf0] }
   0x7   :  { %v1098_v25 = vor.u32 %v1183_v20, %v1095_v22  ;;  %v1077_v26 = vld [vmem:[%s1817_s1 + $0x1a0] sm:$0xf]  ;;  %v1181_v27 = vld [vmem:[%s1817_s1 + $0x1ac] sm:$0xf0]  ;;  %v1147_v28 = vld [vmem:[%s1817_s1 + $0xa4] sm:$0xf]  ;;  %v950_v29 = vor.u32 %v1149_v24, %v949_v23 }
   0x8   :  { %459 = vmatpush.bf16.msra.mxu0 %v966_v16  ;;  %v951_v30 = vld [vmem:[%s1817_s1 + $0xb0] sm:$0xf0]  ;;  %v1179_v31 = vld [vmem:[%s1817_s1 + $0x1a4] sm:$0xf]  ;;  %v1078_v33 = vor.u32 %v1181_v27, %v1077_v26  ;;  %v933_v35 = vld [vmem:[%s1817_s1 + $0x80] sm:$0xf] }
   0x9   :  { %v1079_v32 = vld [vmem:[%s1817_s1 + $0x1b0] sm:$0xf0]  ;;  %478 = vmatpush.bf16.msra.mxu1 %v1094_v17  ;;  %497 = vmatpush.bf16.msra.mxu2 %v970_v21  ;;  %v954_v34 = vor.u32 %v1147_v28, %v951_v30  ;;  %v1145_v36 = vld [vmem:[%s1817_s1 + $0x8c] sm:$0xf0]  ;;  %v1061_v37 = vld [vmem:[%s1817_s1 + $0x180] sm:$0xf] }
   0xa   :  { %516 = vmatpush.bf16.msra.mxu3 %v1098_v25  ;;  %v1082_v38 = vor.u32 %v1179_v31, %v1079_v32  ;;  %v1177_v39 = vld [vmem:[%s1817_s1 + $0x18c] sm:$0xf0]  ;;  %v1143_v40 = vld [vmem:[%s1817_s1 + $0x84] sm:$0xf]  ;;  %v935_v41 = vld [vmem:[%s1817_s1 + $0x90] sm:$0xf0]  ;;  %v934_v44 = vor.u32 %v1145_v36, %v933_v35 }
   0xb   :  { %v1175_v42 = vld [vmem:[%s1817_s1 + $0x184] sm:$0xf]  ;;  %v1063_v43 = vld [vmem:[%s1817_s1 + $0x190] sm:$0xf0]  ;;  %v1062_v45 = vor.u32 %v1177_v39, %v1061_v37  ;;  %v938_v46 = vor.u32 %v1143_v40, %v935_v41  ;;  %v917_v47 = vld [vmem:[%s1817_s1 + $0x60] sm:$0xf] }
   0xc   :  { %460 = vmatpush.bf16.msra.mxu0 %v950_v29  ;;  %v1141_v48 = vld [vmem:[%s1817_s1 + $0x6c] sm:$0xf0]  ;;  %v1045_v49 = vld [vmem:[%s1817_s1 + $0x160] sm:$0xf]  ;;  %v1066_v50 = vor.u32 %v1175_v42, %v1063_v43  ;;  %v1139_v52 = vld [vmem:[%s1817_s1 + $0x64] sm:$0xf] }
   0xd   :  { %479 = vmatpush.bf16.msra.mxu1 %v1078_v33  ;;  %498 = vmatpush.bf16.msra.mxu2 %v954_v34  ;;  %v1173_v51 = vld [vmem:[%s1817_s1 + $0x16c] sm:$0xf0]  ;;  %v919_v53 = vld [vmem:[%s1817_s1 + $0x70] sm:$0xf0]  ;;  %v1171_v54 = vld [vmem:[%s1817_s1 + $0x164] sm:$0xf]  ;;  %v918_v56 = vor.u32 %v1141_v48, %v917_v47 }
   0xe   :  { %517 = vmatpush.bf16.msra.mxu3 %v1082_v38  ;;  %v1047_v55 = vld [vmem:[%s1817_s1 + $0x170] sm:$0xf0]  ;;  %v1046_v57 = vor.u32 %v1173_v51, %v1045_v49  ;;  %v922_v58 = vor.u32 %v1139_v52, %v919_v53  ;;  %v901_v59 = vld [vmem:[%s1817_s1 + $0x40] sm:$0xf]  ;;  %v1137_v60 = vld [vmem:[%s1817_s1 + $0x4c] sm:$0xf0] }
   0xf   :  { %v1029_v61 = vld [vmem:[%s1817_s1 + $0x140] sm:$0xf]  ;;  %v1050_v62 = vor.u32 %v1171_v54, %v1047_v55  ;;  %v1169_v63 = vld [vmem:[%s1817_s1 + $0x14c] sm:$0xf0]  ;;  %v1135_v0 = vld [vmem:[%s1817_s1 + $0x44] sm:$0xf]  ;;  %v902_v4 = vor.u32 %v1137_v60, %v901_v59 }
  0x10   :  { %461 = vmatpush.bf16.msra.mxu0 %v934_v44  ;;  %v903_v1 = vld [vmem:[%s1817_s1 + $0x50] sm:$0xf0]  ;;  %v1167_v2 = vld [vmem:[%s1817_s1 + $0x144] sm:$0xf]  ;;  %v1030_v5 = vor.u32 %v1169_v63, %v1029_v61  ;;  %v885_v7 = vld [vmem:[%s1817_s1 + $0x20] sm:$0xf] }
  0x11   :  { %480 = vmatpush.bf16.msra.mxu1 %v1062_v45  ;;  %499 = vmatpush.bf16.msra.mxu2 %v938_v46  ;;  %v1031_v3 = vld [vmem:[%s1817_s1 + $0x150] sm:$0xf0]  ;;  %v906_v6 = vor.u32 %v1135_v0, %v903_v1  ;;  %v1133_v8 = vld [vmem:[%s1817_s1 + $0x2c] sm:$0xf0]  ;;  %v1013_v9 = vld [vmem:[%s1817_s1 + $0x120] sm:$0xf] }
  0x12   :  { %518 = vmatpush.bf16.msra.mxu3 %v1066_v50  ;;  %v1034_v10 = vor.u32 %v1167_v2, %v1031_v3  ;;  %v1165_v11 = vld [vmem:[%s1817_s1 + $0x12c] sm:$0xf0]  ;;  %v1131_v12 = vld [vmem:[%s1817_s1 + $0x24] sm:$0xf]  ;;  %v887_v13 = vld [vmem:[%s1817_s1 + $0x30] sm:$0xf0]  ;;  %v886_v16 = vor.u32 %v1133_v8, %v885_v7 }
  0x13   :  { %v1163_v14 = vld [vmem:[%s1817_s1 + $0x124] sm:$0xf]  ;;  %v1015_v15 = vld [vmem:[%s1817_s1 + $0x130] sm:$0xf0]  ;;  %v869_v17 = vld [vmem:[%s1817_s1] sm:$0xf]  ;;  %v1014_v19 = vor.u32 %v1165_v11, %v1013_v9  ;;  %v890_v20 = vor.u32 %v1131_v12, %v887_v13 }
  0x14   :  { %462 = vmatpush.bf16.msra.mxu0 %v918_v56  ;;  %v1129_v18 = vld [vmem:[%s1817_s1 + $0xc] sm:$0xf0]  ;;  %v997_v21 = vld [vmem:[%s1817_s1 + $0x100] sm:$0xf]  ;;  %v1127_v23 = vld [vmem:[%s1817_s1 + $0x4] sm:$0xf]  ;;  %v1018_v24 = vor.u32 %v1163_v14, %v1015_v15 }
  0x15   :  { %481 = vmatpush.bf16.msra.mxu1 %v1046_v57  ;;  %500 = vmatpush.bf16.msra.mxu2 %v922_v58  ;;  %v1161_v22 = vld [vmem:[%s1817_s1 + $0x10c] sm:$0xf0]  ;;  %v871_v25 = vld [vmem:[%s1817_s1 + $0x10] sm:$0xf0]  ;;  %v1159_v26 = vld [vmem:[%s1817_s1 + $0x104] sm:$0xf]  ;;  %v870_v31 = vor.u32 %v1129_v18, %v869_v17 }
  0x16   :  { %519 = vmatpush.bf16.msra.mxu3 %v1050_v62  ;;  %v999_v27 = vld [vmem:[%s1817_s1 + $0x110] sm:$0xf0]  ;;  %v853_v28 = vld [vmem:[%s1818_s0] sm:$0xf]  ;;  %v1156_v29 = vld [vmem:[%s1817_s1 + $0xec] sm:$0xf]  ;;  %v998_v35 = vor.u32 %v1161_v22, %v997_v21  ;;  %v874_v36 = vor.u32 %v1127_v23, %v871_v25 }
  0x17   :  { %v991_v30 = vld [vmem:[%s1817_s1 + $0xf8] sm:$0xf0]  ;;  %v1124_v32 = vld [vmem:[%s1818_s0 + $0x4] sm:$0xf0]  ;;  %v1188_v33 = vld [vmem:[%s1817_s1 + $0x1ec] sm:$0xf]  ;;  %v1002_v39 = vor.u32 %v1159_v26, %v999_v27 }
  0x18   :  { %463 = vmatpush.bf16.msra.mxu0 %v902_v4  ;;  %v1119_v34 = vld [vmem:[%s1817_s1 + $0x1f8] sm:$0xf0]  ;;  %v1123_v37 = vld [vmem:[%s1818_s0 + $0x4] sm:$0xf]  ;;  %v855_v38 = vld [vmem:[%s1818_s0 + $0x8] sm:$0xf0]  ;;  %v994_v40 = vor.u32 %v1156_v29, %v991_v30  ;;  %v1468_v44 = vor.u32 %v1124_v32, %v853_v28 }
  0x19   :  { %482 = vmatpush.bf16.msra.mxu1 %v1030_v5  ;;  %501 = vmatpush.bf16.msra.mxu2 %v906_v6  ;;  %v989_v41 = vld [vmem:[%s1817_s1 + $0xe8] sm:$0xf]  ;;  %v1158_v42 = vld [vmem:[%s1817_s1 + $0xf4] sm:$0xf0]  ;;  %v1122_v45 = vor.u32 %v1188_v33, %v1119_v34  ;;  %v1152_v47 = vld [vmem:[%s1817_s1 + $0xcc] sm:$0xf]  ;;  %v1479_v49 = vor.u32 %v1123_v37, %v855_v38 }
  0x1a   :  { %520 = vmatpush.bf16.msra.mxu3 %v1034_v10  ;;  %v1117_v43 = vld [vmem:[%s1817_s1 + $0x1e8] sm:$0xf]  ;;  %v1190_v46 = vld [vmem:[%s1817_s1 + $0x1f4] sm:$0xf0]  ;;  %v975_v48 = vld [vmem:[%s1817_s1 + $0xd8] sm:$0xf0]  ;;  %v990_v52 = vor.u32 %v1158_v42, %v989_v41 }
  0x1b   :  { %v1184_v50 = vld [vmem:[%s1817_s1 + $0x1cc] sm:$0xf]  ;;  %v1103_v51 = vld [vmem:[%s1817_s1 + $0x1d8] sm:$0xf0]  ;;  %v1118_v53 = vor.u32 %v1190_v46, %v1117_v43  ;;  %v978_v54 = vor.u32 %v1152_v47, %v975_v48  ;;  %v973_v55 = vld [vmem:[%s1817_s1 + $0xc8] sm:$0xf] }
  0x1c   :  { %464 = vmatpush.bf16.msra.mxu0 %v886_v16  ;;  %v1154_v56 = vld [vmem:[%s1817_s1 + $0xd4] sm:$0xf0]  ;;  %v1101_v57 = vld [vmem:[%s1817_s1 + $0x1c8] sm:$0xf]  ;;  %v1106_v58 = vor.u32 %v1184_v50, %v1103_v51  ;;  %v1148_v60 = vld [vmem:[%s1817_s1 + $0xac] sm:$0xf] }
  0x1d   :  { %483 = vmatpush.bf16.msra.mxu1 %v1014_v19  ;;  %502 = vmatpush.bf16.msra.mxu2 %v890_v20  ;;  %v1186_v59 = vld [vmem:[%s1817_s1 + $0x1d4] sm:$0xf0]  ;;  %v959_v61 = vld [vmem:[%s1817_s1 + $0xb8] sm:$0xf0]  ;;  %v1180_v62 = vld [vmem:[%s1817_s1 + $0x1ac] sm:$0xf]  ;;  %v974_v0 = vor.u32 %v1154_v56, %v973_v55 }
  0x1e   :  { %521 = vmatpush.bf16.msra.mxu3 %v1018_v24  ;;  %v1087_v63 = vld [vmem:[%s1817_s1 + $0x1b8] sm:$0xf0]  ;;  %v1102_v1 = vor.u32 %v1186_v59, %v1101_v57  ;;  %v962_v2 = vor.u32 %v1148_v60, %v959_v61  ;;  %v957_v3 = vld [vmem:[%s1817_s1 + $0xa8] sm:$0xf]  ;;  %v1150_v4 = vld [vmem:[%s1817_s1 + $0xb4] sm:$0xf0] }
  0x1f   :  { %v1085_v5 = vld [vmem:[%s1817_s1 + $0x1a8] sm:$0xf]  ;;  %v1090_v6 = vor.u32 %v1180_v62, %v1087_v63  ;;  %v1182_v7 = vld [vmem:[%s1817_s1 + $0x1b4] sm:$0xf0]  ;;  %v1144_v8 = vld [vmem:[%s1817_s1 + $0x8c] sm:$0xf]  ;;  %v958_v12 = vor.u32 %v1150_v4, %v957_v3 }
  0x20   :  { %465 = vmatpush.bf16.msra.mxu0 %v870_v31  ;;  %v943_v9 = vld [vmem:[%s1817_s1 + $0x98] sm:$0xf0]  ;;  %v1176_v10 = vld [vmem:[%s1817_s1 + $0x18c] sm:$0xf]  ;;  %v941_v13 = vld [vmem:[%s1817_s1 + $0x88] sm:$0xf]  ;;  %v1086_v14 = vor.u32 %v1182_v7, %v1085_v5 }
  0x21   :  { %484 = vmatpush.bf16.msra.mxu1 %v998_v35  ;;  %503 = vmatpush.bf16.msra.mxu2 %v874_v36  ;;  %v1071_v11 = vld [vmem:[%s1817_s1 + $0x198] sm:$0xf0]  ;;  %v946_v15 = vor.u32 %v1144_v8, %v943_v9  ;;  %v1146_v16 = vld [vmem:[%s1817_s1 + $0x94] sm:$0xf0]  ;;  %v1069_v17 = vld [vmem:[%s1817_s1 + $0x188] sm:$0xf] }
  0x22   :  { %522 = vmatpush.bf16.msra.mxu3 %v1002_v39  ;;  %v1178_v18 = vld [vmem:[%s1817_s1 + $0x194] sm:$0xf0]  ;;  %v1074_v19 = vor.u32 %v1176_v10, %v1071_v11  ;;  %v861_v20 = vld [vmem:[%s1818_s0 + $0x10] sm:$0xf]  ;;  %v1140_v21 = vld [vmem:[%s1817_s1 + $0x6c] sm:$0xf]  ;;  %v942_v26 = vor.u32 %v1146_v16, %v941_v13 }
  0x23   :  { %466 = vmatmul.bf16.vlgmr.msra.gmra.mxu0 %v1468_v44  ;;  %v927_v22 = vld [vmem:[%s1817_s1 + $0x78] sm:$0xf0]  ;;  %v1126_v23 = vld [vmem:[%s1818_s0 + $0x14] sm:$0xf0]  ;;  %v1172_v24 = vld [vmem:[%s1817_s1 + $0x16c] sm:$0xf]  ;;  %v1070_v29 = vor.u32 %v1178_v18, %v1069_v17 }
  0x24   :  { %485 = vmatmul.bf16.vlgmr.msra.gmra.mxu1 %v1479_v49  ;;  %504 = vmatmul.bf16.vlgmr.msra.gmra.mxu2 %v1468_v44  ;;  %v1055_v25 = vld [vmem:[%s1817_s1 + $0x178] sm:$0xf0]  ;;  %v1125_v27 = vld [vmem:[%s1818_s0 + $0x14] sm:$0xf]  ;;  %v930_v30 = vor.u32 %v1140_v21, %v927_v22  ;;  %v925_v31 = vld [vmem:[%s1817_s1 + $0x68] sm:$0xf]  ;;  %v1584_v34 = vor.u32 %v1126_v23, %v861_v20 }
  0x25   :  { %572 = vmatpush.bf16.msrb.mxu2 %v994_v40  ;;  %523 = vmatmul.bf16.vlgmr.msra.gmra.mxu3 %v1479_v49  ;;  %v863_v28 = vld [vmem:[%s1818_s0 + $0x18] sm:$0xf0]  ;;  %v1142_v32 = vld [vmem:[%s1817_s1 + $0x74] sm:$0xf0]  ;;  %v1053_v33 = vld [vmem:[%s1817_s1 + $0x168] sm:$0xf]  ;;  %v1058_v35 = vor.u32 %v1172_v24, %v1055_v25 }
  0x26   :  { %591 = vmatpush.bf16.msrb.mxu3 %v1122_v45  ;;  %534 = vmatpush.bf16.msrb.mxu0 %v990_v52  ;;  %v1174_v36 = vld [vmem:[%s1817_s1 + $0x174] sm:$0xf0]  ;;  %v1136_v37 = vld [vmem:[%s1817_s1 + $0x4c] sm:$0xf]  ;;  %v911_v38 = vld [vmem:[%s1817_s1 + $0x58] sm:$0xf0]  ;;  %v1595_v39 = vor.u32 %v1125_v27, %v863_v28  ;;  %v926_v42 = vor.u32 %v1142_v32, %v925_v31 }
  0x27   :  { %553 = vmatpush.bf16.msrb.mxu1 %v1118_v53  ;;  %v1168_v40 = vld [vmem:[%s1817_s1 + $0x14c] sm:$0xf]  ;;  %v1039_v41 = vld [vmem:[%s1817_s1 + $0x158] sm:$0xf0]  ;;  %v1054_v43 = vor.u32 %v1174_v36, %v1053_v33  ;;  %v914_v45 = vor.u32 %v1136_v37, %v911_v38  ;;  %v909_v46 = vld [vmem:[%s1817_s1 + $0x48] sm:$0xf] }
  0x28   :  { %v1138_v47 = vld [vmem:[%s1817_s1 + $0x54] sm:$0xf0]  ;;  %v1037_v48 = vld [vmem:[%s1817_s1 + $0x148] sm:$0xf]  ;;  %v1042_v50 = vor.u32 %v1168_v40, %v1039_v41  ;;  %v1132_v52 = vld [vmem:[%s1817_s1 + $0x2c] sm:$0xf] }
  0x29   :  { %573 = vmatpush.bf16.msrb.mxu2 %v978_v54  ;;  %v1170_v51 = vld [vmem:[%s1817_s1 + $0x154] sm:$0xf0]  ;;  %v895_v53 = vld [vmem:[%s1817_s1 + $0x38] sm:$0xf0]  ;;  %v1164_v54 = vld [vmem:[%s1817_s1 + $0x12c] sm:$0xf]  ;;  %v910_v56 = vor.u32 %v1138_v47, %v909_v46 }
  0x2a   :  { %592 = vmatpush.bf16.msrb.mxu3 %v1106_v58  ;;  %535 = vmatpush.bf16.msrb.mxu0 %v974_v0  ;;  %v1023_v55 = vld [vmem:[%s1817_s1 + $0x138] sm:$0xf0]  ;;  %v1038_v57 = vor.u32 %v1170_v51, %v1037_v48  ;;  %v898_v58 = vor.u32 %v1132_v52, %v895_v53  ;;  %v893_v59 = vld [vmem:[%s1817_s1 + $0x28] sm:$0xf]  ;;  %v1134_v60 = vld [vmem:[%s1817_s1 + $0x34] sm:$0xf0] }
  0x2b   :  { %554 = vmatpush.bf16.msrb.mxu1 %v1102_v1  ;;  %v1021_v61 = vld [vmem:[%s1817_s1 + $0x128] sm:$0xf]  ;;  %v1026_v62 = vor.u32 %v1164_v54, %v1023_v55  ;;  %v1166_v63 = vld [vmem:[%s1817_s1 + $0x134] sm:$0xf0]  ;;  %v1128_v0 = vld [vmem:[%s1817_s1 + $0xc] sm:$0xf]  ;;  %v894_v4 = vor.u32 %v1134_v60, %v893_v59 }
  0x2c   :  { %v879_v1 = vld [vmem:[%s1817_s1 + $0x18] sm:$0xf0]  ;;  %v1022_v5 = vor.u32 %v1166_v63, %v1021_v61  ;;  %v877_v7 = vld [vmem:[%s1817_s1 + $0x8] sm:$0xf]  ;;  %v1130_v8 = vld [vmem:[%s1817_s1 + $0x14] sm:$0xf0] }
  0x2d   :  { %574 = vmatpush.bf16.msrb.mxu2 %v962_v2  ;;  %v1160_v2 = vld [vmem:[%s1817_s1 + $0x10c] sm:$0xf]  ;;  %v1007_v3 = vld [vmem:[%s1817_s1 + $0x118] sm:$0xf0]  ;;  %v1005_v10 = vld [vmem:[%s1817_s1 + $0x108] sm:$0xf] }
  0x2e   :  { %593 = vmatpush.bf16.msrb.mxu3 %v1090_v6  ;;  %536 = vmatpush.bf16.msrb.mxu0 %v958_v12  ;;  %v882_v6 = vor.u32 %v1128_v0, %v879_v1  ;;  %v1010_v9 = vor.u32 %v1160_v2, %v1007_v3  ;;  %v1162_v11 = vld [vmem:[%s1817_s1 + $0x114] sm:$0xf0]  ;;  %v878_v12 = vor.u32 %v1130_v8, %v877_v7 }
  0x2f   :  { %555 = vmatpush.bf16.msrb.mxu1 %v1086_v14  ;;  %v1006_v13 = vor.u32 %v1162_v11, %v1005_v10  ;;  %v1678_v14 = vld [vmem:[%s1819_s2] sm:$0xf] }
  0x30   :  { %v1686_v20 = vperm.slane %v1678_v14, 1 }
  0x31   :  { %575 = vmatpush.bf16.msrb.mxu2 %v946_v15 }
  0x32   :  { %594 = vmatpush.bf16.msrb.mxu3 %v1074_v19  ;;  %537 = vmatpush.bf16.msrb.mxu0 %v942_v26 }
  0x33   :  { %556 = vmatpush.bf16.msrb.mxu1 %v1070_v29  ;;  %471 = vmatmul.bf16.gmra.mxu0 %v1584_v34 }
  0x34   :  { %490 = vmatmul.bf16.gmra.mxu1 %v1595_v39  ;;  %509 = vmatmul.bf16.gmra.mxu2 %v1584_v34 }
  0x35   :  { %576 = vmatpush.bf16.msrb.mxu2 %v930_v30  ;;  %528 = vmatmul.bf16.gmra.mxu3 %v1595_v39 }
  0x36   :  { %595 = vmatpush.bf16.msrb.mxu3 %v1058_v35  ;;  %538 = vmatpush.bf16.msrb.mxu0 %v926_v42 }
  0x37   :  { %557 = vmatpush.bf16.msrb.mxu1 %v1054_v43 }
  0x39   :  { %577 = vmatpush.bf16.msrb.mxu2 %v914_v45 }
  0x3a   :  { %596 = vmatpush.bf16.msrb.mxu3 %v1042_v50  ;;  %539 = vmatpush.bf16.msrb.mxu0 %v910_v56 }
  0x3b   :  { %558 = vmatpush.bf16.msrb.mxu1 %v1038_v57 }
  0x3d   :  { %578 = vmatpush.bf16.msrb.mxu2 %v898_v58 }
  0x3e   :  { %597 = vmatpush.bf16.msrb.mxu3 %v1026_v62  ;;  %540 = vmatpush.bf16.msrb.mxu0 %v894_v4 }
  0x3f   :  { %559 = vmatpush.bf16.msrb.mxu1 %v1022_v5 }
  0x41   :  { %579 = vmatpush.bf16.msrb.mxu2 %v882_v6 }
  0x42   :  { %598 = vmatpush.bf16.msrb.mxu3 %v1010_v9  ;;  %541 = vmatpush.bf16.msrb.mxu0 %v878_v12 }
  0x43   :  { %560 = vmatpush.bf16.msrb.mxu1 %v1006_v13 }
  0x44   :  { %580 = vmatmul.bf16.vlgmr.msrb.gmra.mxu2 %v1468_v44 }
  0x45   :  { %542 = vmatmul.bf16.vlgmr.msrb.gmra.mxu0 %v1468_v44  ;;  %599 = vmatmul.bf16.vlgmr.msrb.gmra.mxu3 %v1479_v49  ;;  %v663_v44 = vperm.slane %v1678_v14, 0 }
  0x46   :  { %561 = vmatmul.bf16.vlgmr.msrb.gmra.mxu1 %v1479_v49 }
  0x54   :  { %585 = vmatmul.bf16.gmra.mxu2 %v1584_v34 }
  0x55   :  { %547 = vmatmul.bf16.gmra.mxu0 %v1584_v34  ;;  %604 = vmatmul.bf16.gmra.mxu3 %v1595_v39 }
  0x56   :  { %566 = vmatmul.bf16.gmra.mxu1 %v1595_v39 }
  0xa0   :  { %v467_v15 = vpop.f32.mrf.mxu0 }
  0xa1   :  { %v486_v16 = vpop.f32.mrf.mxu1 }
  0xa2   :  { %v487_v17 = vadd.f32 %v486_v16, %v467_v15 }
  0xa4   :  { %v1681_v18 = vadd.f32 %v663_v44, %v487_v17 }
  0xa6   :  { %v687_v49 = vmul.f32 %v1681_v18, %v1681_v18 }
  0xa7   :  { %v505_v19 = vpop.f32.mrf.mxu2 }
  0xa8   :  { %v703_v21 = vmul.f32 %v687_v49, %v1681_v18  ;;  %v524_v22 = vpop.f32.mrf.mxu3  ;;  %v469_v23 = vpop.f32.mrf.mxu0 }
  0xa9   :  { %v525_v24 = vadd.f32 %v524_v22, %v505_v19  ;;  %v488_v25 = vpop.f32.mrf.mxu1 }
  0xaa   :  { %v719_v26 = vmul.f32 0.044715, %v703_v21  ;;  %v489_v27 = vadd.f32 %v488_v25, %v469_v23  ;;  %v1728_v23 = vperm.slane %v1678_v14, 2 }
  0xab   :  { %v1690_v28 = vadd.f32 %v1686_v20, %v525_v24 }
  0xac   :  { %v735_v29 = vadd.f32 %v719_v26, %v1681_v18  ;;  %v1693_v30 = vadd.f32 %v663_v44, %v489_v27 }
  0xad   :  { %v688_v31 = vmul.f32 %v1690_v28, %v1690_v28 }
  0xae   :  { %v751_v32 = vmul.f32 0.7978846, %v735_v29  ;;  %v691_v33 = vmul.f32 %v1693_v30, %v1693_v30 }
  0xaf   :  { %v704_v34 = vmul.f32 %v688_v31, %v1690_v28  ;;  %v507_v35 = vpop.f32.mrf.mxu2 }
  0xb0   :  { %v707_v36 = vmul.f32 %v691_v33, %v1693_v30  ;;  %v526_v37 = vpop.f32.mrf.mxu3  ;;  %v472_v38 = vpop.f32.mrf.mxu0  ;;  %1191 = vtanh.f32 %v751_v32 }
  0xb1   :  { %v720_v39 = vmul.f32 0.044715, %v704_v34  ;;  %v527_v40 = vadd.f32 %v526_v37, %v507_v35  ;;  %v491_v41 = vpop.f32.mrf.mxu1 }
  0xb2   :  { %v723_v42 = vmul.f32 0.044715, %v707_v36  ;;  %v492_v43 = vadd.f32 %v491_v41, %v472_v38 }
  0xb3   :  { %v736_v45 = vadd.f32 %v720_v39, %v1690_v28  ;;  %v1703_v46 = vadd.f32 %v1686_v20, %v527_v40 }
  0xb4   :  { %v739_v47 = vadd.f32 %v723_v42, %v1693_v30  ;;  %v1706_v48 = vadd.f32 %v663_v44, %v492_v43 }
  0xb5   :  { %v752_v50 = vmul.f32 0.7978846, %v736_v45  ;;  %v692_v51 = vmul.f32 %v1703_v46, %v1703_v46  ;;  %v1749_v45 = vperm.slane %v1678_v14, 3 }
  0xb6   :  { %v755_v52 = vmul.f32 0.7978846, %v739_v47  ;;  %v695_v53 = vmul.f32 %v1706_v48, %v1706_v48  ;;  %v1192_v54 = vpop.eup %1191 }
  0xb7   :  { %1193 = vtanh.f32 %v752_v50  ;;  %v708_v55 = vmul.f32 %v692_v51, %v1703_v46  ;;  %v510_v56 = vpop.f32.mrf.mxu2  ;;  %v783_v63 = vadd.f32 1.0, %v1192_v54 }
  0xb8   :  { %v711_v57 = vmul.f32 %v695_v53, %v1706_v48  ;;  %v529_v58 = vpop.f32.mrf.mxu3  ;;  %v474_v59 = vpop.f32.mrf.mxu0  ;;  %1195 = vtanh.f32 %v755_v52 }
  0xb9   :  { %v724_v60 = vmul.f32 0.044715, %v708_v55  ;;  %v530_v61 = vadd.f32 %v529_v58, %v510_v56  ;;  %v493_v62 = vpop.f32.mrf.mxu1  ;;  %v799_v9 = vmul.f32 0.5, %v783_v63 }
  0xba   :  { %v727_v0 = vmul.f32 0.044715, %v711_v57  ;;  %v494_v1 = vadd.f32 %v493_v62, %v474_v59 }
  0xbb   :  { %v740_v2 = vadd.f32 %v724_v60, %v1703_v46  ;;  %v1716_v3 = vadd.f32 %v1686_v20, %v530_v61  ;;  %v815_v24 = vmul.f32 %v799_v9, %v1681_v18 }
  0xbc   :  { %v743_v4 = vadd.f32 %v727_v0, %v1706_v48  ;;  %v1719_v5 = vadd.f32 %v663_v44, %v494_v1 }
  0xbd   :  { %v1194_v6 = vpop.eup %1193  ;;  %v756_v7 = vmul.f32 0.7978846, %v740_v2  ;;  %v696_v8 = vmul.f32 %v1716_v3, %v1716_v3 }
  0xbe   :  { %v784_v10 = vadd.f32 1.0, %v1194_v6  ;;  %v759_v11 = vmul.f32 0.7978846, %v743_v4  ;;  %v699_v12 = vmul.f32 %v1719_v5, %v1719_v5  ;;  %v1196_v13 = vpop.eup %1195 }
  0xbf   :  { %1197 = vtanh.f32 %v756_v7  ;;  %v712_v15 = vmul.f32 %v696_v8, %v1716_v3  ;;  %v512_v16 = vpop.f32.mrf.mxu2  ;;  %v787_v26 = vadd.f32 1.0, %v1196_v13 }
  0xc0   :  { %v800_v17 = vmul.f32 0.5, %v784_v10  ;;  %v715_v44 = vmul.f32 %v699_v12, %v1719_v5  ;;  %v531_v49 = vpop.f32.mrf.mxu3  ;;  %1199 = vtanh.f32 %v759_v11 }
  0xc1   :  { %v728_v19 = vmul.f32 0.044715, %v712_v15  ;;  %v532_v21 = vadd.f32 %v531_v49, %v512_v16 }
  0xc2   :  { %v543_v22 = vpop.f32.mrf.mxu0  ;;  %v816_v25 = vmul.f32 %v800_v17, %v1690_v28  ;;  %v731_v27 = vmul.f32 0.044715, %v715_v44  ;;  %v803_v28 = vmul.f32 0.5, %v787_v26 }
  0xc3   :  { %v562_v29 = vpop.f32.mrf.mxu1  ;;  %v744_v31 = vadd.f32 %v728_v19, %v1716_v3  ;;  %v1734_v32 = vadd.f32 %v1686_v20, %v532_v21 }
  0xc4   :  { %v563_v33 = vadd.f32 %v562_v29, %v543_v22  ;;  %v831_v34 = vpack.c.bf16 %v816_v25, %v815_v24  ;;  %v747_v35 = vadd.f32 %v731_v27, %v1719_v5  ;;  %v819_v55 = vmul.f32 %v803_v28, %v1693_v30 }
  0xc5   :  { %v1198_v36 = vpop.eup %1197  ;;  %v760_v37 = vmul.f32 0.7978846, %v744_v31  ;;  %v700_v38 = vmul.f32 %v1734_v32, %v1734_v32 }
  0xc6   :  { %v1740_v18 = vadd.f32 %v1728_v23, %v563_v33  ;;  %839 = vst [vmem:[%s1820_s3] sm:$0xff] %v831_v34  ;;  %v788_v39 = vadd.f32 1.0, %v1198_v36  ;;  %v763_v20 = vmul.f32 0.7978846, %v747_v35  ;;  %v1200_v40 = vpop.eup %1199 }
  0xc7   :  { %1201 = vtanh.f32 %v760_v37  ;;  %v716_v41 = vmul.f32 %v700_v38, %v1734_v32  ;;  %v581_v43 = vpop.f32.mrf.mxu2  ;;  %v791_v57 = vadd.f32 1.0, %v1200_v40 }
  0xc8   :  { %v689_v42 = vmul.f32 %v1740_v18, %v1740_v18  ;;  %v804_v47 = vmul.f32 0.5, %v788_v39  ;;  %v600_v50 = vpop.f32.mrf.mxu3  ;;  %1203 = vtanh.f32 %v763_v20 }
  0xc9   :  { %v732_v51 = vmul.f32 0.044715, %v716_v41  ;;  %v601_v53 = vadd.f32 %v600_v50, %v581_v43  ;;  %v807_v30 = vmul.f32 0.5, %v791_v57 }
  0xca   :  { %v705_v52 = vmul.f32 %v689_v42, %v1740_v18  ;;  %v545_v54 = vpop.f32.mrf.mxu0  ;;  %v820_v56 = vmul.f32 %v804_v47, %v1703_v46 }
  0xcb   :  { %v564_v58 = vpop.f32.mrf.mxu1  ;;  %v748_v59 = vadd.f32 %v732_v51, %v1734_v32  ;;  %v1756_v14 = vadd.f32 %v1749_v45, %v601_v53  ;;  %v823_v17 = vmul.f32 %v807_v30, %v1706_v48 }
  0xcc   :  { %v721_v60 = vmul.f32 0.044715, %v705_v52  ;;  %v833_v61 = vpack.c.bf16 %v820_v56, %v819_v55  ;;  %v565_v62 = vadd.f32 %v564_v58, %v545_v54 }
  0xcd   :  { %v1202_v63 = vpop.eup %1201  ;;  %v764_v0 = vmul.f32 0.7978846, %v748_v59  ;;  %v690_v2 = vmul.f32 %v1756_v14, %v1756_v14 }
  0xce   :  { %v737_v1 = vadd.f32 %v721_v60, %v1740_v18  ;;  %841 = vst [vmem:[%s1820_s3 + $0x10] sm:$0xff] %v833_v61  ;;  %v792_v46 = vadd.f32 1.0, %v1202_v63  ;;  %v1765_v4 = vadd.f32 %v1728_v23, %v565_v62  ;;  %v1204_v6 = vpop.eup %1203 }
  0xcf   :  { %1205 = vtanh.f32 %v764_v0  ;;  %v706_v8 = vmul.f32 %v690_v2, %v1756_v14  ;;  %v583_v9 = vpop.f32.mrf.mxu2  ;;  %v795_v49 = vadd.f32 1.0, %v1204_v6 }
  0xd0   :  { %v753_v7 = vmul.f32 0.7978846, %v737_v1  ;;  %v808_v10 = vmul.f32 0.5, %v792_v46  ;;  %v693_v11 = vmul.f32 %v1765_v4, %v1765_v4  ;;  %v602_v12 = vpop.f32.mrf.mxu3 }
  0xd1   :  { %v722_v13 = vmul.f32 0.044715, %v706_v8  ;;  %v603_v15 = vadd.f32 %v602_v12, %v583_v9 }
  0xd2   :  { %1207 = vtanh.f32 %v753_v7  ;;  %v548_v16 = vpop.f32.mrf.mxu0  ;;  %v824_v44 = vmul.f32 %v808_v10, %v1716_v3  ;;  %v709_v19 = vmul.f32 %v693_v11, %v1765_v4  ;;  %v811_v3 = vmul.f32 0.5, %v795_v49 }
  0xd3   :  { %v567_v21 = vpop.f32.mrf.mxu1  ;;  %v738_v22 = vadd.f32 %v722_v13, %v1756_v14  ;;  %v1775_v24 = vadd.f32 %v1749_v45, %v603_v15 }
  0xd4   :  { %v568_v25 = vadd.f32 %v567_v21, %v548_v16  ;;  %v835_v26 = vpack.c.bf16 %v824_v44, %v823_v17  ;;  %v725_v27 = vmul.f32 0.044715, %v709_v19  ;;  %v827_v50 = vmul.f32 %v811_v3, %v1719_v5 }
  0xd5   :  { %v1206_v29 = vpop.eup %1205  ;;  %v754_v31 = vmul.f32 0.7978846, %v738_v22  ;;  %v694_v33 = vmul.f32 %v1775_v24, %v1775_v24 }
  0xd6   :  { %v1780_v48 = vadd.f32 %v1728_v23, %v568_v25  ;;  %843 = vst [vmem:[%s1820_s3 + $0x20] sm:$0xff] %v835_v26  ;;  %v796_v34 = vadd.f32 1.0, %v1206_v29  ;;  %v741_v35 = vadd.f32 %v725_v27, %v1765_v4 }
  0xd7   :  { %1209 = vtanh.f32 %v754_v31  ;;  %v710_v37 = vmul.f32 %v694_v33, %v1775_v24  ;;  %v586_v28 = vpop.f32.mrf.mxu2 }
  0xd8   :  { %v1208_v36 = vpop.eup %1207  ;;  %v697_v38 = vmul.f32 %v1780_v48, %v1780_v48  ;;  %v812_v39 = vmul.f32 0.5, %v796_v34  ;;  %v757_v20 = vmul.f32 0.7978846, %v741_v35  ;;  %v605_v40 = vpop.f32.mrf.mxu3 }
  0xd9   :  { %v726_v41 = vmul.f32 0.044715, %v710_v37  ;;  %v606_v43 = vadd.f32 %v605_v40, %v586_v28  ;;  %v785_v52 = vadd.f32 1.0, %v1208_v36 }
  0xda   :  { %v713_v42 = vmul.f32 %v697_v38, %v1780_v48  ;;  %v550_v47 = vpop.f32.mrf.mxu0  ;;  %v828_v51 = vmul.f32 %v812_v39, %v1734_v32  ;;  %1211 = vtanh.f32 %v757_v20 }
  0xdb   :  { %v569_v53 = vpop.f32.mrf.mxu1  ;;  %v742_v54 = vadd.f32 %v726_v41, %v1775_v24  ;;  %v682_v56 = vadd.f32 %v1749_v45, %v606_v43  ;;  %v801_v5 = vmul.f32 0.5, %v785_v52 }
  0xdc   :  { %v729_v55 = vmul.f32 0.044715, %v713_v42  ;;  %v570_v57 = vadd.f32 %v569_v53, %v550_v47  ;;  %v837_v58 = vpack.c.bf16 %v828_v51, %v827_v50 }
  0xdd   :  { %v1210_v59 = vpop.eup %1209  ;;  %v758_v60 = vmul.f32 0.7978846, %v742_v54  ;;  %v698_v62 = vmul.f32 %v682_v56, %v682_v56 }
  0xde   :  { %v745_v61 = vadd.f32 %v729_v55, %v1780_v48  ;;  %v685_v63 = vadd.f32 %v1728_v23, %v570_v57  ;;  %845 = vst [vmem:[%s1820_s3 + $0x30] sm:$0xff] %v837_v58  ;;  %v786_v32 = vadd.f32 1.0, %v1210_v59  ;;  %v817_v23 = vmul.f32 %v801_v5, %v1740_v18 }
  0xdf   :  { %1213 = vtanh.f32 %v758_v60  ;;  %v714_v1 = vmul.f32 %v698_v62, %v682_v56  ;;  %v588_v30 = vpop.f32.mrf.mxu2 }
  0xe0   :  { %v761_v0 = vmul.f32 0.7978846, %v745_v61  ;;  %v701_v2 = vmul.f32 %v685_v63, %v685_v63  ;;  %v1212_v46 = vpop.eup %1211  ;;  %v802_v6 = vmul.f32 0.5, %v786_v32  ;;  %v607_v7 = vpop.f32.mrf.mxu3 }
  0xe1   :  { %v789_v8 = vadd.f32 1.0, %v1212_v46  ;;  %v730_v9 = vmul.f32 0.044715, %v714_v1  ;;  %v608_v12 = vadd.f32 %v607_v7, %v588_v30 }
  0xe2   :  { %1215 = vtanh.f32 %v761_v0  ;;  %v717_v10 = vmul.f32 %v701_v2, %v685_v63  ;;  %v818_v11 = vmul.f32 %v802_v6, %v1756_v14 }
  0xe3   :  { %v746_v13 = vadd.f32 %v730_v9, %v682_v56  ;;  %v686_v17 = vadd.f32 %v1749_v45, %v608_v12  ;;  %v805_v49 = vmul.f32 0.5, %v789_v8 }
  0xe4   :  { %v733_v15 = vmul.f32 0.044715, %v717_v10  ;;  %v832_v16 = vpack.c.bf16 %v818_v11, %v817_v23 }
  0xe5   :  { %v1214_v44 = vpop.eup %1213  ;;  %v762_v19 = vmul.f32 0.7978846, %v746_v13  ;;  %v702_v25 = vmul.f32 %v686_v17, %v686_v17  ;;  %v821_v29 = vmul.f32 %v805_v49, %v1765_v4 }
  0xe6   :  { %v749_v21 = vadd.f32 %v733_v15, %v685_v63  ;;  %840 = vst [vmem:[%s1820_s3 + $0x8] sm:$0xff] %v832_v16  ;;  %v790_v22 = vadd.f32 1.0, %v1214_v44 }
  0xe7   :  { %1217 = vtanh.f32 %v762_v19  ;;  %v718_v27 = vmul.f32 %v702_v25, %v686_v17 }
  0xe8   :  { %v1216_v26 = vpop.eup %1215  ;;  %v765_v18 = vmul.f32 0.7978846, %v749_v21  ;;  %v806_v14 = vmul.f32 0.5, %v790_v22 }
  0xe9   :  { %v793_v45 = vadd.f32 1.0, %v1216_v26  ;;  %v734_v33 = vmul.f32 0.044715, %v718_v27 }
  0xea   :  { %v822_v31 = vmul.f32 %v806_v14, %v1775_v24  ;;  %1219 = vtanh.f32 %v765_v18 }
  0xeb   :  { %v750_v34 = vadd.f32 %v734_v33, %v686_v17  ;;  %v809_v36 = vmul.f32 0.5, %v793_v45 }
  0xec   :  { %v834_v3 = vpack.c.bf16 %v822_v31, %v821_v29 }
  0xed   :  { %v1218_v35 = vpop.eup %1217  ;;  %v766_v38 = vmul.f32 0.7978846, %v750_v34  ;;  %v825_v4 = vmul.f32 %v809_v36, %v1780_v48 }
  0xee   :  { %842 = vst [vmem:[%s1820_s3 + $0x18] sm:$0xff] %v834_v3  ;;  %v794_v37 = vadd.f32 1.0, %v1218_v35 }
  0xef   :  { %1221 = vtanh.f32 %v766_v38 }
  0xf0   :  { %v1220_v28 = vpop.eup %1219  ;;  %v810_v39 = vmul.f32 0.5, %v794_v37 }
  0xf1   :  { %v797_v24 = vadd.f32 1.0, %v1220_v28 }
  0xf2   :  { %v826_v20 = vmul.f32 %v810_v39, %v682_v56 }
  0xf3   :  { %v813_v42 = vmul.f32 0.5, %v797_v24 }
  0xf4   :  { %v836_v40 = vpack.c.bf16 %v826_v20, %v825_v4 }
  0xf5   :  { %v1222_v41 = vpop.eup %1221  ;;  %v829_v50 = vmul.f32 %v813_v42, %v685_v63 }
  0xf6   :  { %844 = vst [vmem:[%s1820_s3 + $0x28] sm:$0xff] %v836_v40  ;;  %v798_v43 = vadd.f32 1.0, %v1222_v41 }
  0xf8   :  { %v814_v47 = vmul.f32 0.5, %v798_v43 }
  0xfa   :  { %v830_v51 = vmul.f32 %v814_v47, %v686_v17 }
  0xfc   :  { %v838_v52 = vpack.c.bf16 %v830_v51, %v829_v50 }
  0xfe   :  { %846 = vst [vmem:[%s1820_s3 + $0x38] sm:$0xff] %v838_v52 }

// kernel: label_mask_model_forward.19
= control target key start
LH: loop header
LB: loop body
LE: loop exit
PB: predicated region body
PF: predicated region fallthrough
CT: control target
= control target key end

     0   :  { %8 = vsyncpa [#allocation4], 0  ;;  %s1369_s0 = inlined_call_operand.vmem [shape: bf16[32,256], index: 0, kind: input, shape index: {}]   ;;  %s1370_s1 = inlined_call_operand.hbm [shape: bf16[256,768], index: 1, kind: input, shape index: {}]   ;;  %s1371_s2 = inlined_call_operand.vmem [shape: f32[1,768], index: 2, kind: input, shape index: {}]   ;;  %s1372_s3 = inlined_call_operand.vmem [shape: bf16[32,768], index: 3, kind: output, shape index: {}]  }
   0x1   :  { %10 = vsyncpa [#allocation4 + $0x1], 0  ;;  %s1167_s12 = smov 0   ;;  %s1169_s13 = smov 0  }
   0x2   :  { %s1171_s14 = smov 0   ;;  %s1173_s15 = smov 0  }
   0x3   :  { %s1175_s16 = smov 0   ;;  %s1177_s17 = smov 0  }
   0x4 LB: > { %s805_s18 = sadd.s32 4294967295, %s1142_s17   ;;  %s31_s19 = sadd.s32 1, %s1138_s16  ;;  %s1142_s17 = sphi %s1177_s17, %s16_s17   ;;  %s1138_s16 = sphi %s1175_s16, %s1380_s16   ;;  %s1134_s15 = sphi %s1173_s15, %s1379_s15   ;;  %s1130_s14 = sphi %s1171_s14, %s1378_s14   ;;  %s1126_s13 = sphi %s1169_s13, %s1377_s13   ;;  %s1122_s12 = sphi %s1167_s12, %s1376_s12  }
   0x5   : > { %p33_p0 = scmp.ge.s32.totalorder %s31_s19, 3  ;;  %s72_s20 = sadd.s32 1, %s1130_s14 }
   0x6   : > { %p79_p1 = scmp.ne.s32.totalorder %s1130_s14, %s1126_s13  ;;  %p80_p2 = scmp.eq.s32.totalorder %s1142_s17, 0 }
   0x7   : > { %s1382_s19 = smov (%p33_p0, %s31_s19), 0  ;;  %p85_p4 = scmp.ne.s32.totalorder %s1126_s13, %s1122_s12 }
   0x8   : > { %p1203_p3 = por %p80_p2, %p79_p1  ;;  %s68_s22 = ssub.s32 %s1138_s16, %s1382_s19 }
   0x9   : > { %p86_p5 = scmp.eq.s32.totalorder %s805_s18, 0  ;;  %p70_p6 = scmp.eq.s32.totalorder %s68_s22, 0 }
   0xa   : > { %p137_p7 = scmp.eq.s32.totalorder %s805_s18, 2  ;;  %p1010_p10 = scmp.lt.s32.totalorder %s1142_s17, 3 }
   0xb   : > { %p1210_p8 = por %p86_p5, %p85_p4  ;;  %s178_s26 = sand.u32 1, %s1130_s14  }
   0xc   : > { %s1215_s24 = scalar_select %p70_p6, %s1130_s14, %s72_s20  }
   0xd   : > { %p1217_p9 = por %p137_p7, %p79_p1  ;;  %s966_s27 = sshll.u32 %s1138_s16, 3 }
   0xe   : > { %s810_s28 = sshll.u32 %s178_s26, 8  ;;  %s190_s4 = scalar_lea.hbm %s1370_s1, %s966_s27 }
   0xf   : > { %s191_s5 = sshll.u32 %s190_s4, 4  ;;  %s182_s6 = scalar_lea.vmem [#allocation3], %s810_s28  ;;  %s192_s5 = int_to_ptr.hbm [resolvable:$true] %s191_s5 }
  0x10   : > { %s193_s7 = sshll.u32 %s182_s6, 4  ;;  %p1007_p11 = pnand %p1010_p10, %p1203_p3  ;;  %s194_s7 = int_to_ptr.vmem [resolvable:$true] %s193_s7 }
  0x11   : > { %p813_p12 = scmp.ge.s32.totalorder %s1142_s17, 1  ;;  %s179_s8 = scalar_lea.sflag [#allocation4], %s178_s26 }
  0x12   : > { %s1144_s9 = smov 384   ;;  %s1145_s10 = smov 128  }
  0x13   : > { %s1146_s11 = smov 8   ;;  %p209_p13 = scmp.lt.s32.totalorder %s1142_s17, 4 }
  0x14   : > { %1009 = dma.hbm_to_vmem [thread:$0]  (!%p1007_p11), %s192_s5, 4096, %s194_s7, %s179_s8, %s1144_s9, %s1145_s10, %s1146_s11  }
  0x15   : > { %p210_p0 = pnand %p813_p12, %p209_p13 }
  0x16   : > { %s1232_s12 = sand.u32 (!%p210_p0), 1, %s1126_s13  }
  0x17   : > { %213 = sbr.rel (%p210_p0) target bundleno = 237 (0xed), region = 32  ;;  %s814_s18 = sshll.u32 (!%p210_p0), %s1232_s12, 8 }
  0x18   : > { %s216_s20 = scalar_lea.sflag (!%p210_p0), [#allocation4], %s1232_s12  ;;  %s1236_s22 = scalar_lea.vmem (!%p210_p0), [#allocation3], %s814_s18 }
  0x1c   : > { %1117 = dma.done.wait (%p1210_p8), %s216_s20, 4096  }
  0x1d   : > { %1119 = vsyncadd (%p1210_p8), %s216_s20, 4294963200  ;;  %v891_v0 = vld [vmem:[%s1236_s22 + $0x70] sm:$0xf]  ;;  %v986_v1 = vld [vmem:[%s1236_s22 + $0x74] sm:$0xf0]  ;;  %s816_s20 = sshll.u32 %s1134_s15, 1 }
  0x1e   : > { %v955_v2 = vld [vmem:[%s1236_s22 + $0xf0] sm:$0xf]  ;;  %v892_v3 = vor.u32 %v986_v1, %v891_v0  ;;  %v1002_v4 = vld [vmem:[%s1236_s22 + $0xf4] sm:$0xf0]  ;;  %v985_v5 = vld [vmem:[%s1236_s22 + $0x74] sm:$0xf] }
  0x1f   : > { %v893_v6 = vld [vmem:[%s1236_s22 + $0x78] sm:$0xf0]  ;;  %v956_v7 = vor.u32 %v1002_v4, %v955_v2  ;;  %v1001_v9 = vld [vmem:[%s1236_s22 + $0xf4] sm:$0xf]  ;;  %v883_v11 = vld [vmem:[%s1236_s22 + $0x60] sm:$0xf] }
  0x20   : > { %v896_v8 = vor.u32 %v985_v5, %v893_v6  ;;  %v957_v10 = vld [vmem:[%s1236_s22 + $0xf8] sm:$0xf0]  ;;  %513 = vmatpush.bf16.msra.mxu0 %v892_v3  ;;  %v984_v13 = vld [vmem:[%s1236_s22 + $0x64] sm:$0xf0]  ;;  %v947_v14 = vld [vmem:[%s1236_s22 + $0xe0] sm:$0xf] }
  0x21   : > { %v960_v12 = vor.u32 %v1001_v9, %v957_v10  ;;  %v1000_v15 = vld [vmem:[%s1236_s22 + $0xe4] sm:$0xf0]  ;;  %532 = vmatpush.bf16.msra.mxu1 %v956_v7  ;;  %v884_v16 = vor.u32 %v984_v13, %v883_v11  ;;  %v983_v18 = vld [vmem:[%s1236_s22 + $0x64] sm:$0xf]  ;;  %v885_v19 = vld [vmem:[%s1236_s22 + $0x68] sm:$0xf0] }
  0x22   : > { %551 = vmatpush.bf16.msra.mxu2 %v896_v8  ;;  %v948_v17 = vor.u32 %v1000_v15, %v947_v14  ;;  %v999_v20 = vld [vmem:[%s1236_s22 + $0xe4] sm:$0xf]  ;;  %v888_v21 = vor.u32 %v983_v18, %v885_v19  ;;  %v949_v22 = vld [vmem:[%s1236_s22 + $0xe8] sm:$0xf0]  ;;  %v875_v23 = vld [vmem:[%s1236_s22 + $0x50] sm:$0xf] }
  0x23   : > { %570 = vmatpush.bf16.msra.mxu3 %v960_v12  ;;  %v982_v24 = vld [vmem:[%s1236_s22 + $0x54] sm:$0xf0]  ;;  %v952_v25 = vor.u32 %v999_v20, %v949_v22  ;;  %v939_v26 = vld [vmem:[%s1236_s22 + $0xd0] sm:$0xf]  ;;  %v981_v28 = vld [vmem:[%s1236_s22 + $0x54] sm:$0xf] }
  0x24   : > { %v998_v27 = vld [vmem:[%s1236_s22 + $0xd4] sm:$0xf0]  ;;  %514 = vmatpush.bf16.msra.mxu0 %v884_v16  ;;  %v876_v29 = vor.u32 %v982_v24, %v875_v23  ;;  %v877_v30 = vld [vmem:[%s1236_s22 + $0x58] sm:$0xf0]  ;;  %v997_v31 = vld [vmem:[%s1236_s22 + $0xd4] sm:$0xf] }
  0x25   : > { %v941_v32 = vld [vmem:[%s1236_s22 + $0xd8] sm:$0xf0]  ;;  %533 = vmatpush.bf16.msra.mxu1 %v948_v17  ;;  %v940_v33 = vor.u32 %v998_v27, %v939_v26  ;;  %v880_v34 = vor.u32 %v981_v28, %v877_v30  ;;  %v867_v35 = vld [vmem:[%s1236_s22 + $0x40] sm:$0xf]  ;;  %v980_v36 = vld [vmem:[%s1236_s22 + $0x44] sm:$0xf0] }
  0x26   : > { %552 = vmatpush.bf16.msra.mxu2 %v888_v21  ;;  %v931_v37 = vld [vmem:[%s1236_s22 + $0xc0] sm:$0xf]  ;;  %v944_v38 = vor.u32 %v997_v31, %v941_v32  ;;  %v996_v39 = vld [vmem:[%s1236_s22 + $0xc4] sm:$0xf0]  ;;  %v979_v40 = vld [vmem:[%s1236_s22 + $0x44] sm:$0xf]  ;;  %v868_v44 = vor.u32 %v980_v36, %v867_v35 }
  0x27   : > { %571 = vmatpush.bf16.msra.mxu3 %v952_v25  ;;  %v869_v41 = vld [vmem:[%s1236_s22 + $0x48] sm:$0xf0]  ;;  %v995_v42 = vld [vmem:[%s1236_s22 + $0xc4] sm:$0xf]  ;;  %v932_v45 = vor.u32 %v996_v39, %v931_v37  ;;  %v859_v47 = vld [vmem:[%s1236_s22 + $0x30] sm:$0xf] }
  0x28   : > { %v933_v43 = vld [vmem:[%s1236_s22 + $0xc8] sm:$0xf0]  ;;  %515 = vmatpush.bf16.msra.mxu0 %v876_v29  ;;  %v872_v46 = vor.u32 %v979_v40, %v869_v41  ;;  %v978_v48 = vld [vmem:[%s1236_s22 + $0x34] sm:$0xf0]  ;;  %v923_v49 = vld [vmem:[%s1236_s22 + $0xb0] sm:$0xf] }
  0x29   : > { %534 = vmatpush.bf16.msra.mxu1 %v940_v33  ;;  %v936_v50 = vor.u32 %v995_v42, %v933_v43  ;;  %v994_v51 = vld [vmem:[%s1236_s22 + $0xb4] sm:$0xf0]  ;;  %v977_v52 = vld [vmem:[%s1236_s22 + $0x34] sm:$0xf]  ;;  %v861_v53 = vld [vmem:[%s1236_s22 + $0x38] sm:$0xf0]  ;;  %v860_v56 = vor.u32 %v978_v48, %v859_v47 }
  0x2a   : > { %553 = vmatpush.bf16.msra.mxu2 %v880_v34  ;;  %v993_v54 = vld [vmem:[%s1236_s22 + $0xb4] sm:$0xf]  ;;  %v925_v55 = vld [vmem:[%s1236_s22 + $0xb8] sm:$0xf0]  ;;  %v924_v57 = vor.u32 %v994_v51, %v923_v49  ;;  %v864_v58 = vor.u32 %v977_v52, %v861_v53  ;;  %v851_v59 = vld [vmem:[%s1236_s22 + $0x20] sm:$0xf] }
  0x2b   : > { %572 = vmatpush.bf16.msra.mxu3 %v944_v38  ;;  %v976_v60 = vld [vmem:[%s1236_s22 + $0x24] sm:$0xf0]  ;;  %v915_v61 = vld [vmem:[%s1236_s22 + $0xa0] sm:$0xf]  ;;  %v928_v62 = vor.u32 %v993_v54, %v925_v55  ;;  %v975_v0 = vld [vmem:[%s1236_s22 + $0x24] sm:$0xf] }
  0x2c   : > { %516 = vmatpush.bf16.msra.mxu0 %v868_v44  ;;  %v992_v63 = vld [vmem:[%s1236_s22 + $0xa4] sm:$0xf0]  ;;  %v853_v1 = vld [vmem:[%s1236_s22 + $0x28] sm:$0xf0]  ;;  %v991_v2 = vld [vmem:[%s1236_s22 + $0xa4] sm:$0xf]  ;;  %v852_v4 = vor.u32 %v976_v60, %v851_v59 }
  0x2d   : > { %535 = vmatpush.bf16.msra.mxu1 %v932_v45  ;;  %v917_v3 = vld [vmem:[%s1236_s22 + $0xa8] sm:$0xf0]  ;;  %v916_v5 = vor.u32 %v992_v63, %v915_v61  ;;  %v856_v6 = vor.u32 %v975_v0, %v853_v1  ;;  %v843_v7 = vld [vmem:[%s1236_s22 + $0x10] sm:$0xf]  ;;  %v974_v8 = vld [vmem:[%s1236_s22 + $0x14] sm:$0xf0] }
  0x2e   : > { %554 = vmatpush.bf16.msra.mxu2 %v872_v46  ;;  %v907_v9 = vld [vmem:[%s1236_s22 + $0x90] sm:$0xf]  ;;  %v920_v10 = vor.u32 %v991_v2, %v917_v3  ;;  %v990_v11 = vld [vmem:[%s1236_s22 + $0x94] sm:$0xf0]  ;;  %v973_v12 = vld [vmem:[%s1236_s22 + $0x14] sm:$0xf]  ;;  %v844_v16 = vor.u32 %v974_v8, %v843_v7 }
  0x2f   : > { %573 = vmatpush.bf16.msra.mxu3 %v936_v50  ;;  %v845_v13 = vld [vmem:[%s1236_s22 + $0x18] sm:$0xf0]  ;;  %v989_v14 = vld [vmem:[%s1236_s22 + $0x94] sm:$0xf]  ;;  %v908_v17 = vor.u32 %v990_v11, %v907_v9  ;;  %v835_v19 = vld [vmem:[%s1236_s22] sm:$0xf] }
  0x30   : > { %517 = vmatpush.bf16.msra.mxu0 %v860_v56  ;;  %v909_v15 = vld [vmem:[%s1236_s22 + $0x98] sm:$0xf0]  ;;  %v848_v18 = vor.u32 %v973_v12, %v845_v13  ;;  %v972_v20 = vld [vmem:[%s1236_s22 + $0x4] sm:$0xf0]  ;;  %v899_v21 = vld [vmem:[%s1236_s22 + $0x80] sm:$0xf] }
  0x31   : > { %536 = vmatpush.bf16.msra.mxu1 %v924_v57  ;;  %v912_v22 = vor.u32 %v989_v14, %v909_v15  ;;  %v988_v23 = vld [vmem:[%s1236_s22 + $0x84] sm:$0xf0]  ;;  %v971_v24 = vld [vmem:[%s1236_s22 + $0x4] sm:$0xf]  ;;  %v837_v25 = vld [vmem:[%s1236_s22 + $0x8] sm:$0xf0]  ;;  %v836_v28 = vor.u32 %v972_v20, %v835_v19 }
  0x32   : > { %555 = vmatpush.bf16.msra.mxu2 %v864_v58  ;;  %v987_v26 = vld [vmem:[%s1236_s22 + $0x84] sm:$0xf]  ;;  %v901_v27 = vld [vmem:[%s1236_s22 + $0x88] sm:$0xf0]  ;;  %v819_v29 = vld [vmem:[%s1369_s0] sm:$0xf]  ;;  %v900_v31 = vor.u32 %v988_v23, %v899_v21  ;;  %v840_v32 = vor.u32 %v971_v24, %v837_v25 }
  0x33   : > { %574 = vmatpush.bf16.msra.mxu3 %v928_v62  ;;  %v968_v30 = vld [vmem:[%s1369_s0 + $0x4] sm:$0xf0]  ;;  %v967_v33 = vld [vmem:[%s1369_s0 + $0x4] sm:$0xf]  ;;  %v821_v34 = vld [vmem:[%s1369_s0 + $0x8] sm:$0xf0]  ;;  %v904_v35 = vor.u32 %v987_v26, %v901_v27 }
  0x34   : > { %518 = vmatpush.bf16.msra.mxu0 %v852_v4  ;;  %v820_v36 = vor.u32 %v968_v30, %v819_v29  ;;  %v824_v37 = vor.u32 %v967_v33, %v821_v34  ;;  %v827_v38 = vld [vmem:[%s1369_s0 + $0x10] sm:$0xf]  ;;  %v970_v39 = vld [vmem:[%s1369_s0 + $0x14] sm:$0xf0]  ;;  %v969_v40 = vld [vmem:[%s1369_s0 + $0x14] sm:$0xf] }
  0x35   : > { %537 = vmatpush.bf16.msra.mxu1 %v916_v5  ;;  %v829_v41 = vld [vmem:[%s1369_s0 + $0x18] sm:$0xf0]  ;;  %v828_v42 = vor.u32 %v970_v39, %v827_v38  ;;  %p271_p1 = scmp.lt.s32.totalorder %s816_s20, 5  ;;  %s815_s26 = sshll.u32 %s1232_s12, 5 }
  0x36   : > { %556 = vmatpush.bf16.msra.mxu2 %v856_v6  ;;  %v832_v43 = vor.u32 %v969_v40, %v829_v41  ;;  %s1335_s27 = scalar_lea.vmem [#allocation5], %s815_s26  ;;  %s1003_s12 = sshll.u32 (%p1217_p9), %s1134_s15, 3 }
  0x37   : > { %575 = vmatpush.bf16.msra.mxu3 %v920_v10  ;;  %s1384_s20 = smov (!%p271_p1, %s816_s20), 5  ;;  %s650_s30 = scalar_lea.vmem (%p1217_p9), %s1372_s3, %s1003_s12 }
  0x38   : > { %519 = vmatpush.bf16.msra.mxu0 %v844_v16  ;;  %s273_s23 = scalar_lea.vmem %s1371_s2, %s1384_s20 }
  0x39   : > { %538 = vmatpush.bf16.msra.mxu1 %v908_v17  ;;  %v616_v46 = vld [vmem:[%s273_s23] sm:$0x3] }
  0x3a   : > { %557 = vmatpush.bf16.msra.mxu2 %v848_v18  ;;  %v618_v48 = vperm.slane %v616_v46, 0  ;;  %v619_v50 = vperm.slane %v616_v46, 1 }
  0x3b   : > { %576 = vmatpush.bf16.msra.mxu3 %v912_v22 }
  0x3c   : > { %520 = vmatpush.bf16.msra.mxu0 %v836_v28 }
  0x3d   : > { %539 = vmatpush.bf16.msra.mxu1 %v900_v31 }
  0x3e   : > { %558 = vmatpush.bf16.msra.mxu2 %v840_v32 }
  0x3f   : > { %577 = vmatpush.bf16.msra.mxu3 %v904_v35  ;;  %521 = vmatmul.bf16.vlgmr.msra.gmra.mxu0 %v820_v36 }
  0x40   : > { %540 = vmatmul.bf16.vlgmr.msra.gmra.mxu1 %v824_v37 }
  0x41   : > { %559 = vmatmul.bf16.vlgmr.msra.gmra.mxu2 %v820_v36 }
  0x42   : > { %578 = vmatmul.bf16.vlgmr.msra.gmra.mxu3 %v824_v37 }
  0x4f   : > { %526 = vmatmul.bf16.gmra.mxu0 %v828_v42 }
  0x50   : > { %545 = vmatmul.bf16.gmra.mxu1 %v832_v43 }
  0x51   : > { %564 = vmatmul.bf16.gmra.mxu2 %v828_v42 }
  0x52   : > { %583 = vmatmul.bf16.gmra.mxu3 %v832_v43 }
  0xbc   : > { %v522_v44 = vpop.f32.mrf.mxu0 }
  0xbd   : > { %v541_v45 = vpop.f32.mrf.mxu1 }
  0xbe   : > { %v542_v47 = vadd.f32 %v541_v45, %v522_v44 }
  0xc0   : > { %v622_v53 = vadd.f32 %v618_v48, %v542_v47 }
  0xc4   : > { %v560_v49 = vpop.f32.mrf.mxu2  ;;  %v524_v52 = vpop.f32.mrf.mxu0 }
  0xc5   : > { %v579_v51 = vpop.f32.mrf.mxu3  ;;  %v543_v55 = vpop.f32.mrf.mxu1 }
  0xc6   : > { %v580_v54 = vadd.f32 %v579_v51, %v560_v49  ;;  %v544_v58 = vadd.f32 %v543_v55, %v524_v52 }
  0xc8   : > { %v623_v56 = vadd.f32 %v619_v50, %v580_v54  ;;  %v624_v0 = vadd.f32 %v618_v48, %v544_v58 }
  0xca   : > { %v630_v57 = vpack.c.bf16 %v623_v56, %v622_v53 }
  0xcc   : > { %634 = vst [vmem:[%s1335_s27] sm:$0xff] %v630_v57  ;;  %v562_v59 = vpop.f32.mrf.mxu2  ;;  %v527_v62 = vpop.f32.mrf.mxu0 }
  0xcd   : > { %v581_v60 = vpop.f32.mrf.mxu3  ;;  %v546_v63 = vpop.f32.mrf.mxu1 }
  0xce   : > { %v582_v61 = vadd.f32 %v581_v60, %v562_v59  ;;  %v547_v3 = vadd.f32 %v546_v63, %v527_v62 }
  0xd0   : > { %v625_v1 = vadd.f32 %v619_v50, %v582_v61  ;;  %v626_v6 = vadd.f32 %v618_v48, %v547_v3 }
  0xd2   : > { %v631_v2 = vpack.c.bf16 %v625_v1, %v624_v0 }
  0xd3   : > { %v685_v19 = vld [vmem:[%s1335_s27] sm:$0xff] (%p1217_p9) }
  0xd4   : > { %635 = vst [vmem:[%s1335_s27 + $0x8] sm:$0xff] %v631_v2  ;;  %v565_v4 = vpop.f32.mrf.mxu2  ;;  %v529_v9 = vpop.f32.mrf.mxu0 }
  0xd5   : > { %v584_v5 = vpop.f32.mrf.mxu3  ;;  %v548_v10 = vpop.f32.mrf.mxu1  ;;  %686 = vst [vmem:[%s650_s30] sm:$0xff] (%p1217_p9), %v685_v19 }
  0xd6   : > { %v585_v7 = vadd.f32 %v584_v5, %v565_v4  ;;  %v549_v12 = vadd.f32 %v548_v10, %v529_v9 }
  0xd8   : > { %v627_v8 = vadd.f32 %v619_v50, %v585_v7  ;;  %v628_v16 = vadd.f32 %v618_v48, %v549_v12 }
  0xda   : > { %v632_v11 = vpack.c.bf16 %v627_v8, %v626_v6 }
  0xdb   : > { %v687_v20 = vld [vmem:[%s1335_s27 + $0x8] sm:$0xff] (%p1217_p9) }
  0xdc   : > { %636 = vst [vmem:[%s1335_s27 + $0x10] sm:$0xff] %v632_v11  ;;  %v567_v13 = vpop.f32.mrf.mxu2 }
  0xdd   : > { %v586_v14 = vpop.f32.mrf.mxu3  ;;  %688 = vst [vmem:[%s650_s30 + $0x18] sm:$0xff] (%p1217_p9), %v687_v20 }
  0xde   : > { %v587_v15 = vadd.f32 %v586_v14, %v567_v13 }
  0xe0   : > { %v629_v17 = vadd.f32 %v619_v50, %v587_v15  ;;  %644 = sbr.rel (!%p1217_p9) target bundleno = 237 (0xed), region = 48 }
  0xe2   : > { %v633_v18 = vpack.c.bf16 %v629_v17, %v628_v16 }
  0xe3   : > { %v689_v21 = vld [vmem:[%s1335_s27 + $0x10] sm:$0xff] (%p1217_p9) }
  0xe4   : > { %637 = vst [vmem:[%s1335_s27 + $0x18] sm:$0xff] %v633_v18 }
  0xe5   : > { %690 = vst [vmem:[%s650_s30 + $0x30] sm:$0xff] %v689_v21 }
  0xeb   : > { %v691_v22 = vld [vmem:[%s1335_s27 + $0x18] sm:$0xff] }
  0xec   : > { %692 = vst [vmem:[%s650_s30 + $0x48] sm:$0xff] %v691_v22 }
  0xed PF: > { %s16_s17 = sadd.s32 1, %s1142_s17   ;;  %s1376_s12 = smov %s1126_s13 }
  0xee   : > { %p13_p2 = scmp.ge.s32.totalorder %s16_s17, 5   ;;  %s1377_s13 = smov %s1130_s14 }
  0xef   : > { %s1378_s14 = smov %s1215_s24  ;;  %s1379_s15 = smov %s1138_s16 }
  0xf0   : > { %s1380_s16 = smov %s1382_s19  ;;  %15 = sbr.rel (!%p13_p2) target bundleno = 4 (0x4), region = 124 }
  0xf5   :  { %708 = vsyncpa [#allocation4], 1 }
  0xf6   :  { %710 = vsyncpa [#allocation4 + $0x1], 1 }

// kernel: label_mask_model_forward.22
= control target key start
LH: loop header
LB: loop body
LE: loop exit
PB: predicated region body
PF: predicated region fallthrough
CT: control target
= control target key end

     0   :  { %8 = vsyncpa [#allocation4], 0  ;;  %s1269_s15 = smov [#allocation3]   ;;  %s1270_s17 = smov 256   ;;  %s1485_s0 = inlined_call_operand.vmem [shape: bf16[32,256], index: 0, kind: input, shape index: {}]   ;;  %s1486_s1 = inlined_call_operand.hbm [shape: bf16[256,512], index: 1, kind: input, shape index: {}]   ;;  %s1487_s2 = inlined_call_operand.vmem [shape: f32[1,512], index: 2, kind: input, shape index: {}]   ;;  %s1488_s3 = inlined_call_operand.vmem [shape: bf16[32,512], index: 3, kind: output, shape index: {}]  }
   0x1   :  { %s15_s14 = sshll.u32 %s1486_s1, 4  ;;  %s17_s16 = sshll.u32 %s1269_s15, 4  ;;  %s16_s14 = int_to_ptr.hbm [resolvable:$true] %s15_s14  ;;  %s18_s16 = int_to_ptr.vmem [resolvable:$true] %s17_s16 }
   0x2   :  { %s1271_s18 = smov 16  }
   0x3   :  { %23 = dma.hbm_to_vmem [thread:$0]  %s16_s14, 8192, %s18_s16, [#allocation4], %s1270_s17, %s1270_s17, %s1271_s18  }
   0x4   :  { %1267 = dma.done.wait [#allocation4], 8192  }
   0x5   :  { %1268 = vsyncadd [#allocation4], 4294959104  ;;  %v998_v0 = vld [vmem:[#allocation3 + $0xe0] sm:$0xf]  ;;  %v1174_v1 = vld [vmem:[#allocation3 + $0xec] sm:$0xf0] }
   0x6   :  { %v1126_v2 = vld [vmem:[#allocation3 + $0x1e0] sm:$0xf]  ;;  %v999_v3 = vor.u32 %v1174_v1, %v998_v0  ;;  %v1206_v4 = vld [vmem:[#allocation3 + $0x1ec] sm:$0xf0]  ;;  %v1172_v5 = vld [vmem:[#allocation3 + $0xe4] sm:$0xf] }
   0x7   :  { %v1000_v6 = vld [vmem:[#allocation3 + $0xf0] sm:$0xf0]  ;;  %v1127_v7 = vor.u32 %v1206_v4, %v1126_v2  ;;  %v1204_v9 = vld [vmem:[#allocation3 + $0x1e4] sm:$0xf]  ;;  %v982_v11 = vld [vmem:[#allocation3 + $0xc0] sm:$0xf] }
   0x8   :  { %v1003_v8 = vor.u32 %v1172_v5, %v1000_v6  ;;  %v1128_v10 = vld [vmem:[#allocation3 + $0x1f0] sm:$0xf0]  ;;  %474 = vmatpush.bf16.msra.mxu0 %v999_v3  ;;  %v1170_v13 = vld [vmem:[#allocation3 + $0xcc] sm:$0xf0]  ;;  %v1110_v14 = vld [vmem:[#allocation3 + $0x1c0] sm:$0xf] }
   0x9   :  { %v1131_v12 = vor.u32 %v1204_v9, %v1128_v10  ;;  %v1202_v15 = vld [vmem:[#allocation3 + $0x1cc] sm:$0xf0]  ;;  %493 = vmatpush.bf16.msra.mxu1 %v1127_v7  ;;  %v983_v16 = vor.u32 %v1170_v13, %v982_v11  ;;  %v1168_v18 = vld [vmem:[#allocation3 + $0xc4] sm:$0xf]  ;;  %v984_v19 = vld [vmem:[#allocation3 + $0xd0] sm:$0xf0] }
   0xa   :  { %512 = vmatpush.bf16.msra.mxu2 %v1003_v8  ;;  %v1111_v17 = vor.u32 %v1202_v15, %v1110_v14  ;;  %v1200_v20 = vld [vmem:[#allocation3 + $0x1c4] sm:$0xf]  ;;  %v987_v21 = vor.u32 %v1168_v18, %v984_v19  ;;  %v1112_v22 = vld [vmem:[#allocation3 + $0x1d0] sm:$0xf0]  ;;  %v966_v23 = vld [vmem:[#allocation3 + $0xa0] sm:$0xf] }
   0xb   :  { %531 = vmatpush.bf16.msra.mxu3 %v1131_v12  ;;  %v1166_v24 = vld [vmem:[#allocation3 + $0xac] sm:$0xf0]  ;;  %v1115_v25 = vor.u32 %v1200_v20, %v1112_v22  ;;  %v1094_v26 = vld [vmem:[#allocation3 + $0x1a0] sm:$0xf]  ;;  %v1164_v28 = vld [vmem:[#allocation3 + $0xa4] sm:$0xf] }
   0xc   :  { %v1198_v27 = vld [vmem:[#allocation3 + $0x1ac] sm:$0xf0]  ;;  %475 = vmatpush.bf16.msra.mxu0 %v983_v16  ;;  %v967_v29 = vor.u32 %v1166_v24, %v966_v23  ;;  %v968_v30 = vld [vmem:[#allocation3 + $0xb0] sm:$0xf0]  ;;  %v1196_v31 = vld [vmem:[#allocation3 + $0x1a4] sm:$0xf] }
   0xd   :  { %v1096_v32 = vld [vmem:[#allocation3 + $0x1b0] sm:$0xf0]  ;;  %494 = vmatpush.bf16.msra.mxu1 %v1111_v17  ;;  %v1095_v33 = vor.u32 %v1198_v27, %v1094_v26  ;;  %v971_v34 = vor.u32 %v1164_v28, %v968_v30  ;;  %v950_v35 = vld [vmem:[#allocation3 + $0x80] sm:$0xf]  ;;  %v1162_v36 = vld [vmem:[#allocation3 + $0x8c] sm:$0xf0] }
   0xe   :  { %513 = vmatpush.bf16.msra.mxu2 %v987_v21  ;;  %v1078_v37 = vld [vmem:[#allocation3 + $0x180] sm:$0xf]  ;;  %v1099_v38 = vor.u32 %v1196_v31, %v1096_v32  ;;  %v1194_v39 = vld [vmem:[#allocation3 + $0x18c] sm:$0xf0]  ;;  %v1160_v40 = vld [vmem:[#allocation3 + $0x84] sm:$0xf]  ;;  %v951_v44 = vor.u32 %v1162_v36, %v950_v35 }
   0xf   :  { %532 = vmatpush.bf16.msra.mxu3 %v1115_v25  ;;  %v952_v41 = vld [vmem:[#allocation3 + $0x90] sm:$0xf0]  ;;  %v1192_v42 = vld [vmem:[#allocation3 + $0x184] sm:$0xf]  ;;  %v1079_v45 = vor.u32 %v1194_v39, %v1078_v37  ;;  %v934_v47 = vld [vmem:[#allocation3 + $0x60] sm:$0xf] }
  0x10   :  { %v1080_v43 = vld [vmem:[#allocation3 + $0x190] sm:$0xf0]  ;;  %476 = vmatpush.bf16.msra.mxu0 %v967_v29  ;;  %v955_v46 = vor.u32 %v1160_v40, %v952_v41  ;;  %v1158_v48 = vld [vmem:[#allocation3 + $0x6c] sm:$0xf0]  ;;  %v1062_v49 = vld [vmem:[#allocation3 + $0x160] sm:$0xf] }
  0x11   :  { %495 = vmatpush.bf16.msra.mxu1 %v1095_v33  ;;  %v1083_v50 = vor.u32 %v1192_v42, %v1080_v43  ;;  %v1190_v51 = vld [vmem:[#allocation3 + $0x16c] sm:$0xf0]  ;;  %v1156_v52 = vld [vmem:[#allocation3 + $0x64] sm:$0xf]  ;;  %v936_v53 = vld [vmem:[#allocation3 + $0x70] sm:$0xf0]  ;;  %v935_v56 = vor.u32 %v1158_v48, %v934_v47 }
  0x12   :  { %514 = vmatpush.bf16.msra.mxu2 %v971_v34  ;;  %v1188_v54 = vld [vmem:[#allocation3 + $0x164] sm:$0xf]  ;;  %v1064_v55 = vld [vmem:[#allocation3 + $0x170] sm:$0xf0]  ;;  %v1063_v57 = vor.u32 %v1190_v51, %v1062_v49  ;;  %v939_v58 = vor.u32 %v1156_v52, %v936_v53  ;;  %v918_v59 = vld [vmem:[#allocation3 + $0x40] sm:$0xf] }
  0x13   :  { %533 = vmatpush.bf16.msra.mxu3 %v1099_v38  ;;  %v1154_v60 = vld [vmem:[#allocation3 + $0x4c] sm:$0xf0]  ;;  %v1046_v61 = vld [vmem:[#allocation3 + $0x140] sm:$0xf]  ;;  %v1067_v62 = vor.u32 %v1188_v54, %v1064_v55  ;;  %v1152_v0 = vld [vmem:[#allocation3 + $0x44] sm:$0xf] }
  0x14   :  { %477 = vmatpush.bf16.msra.mxu0 %v951_v44  ;;  %v1186_v63 = vld [vmem:[#allocation3 + $0x14c] sm:$0xf0]  ;;  %v920_v1 = vld [vmem:[#allocation3 + $0x50] sm:$0xf0]  ;;  %v1184_v2 = vld [vmem:[#allocation3 + $0x144] sm:$0xf]  ;;  %v919_v4 = vor.u32 %v1154_v60, %v918_v59 }
  0x15   :  { %496 = vmatpush.bf16.msra.mxu1 %v1079_v45  ;;  %v1048_v3 = vld [vmem:[#allocation3 + $0x150] sm:$0xf0]  ;;  %v1047_v5 = vor.u32 %v1186_v63, %v1046_v61  ;;  %v923_v6 = vor.u32 %v1152_v0, %v920_v1  ;;  %v902_v7 = vld [vmem:[#allocation3 + $0x20] sm:$0xf]  ;;  %v1150_v8 = vld [vmem:[#allocation3 + $0x2c] sm:$0xf0] }
  0x16   :  { %515 = vmatpush.bf16.msra.mxu2 %v955_v46  ;;  %v1030_v9 = vld [vmem:[#allocation3 + $0x120] sm:$0xf]  ;;  %v1051_v10 = vor.u32 %v1184_v2, %v1048_v3  ;;  %v1182_v11 = vld [vmem:[#allocation3 + $0x12c] sm:$0xf0]  ;;  %v1148_v12 = vld [vmem:[#allocation3 + $0x24] sm:$0xf]  ;;  %v903_v16 = vor.u32 %v1150_v8, %v902_v7 }
  0x17   :  { %534 = vmatpush.bf16.msra.mxu3 %v1083_v50  ;;  %v904_v13 = vld [vmem:[#allocation3 + $0x30] sm:$0xf0]  ;;  %v1180_v14 = vld [vmem:[#allocation3 + $0x124] sm:$0xf]  ;;  %v886_v17 = vld [vmem:[#allocation3] sm:$0xf]  ;;  %v1031_v19 = vor.u32 %v1182_v11, %v1030_v9 }
  0x18   :  { %478 = vmatpush.bf16.msra.mxu0 %v935_v56  ;;  %v1032_v15 = vld [vmem:[#allocation3 + $0x130] sm:$0xf0]  ;;  %v1146_v18 = vld [vmem:[#allocation3 + $0xc] sm:$0xf0]  ;;  %v907_v20 = vor.u32 %v1148_v12, %v904_v13  ;;  %v1014_v21 = vld [vmem:[#allocation3 + $0x100] sm:$0xf] }
  0x19   :  { %497 = vmatpush.bf16.msra.mxu1 %v1063_v57  ;;  %v1178_v22 = vld [vmem:[#allocation3 + $0x10c] sm:$0xf0]  ;;  %v1144_v23 = vld [vmem:[#allocation3 + $0x4] sm:$0xf]  ;;  %v1035_v24 = vor.u32 %v1180_v14, %v1032_v15  ;;  %v888_v25 = vld [vmem:[#allocation3 + $0x10] sm:$0xf0]  ;;  %v887_v31 = vor.u32 %v1146_v18, %v886_v17 }
  0x1a   :  { %516 = vmatpush.bf16.msra.mxu2 %v939_v58  ;;  %v1176_v26 = vld [vmem:[#allocation3 + $0x104] sm:$0xf]  ;;  %v1016_v27 = vld [vmem:[#allocation3 + $0x110] sm:$0xf0]  ;;  %v870_v28 = vld [vmem:[%s1485_s0] sm:$0xf]  ;;  %v1015_v35 = vor.u32 %v1178_v22, %v1014_v21  ;;  %v891_v36 = vor.u32 %v1144_v23, %v888_v25 }
  0x1b   :  { %535 = vmatpush.bf16.msra.mxu3 %v1067_v62  ;;  %v1173_v29 = vld [vmem:[#allocation3 + $0xec] sm:$0xf]  ;;  %v1008_v30 = vld [vmem:[#allocation3 + $0xf8] sm:$0xf0]  ;;  %v1141_v32 = vld [vmem:[%s1485_s0 + $0x4] sm:$0xf0]  ;;  %v1019_v39 = vor.u32 %v1176_v26, %v1016_v27 }
  0x1c   :  { %479 = vmatpush.bf16.msra.mxu0 %v919_v4  ;;  %v1205_v33 = vld [vmem:[#allocation3 + $0x1ec] sm:$0xf]  ;;  %v1136_v34 = vld [vmem:[#allocation3 + $0x1f8] sm:$0xf0]  ;;  %v1140_v37 = vld [vmem:[%s1485_s0 + $0x4] sm:$0xf]  ;;  %v1011_v40 = vor.u32 %v1173_v29, %v1008_v30  ;;  %v1307_v44 = vor.u32 %v1141_v32, %v870_v28 }
  0x1d   :  { %498 = vmatpush.bf16.msra.mxu1 %v1047_v5  ;;  %v872_v38 = vld [vmem:[%s1485_s0 + $0x8] sm:$0xf0]  ;;  %v1006_v41 = vld [vmem:[#allocation3 + $0xe8] sm:$0xf]  ;;  %v1175_v42 = vld [vmem:[#allocation3 + $0xf4] sm:$0xf0]  ;;  %v1139_v45 = vor.u32 %v1205_v33, %v1136_v34 }
  0x1e   :  { %517 = vmatpush.bf16.msra.mxu2 %v923_v6  ;;  %v1134_v43 = vld [vmem:[#allocation3 + $0x1e8] sm:$0xf]  ;;  %v1207_v46 = vld [vmem:[#allocation3 + $0x1f4] sm:$0xf0]  ;;  %v1169_v47 = vld [vmem:[#allocation3 + $0xcc] sm:$0xf]  ;;  %v1309_v49 = vor.u32 %v1140_v37, %v872_v38  ;;  %v1007_v52 = vor.u32 %v1175_v42, %v1006_v41 }
  0x1f   :  { %536 = vmatpush.bf16.msra.mxu3 %v1051_v10  ;;  %v992_v48 = vld [vmem:[#allocation3 + $0xd8] sm:$0xf0]  ;;  %v1201_v50 = vld [vmem:[#allocation3 + $0x1cc] sm:$0xf]  ;;  %v1135_v53 = vor.u32 %v1207_v46, %v1134_v43  ;;  %v990_v55 = vld [vmem:[#allocation3 + $0xc8] sm:$0xf] }
  0x20   :  { %480 = vmatpush.bf16.msra.mxu0 %v903_v16  ;;  %v1120_v51 = vld [vmem:[#allocation3 + $0x1d8] sm:$0xf0]  ;;  %v995_v54 = vor.u32 %v1169_v47, %v992_v48  ;;  %v1171_v56 = vld [vmem:[#allocation3 + $0xd4] sm:$0xf0]  ;;  %v1118_v57 = vld [vmem:[#allocation3 + $0x1c8] sm:$0xf] }
  0x21   :  { %499 = vmatpush.bf16.msra.mxu1 %v1031_v19  ;;  %v1123_v58 = vor.u32 %v1201_v50, %v1120_v51  ;;  %v1203_v59 = vld [vmem:[#allocation3 + $0x1d4] sm:$0xf0]  ;;  %v1165_v60 = vld [vmem:[#allocation3 + $0xac] sm:$0xf]  ;;  %v976_v61 = vld [vmem:[#allocation3 + $0xb8] sm:$0xf0]  ;;  %v991_v0 = vor.u32 %v1171_v56, %v990_v55 }
  0x22   :  { %518 = vmatpush.bf16.msra.mxu2 %v907_v20  ;;  %v1197_v62 = vld [vmem:[#allocation3 + $0x1ac] sm:$0xf]  ;;  %v1104_v63 = vld [vmem:[#allocation3 + $0x1b8] sm:$0xf0]  ;;  %v1119_v1 = vor.u32 %v1203_v59, %v1118_v57  ;;  %v979_v2 = vor.u32 %v1165_v60, %v976_v61  ;;  %v974_v3 = vld [vmem:[#allocation3 + $0xa8] sm:$0xf] }
  0x23   :  { %537 = vmatpush.bf16.msra.mxu3 %v1035_v24  ;;  %v1167_v4 = vld [vmem:[#allocation3 + $0xb4] sm:$0xf0]  ;;  %v1102_v5 = vld [vmem:[#allocation3 + $0x1a8] sm:$0xf]  ;;  %v1107_v6 = vor.u32 %v1197_v62, %v1104_v63  ;;  %v1161_v8 = vld [vmem:[#allocation3 + $0x8c] sm:$0xf] }
  0x24   :  { %481 = vmatpush.bf16.msra.mxu0 %v887_v31  ;;  %v1199_v7 = vld [vmem:[#allocation3 + $0x1b4] sm:$0xf0]  ;;  %v960_v9 = vld [vmem:[#allocation3 + $0x98] sm:$0xf0]  ;;  %v1193_v10 = vld [vmem:[#allocation3 + $0x18c] sm:$0xf]  ;;  %v975_v12 = vor.u32 %v1167_v4, %v974_v3 }
  0x25   :  { %500 = vmatpush.bf16.msra.mxu1 %v1015_v35  ;;  %v1088_v11 = vld [vmem:[#allocation3 + $0x198] sm:$0xf0]  ;;  %v958_v13 = vld [vmem:[#allocation3 + $0x88] sm:$0xf]  ;;  %v1103_v14 = vor.u32 %v1199_v7, %v1102_v5  ;;  %v963_v15 = vor.u32 %v1161_v8, %v960_v9  ;;  %v1163_v16 = vld [vmem:[#allocation3 + $0x94] sm:$0xf0] }
  0x26   :  { %519 = vmatpush.bf16.msra.mxu2 %v891_v36  ;;  %v1086_v17 = vld [vmem:[#allocation3 + $0x188] sm:$0xf]  ;;  %v1195_v18 = vld [vmem:[#allocation3 + $0x194] sm:$0xf0]  ;;  %v1091_v19 = vor.u32 %v1193_v10, %v1088_v11  ;;  %v878_v20 = vld [vmem:[%s1485_s0 + $0x10] sm:$0xf]  ;;  %v959_v26 = vor.u32 %v1163_v16, %v958_v13 }
  0x27   :  { %538 = vmatpush.bf16.msra.mxu3 %v1019_v39  ;;  %482 = vmatmul.bf16.vlgmr.msra.gmra.mxu0 %v1307_v44  ;;  %v1157_v21 = vld [vmem:[#allocation3 + $0x6c] sm:$0xf]  ;;  %v944_v22 = vld [vmem:[#allocation3 + $0x78] sm:$0xf0]  ;;  %v1143_v23 = vld [vmem:[%s1485_s0 + $0x14] sm:$0xf0]  ;;  %v1087_v29 = vor.u32 %v1195_v18, %v1086_v17 }
  0x28   :  { %501 = vmatmul.bf16.vlgmr.msra.gmra.mxu1 %v1309_v49  ;;  %550 = vmatpush.bf16.msrb.mxu0 %v1007_v52  ;;  %v1189_v24 = vld [vmem:[#allocation3 + $0x16c] sm:$0xf]  ;;  %v1072_v25 = vld [vmem:[#allocation3 + $0x178] sm:$0xf0]  ;;  %v1142_v27 = vld [vmem:[%s1485_s0 + $0x14] sm:$0xf]  ;;  %v947_v30 = vor.u32 %v1157_v21, %v944_v22  ;;  %v1327_v34 = vor.u32 %v1143_v23, %v878_v20 }
  0x29   :  { %520 = vmatmul.bf16.vlgmr.msra.gmra.mxu2 %v1307_v44  ;;  %569 = vmatpush.bf16.msrb.mxu1 %v1135_v53  ;;  %v880_v28 = vld [vmem:[%s1485_s0 + $0x18] sm:$0xf0]  ;;  %v942_v31 = vld [vmem:[#allocation3 + $0x68] sm:$0xf]  ;;  %v1159_v32 = vld [vmem:[#allocation3 + $0x74] sm:$0xf0]  ;;  %v1075_v35 = vor.u32 %v1189_v24, %v1072_v25 }
  0x2a   :  { %588 = vmatpush.bf16.msrb.mxu2 %v1011_v40  ;;  %539 = vmatmul.bf16.vlgmr.msra.gmra.mxu3 %v1309_v49  ;;  %v1070_v33 = vld [vmem:[#allocation3 + $0x168] sm:$0xf]  ;;  %v1191_v36 = vld [vmem:[#allocation3 + $0x174] sm:$0xf0]  ;;  %v1153_v37 = vld [vmem:[#allocation3 + $0x4c] sm:$0xf]  ;;  %v1329_v39 = vor.u32 %v1142_v27, %v880_v28  ;;  %v943_v42 = vor.u32 %v1159_v32, %v942_v31 }
  0x2b   :  { %607 = vmatpush.bf16.msrb.mxu3 %v1139_v45  ;;  %v928_v38 = vld [vmem:[#allocation3 + $0x58] sm:$0xf0]  ;;  %v1185_v40 = vld [vmem:[#allocation3 + $0x14c] sm:$0xf]  ;;  %v1071_v43 = vor.u32 %v1191_v36, %v1070_v33  ;;  %v926_v46 = vld [vmem:[#allocation3 + $0x48] sm:$0xf] }
  0x2c   :  { %551 = vmatpush.bf16.msrb.mxu0 %v991_v0  ;;  %v1056_v41 = vld [vmem:[#allocation3 + $0x158] sm:$0xf0]  ;;  %v931_v45 = vor.u32 %v1153_v37, %v928_v38  ;;  %v1155_v47 = vld [vmem:[#allocation3 + $0x54] sm:$0xf0]  ;;  %v1054_v48 = vld [vmem:[#allocation3 + $0x148] sm:$0xf] }
  0x2d   :  { %570 = vmatpush.bf16.msrb.mxu1 %v1119_v1  ;;  %v1059_v50 = vor.u32 %v1185_v40, %v1056_v41  ;;  %v1187_v51 = vld [vmem:[#allocation3 + $0x154] sm:$0xf0]  ;;  %v1149_v52 = vld [vmem:[#allocation3 + $0x2c] sm:$0xf]  ;;  %v912_v53 = vld [vmem:[#allocation3 + $0x38] sm:$0xf0]  ;;  %v927_v56 = vor.u32 %v1155_v47, %v926_v46 }
  0x2e   :  { %589 = vmatpush.bf16.msrb.mxu2 %v995_v54  ;;  %v1181_v54 = vld [vmem:[#allocation3 + $0x12c] sm:$0xf]  ;;  %v1040_v55 = vld [vmem:[#allocation3 + $0x138] sm:$0xf0]  ;;  %v1055_v57 = vor.u32 %v1187_v51, %v1054_v48  ;;  %v910_v59 = vld [vmem:[#allocation3 + $0x28] sm:$0xf] }
  0x2f   :  { %608 = vmatpush.bf16.msrb.mxu3 %v1123_v58  ;;  %v915_v58 = vor.u32 %v1149_v52, %v912_v53  ;;  %v1151_v60 = vld [vmem:[#allocation3 + $0x34] sm:$0xf0]  ;;  %v1038_v61 = vld [vmem:[#allocation3 + $0x128] sm:$0xf]  ;;  %v1043_v62 = vor.u32 %v1181_v54, %v1040_v55  ;;  %v1145_v0 = vld [vmem:[#allocation3 + $0xc] sm:$0xf] }
  0x30   :  { %552 = vmatpush.bf16.msrb.mxu0 %v975_v12  ;;  %v1183_v63 = vld [vmem:[#allocation3 + $0x134] sm:$0xf0]  ;;  %v896_v1 = vld [vmem:[#allocation3 + $0x18] sm:$0xf0]  ;;  %v911_v4 = vor.u32 %v1151_v60, %v910_v59  ;;  %v894_v7 = vld [vmem:[#allocation3 + $0x8] sm:$0xf] }
  0x31   :  { %571 = vmatpush.bf16.msrb.mxu1 %v1103_v14  ;;  %v1024_v3 = vld [vmem:[#allocation3 + $0x118] sm:$0xf0]  ;;  %v1039_v5 = vor.u32 %v1183_v63, %v1038_v61  ;;  %v1147_v8 = vld [vmem:[#allocation3 + $0x14] sm:$0xf0]  ;;  %v1022_v10 = vld [vmem:[#allocation3 + $0x108] sm:$0xf] }
  0x32   :  { %590 = vmatpush.bf16.msrb.mxu2 %v979_v2  ;;  %v1177_v2 = vld [vmem:[#allocation3 + $0x10c] sm:$0xf]  ;;  %v1179_v11 = vld [vmem:[#allocation3 + $0x114] sm:$0xf0]  ;;  %v895_v12 = vor.u32 %v1147_v8, %v894_v7  ;;  %v1346_v14 = vld [vmem:[%s1487_s2] sm:$0xf] }
  0x33   :  { %609 = vmatpush.bf16.msrb.mxu3 %v1107_v6  ;;  %v899_v6 = vor.u32 %v1145_v0, %v896_v1  ;;  %v1027_v9 = vor.u32 %v1177_v2, %v1024_v3  ;;  %v1023_v13 = vor.u32 %v1179_v11, %v1022_v10  ;;  %v1354_v20 = vperm.slane %v1346_v14, 1 }
  0x34   :  { %553 = vmatpush.bf16.msrb.mxu0 %v959_v26 }
  0x35   :  { %572 = vmatpush.bf16.msrb.mxu1 %v1087_v29 }
  0x36   :  { %591 = vmatpush.bf16.msrb.mxu2 %v963_v15 }
  0x37   :  { %610 = vmatpush.bf16.msrb.mxu3 %v1091_v19  ;;  %487 = vmatmul.bf16.gmra.mxu0 %v1327_v34 }
  0x38   :  { %506 = vmatmul.bf16.gmra.mxu1 %v1329_v39  ;;  %554 = vmatpush.bf16.msrb.mxu0 %v943_v42 }
  0x39   :  { %525 = vmatmul.bf16.gmra.mxu2 %v1327_v34  ;;  %573 = vmatpush.bf16.msrb.mxu1 %v1071_v43 }
  0x3a   :  { %592 = vmatpush.bf16.msrb.mxu2 %v947_v30  ;;  %544 = vmatmul.bf16.gmra.mxu3 %v1329_v39 }
  0x3b   :  { %611 = vmatpush.bf16.msrb.mxu3 %v1075_v35 }
  0x3c   :  { %555 = vmatpush.bf16.msrb.mxu0 %v927_v56 }
  0x3d   :  { %574 = vmatpush.bf16.msrb.mxu1 %v1055_v57 }
  0x3e   :  { %593 = vmatpush.bf16.msrb.mxu2 %v931_v45 }
  0x3f   :  { %612 = vmatpush.bf16.msrb.mxu3 %v1059_v50 }
  0x40   :  { %556 = vmatpush.bf16.msrb.mxu0 %v911_v4 }
  0x41   :  { %575 = vmatpush.bf16.msrb.mxu1 %v1039_v5 }
  0x42   :  { %594 = vmatpush.bf16.msrb.mxu2 %v915_v58 }
  0x43   :  { %613 = vmatpush.bf16.msrb.mxu3 %v1043_v62 }
  0x44   :  { %557 = vmatpush.bf16.msrb.mxu0 %v895_v12 }
  0x45   :  { %576 = vmatpush.bf16.msrb.mxu1 %v1023_v13 }
  0x46   :  { %595 = vmatpush.bf16.msrb.mxu2 %v899_v6 }
  0x47   :  { %614 = vmatpush.bf16.msrb.mxu3 %v1027_v9  ;;  %558 = vmatmul.bf16.vlgmr.msrb.gmra.mxu0 %v1307_v44 }
  0x48   :  { %577 = vmatmul.bf16.vlgmr.msrb.gmra.mxu1 %v1309_v49 }
  0x49   :  { %596 = vmatmul.bf16.vlgmr.msrb.gmra.mxu2 %v1307_v44  ;;  %v679_v44 = vperm.slane %v1346_v14, 0 }
  0x4a   :  { %615 = vmatmul.bf16.vlgmr.msrb.gmra.mxu3 %v1309_v49 }
  0x57   :  { %563 = vmatmul.bf16.gmra.mxu0 %v1327_v34 }
  0x58   :  { %582 = vmatmul.bf16.gmra.mxu1 %v1329_v39 }
  0x59   :  { %601 = vmatmul.bf16.gmra.mxu2 %v1327_v34 }
  0x5a   :  { %620 = vmatmul.bf16.gmra.mxu3 %v1329_v39 }
  0xa4   :  { %v483_v15 = vpop.f32.mrf.mxu0 }
  0xa5   :  { %v502_v16 = vpop.f32.mrf.mxu1 }
  0xa6   :  { %v503_v17 = vadd.f32 %v502_v16, %v483_v15 }
  0xa8   :  { %v1349_v18 = vadd.f32 %v679_v44, %v503_v17 }
  0xaa   :  { %v703_v49 = vmul.f32 %v1349_v18, %v1349_v18 }
  0xac   :  { %v521_v19 = vpop.f32.mrf.mxu2  ;;  %v719_v21 = vmul.f32 %v703_v49, %v1349_v18  ;;  %v485_v23 = vpop.f32.mrf.mxu0 }
  0xad   :  { %v540_v22 = vpop.f32.mrf.mxu3  ;;  %v504_v25 = vpop.f32.mrf.mxu1 }
  0xae   :  { %v541_v24 = vadd.f32 %v540_v22, %v521_v19  ;;  %v735_v26 = vmul.f32 0.044715, %v719_v21  ;;  %v505_v27 = vadd.f32 %v504_v25, %v485_v23  ;;  %v1396_v23 = vperm.slane %v1346_v14, 2 }
  0xb0   :  { %v1358_v28 = vadd.f32 %v1354_v20, %v541_v24  ;;  %v751_v29 = vadd.f32 %v735_v26, %v1349_v18  ;;  %v1361_v30 = vadd.f32 %v679_v44, %v505_v27 }
  0xb2   :  { %v704_v31 = vmul.f32 %v1358_v28, %v1358_v28  ;;  %v767_v32 = vmul.f32 0.7978846, %v751_v29  ;;  %v707_v33 = vmul.f32 %v1361_v30, %v1361_v30 }
  0xb4   :  { %v720_v34 = vmul.f32 %v704_v31, %v1358_v28  ;;  %v523_v35 = vpop.f32.mrf.mxu2  ;;  %v723_v36 = vmul.f32 %v707_v33, %v1361_v30  ;;  %v488_v38 = vpop.f32.mrf.mxu0  ;;  %1211 = vtanh.f32 %v767_v32 }
  0xb5   :  { %v542_v37 = vpop.f32.mrf.mxu3  ;;  %v507_v41 = vpop.f32.mrf.mxu1 }
  0xb6   :  { %v736_v39 = vmul.f32 0.044715, %v720_v34  ;;  %v543_v40 = vadd.f32 %v542_v37, %v523_v35  ;;  %v739_v42 = vmul.f32 0.044715, %v723_v36  ;;  %v508_v43 = vadd.f32 %v507_v41, %v488_v38 }
  0xb8   :  { %v752_v45 = vadd.f32 %v736_v39, %v1358_v28  ;;  %v1371_v46 = vadd.f32 %v1354_v20, %v543_v40  ;;  %v755_v47 = vadd.f32 %v739_v42, %v1361_v30  ;;  %v1374_v48 = vadd.f32 %v679_v44, %v508_v43 }
  0xba   :  { %v768_v50 = vmul.f32 0.7978846, %v752_v45  ;;  %v708_v51 = vmul.f32 %v1371_v46, %v1371_v46  ;;  %v771_v52 = vmul.f32 0.7978846, %v755_v47  ;;  %v711_v53 = vmul.f32 %v1374_v48, %v1374_v48  ;;  %v1212_v54 = vpop.eup %1211 }
  0xbb   :  { %v799_v63 = vadd.f32 1.0, %v1212_v54  ;;  %v1417_v45 = vperm.slane %v1346_v14, 3 }
  0xbc   :  { %1213 = vtanh.f32 %v768_v50  ;;  %v724_v55 = vmul.f32 %v708_v51, %v1371_v46  ;;  %v526_v56 = vpop.f32.mrf.mxu2  ;;  %v727_v57 = vmul.f32 %v711_v53, %v1374_v48  ;;  %v490_v59 = vpop.f32.mrf.mxu0 }
  0xbd   :  { %v545_v58 = vpop.f32.mrf.mxu3  ;;  %1215 = vtanh.f32 %v771_v52  ;;  %v509_v62 = vpop.f32.mrf.mxu1  ;;  %v815_v9 = vmul.f32 0.5, %v799_v63 }
  0xbe   :  { %v740_v60 = vmul.f32 0.044715, %v724_v55  ;;  %v546_v61 = vadd.f32 %v545_v58, %v526_v56  ;;  %v743_v0 = vmul.f32 0.044715, %v727_v57  ;;  %v510_v1 = vadd.f32 %v509_v62, %v490_v59 }
  0xbf   :  { %v831_v24 = vmul.f32 %v815_v9, %v1349_v18 }
  0xc0   :  { %v756_v2 = vadd.f32 %v740_v60, %v1371_v46  ;;  %v1384_v3 = vadd.f32 %v1354_v20, %v546_v61  ;;  %v759_v4 = vadd.f32 %v743_v0, %v1374_v48  ;;  %v1387_v5 = vadd.f32 %v679_v44, %v510_v1 }
  0xc2   :  { %v1214_v6 = vpop.eup %1213  ;;  %v772_v7 = vmul.f32 0.7978846, %v756_v2  ;;  %v712_v8 = vmul.f32 %v1384_v3, %v1384_v3  ;;  %v775_v11 = vmul.f32 0.7978846, %v759_v4  ;;  %v715_v12 = vmul.f32 %v1387_v5, %v1387_v5 }
  0xc3   :  { %v800_v10 = vadd.f32 1.0, %v1214_v6  ;;  %v1216_v13 = vpop.eup %1215 }
  0xc4   :  { %1217 = vtanh.f32 %v772_v7  ;;  %v728_v15 = vmul.f32 %v712_v8, %v1384_v3  ;;  %v528_v16 = vpop.f32.mrf.mxu2  ;;  %v731_v44 = vmul.f32 %v715_v12, %v1387_v5  ;;  %v559_v22 = vpop.f32.mrf.mxu0  ;;  %v803_v26 = vadd.f32 1.0, %v1216_v13 }
  0xc5   :  { %v816_v17 = vmul.f32 0.5, %v800_v10  ;;  %v547_v49 = vpop.f32.mrf.mxu3  ;;  %1219 = vtanh.f32 %v775_v11  ;;  %v578_v29 = vpop.f32.mrf.mxu1 }
  0xc6   :  { %v744_v19 = vmul.f32 0.044715, %v728_v15  ;;  %v548_v21 = vadd.f32 %v547_v49, %v528_v16  ;;  %v747_v27 = vmul.f32 0.044715, %v731_v44  ;;  %v579_v33 = vadd.f32 %v578_v29, %v559_v22 }
  0xc7   :  { %v832_v25 = vmul.f32 %v816_v17, %v1358_v28  ;;  %v819_v28 = vmul.f32 0.5, %v803_v26 }
  0xc8   :  { %v760_v31 = vadd.f32 %v744_v19, %v1384_v3  ;;  %v1402_v32 = vadd.f32 %v1354_v20, %v548_v21  ;;  %v763_v35 = vadd.f32 %v747_v27, %v1387_v5  ;;  %v1408_v18 = vadd.f32 %v1396_v23, %v579_v33 }
  0xc9   :  { %v847_v34 = vpack.c.bf16 %v832_v25, %v831_v24  ;;  %v835_v55 = vmul.f32 %v819_v28, %v1361_v30 }
  0xca   :  { %v1218_v36 = vpop.eup %1217  ;;  %v776_v37 = vmul.f32 0.7978846, %v760_v31  ;;  %v716_v38 = vmul.f32 %v1402_v32, %v1402_v32  ;;  %v779_v20 = vmul.f32 0.7978846, %v763_v35  ;;  %v705_v42 = vmul.f32 %v1408_v18, %v1408_v18 }
  0xcb   :  { %855 = vst [vmem:[%s1488_s3] sm:$0xff] %v847_v34  ;;  %v804_v39 = vadd.f32 1.0, %v1218_v36  ;;  %v1220_v40 = vpop.eup %1219 }
  0xcc   :  { %1221 = vtanh.f32 %v776_v37  ;;  %v732_v41 = vmul.f32 %v716_v38, %v1402_v32  ;;  %v597_v43 = vpop.f32.mrf.mxu2  ;;  %v721_v52 = vmul.f32 %v705_v42, %v1408_v18  ;;  %v561_v54 = vpop.f32.mrf.mxu0  ;;  %v807_v57 = vadd.f32 1.0, %v1220_v40 }
  0xcd   :  { %v820_v47 = vmul.f32 0.5, %v804_v39  ;;  %v616_v50 = vpop.f32.mrf.mxu3  ;;  %1223 = vtanh.f32 %v779_v20  ;;  %v580_v58 = vpop.f32.mrf.mxu1 }
  0xce   :  { %v748_v51 = vmul.f32 0.044715, %v732_v41  ;;  %v617_v53 = vadd.f32 %v616_v50, %v597_v43  ;;  %v737_v60 = vmul.f32 0.044715, %v721_v52  ;;  %v581_v62 = vadd.f32 %v580_v58, %v561_v54 }
  0xcf   :  { %v836_v56 = vmul.f32 %v820_v47, %v1371_v46  ;;  %v823_v30 = vmul.f32 0.5, %v807_v57 }
  0xd0   :  { %v764_v59 = vadd.f32 %v748_v51, %v1402_v32  ;;  %v1424_v14 = vadd.f32 %v1417_v45, %v617_v53  ;;  %v753_v1 = vadd.f32 %v737_v60, %v1408_v18  ;;  %v1433_v4 = vadd.f32 %v1396_v23, %v581_v62 }
  0xd1   :  { %v849_v61 = vpack.c.bf16 %v836_v56, %v835_v55  ;;  %v839_v17 = vmul.f32 %v823_v30, %v1374_v48 }
  0xd2   :  { %v1222_v63 = vpop.eup %1221  ;;  %v780_v0 = vmul.f32 0.7978846, %v764_v59  ;;  %v706_v2 = vmul.f32 %v1424_v14, %v1424_v14  ;;  %v769_v7 = vmul.f32 0.7978846, %v753_v1  ;;  %v709_v11 = vmul.f32 %v1433_v4, %v1433_v4 }
  0xd3   :  { %857 = vst [vmem:[%s1488_s3 + $0x10] sm:$0xff] %v849_v61  ;;  %v808_v46 = vadd.f32 1.0, %v1222_v63  ;;  %v1224_v6 = vpop.eup %1223 }
  0xd4   :  { %1225 = vtanh.f32 %v780_v0  ;;  %v722_v8 = vmul.f32 %v706_v2, %v1424_v14  ;;  %v599_v9 = vpop.f32.mrf.mxu2  ;;  %v564_v16 = vpop.f32.mrf.mxu0  ;;  %v811_v49 = vadd.f32 1.0, %v1224_v6  ;;  %v725_v19 = vmul.f32 %v709_v11, %v1433_v4 }
  0xd5   :  { %v824_v10 = vmul.f32 0.5, %v808_v46  ;;  %v618_v12 = vpop.f32.mrf.mxu3  ;;  %1227 = vtanh.f32 %v769_v7  ;;  %v583_v21 = vpop.f32.mrf.mxu1 }
  0xd6   :  { %v738_v13 = vmul.f32 0.044715, %v722_v8  ;;  %v619_v15 = vadd.f32 %v618_v12, %v599_v9  ;;  %v584_v25 = vadd.f32 %v583_v21, %v564_v16  ;;  %v741_v27 = vmul.f32 0.044715, %v725_v19 }
  0xd7   :  { %v840_v44 = vmul.f32 %v824_v10, %v1384_v3  ;;  %v827_v3 = vmul.f32 0.5, %v811_v49 }
  0xd8   :  { %v754_v22 = vadd.f32 %v738_v13, %v1424_v14  ;;  %v1443_v24 = vadd.f32 %v1417_v45, %v619_v15  ;;  %v1448_v48 = vadd.f32 %v1396_v23, %v584_v25  ;;  %v757_v35 = vadd.f32 %v741_v27, %v1433_v4 }
  0xd9   :  { %v851_v26 = vpack.c.bf16 %v840_v44, %v839_v17  ;;  %v843_v50 = vmul.f32 %v827_v3, %v1387_v5 }
  0xda   :  { %v1226_v29 = vpop.eup %1225  ;;  %v770_v31 = vmul.f32 0.7978846, %v754_v22  ;;  %v710_v33 = vmul.f32 %v1443_v24, %v1443_v24  ;;  %v713_v38 = vmul.f32 %v1448_v48, %v1448_v48  ;;  %v773_v20 = vmul.f32 0.7978846, %v757_v35 }
  0xdb   :  { %859 = vst [vmem:[%s1488_s3 + $0x20] sm:$0xff] %v851_v26  ;;  %v812_v34 = vadd.f32 1.0, %v1226_v29  ;;  %v1228_v36 = vpop.eup %1227 }
  0xdc   :  { %1229 = vtanh.f32 %v770_v31  ;;  %v726_v37 = vmul.f32 %v710_v33, %v1443_v24  ;;  %v602_v28 = vpop.f32.mrf.mxu2  ;;  %v729_v42 = vmul.f32 %v713_v38, %v1448_v48  ;;  %v566_v47 = vpop.f32.mrf.mxu0  ;;  %v801_v52 = vadd.f32 1.0, %v1228_v36 }
  0xdd   :  { %v828_v39 = vmul.f32 0.5, %v812_v34  ;;  %v621_v40 = vpop.f32.mrf.mxu3  ;;  %1231 = vtanh.f32 %v773_v20  ;;  %v585_v53 = vpop.f32.mrf.mxu1 }
  0xde   :  { %v742_v41 = vmul.f32 0.044715, %v726_v37  ;;  %v622_v43 = vadd.f32 %v621_v40, %v602_v28  ;;  %v745_v55 = vmul.f32 0.044715, %v729_v42  ;;  %v586_v57 = vadd.f32 %v585_v53, %v566_v47 }
  0xdf   :  { %v844_v51 = vmul.f32 %v828_v39, %v1402_v32  ;;  %v817_v5 = vmul.f32 0.5, %v801_v52 }
  0xe0   :  { %v758_v54 = vadd.f32 %v742_v41, %v1443_v24  ;;  %v698_v56 = vadd.f32 %v1417_v45, %v622_v43  ;;  %v761_v61 = vadd.f32 %v745_v55, %v1448_v48  ;;  %v701_v63 = vadd.f32 %v1396_v23, %v586_v57 }
  0xe1   :  { %v853_v58 = vpack.c.bf16 %v844_v51, %v843_v50  ;;  %v833_v23 = vmul.f32 %v817_v5, %v1408_v18 }
  0xe2   :  { %v1230_v59 = vpop.eup %1229  ;;  %v774_v60 = vmul.f32 0.7978846, %v758_v54  ;;  %v714_v62 = vmul.f32 %v698_v56, %v698_v56  ;;  %v777_v0 = vmul.f32 0.7978846, %v761_v61  ;;  %v717_v2 = vmul.f32 %v701_v63, %v701_v63 }
  0xe3   :  { %861 = vst [vmem:[%s1488_s3 + $0x30] sm:$0xff] %v853_v58  ;;  %v802_v32 = vadd.f32 1.0, %v1230_v59  ;;  %v1232_v46 = vpop.eup %1231 }
  0xe4   :  { %1233 = vtanh.f32 %v774_v60  ;;  %v730_v1 = vmul.f32 %v714_v62, %v698_v56  ;;  %v604_v30 = vpop.f32.mrf.mxu2  ;;  %v805_v8 = vadd.f32 1.0, %v1232_v46  ;;  %v733_v10 = vmul.f32 %v717_v2, %v701_v63 }
  0xe5   :  { %v818_v6 = vmul.f32 0.5, %v802_v32  ;;  %v623_v7 = vpop.f32.mrf.mxu3  ;;  %1235 = vtanh.f32 %v777_v0 }
  0xe6   :  { %v746_v9 = vmul.f32 0.044715, %v730_v1  ;;  %v624_v12 = vadd.f32 %v623_v7, %v604_v30  ;;  %v749_v15 = vmul.f32 0.044715, %v733_v10  ;;  %v821_v49 = vmul.f32 0.5, %v805_v8 }
  0xe7   :  { %v834_v11 = vmul.f32 %v818_v6, %v1424_v14 }
  0xe8   :  { %v762_v13 = vadd.f32 %v746_v9, %v698_v56  ;;  %v702_v17 = vadd.f32 %v1417_v45, %v624_v12  ;;  %v765_v21 = vadd.f32 %v749_v15, %v701_v63  ;;  %v837_v29 = vmul.f32 %v821_v49, %v1433_v4 }
  0xe9   :  { %v848_v16 = vpack.c.bf16 %v834_v11, %v833_v23 }
  0xea   :  { %v1234_v44 = vpop.eup %1233  ;;  %v778_v19 = vmul.f32 0.7978846, %v762_v13  ;;  %v718_v25 = vmul.f32 %v702_v17, %v702_v17  ;;  %v781_v18 = vmul.f32 0.7978846, %v765_v21 }
  0xeb   :  { %856 = vst [vmem:[%s1488_s3 + $0x8] sm:$0xff] %v848_v16  ;;  %v806_v22 = vadd.f32 1.0, %v1234_v44  ;;  %v1236_v26 = vpop.eup %1235 }
  0xec   :  { %1237 = vtanh.f32 %v778_v19  ;;  %v734_v27 = vmul.f32 %v718_v25, %v702_v17  ;;  %v809_v45 = vadd.f32 1.0, %v1236_v26 }
  0xed   :  { %v822_v14 = vmul.f32 0.5, %v806_v22  ;;  %1239 = vtanh.f32 %v781_v18 }
  0xee   :  { %v750_v33 = vmul.f32 0.044715, %v734_v27  ;;  %v825_v36 = vmul.f32 0.5, %v809_v45 }
  0xef   :  { %v838_v31 = vmul.f32 %v822_v14, %v1443_v24 }
  0xf0   :  { %v766_v34 = vadd.f32 %v750_v33, %v702_v17  ;;  %v841_v4 = vmul.f32 %v825_v36, %v1448_v48 }
  0xf1   :  { %v850_v3 = vpack.c.bf16 %v838_v31, %v837_v29 }
  0xf2   :  { %v1238_v35 = vpop.eup %1237  ;;  %v782_v38 = vmul.f32 0.7978846, %v766_v34 }
  0xf3   :  { %858 = vst [vmem:[%s1488_s3 + $0x18] sm:$0xff] %v850_v3  ;;  %v810_v37 = vadd.f32 1.0, %v1238_v35  ;;  %v1240_v28 = vpop.eup %1239 }
  0xf4   :  { %1241 = vtanh.f32 %v782_v38  ;;  %v813_v24 = vadd.f32 1.0, %v1240_v28 }
  0xf5   :  { %v826_v39 = vmul.f32 0.5, %v810_v37 }
  0xf6   :  { %v829_v42 = vmul.f32 0.5, %v813_v24 }
  0xf7   :  { %v842_v20 = vmul.f32 %v826_v39, %v698_v56 }
  0xf8   :  { %v845_v50 = vmul.f32 %v829_v42, %v701_v63 }
  0xf9   :  { %v852_v40 = vpack.c.bf16 %v842_v20, %v841_v4 }
  0xfa   :  { %v1242_v41 = vpop.eup %1241 }
  0xfb   :  { %860 = vst [vmem:[%s1488_s3 + $0x28] sm:$0xff] %v852_v40  ;;  %v814_v43 = vadd.f32 1.0, %v1242_v41 }
  0xfd   :  { %v830_v47 = vmul.f32 0.5, %v814_v43 }
  0xff   :  { %v846_v51 = vmul.f32 %v830_v47, %v702_v17 }
 0x101   :  { %v854_v52 = vpack.c.bf16 %v846_v51, %v845_v50 }
 0x103   :  { %862 = vst [vmem:[%s1488_s3 + $0x38] sm:$0xff] %v854_v52 }
 0x104   :  { %867 = vsyncpa [#allocation4], 1 }

// kernel: label_mask_model_forward.24
= control target key start
LH: loop header
LB: loop body
LE: loop exit
PB: predicated region body
PF: predicated region fallthrough
CT: control target
= control target key end

     0   :  { %s567_s20 = smov [#allocation3]   ;;  %s796_s0 = inlined_call_operand.vmem [shape: s32[2,3], index: 0, kind: input, shape index: {}]   ;;  %s797_s1 = inlined_call_operand.vmem [shape: bf16[2,16,256], index: 1, kind: input, shape index: {}]   ;;  %s798_s2 = inlined_call_operand.vmem [shape: f32[256,1], index: 2, kind: input, shape index: {}]   ;;  %s799_s4 = inlined_call_operand.hbm [shape: f32[2,1,3], index: 4, kind: output, shape index: {}]   ;;  %s800_s3 = inlined_call_operand.<no memory space> [shape: f32[1,1], index: 3, kind: input, shape index: {}]  }
   0x1   :  { %s10_s17 = sshll.u32 %s796_s0, 4  ;;  %v14_v0 = vstv %s800_s3  ;;  %s11_s17 = int_to_ptr.vmem [resolvable:$true] %s10_s17 }
   0x2   :  { %15 = vst [vmem:[#allocation4] sm:$0x1] %v14_v0  ;;  %13 = dma.vmem_to_smem %s11_s17, 32, %s567_s20, [#allocation2] }
   0x3   :  { %545 = dma.done.wait [#allocation2], 32 }
   0x4   :  { %546 = vsyncadd [#allocation2], 4294967264 }
   0x5   :  { %18 = sfence }
   0x6   :  { %19 = vsyncpa [#allocation6], 0 }
   0x7   :  { %21 = vsyncpa [#allocation6 + $0x1], 0  ;;  %s600_s21 = smov 0   ;;  %s602_s22 = smov 0  }
   0x8   :  { %s604_s23 = smov 0   ;;  %s606_s0 = smov 0  }
   0x9 LB: > { %s621_s3 = sadd.s32 4294967295, %s565_s0   ;;  %s420_s24 = sadd.s32 4294967294, %s565_s0   ;;  %s565_s0 = sphi %s606_s0, %s808_s0   ;;  %s561_s23 = sphi %s604_s23, %s807_s23   ;;  %s557_s22 = sphi %s602_s22, %s806_s22   ;;  %s553_s21 = sphi %s600_s21, %s805_s21  }
   0xa   : > { %s625_s25 = sadd.s32 1, %s565_s0   ;;  %s102_s26 = sadd.s32 1, %s561_s23 }
   0xb   : > { %s99_s27 = ssub.s32 %s565_s0, %s625_s25  ;;  %p112_p0 = scmp.ne.s32.totalorder %s561_s23, %s557_s22 }
   0xc   : > { %p100_p1 = scmp.eq.s32.totalorder %s99_s27, 0  ;;  %p113_p2 = scmp.eq.s32.totalorder %s621_s3, 1 }
   0xd   : > { %p118_p3 = scmp.ne.s32.totalorder %s557_s22, %s553_s21  ;;  %p119_p4 = scmp.eq.s32.totalorder %s420_s24, 1 }
   0xe   : > { %s636_s28 = scalar_select %p100_p1, %s561_s23, %s102_s26  }
   0xf   : > { %p638_p5 = por %p113_p2, %p112_p0  ;;  %p642_p6 = por %p119_p4, %p118_p3 }
  0x10   : > { %p423_p7 = scmp.ge.s32.totalorder %s565_s0, 1  ;;  %p151_p8 = scmp.lt.s32.totalorder %s565_s0, 3 }
  0x12   : > { %p152_p9 = pnand %p423_p7, %p151_p8 }
  0x13   : > { %p174_p10 = scmp.lt.s32.totalorder (!%p152_p9), %s621_s3, 1  ;;  %s434_s17 = sshll.u32 (!%p152_p9), %s621_s3, 7 }
  0x14   : > { %155 = sbr.rel (%p152_p9) target bundleno = 397 (0x18d), region = 32  ;;  %s319_s18 = sadd.s32 (!%p152_p9), 2, %s434_s17 }
  0x15   : > { %s320_s19 = sld [smem:[#allocation3 + %s319_s18]] (!%p152_p9)  ;;  %s296_s24 = sadd.s32 (!%p152_p9), 1, %s434_s17 }
  0x16   : > { %s273_s20 = sld [smem:[#allocation3 + %s434_s17]] (!%p152_p9)  ;;  %s361_s10 = scalar_lea.hbm (!%p152_p9), %s799_s4, %s621_s3 }
  0x17   : > { %s297_s26 = sld [smem:[#allocation3 + %s296_s24]] (!%p152_p9)  ;;  %s365_s13 = sshll.u32 (!%p152_p9), %s361_s10, 4  ;;  %s366_s13 = int_to_ptr.hbm [resolvable:$true] %s365_s13 }
  0x18   : > { %s521_s18 = scalar_lea.hbm (!%p152_p9), %s799_s4, 2 }
  0x19   : > { %v195_v1 = vld [vmem:[%s798_s2 + $0x70] sm:$0xff]  ;;  %v196_v2 = vld [vmem:[%s798_s2 + $0x78] sm:$0xff]  ;;  %v193_v6 = vld [vmem:[%s798_s2 + $0x60] sm:$0xff]  ;;  %s175_s15 = scalar_select %p174_p10, %s621_s3, 1  ;;  %v568_v55 = vmov 0   ;;  %v267_v56 = vlaneseq  ;;  %vm279_vm4 = vcmask 7168  }
  0x1a   : > { %v211_v3 = vld [vmem:[%s798_s2 + $0xf0] sm:$0xff]  ;;  %v220_v4 = vpack.c.bf16 %v196_v2, %v195_v1  ;;  %v212_v5 = vld [vmem:[%s798_s2 + $0xf8] sm:$0xff]  ;;  %v194_v7 = vld [vmem:[%s798_s2 + $0x68] sm:$0xff]  ;;  %487 = vset.pattern.permute.xlu1 %v568_v55  ;;  %488 = vset.pattern.permute.xlu0 %v568_v55  ;;  %vm350_vm10 = vcmask 16384  }
  0x1b   : > { %v228_v8 = vpack.c.bf16 %v212_v5, %v211_v3  ;;  %v209_v9 = vld [vmem:[%s798_s2 + $0xe0] sm:$0xff]  ;;  %v210_v10 = vld [vmem:[%s798_s2 + $0xe8] sm:$0xff]  ;;  %v219_v11 = vpack.c.bf16 %v194_v7, %v193_v6  ;;  %v191_v13 = vld [vmem:[%s798_s2 + $0x50] sm:$0xff]  ;;  %s437_s5 = sshll.u32 %s175_s15, 4  ;;  %v268_v59 = vshrl.u32 %v267_v56, 7  ;;  %v321_v60 = vstv %s320_s19  ;;  %s515_s15 = sshra.s32 %s366_s13, 4  ;;  %s516_s15 = int_to_ptr.hbm [resolvable:$true] %s515_s15 }
  0x1c   : > { %239 = vmatpush.bf16.msra.mxu0 %v220_v4  ;;  %v227_v12 = vpack.c.bf16 %v210_v10, %v209_v9  ;;  %v192_v14 = vld [vmem:[%s798_s2 + $0x58] sm:$0xff]  ;;  %v207_v15 = vld [vmem:[%s798_s2 + $0xd0] sm:$0xff]  ;;  %v189_v19 = vld [vmem:[%s798_s2 + $0x40] sm:$0xff]  ;;  %s178_s12 = scalar_lea.vmem %s797_s1, %s437_s5  ;;  %v274_v61 = vstv %s273_s20  ;;  %s172_s5 = sand.u32 1, %s557_s22  }
  0x1d   : > { %253 = vmatpush.bf16.msra.mxu1 %v228_v8  ;;  %v208_v16 = vld [vmem:[%s798_s2 + $0xd8] sm:$0xff]  ;;  %v218_v17 = vpack.c.bf16 %v192_v14, %v191_v13  ;;  %v190_v20 = vld [vmem:[%s798_s2 + $0x48] sm:$0xff]  ;;  %v205_v21 = vld [vmem:[%s798_s2 + $0xc0] sm:$0xff]  ;;  %v269_v62 = vadd.s32 8, %v268_v59  ;;  %vm322_vm0 = vcmp.eq.s32.totalorder %v268_v59, %v321_v60  ;;  %vm751_vm1 = vcmp.eq.s32.totalorder %v268_v59, %v274_v61  ;;  %s173_s11 = scalar_lea.vmem [#allocation5], %s172_s5  ;;  %s353_s14 = scalar_lea.sflag [#allocation6], %s172_s5 }
  0x1e   : > { %v226_v18 = vpack.c.bf16 %v208_v16, %v207_v15  ;;  %v206_v22 = vld [vmem:[%s798_s2 + $0xc8] sm:$0xff]  ;;  %v217_v23 = vpack.c.bf16 %v190_v20, %v189_v19  ;;  %v187_v25 = vld [vmem:[%s798_s2 + $0x30] sm:$0xff]  ;;  %v188_v26 = vld [vmem:[%s798_s2 + $0x38] sm:$0xff]  ;;  %v298_v6 = vstv %s297_s26  ;;  %s517_s3 = scalar_lea.hbm %s516_s15, 1  ;;  %p522_p0 = scmp.lt.s32.totalorder %s516_s15, %s799_s4 }
  0x1f   : > { %v225_v24 = vpack.c.bf16 %v206_v22, %v205_v21  ;;  %v203_v27 = vld [vmem:[%s798_s2 + $0xb0] sm:$0xff]  ;;  %v204_v28 = vld [vmem:[%s798_s2 + $0xb8] sm:$0xff]  ;;  %v216_v29 = vpack.c.bf16 %v188_v26, %v187_v25  ;;  %v185_v31 = vld [vmem:[%s798_s2 + $0x20] sm:$0xff]  ;;  %vm323_vm2 = vcmp.eq.s32.totalorder %v269_v62, %v321_v60  ;;  %vm276_vm3 = vcmp.eq.s32.totalorder %v269_v62, %v274_v61  ;;  %p518_p11 = scmp.ne.s32.totalorder %s516_s15, %s517_s3  ;;  %p523_p1 = scmp.lt.s32.totalorder %s521_s18, %s517_s3 }
  0x20   : > { %240 = vmatpush.bf16.msra.mxu0 %v219_v11  ;;  %v224_v30 = vpack.c.bf16 %v204_v28, %v203_v27  ;;  %v186_v32 = vld [vmem:[%s798_s2 + $0x28] sm:$0xff]  ;;  %v201_v33 = vld [vmem:[%s798_s2 + $0xa0] sm:$0xff]  ;;  %v183_v37 = vld [vmem:[%s798_s2 + $0x10] sm:$0xff]  ;;  %vm300_vm5 = vcmp.eq.s32.totalorder %v269_v62, %v298_v6  ;;  %vm299_vm6 = vcmp.eq.s32.totalorder %v268_v59, %v298_v6 }
  0x21   : > { %254 = vmatpush.bf16.msra.mxu1 %v227_v12  ;;  %v202_v34 = vld [vmem:[%s798_s2 + $0xa8] sm:$0xff]  ;;  %v215_v35 = vpack.c.bf16 %v186_v32, %v185_v31  ;;  %v184_v38 = vld [vmem:[%s798_s2 + $0x18] sm:$0xff]  ;;  %v199_v39 = vld [vmem:[%s798_s2 + $0x90] sm:$0xff]  ;;  %p519_p12 = pnand %p518_p11, %p638_p5  ;;  %p524_p2 = por %p523_p1, %p522_p0 }
  0x22   : > { %v223_v36 = vpack.c.bf16 %v202_v34, %v201_v33  ;;  %v200_v40 = vld [vmem:[%s798_s2 + $0x98] sm:$0xff]  ;;  %v214_v41 = vpack.c.bf16 %v184_v38, %v183_v37  ;;  %v181_v43 = vld [vmem:[%s798_s2] sm:$0xff]  ;;  %v182_v44 = vld [vmem:[%s798_s2 + $0x8] sm:$0xff] }
  0x23   : > { %v222_v42 = vpack.c.bf16 %v200_v40, %v199_v39  ;;  %v197_v45 = vld [vmem:[%s798_s2 + $0x80] sm:$0xff]  ;;  %v198_v46 = vld [vmem:[%s798_s2 + $0x88] sm:$0xff]  ;;  %v213_v47 = vpack.c.bf16 %v182_v44, %v181_v43  ;;  %p520_p13 = pneg %p519_p12 }
  0x24   : > { %241 = vmatpush.bf16.msra.mxu0 %v218_v17  ;;  %v428_v48 = vld [vmem:[%s178_s12] sm:$0xf]  ;;  %v439_v49 = vld [vmem:[%s178_s12 + $0x4] sm:$0xf0]  ;;  %v221_v50 = vpack.c.bf16 %v198_v46, %v197_v45  ;;  %v438_v51 = vld [vmem:[%s178_s12 + $0x4] sm:$0xf] }
  0x25   : > { %255 = vmatpush.bf16.msra.mxu1 %v226_v18  ;;  %v430_v52 = vld [vmem:[%s178_s12 + $0x8] sm:$0xf0]  ;;  %v429_v53 = vor.u32 %v439_v49, %v428_v48  ;;  %v342_v20 = vld [vmem:[#allocation4] sm:$0x1]  ;;  %s363_s12 = sshll.u32 %s173_s11, 4  ;;  %p525_p3 = pnand %p524_p2, %p520_p13  ;;  %s364_s12 = int_to_ptr.vmem [resolvable:$true] %s363_s12 }
  0x26   : > { %v433_v54 = vor.u32 %v438_v51, %v430_v52 }
  0x28   : > { %242 = vmatpush.bf16.msra.mxu0 %v217_v23 }
  0x29   : > { %256 = vmatpush.bf16.msra.mxu1 %v225_v24 }
  0x2c   : > { %243 = vmatpush.bf16.msra.mxu0 %v216_v29 }
  0x2d   : > { %257 = vmatpush.bf16.msra.mxu1 %v224_v30 }
  0x30   : > { %244 = vmatpush.bf16.msra.mxu0 %v215_v35 }
  0x31   : > { %258 = vmatpush.bf16.msra.mxu1 %v223_v36 }
  0x34   : > { %245 = vmatpush.bf16.msra.mxu0 %v214_v41 }
  0x35   : > { %259 = vmatpush.bf16.msra.mxu1 %v222_v42  ;;  %v271_v42 = vand.u32 127, %v267_v56 }
  0x37   : > { %vm292_vm7 = vcmp.eq.s32.totalorder %v271_v42, 0  ;;  %vm315_vm8 = vcmp.eq.s32.totalorder %v271_v42, 1  ;;  %vm338_vm9 = vcmp.eq.s32.totalorder %v271_v42, 2 }
  0x38   : > { %246 = vmatpush.bf16.msra.mxu0 %v213_v47 }
  0x39   : > { %260 = vmatpush.bf16.msra.mxu1 %v221_v50 }
  0x3b   : > { %247 = vmatmul.bf16.vlgmr.msra.gmra.mxu0 %v429_v53 }
  0x3c   : > { %261 = vmatmul.bf16.vlgmr.msra.gmra.mxu1 %v433_v54 }
  0xb8   : > { %v248_v57 = vpop.f32.mrf.mxu0 }
  0xb9   : > { %v262_v58 = vpop.f32.mrf.mxu1 }
  0xba   : > { %v263_v63 = vadd.f32 %v262_v58, %v248_v57 }
  0xbc   : > { %v324_v4 = vsel %vm322_vm0, %v263_v63, 0.0  ;;  %v277_v5 = vsel %vm751_vm1, %v263_v63, 0.0  ;;  %v301_v16 = vsel %vm299_vm6, %v263_v63, 0.0 }
  0xbd   : > { %v326_v9 = vsel %vm279_vm4, %v324_v4, 0.0  ;;  %v280_v11 = vsel %vm279_vm4, %v277_v5, 0.0  ;;  %v303_v18 = vsel %vm279_vm4, %v301_v16, 0.0 }
  0xc0   : > { %v250_v1 = vpop.f32.mrf.mxu0 }
  0xc1   : > { %v264_v2 = vpop.f32.mrf.mxu1 }
  0xc2   : > { %v265_v3 = vadd.f32 %v264_v2, %v250_v1 }
  0xc4   : > { %v325_v7 = vsel %vm323_vm2, %v265_v3, 0.0  ;;  %v278_v8 = vsel %vm276_vm3, %v265_v3, 0.0  ;;  %v302_v15 = vsel %vm300_vm5, %v265_v3, 0.0 }
  0xc5   : > { %v327_v10 = vsel %vm279_vm4, %v325_v7, 0.0  ;;  %v281_v12 = vsel %vm279_vm4, %v278_v8, 0.0  ;;  %v304_v17 = vsel %vm279_vm4, %v302_v15, 0.0 }
  0xc6   : > { %v328_v13 = vadd.f32 %v327_v10, %v326_v9  ;;  %v282_v14 = vadd.f32 %v281_v12, %v280_v11  ;;  %v305_v19 = vadd.f32 %v304_v17, %v303_v18 }
  0xc8   : > { %329 = vadd.xlane.f32.xlu1 %v328_v13  ;;  %283 = vadd.xlane.f32.xlu0 %v282_v14 }
  0xd0   : > { %306 = vadd.xlane.f32.xlu0 %v305_v19 }
  0xe1   : > { %345 = vperm.xlu1 %487, %v342_v20  }
 0x13b   : > { %v330_v21 = vpop.xlane.xlu1 %329  ;;  %v284_v22 = vpop.xlane.xlu0 %283 }
 0x13c   : > { %v331_v23 = vrot.slane %v330_v21, 4  ;;  %v285_v24 = vrot.slane %v284_v22, 4 }
 0x13e   : > { %v286_v25 = vadd.f32 %v285_v24, %v284_v22  ;;  %v332_v26 = vadd.f32 %v331_v23, %v330_v21 }
 0x140   : > { %v287_v27 = vrot.slane %v286_v25, 2  ;;  %v333_v29 = vrot.slane %v332_v26, 2 }
 0x142   : > { %v288_v28 = vadd.f32 %v287_v27, %v286_v25  ;;  %v334_v35 = vadd.f32 %v333_v29, %v332_v26 }
 0x143   : > { %v307_v30 = vpop.xlane.xlu0 %306 }
 0x144   : > { %v308_v31 = vrot.slane %v307_v30, 4  ;;  %v289_v32 = vrot.slane %v288_v28, 1  ;;  %v335_v38 = vrot.slane %v334_v35, 1 }
 0x146   : > { %v309_v33 = vadd.f32 %v308_v31, %v307_v30  ;;  %v290_v34 = vadd.f32 %v289_v32, %v288_v28  ;;  %v336_v41 = vadd.f32 %v335_v38, %v334_v35 }
 0x148   : > { %v310_v36 = vrot.slane %v309_v33, 2  ;;  %440 = vpush %v290_v34 }
 0x14a   : > { %v311_v37 = vadd.f32 %v310_v36, %v309_v33 }
 0x14c   : > { %v312_v39 = vrot.slane %v311_v37, 1 }
 0x14e   : > { %v313_v40 = vadd.f32 %v312_v39, %v311_v37 }
 0x150   : > { %442 = vpush %v313_v40 }
 0x151   : > { %444 = vpush %v336_v41 }
 0x153   : > { %v346_v44 = vpop.permute.xlu1 %345 }
 0x154   : > { %v348_v50 = vperm.slane %v346_v44, 0 }
 0x179   : > { %s441_s27 = spop %440 }
 0x17a   : > { %v293_v43 = vstv %s441_s27 }
 0x17b   : > { %v294_v46 = vsel %vm292_vm7, %v293_v43, 0.0 }
 0x181   : > { %s443_s6 = spop %442 }
 0x182   : > { %v316_v45 = vstv %s443_s6  ;;  %s445_s7 = spop %444 }
 0x183   : > { %v317_v47 = vsel %vm315_vm8, %v316_v45, 0.0  ;;  %v339_v48 = vstv %s445_s7 }
 0x184   : > { %v318_v49 = vadd.f32 %v317_v47, %v294_v46  ;;  %v340_v51 = vsel %vm338_vm9, %v339_v48, 0.0 }
 0x186   : > { %v341_v52 = vadd.f32 %v340_v51, %v318_v49 }
 0x188   : > { %v349_v53 = vadd.f32 %v348_v50, %v341_v52 }
 0x18a   : > { %351 = vst.msk [vmem:[%s173_s11] sm:$0x1] %vm350_vm10, %v349_v53 }
 0x18b   : > { %528 = shalt.err (!%p525_p3)
}
 0x18c   : > { %446 = dma.vmem_to_hbm [thread:$0]  (%p638_p5), %s364_s12, 16, %s366_s13, %s353_s14  }
 0x18d PF: > { %p452_p4 = scmp.ge.s32.totalorder %s565_s0, 2  ;;  %s377_s24 = sand.u32 1, %s553_s21  }
 0x18e   : > { %s378_s26 = scalar_lea.sflag [#allocation6], %s377_s24 }
 0x18f   : > { %p449_p7 = pnand %p452_p4, %p642_p6 }
 0x191   : > { %p450_p8 = pneg %p449_p7 }
 0x193   : > { %548 = dma.done.wait (%p450_p8), %s378_s26, 16  }
 0x194   : > { %550 = vsyncadd (%p450_p8), %s378_s26, 4294967280  ;;  %p24_p9 = scmp.ge.s32.totalorder %s625_s25, 4   ;;  %s805_s21 = smov %s557_s22 }
 0x195   : > { %s806_s22 = smov %s561_s23  ;;  %s807_s23 = smov %s636_s28 }
 0x196   : > { %s808_s0 = smov %s625_s25  ;;  %26 = sbr.rel (!%p24_p9) target bundleno = 9 (0x9), region = 67 }
 0x19b   :  { %383 = vsyncpa [#allocation6], 1 }
 0x19c   :  { %385 = vsyncpa [#allocation6 + $0x1], 1 }

// kernel: label_mask_model_forward.25
= control target key start
LH: loop header
LB: loop body
LE: loop exit
PB: predicated region body
PF: predicated region fallthrough
CT: control target
= control target key end

     0   :  { %s848_s0 = inlined_call_operand.vmem [shape: bf16[32,256], index: 0, kind: input, shape index: {}]   ;;  %s849_s1 = inlined_call_operand.vmem [shape: bf16[256,256], index: 1, kind: input, shape index: {}]   ;;  %s850_s2 = inlined_call_operand.vmem [shape: f32[1,256], index: 2, kind: input, shape index: {}]   ;;  %s851_s3 = inlined_call_operand.hbm [shape: bf16[32,256], index: 3, kind: output, shape index: {}]  }
   0x1   :  { %v468_v0 = vld [vmem:[%s849_s1 + $0x70] sm:$0xf]  ;;  %v557_v1 = vld [vmem:[%s849_s1 + $0x74] sm:$0xf0]  ;;  %v556_v5 = vld [vmem:[%s849_s1 + $0x74] sm:$0xf] }
   0x2   :  { %v532_v2 = vld [vmem:[%s849_s1 + $0xf0] sm:$0xf]  ;;  %v469_v3 = vor.u32 %v557_v1, %v468_v0  ;;  %v573_v4 = vld [vmem:[%s849_s1 + $0xf4] sm:$0xf0]  ;;  %v470_v6 = vld [vmem:[%s849_s1 + $0x78] sm:$0xf0] }
   0x3   :  { %v533_v7 = vor.u32 %v573_v4, %v532_v2  ;;  %v473_v8 = vor.u32 %v556_v5, %v470_v6  ;;  %v572_v9 = vld [vmem:[%s849_s1 + $0xf4] sm:$0xf]  ;;  %v534_v10 = vld [vmem:[%s849_s1 + $0xf8] sm:$0xf0]  ;;  %v460_v11 = vld [vmem:[%s849_s1 + $0x60] sm:$0xf] }
   0x4   :  { %251 = vmatpush.bf16.msra.mxu0 %v469_v3  ;;  %v537_v12 = vor.u32 %v572_v9, %v534_v10  ;;  %v555_v13 = vld [vmem:[%s849_s1 + $0x64] sm:$0xf0]  ;;  %v524_v14 = vld [vmem:[%s849_s1 + $0xe0] sm:$0xf]  ;;  %v554_v18 = vld [vmem:[%s849_s1 + $0x64] sm:$0xf] }
   0x5   :  { %v571_v15 = vld [vmem:[%s849_s1 + $0xe4] sm:$0xf0]  ;;  %270 = vmatpush.bf16.msra.mxu1 %v533_v7  ;;  %289 = vmatpush.bf16.msra.mxu2 %v473_v8  ;;  %v461_v16 = vor.u32 %v555_v13, %v460_v11  ;;  %v462_v19 = vld [vmem:[%s849_s1 + $0x68] sm:$0xf0]  ;;  %v570_v20 = vld [vmem:[%s849_s1 + $0xe4] sm:$0xf] }
   0x6   :  { %v525_v17 = vor.u32 %v571_v15, %v524_v14  ;;  %308 = vmatpush.bf16.msra.mxu3 %v537_v12  ;;  %v465_v21 = vor.u32 %v554_v18, %v462_v19  ;;  %v526_v22 = vld [vmem:[%s849_s1 + $0xe8] sm:$0xf0]  ;;  %v452_v23 = vld [vmem:[%s849_s1 + $0x50] sm:$0xf]  ;;  %v553_v24 = vld [vmem:[%s849_s1 + $0x54] sm:$0xf0] }
   0x7   :  { %v529_v25 = vor.u32 %v570_v20, %v526_v22  ;;  %v516_v26 = vld [vmem:[%s849_s1 + $0xd0] sm:$0xf]  ;;  %v569_v27 = vld [vmem:[%s849_s1 + $0xd4] sm:$0xf0]  ;;  %v552_v28 = vld [vmem:[%s849_s1 + $0x54] sm:$0xf]  ;;  %v453_v29 = vor.u32 %v553_v24, %v452_v23 }
   0x8   :  { %252 = vmatpush.bf16.msra.mxu0 %v461_v16  ;;  %v454_v30 = vld [vmem:[%s849_s1 + $0x58] sm:$0xf0]  ;;  %v568_v31 = vld [vmem:[%s849_s1 + $0xd4] sm:$0xf]  ;;  %v517_v33 = vor.u32 %v569_v27, %v516_v26  ;;  %v444_v35 = vld [vmem:[%s849_s1 + $0x40] sm:$0xf] }
   0x9   :  { %v518_v32 = vld [vmem:[%s849_s1 + $0xd8] sm:$0xf0]  ;;  %271 = vmatpush.bf16.msra.mxu1 %v525_v17  ;;  %290 = vmatpush.bf16.msra.mxu2 %v465_v21  ;;  %v457_v34 = vor.u32 %v552_v28, %v454_v30  ;;  %v551_v36 = vld [vmem:[%s849_s1 + $0x44] sm:$0xf0]  ;;  %v508_v37 = vld [vmem:[%s849_s1 + $0xc0] sm:$0xf] }
   0xa   :  { %309 = vmatpush.bf16.msra.mxu3 %v529_v25  ;;  %v521_v38 = vor.u32 %v568_v31, %v518_v32  ;;  %v567_v39 = vld [vmem:[%s849_s1 + $0xc4] sm:$0xf0]  ;;  %v550_v40 = vld [vmem:[%s849_s1 + $0x44] sm:$0xf]  ;;  %v446_v41 = vld [vmem:[%s849_s1 + $0x48] sm:$0xf0]  ;;  %v445_v44 = vor.u32 %v551_v36, %v444_v35 }
   0xb   :  { %v566_v42 = vld [vmem:[%s849_s1 + $0xc4] sm:$0xf]  ;;  %v510_v43 = vld [vmem:[%s849_s1 + $0xc8] sm:$0xf0]  ;;  %v509_v45 = vor.u32 %v567_v39, %v508_v37  ;;  %v449_v46 = vor.u32 %v550_v40, %v446_v41  ;;  %v436_v47 = vld [vmem:[%s849_s1 + $0x30] sm:$0xf] }
   0xc   :  { %253 = vmatpush.bf16.msra.mxu0 %v453_v29  ;;  %v549_v48 = vld [vmem:[%s849_s1 + $0x34] sm:$0xf0]  ;;  %v500_v49 = vld [vmem:[%s849_s1 + $0xb0] sm:$0xf]  ;;  %v513_v50 = vor.u32 %v566_v42, %v510_v43  ;;  %v548_v52 = vld [vmem:[%s849_s1 + $0x34] sm:$0xf] }
   0xd   :  { %272 = vmatpush.bf16.msra.mxu1 %v517_v33  ;;  %291 = vmatpush.bf16.msra.mxu2 %v457_v34  ;;  %v565_v51 = vld [vmem:[%s849_s1 + $0xb4] sm:$0xf0]  ;;  %v438_v53 = vld [vmem:[%s849_s1 + $0x38] sm:$0xf0]  ;;  %v564_v54 = vld [vmem:[%s849_s1 + $0xb4] sm:$0xf]  ;;  %v437_v56 = vor.u32 %v549_v48, %v436_v47 }
   0xe   :  { %310 = vmatpush.bf16.msra.mxu3 %v521_v38  ;;  %v502_v55 = vld [vmem:[%s849_s1 + $0xb8] sm:$0xf0]  ;;  %v501_v57 = vor.u32 %v565_v51, %v500_v49  ;;  %v441_v58 = vor.u32 %v548_v52, %v438_v53  ;;  %v428_v59 = vld [vmem:[%s849_s1 + $0x20] sm:$0xf]  ;;  %v547_v60 = vld [vmem:[%s849_s1 + $0x24] sm:$0xf0] }
   0xf   :  { %v492_v61 = vld [vmem:[%s849_s1 + $0xa0] sm:$0xf]  ;;  %v505_v62 = vor.u32 %v564_v54, %v502_v55  ;;  %v563_v63 = vld [vmem:[%s849_s1 + $0xa4] sm:$0xf0]  ;;  %v546_v0 = vld [vmem:[%s849_s1 + $0x24] sm:$0xf]  ;;  %v429_v4 = vor.u32 %v547_v60, %v428_v59 }
  0x10   :  { %254 = vmatpush.bf16.msra.mxu0 %v445_v44  ;;  %v430_v1 = vld [vmem:[%s849_s1 + $0x28] sm:$0xf0]  ;;  %v562_v2 = vld [vmem:[%s849_s1 + $0xa4] sm:$0xf]  ;;  %v493_v5 = vor.u32 %v563_v63, %v492_v61  ;;  %v420_v7 = vld [vmem:[%s849_s1 + $0x10] sm:$0xf] }
  0x11   :  { %273 = vmatpush.bf16.msra.mxu1 %v509_v45  ;;  %292 = vmatpush.bf16.msra.mxu2 %v449_v46  ;;  %v494_v3 = vld [vmem:[%s849_s1 + $0xa8] sm:$0xf0]  ;;  %v433_v6 = vor.u32 %v546_v0, %v430_v1  ;;  %v545_v8 = vld [vmem:[%s849_s1 + $0x14] sm:$0xf0]  ;;  %v484_v9 = vld [vmem:[%s849_s1 + $0x90] sm:$0xf] }
  0x12   :  { %311 = vmatpush.bf16.msra.mxu3 %v513_v50  ;;  %v497_v10 = vor.u32 %v562_v2, %v494_v3  ;;  %v561_v11 = vld [vmem:[%s849_s1 + $0x94] sm:$0xf0]  ;;  %v544_v12 = vld [vmem:[%s849_s1 + $0x14] sm:$0xf]  ;;  %v422_v13 = vld [vmem:[%s849_s1 + $0x18] sm:$0xf0]  ;;  %v421_v16 = vor.u32 %v545_v8, %v420_v7 }
  0x13   :  { %v560_v14 = vld [vmem:[%s849_s1 + $0x94] sm:$0xf]  ;;  %v486_v15 = vld [vmem:[%s849_s1 + $0x98] sm:$0xf0]  ;;  %v412_v17 = vld [vmem:[%s849_s1] sm:$0xf]  ;;  %v485_v18 = vor.u32 %v561_v11, %v484_v9  ;;  %v425_v19 = vor.u32 %v544_v12, %v422_v13 }
  0x14   :  { %255 = vmatpush.bf16.msra.mxu0 %v437_v56  ;;  %v543_v20 = vld [vmem:[%s849_s1 + $0x4] sm:$0xf0]  ;;  %v476_v21 = vld [vmem:[%s849_s1 + $0x80] sm:$0xf] }
  0x15   :  { %274 = vmatpush.bf16.msra.mxu1 %v501_v57  ;;  %293 = vmatpush.bf16.msra.mxu2 %v441_v58 }
  0x16   :  { %312 = vmatpush.bf16.msra.mxu3 %v505_v62 }
  0x18   :  { %256 = vmatpush.bf16.msra.mxu0 %v429_v4 }
  0x19   :  { %275 = vmatpush.bf16.msra.mxu1 %v493_v5  ;;  %294 = vmatpush.bf16.msra.mxu2 %v433_v6 }
  0x1a   :  { %8 = vsyncpa [#allocation4], 0  ;;  %313 = vmatpush.bf16.msra.mxu3 %v497_v10  ;;  %v489_v22 = vor.u32 %v560_v14, %v486_v15  ;;  %v559_v23 = vld [vmem:[%s849_s1 + $0x84] sm:$0xf0]  ;;  %v542_v24 = vld [vmem:[%s849_s1 + $0x4] sm:$0xf]  ;;  %v413_v28 = vor.u32 %v543_v20, %v412_v17 }
  0x1b   :  { %v414_v25 = vld [vmem:[%s849_s1 + $0x8] sm:$0xf0]  ;;  %v558_v26 = vld [vmem:[%s849_s1 + $0x84] sm:$0xf]  ;;  %v396_v29 = vld [vmem:[%s848_s0] sm:$0xf]  ;;  %v477_v31 = vor.u32 %v559_v23, %v476_v21 }
  0x1c   :  { %v478_v27 = vld [vmem:[%s849_s1 + $0x88] sm:$0xf0]  ;;  %257 = vmatpush.bf16.msra.mxu0 %v421_v16  ;;  %v539_v30 = vld [vmem:[%s848_s0 + $0x4] sm:$0xf0]  ;;  %v417_v32 = vor.u32 %v542_v24, %v414_v25  ;;  %v538_v33 = vld [vmem:[%s848_s0 + $0x4] sm:$0xf] }
  0x1d   :  { %276 = vmatpush.bf16.msra.mxu1 %v485_v18  ;;  %295 = vmatpush.bf16.msra.mxu2 %v425_v19  ;;  %v398_v34 = vld [vmem:[%s848_s0 + $0x8] sm:$0xf0]  ;;  %v481_v35 = vor.u32 %v558_v26, %v478_v27  ;;  %v397_v36 = vor.u32 %v539_v30, %v396_v29  ;;  %v404_v38 = vld [vmem:[%s848_s0 + $0x10] sm:$0xf]  ;;  %v541_v39 = vld [vmem:[%s848_s0 + $0x14] sm:$0xf0] }
  0x1e   :  { %314 = vmatpush.bf16.msra.mxu3 %v489_v22  ;;  %v401_v37 = vor.u32 %v538_v33, %v398_v34  ;;  %v540_v40 = vld [vmem:[%s848_s0 + $0x14] sm:$0xf]  ;;  %v406_v41 = vld [vmem:[%s848_s0 + $0x18] sm:$0xf0]  ;;  %v405_v42 = vor.u32 %v541_v39, %v404_v38  ;;  %v354_v46 = vld [vmem:[%s850_s2] sm:$0x3] }
  0x1f   :  { %v409_v43 = vor.u32 %v540_v40, %v406_v41  ;;  %v356_v48 = vperm.slane %v354_v46, 0  ;;  %v357_v50 = vperm.slane %v354_v46, 1  ;;  %s603_s0 = smov [#allocation3]   ;;  %s382_s24 = sshll.u32 %s851_s3, 4  ;;  %s383_s24 = int_to_ptr.hbm [resolvable:$true] %s382_s24 }
  0x20   :  { %258 = vmatpush.bf16.msra.mxu0 %v413_v28  ;;  %s380_s2 = sshll.u32 %s603_s0, 4  ;;  %s604_s25 = smov 128   ;;  %s381_s2 = int_to_ptr.vmem [resolvable:$true] %s380_s2 }
  0x21   :  { %277 = vmatpush.bf16.msra.mxu1 %v477_v31  ;;  %296 = vmatpush.bf16.msra.mxu2 %v417_v32  ;;  %s605_s26 = smov 8  }
  0x22   :  { %315 = vmatpush.bf16.msra.mxu3 %v481_v35 }
  0x23   :  { %259 = vmatmul.bf16.vlgmr.msra.gmra.mxu0 %v397_v36 }
  0x24   :  { %278 = vmatmul.bf16.vlgmr.msra.gmra.mxu1 %v401_v37  ;;  %297 = vmatmul.bf16.vlgmr.msra.gmra.mxu2 %v397_v36 }
  0x25   :  { %316 = vmatmul.bf16.vlgmr.msra.gmra.mxu3 %v401_v37 }
  0x33   :  { %264 = vmatmul.bf16.gmra.mxu0 %v405_v42 }
  0x34   :  { %283 = vmatmul.bf16.gmra.mxu1 %v409_v43  ;;  %302 = vmatmul.bf16.gmra.mxu2 %v405_v42 }
  0x35   :  { %321 = vmatmul.bf16.gmra.mxu3 %v409_v43 }
  0xa0   :  { %v260_v44 = vpop.f32.mrf.mxu0 }
  0xa1   :  { %v279_v45 = vpop.f32.mrf.mxu1 }
  0xa2   :  { %v280_v47 = vadd.f32 %v279_v45, %v260_v44 }
  0xa4   :  { %v360_v53 = vadd.f32 %v356_v48, %v280_v47 }
  0xa7   :  { %v298_v49 = vpop.f32.mrf.mxu2 }
  0xa8   :  { %v317_v51 = vpop.f32.mrf.mxu3  ;;  %v262_v52 = vpop.f32.mrf.mxu0 }
  0xa9   :  { %v318_v54 = vadd.f32 %v317_v51, %v298_v49  ;;  %v281_v55 = vpop.f32.mrf.mxu1 }
  0xaa   :  { %v282_v58 = vadd.f32 %v281_v55, %v262_v52 }
  0xab   :  { %v361_v56 = vadd.f32 %v357_v50, %v318_v54 }
  0xac   :  { %v362_v0 = vadd.f32 %v356_v48, %v282_v58 }
  0xad   :  { %v368_v57 = vpack.c.bf16 %v361_v56, %v360_v53 }
  0xaf   :  { %372 = vst [vmem:[#allocation3] sm:$0xff] %v368_v57  ;;  %v300_v59 = vpop.f32.mrf.mxu2 }
  0xb0   :  { %v319_v60 = vpop.f32.mrf.mxu3  ;;  %v265_v62 = vpop.f32.mrf.mxu0 }
  0xb1   :  { %v320_v61 = vadd.f32 %v319_v60, %v300_v59  ;;  %v284_v63 = vpop.f32.mrf.mxu1 }
  0xb2   :  { %v285_v3 = vadd.f32 %v284_v63, %v265_v62 }
  0xb3   :  { %v363_v1 = vadd.f32 %v357_v50, %v320_v61 }
  0xb4   :  { %v364_v6 = vadd.f32 %v356_v48, %v285_v3 }
  0xb5   :  { %v369_v2 = vpack.c.bf16 %v363_v1, %v362_v0 }
  0xb7   :  { %373 = vst [vmem:[#allocation3 + $0x8] sm:$0xff] %v369_v2  ;;  %v303_v4 = vpop.f32.mrf.mxu2 }
  0xb8   :  { %v322_v5 = vpop.f32.mrf.mxu3  ;;  %v267_v9 = vpop.f32.mrf.mxu0 }
  0xb9   :  { %v323_v7 = vadd.f32 %v322_v5, %v303_v4  ;;  %v286_v10 = vpop.f32.mrf.mxu1 }
  0xba   :  { %v287_v12 = vadd.f32 %v286_v10, %v267_v9 }
  0xbb   :  { %v365_v8 = vadd.f32 %v357_v50, %v323_v7 }
  0xbc   :  { %v366_v16 = vadd.f32 %v356_v48, %v287_v12 }
  0xbd   :  { %v370_v11 = vpack.c.bf16 %v365_v8, %v364_v6 }
  0xbf   :  { %374 = vst [vmem:[#allocation3 + $0x10] sm:$0xff] %v370_v11  ;;  %v305_v13 = vpop.f32.mrf.mxu2 }
  0xc0   :  { %v324_v14 = vpop.f32.mrf.mxu3 }
  0xc1   :  { %v325_v15 = vadd.f32 %v324_v14, %v305_v13 }
  0xc3   :  { %v367_v17 = vadd.f32 %v357_v50, %v325_v15 }
  0xc5   :  { %v371_v18 = vpack.c.bf16 %v367_v17, %v366_v16 }
  0xc7   :  { %375 = vst [vmem:[#allocation3 + $0x18] sm:$0xff] %v371_v18 }
  0xc8   :  { %388 = dma.vmem_to_hbm [thread:$0]  %s381_s2, 512, %s383_s24, [#allocation4], %s604_s25, %s604_s25, %s605_s26  }
  0xc9   :  { %601 = dma.done.wait [#allocation4], 512  }
  0xca   :  { %602 = vsyncadd [#allocation4], 4294966784 }
  0xcb   :  { %393 = vsyncpa [#allocation4], 1 }

</bundles_post_ra>
